<compile_context>
chip_gen: v5e
topology: v5e:2x2
jax: 0.10.0
libtpu: 0.0.40
codegen_flags: <defaults>
</compile_context>

<pallas_src>
import jax
import jax.numpy as jnp
from jax import lax
from jax.experimental import pallas as pl
from jax.experimental.pallas import tpu as pltpu

# Set True on v6e/v7x to feed the MXU bf16 operands (f32 accumulation kept).
# Halves patch/weight DMA bytes; loosen the final tolerance to ~1e-2.
USE_BF16_MXU = False

BN_EPS = 1e-5


# ------------------------- fused per-layer kernel --------------------------- #

def _conv_bn_relu_kernel(p_ref, w_ref, gamma_ref, beta_ref, o_ref):
    """Fused conv-as-matmul + training-mode BatchNorm + ReLU (whole layer in VMEM).

    p_ref:     (M, K)     im2col patches
    w_ref:     (K, Cout)  conv weights (feature order kh, kw, Cin)
    gamma_ref: (1, Cout)  BN weight
    beta_ref:  (1, Cout)  BN bias
    o_ref:     (M, Cout)  output (flattened N*Ho*Wo, Cout)
    """
    conv = jnp.dot(p_ref[...], w_ref[...], preferred_element_type=jnp.float32)
    m_rows = conv.shape[0]                     # static trip count
    inv_m = 1.0 / m_rows
    # Training-mode batch statistics per channel (biased variance, two-pass).
    mean = jnp.sum(conv, axis=0, keepdims=True) * inv_m              # (1, Cout)
    centered = conv - mean
    var = jnp.sum(centered * centered, axis=0, keepdims=True) * inv_m
    scale = gamma_ref[...] * lax.rsqrt(var + BN_EPS)                 # EUP rsqrt
    o_ref[...] = jnp.maximum(centered * scale + beta_ref[...], 0.0)


def _fused_conv_bn_relu(patches, w_mat, gamma, beta):
    """patches [M,K] @ w_mat [K,Cout] -> BN(train) -> ReLU, single VMEM block."""
    M, K = patches.shape
    Cout = w_mat.shape[1]
    vmem = pl.BlockSpec(memory_space=pltpu.MemorySpace.VMEM)
    return pl.pallas_call(
        _conv_bn_relu_kernel,
        out_shape=jax.ShapeDtypeStruct((M, Cout), jnp.float32),
        in_specs=[vmem, vmem, vmem, vmem],
        out_specs=vmem,
    )(patches, w_mat, gamma.reshape(1, Cout), beta.reshape(1, Cout))


# ------------------------------ layer wrapper ------------------------------- #

def _im2col(x_nhwc, kh, kw, stride, padding):
    """Returns patches (N, Ho, Wo, kh*kw*Cin), feature order (kh, kw, Cin)."""
    N, H, W, Cin = x_nhwc.shape
    xp = jnp.pad(x_nhwc, ((0, 0), (padding, padding), (padding, padding), (0, 0)))
    Hp, Wp = H + 2 * padding, W + 2 * padding
    Ho = (Hp - kh) // stride + 1
    Wo = (Wp - kw) // stride + 1
    cols = []
    for i in range(kh):
        for j in range(kw):
            cols.append(xp[:, i:i + stride * (Ho - 1) + 1:stride,
                              j:j + stride * (Wo - 1) + 1:stride, :])
    return jnp.concatenate(cols, axis=-1), Ho, Wo


def conv_bn_relu_layer(x_nhwc, w, gamma, beta, stride, padding):
    """One Conv2d(no-bias, see BN cancellation) -> BatchNorm2d(train) -> ReLU.

    w: (Cout, Cin, kh, kw) PyTorch layout; gamma/beta: (Cout,)
    """
    N = x_nhwc.shape[0]
    Cout, Cin, kh, kw = w.shape
    patches, Ho, Wo = _im2col(x_nhwc, kh, kw, stride, padding)
    K = kh * kw * Cin
    P = patches.reshape(N * Ho * Wo, K)
    # reorder weights to (kh, kw, Cin, Cout) to match patch feature order
    Wmat = jnp.transpose(w, (2, 3, 1, 0)).reshape(K, Cout)

    in_dtype = jnp.bfloat16 if USE_BF16_MXU else jnp.float32
    out = _fused_conv_bn_relu(P.astype(in_dtype), Wmat.astype(in_dtype),
                              gamma, beta)
    return out.reshape(N, Ho, Wo, Cout)


# ------------------------------ full encoder -------------------------------- #

LAYER_CFG = [
    # (Cout, k, stride, padding)
    (8, 5, 2, 1),
    (16, 3, 2, 0),
    (32, 3, 1, 0),
    (64, 3, 1, 0),
    (128, 3, 1, 0),
]


def init_params(inp_channels, key):
    params = []
    cin = inp_channels
    for li, (cout, k, _, _) in enumerate(LAYER_CFG):
        kw_key, kb_key = jax.random.split(jax.random.fold_in(key, li))
        fan_in = cin * k * k
        bound = 1.0 / jnp.sqrt(fan_in)
        w = jax.random.uniform(kw_key, (cout, cin, k, k), jnp.float32, -bound, bound)
        b = jax.random.uniform(kb_key, (cout,), jnp.float32, -bound, bound)
        gamma = jnp.ones((cout,), jnp.float32)
        beta = jnp.zeros((cout,), jnp.float32)
        params.append((w, b, gamma, beta))
        cin = cout
    return params


@jax.jit
def encoder_batch_forward(x_nchw, params):
    x = jnp.transpose(x_nchw, (0, 2, 3, 1)).astype(jnp.float32)  # NCHW -> NHWC
    for (w, b, gamma, beta), (_, _, stride, padding) in zip(params, LAYER_CFG):
        # Conv bias `b` intentionally skipped: training-mode BN subtracts the
        # batch mean, which cancels a per-channel constant bias exactly.
        x = conv_bn_relu_layer(x, w, gamma, beta, stride, padding)
    return jnp.transpose(x, (0, 3, 1, 2))  # NHWC -> NCHW


# ----------------------------- pure-JAX reference ---------------------------- #

def reference_forward(x_nchw, params):
    x = x_nchw.astype(jnp.float32)
    for (w, b, gamma, beta), (_, _, stride, padding) in zip(params, LAYER_CFG):
        x = lax.conv_general_dilated(
            x, w, window_strides=(stride, stride),
            padding=[(padding, padding), (padding, padding)],
            dimension_numbers=("NCHW", "OIHW", "NCHW"),
        ) + b[None, :, None, None]
        mean = jnp.mean(x, axis=(0, 2, 3), keepdims=True)
        var = jnp.mean((x - mean) ** 2, axis=(0, 2, 3), keepdims=True)
        x = (x - mean) / jnp.sqrt(var + BN_EPS)
        x = x * gamma[None, :, None, None] + beta[None, :, None, None]
        x = jnp.maximum(x, 0.0)
    return x


# ---------------------------------- main ------------------------------------ #

if __name__ == "__main__":
    key = jax.random.PRNGKey(0)
    xkey, pkey = jax.random.split(key)

    # Smallest spatial size that survives all 5 conv layers is ~48.
    N, C, H, W = 2, 4, 48, 48
    x = jax.random.normal(xkey, (N, C, H, W), dtype=jnp.float32)
    params = init_params(C, pkey)

    out = jax.block_until_ready(encoder_batch_forward(x, params))
    ref = jax.block_until_ready(reference_forward(x, params))

    assert out.shape == ref.shape == (N, 128, 5, 5), out.shape
    err = float(jnp.max(jnp.abs(out - ref)))
    tol = 1e-2 if USE_BF16_MXU else 1e-3
    assert err < tol, f"max abs err {err}"

    print("KERNEL_OK")
</pallas_src>

<mosaic_0001>
module attributes {stable_mosaic.version = 11 : i64} {
  func.func @_conv_bn_relu_kernel(%arg0: memref<1058x100xf32, #tpu.memory_space<vmem>>, %arg1: memref<100x8xf32, #tpu.memory_space<vmem>>, %arg2: memref<1x8xf32, #tpu.memory_space<vmem>>, %arg3: memref<1x8xf32, #tpu.memory_space<vmem>>, %arg4: memref<1058x8xf32, #tpu.memory_space<vmem>>) attributes {dimension_semantics = [], scalar_prefetch = 0 : i64, scratch_operands = 0 : i64, tpu.core_type = #tpu.core_type<tc>} {
    %c0 = arith.constant 0 : index
    %c0_0 = arith.constant 0 : index
    %0 = vector.load %arg0[%c0, %c0_0] : memref<1058x100xf32, #tpu.memory_space<vmem>>, vector<1058x100xf32>
    %c0_1 = arith.constant 0 : index
    %c0_2 = arith.constant 0 : index
    %1 = vector.load %arg1[%c0_1, %c0_2] : memref<100x8xf32, #tpu.memory_space<vmem>>, vector<100x8xf32>
    %cst = arith.constant dense<0.000000e+00> : vector<1058x8xf32>
    %2 = tpu.matmul %0, %1, %cst {dimension_numbers = #tpu.dot_dimension_numbers<[1], [0], [0], [1], [0, 0, 1, 1], [], []>} : vector<1058x100xf32>, vector<100x8xf32>, vector<1058x8xf32> -> vector<1058x8xf32>
    %cst_3 = arith.constant dense<0.000000e+00> : vector<8xf32>
    %3 = vector.multi_reduction <add>, %2, %cst_3 [0] : vector<1058x8xf32> to vector<8xf32>
    %4 = vector.shape_cast %3 : vector<8xf32> to vector<1x8xf32>
    %cst_4 = arith.constant 9.45179606E-4 : f32
    %5 = vector.broadcast %cst_4 : f32 to vector<1x8xf32>
    %6 = arith.mulf %4, %5 : vector<1x8xf32>
    %7 = vector.broadcast %6 : vector<1x8xf32> to vector<1058x8xf32>
    %8 = arith.subf %2, %7 : vector<1058x8xf32>
    %9 = arith.mulf %8, %8 : vector<1058x8xf32>
    %cst_5 = arith.constant dense<0.000000e+00> : vector<8xf32>
    %10 = vector.multi_reduction <add>, %9, %cst_5 [0] : vector<1058x8xf32> to vector<8xf32>
    %11 = vector.shape_cast %10 : vector<8xf32> to vector<1x8xf32>
    %cst_6 = arith.constant 9.45179606E-4 : f32
    %12 = vector.broadcast %cst_6 : f32 to vector<1x8xf32>
    %13 = arith.mulf %11, %12 : vector<1x8xf32>
    %c0_7 = arith.constant 0 : index
    %c0_8 = arith.constant 0 : index
    %14 = vector.load %arg2[%c0_7, %c0_8] : memref<1x8xf32, #tpu.memory_space<vmem>>, vector<1x8xf32>
    %cst_9 = arith.constant 9.99999974E-6 : f32
    %15 = vector.broadcast %cst_9 : f32 to vector<1x8xf32>
    %16 = arith.addf %13, %15 : vector<1x8xf32>
    %17 = math.rsqrt %16 : vector<1x8xf32>
    %18 = arith.mulf %14, %17 : vector<1x8xf32>
    %19 = vector.broadcast %18 : vector<1x8xf32> to vector<1058x8xf32>
    %20 = arith.mulf %8, %19 : vector<1058x8xf32>
    %c0_10 = arith.constant 0 : index
    %c0_11 = arith.constant 0 : index
    %21 = vector.load %arg3[%c0_10, %c0_11] : memref<1x8xf32, #tpu.memory_space<vmem>>, vector<1x8xf32>
    %22 = vector.broadcast %21 : vector<1x8xf32> to vector<1058x8xf32>
    %23 = arith.addf %20, %22 : vector<1058x8xf32>
    %cst_12 = arith.constant 0.000000e+00 : f32
    %24 = vector.broadcast %cst_12 : f32 to vector<1058x8xf32>
    %25 = arith.maximumf %23, %24 : vector<1058x8xf32>
    %c0_13 = arith.constant 0 : index
    %c0_14 = arith.constant 0 : index
    %26 = vector.load %arg4[%c0_13, %c0_14] : memref<1058x8xf32, #tpu.memory_space<vmem>>, vector<1058x8xf32>
    tpu.vector_store %arg4[%c0_13, %c0_14], %25 {strides = array<i32>} : memref<1058x8xf32, #tpu.memory_space<vmem>>, vector<1058x8xf32>,
    return
  }
}

module attributes {stable_mosaic.version = 11 : i64} {
  func.func @_conv_bn_relu_kernel(%arg0: memref<242x72xf32, #tpu.memory_space<vmem>>, %arg1: memref<72x16xf32, #tpu.memory_space<vmem>>, %arg2: memref<1x16xf32, #tpu.memory_space<vmem>>, %arg3: memref<1x16xf32, #tpu.memory_space<vmem>>, %arg4: memref<242x16xf32, #tpu.memory_space<vmem>>) attributes {dimension_semantics = [], scalar_prefetch = 0 : i64, scratch_operands = 0 : i64, tpu.core_type = #tpu.core_type<tc>} {
    %c0 = arith.constant 0 : index
    %c0_0 = arith.constant 0 : index
    %0 = vector.load %arg0[%c0, %c0_0] : memref<242x72xf32, #tpu.memory_space<vmem>>, vector<242x72xf32>
    %c0_1 = arith.constant 0 : index
    %c0_2 = arith.constant 0 : index
    %1 = vector.load %arg1[%c0_1, %c0_2] : memref<72x16xf32, #tpu.memory_space<vmem>>, vector<72x16xf32>
    %cst = arith.constant dense<0.000000e+00> : vector<242x16xf32>
    %2 = tpu.matmul %0, %1, %cst {dimension_numbers = #tpu.dot_dimension_numbers<[1], [0], [0], [1], [0, 0, 1, 1], [], []>} : vector<242x72xf32>, vector<72x16xf32>, vector<242x16xf32> -> vector<242x16xf32>
    %cst_3 = arith.constant dense<0.000000e+00> : vector<16xf32>
    %3 = vector.multi_reduction <add>, %2, %cst_3 [0] : vector<242x16xf32> to vector<16xf32>
    %4 = vector.shape_cast %3 : vector<16xf32> to vector<1x16xf32>
    %cst_4 = arith.constant 0.00413223123 : f32
    %5 = vector.broadcast %cst_4 : f32 to vector<1x16xf32>
    %6 = arith.mulf %4, %5 : vector<1x16xf32>
    %7 = vector.broadcast %6 : vector<1x16xf32> to vector<242x16xf32>
    %8 = arith.subf %2, %7 : vector<242x16xf32>
    %9 = arith.mulf %8, %8 : vector<242x16xf32>
    %cst_5 = arith.constant dense<0.000000e+00> : vector<16xf32>
    %10 = vector.multi_reduction <add>, %9, %cst_5 [0] : vector<242x16xf32> to vector<16xf32>
    %11 = vector.shape_cast %10 : vector<16xf32> to vector<1x16xf32>
    %cst_6 = arith.constant 0.00413223123 : f32
    %12 = vector.broadcast %cst_6 : f32 to vector<1x16xf32>
    %13 = arith.mulf %11, %12 : vector<1x16xf32>
    %c0_7 = arith.constant 0 : index
    %c0_8 = arith.constant 0 : index
    %14 = vector.load %arg2[%c0_7, %c0_8] : memref<1x16xf32, #tpu.memory_space<vmem>>, vector<1x16xf32>
    %cst_9 = arith.constant 9.99999974E-6 : f32
    %15 = vector.broadcast %cst_9 : f32 to vector<1x16xf32>
    %16 = arith.addf %13, %15 : vector<1x16xf32>
    %17 = math.rsqrt %16 : vector<1x16xf32>
    %18 = arith.mulf %14, %17 : vector<1x16xf32>
    %19 = vector.broadcast %18 : vector<1x16xf32> to vector<242x16xf32>
    %20 = arith.mulf %8, %19 : vector<242x16xf32>
    %c0_10 = arith.constant 0 : index
    %c0_11 = arith.constant 0 : index
    %21 = vector.load %arg3[%c0_10, %c0_11] : memref<1x16xf32, #tpu.memory_space<vmem>>, vector<1x16xf32>
    %22 = vector.broadcast %21 : vector<1x16xf32> to vector<242x16xf32>
    %23 = arith.addf %20, %22 : vector<242x16xf32>
    %cst_12 = arith.constant 0.000000e+00 : f32
    %24 = vector.broadcast %cst_12 : f32 to vector<242x16xf32>
    %25 = arith.maximumf %23, %24 : vector<242x16xf32>
    %c0_13 = arith.constant 0 : index
    %c0_14 = arith.constant 0 : index
    %26 = vector.load %arg4[%c0_13, %c0_14] : memref<242x16xf32, #tpu.memory_space<vmem>>, vector<242x16xf32>
    tpu.vector_store %arg4[%c0_13, %c0_14], %25 {strides = array<i32>} : memref<242x16xf32, #tpu.memory_space<vmem>>, vector<242x16xf32>,
    return
  }
}

module attributes {stable_mosaic.version = 11 : i64} {
  func.func @_conv_bn_relu_kernel(%arg0: memref<162x144xf32, #tpu.memory_space<vmem>>, %arg1: memref<144x32xf32, #tpu.memory_space<vmem>>, %arg2: memref<1x32xf32, #tpu.memory_space<vmem>>, %arg3: memref<1x32xf32, #tpu.memory_space<vmem>>, %arg4: memref<162x32xf32, #tpu.memory_space<vmem>>) attributes {dimension_semantics = [], scalar_prefetch = 0 : i64, scratch_operands = 0 : i64, tpu.core_type = #tpu.core_type<tc>} {
    %c0 = arith.constant 0 : index
    %c0_0 = arith.constant 0 : index
    %0 = vector.load %arg0[%c0, %c0_0] : memref<162x144xf32, #tpu.memory_space<vmem>>, vector<162x144xf32>
    %c0_1 = arith.constant 0 : index
    %c0_2 = arith.constant 0 : index
    %1 = vector.load %arg1[%c0_1, %c0_2] : memref<144x32xf32, #tpu.memory_space<vmem>>, vector<144x32xf32>
    %cst = arith.constant dense<0.000000e+00> : vector<162x32xf32>
    %2 = tpu.matmul %0, %1, %cst {dimension_numbers = #tpu.dot_dimension_numbers<[1], [0], [0], [1], [0, 0, 1, 1], [], []>} : vector<162x144xf32>, vector<144x32xf32>, vector<162x32xf32> -> vector<162x32xf32>
    %cst_3 = arith.constant dense<0.000000e+00> : vector<32xf32>
    %3 = vector.multi_reduction <add>, %2, %cst_3 [0] : vector<162x32xf32> to vector<32xf32>
    %4 = vector.shape_cast %3 : vector<32xf32> to vector<1x32xf32>
    %cst_4 = arith.constant 0.00617283955 : f32
    %5 = vector.broadcast %cst_4 : f32 to vector<1x32xf32>
    %6 = arith.mulf %4, %5 : vector<1x32xf32>
    %7 = vector.broadcast %6 : vector<1x32xf32> to vector<162x32xf32>
    %8 = arith.subf %2, %7 : vector<162x32xf32>
    %9 = arith.mulf %8, %8 : vector<162x32xf32>
    %cst_5 = arith.constant dense<0.000000e+00> : vector<32xf32>
    %10 = vector.multi_reduction <add>, %9, %cst_5 [0] : vector<162x32xf32> to vector<32xf32>
    %11 = vector.shape_cast %10 : vector<32xf32> to vector<1x32xf32>
    %cst_6 = arith.constant 0.00617283955 : f32
    %12 = vector.broadcast %cst_6 : f32 to vector<1x32xf32>
    %13 = arith.mulf %11, %12 : vector<1x32xf32>
    %c0_7 = arith.constant 0 : index
    %c0_8 = arith.constant 0 : index
    %14 = vector.load %arg2[%c0_7, %c0_8] : memref<1x32xf32, #tpu.memory_space<vmem>>, vector<1x32xf32>
    %cst_9 = arith.constant 9.99999974E-6 : f32
    %15 = vector.broadcast %cst_9 : f32 to vector<1x32xf32>
    %16 = arith.addf %13, %15 : vector<1x32xf32>
    %17 = math.rsqrt %16 : vector<1x32xf32>
    %18 = arith.mulf %14, %17 : vector<1x32xf32>
    %19 = vector.broadcast %18 : vector<1x32xf32> to vector<162x32xf32>
    %20 = arith.mulf %8, %19 : vector<162x32xf32>
    %c0_10 = arith.constant 0 : index
    %c0_11 = arith.constant 0 : index
    %21 = vector.load %arg3[%c0_10, %c0_11] : memref<1x32xf32, #tpu.memory_space<vmem>>, vector<1x32xf32>
    %22 = vector.broadcast %21 : vector<1x32xf32> to vector<162x32xf32>
    %23 = arith.addf %20, %22 : vector<162x32xf32>
    %cst_12 = arith.constant 0.000000e+00 : f32
    %24 = vector.broadcast %cst_12 : f32 to vector<162x32xf32>
    %25 = arith.maximumf %23, %24 : vector<162x32xf32>
    %c0_13 = arith.constant 0 : index
    %c0_14 = arith.constant 0 : index
    %26 = vector.load %arg4[%c0_13, %c0_14] : memref<162x32xf32, #tpu.memory_space<vmem>>, vector<162x32xf32>
    tpu.vector_store %arg4[%c0_13, %c0_14], %25 {strides = array<i32>} : memref<162x32xf32, #tpu.memory_space<vmem>>, vector<162x32xf32>,
    return
  }
}

module attributes {stable_mosaic.version = 11 : i64} {
  func.func @_conv_bn_relu_kernel(%arg0: memref<98x288xf32, #tpu.memory_space<vmem>>, %arg1: memref<288x64xf32, #tpu.memory_space<vmem>>, %arg2: memref<1x64xf32, #tpu.memory_space<vmem>>, %arg3: memref<1x64xf32, #tpu.memory_space<vmem>>, %arg4: memref<98x64xf32, #tpu.memory_space<vmem>>) attributes {dimension_semantics = [], scalar_prefetch = 0 : i64, scratch_operands = 0 : i64, tpu.core_type = #tpu.core_type<tc>} {
    %c0 = arith.constant 0 : index
    %c0_0 = arith.constant 0 : index
    %0 = vector.load %arg0[%c0, %c0_0] : memref<98x288xf32, #tpu.memory_space<vmem>>, vector<98x288xf32>
    %c0_1 = arith.constant 0 : index
    %c0_2 = arith.constant 0 : index
    %1 = vector.load %arg1[%c0_1, %c0_2] : memref<288x64xf32, #tpu.memory_space<vmem>>, vector<288x64xf32>
    %cst = arith.constant dense<0.000000e+00> : vector<98x64xf32>
    %2 = tpu.matmul %0, %1, %cst {dimension_numbers = #tpu.dot_dimension_numbers<[1], [0], [0], [1], [0, 0, 1, 1], [], []>} : vector<98x288xf32>, vector<288x64xf32>, vector<98x64xf32> -> vector<98x64xf32>
    %cst_3 = arith.constant dense<0.000000e+00> : vector<64xf32>
    %3 = vector.multi_reduction <add>, %2, %cst_3 [0] : vector<98x64xf32> to vector<64xf32>
    %4 = vector.shape_cast %3 : vector<64xf32> to vector<1x64xf32>
    %cst_4 = arith.constant 0.0102040814 : f32
    %5 = vector.broadcast %cst_4 : f32 to vector<1x64xf32>
    %6 = arith.mulf %4, %5 : vector<1x64xf32>
    %7 = vector.broadcast %6 : vector<1x64xf32> to vector<98x64xf32>
    %8 = arith.subf %2, %7 : vector<98x64xf32>
    %9 = arith.mulf %8, %8 : vector<98x64xf32>
    %cst_5 = arith.constant dense<0.000000e+00> : vector<64xf32>
    %10 = vector.multi_reduction <add>, %9, %cst_5 [0] : vector<98x64xf32> to vector<64xf32>
    %11 = vector.shape_cast %10 : vector<64xf32> to vector<1x64xf32>
    %cst_6 = arith.constant 0.0102040814 : f32
    %12 = vector.broadcast %cst_6 : f32 to vector<1x64xf32>
    %13 = arith.mulf %11, %12 : vector<1x64xf32>
    %c0_7 = arith.constant 0 : index
    %c0_8 = arith.constant 0 : index
    %14 = vector.load %arg2[%c0_7, %c0_8] : memref<1x64xf32, #tpu.memory_space<vmem>>, vector<1x64xf32>
    %cst_9 = arith.constant 9.99999974E-6 : f32
    %15 = vector.broadcast %cst_9 : f32 to vector<1x64xf32>
    %16 = arith.addf %13, %15 : vector<1x64xf32>
    %17 = math.rsqrt %16 : vector<1x64xf32>
    %18 = arith.mulf %14, %17 : vector<1x64xf32>
    %19 = vector.broadcast %18 : vector<1x64xf32> to vector<98x64xf32>
    %20 = arith.mulf %8, %19 : vector<98x64xf32>
    %c0_10 = arith.constant 0 : index
    %c0_11 = arith.constant 0 : index
    %21 = vector.load %arg3[%c0_10, %c0_11] : memref<1x64xf32, #tpu.memory_space<vmem>>, vector<1x64xf32>
    %22 = vector.broadcast %21 : vector<1x64xf32> to vector<98x64xf32>
    %23 = arith.addf %20, %22 : vector<98x64xf32>
    %cst_12 = arith.constant 0.000000e+00 : f32
    %24 = vector.broadcast %cst_12 : f32 to vector<98x64xf32>
    %25 = arith.maximumf %23, %24 : vector<98x64xf32>
    %c0_13 = arith.constant 0 : index
    %c0_14 = arith.constant 0 : index
    %26 = vector.load %arg4[%c0_13, %c0_14] : memref<98x64xf32, #tpu.memory_space<vmem>>, vector<98x64xf32>
    tpu.vector_store %arg4[%c0_13, %c0_14], %25 {strides = array<i32>} : memref<98x64xf32, #tpu.memory_space<vmem>>, vector<98x64xf32>,
    return
  }
}

module attributes {stable_mosaic.version = 11 : i64} {
  func.func @_conv_bn_relu_kernel(%arg0: memref<50x576xf32, #tpu.memory_space<vmem>>, %arg1: memref<576x128xf32, #tpu.memory_space<vmem>>, %arg2: memref<1x128xf32, #tpu.memory_space<vmem>>, %arg3: memref<1x128xf32, #tpu.memory_space<vmem>>, %arg4: memref<50x128xf32, #tpu.memory_space<vmem>>) attributes {dimension_semantics = [], scalar_prefetch = 0 : i64, scratch_operands = 0 : i64, tpu.core_type = #tpu.core_type<tc>} {
    %c0 = arith.constant 0 : index
    %c0_0 = arith.constant 0 : index
    %0 = vector.load %arg0[%c0, %c0_0] : memref<50x576xf32, #tpu.memory_space<vmem>>, vector<50x576xf32>
    %c0_1 = arith.constant 0 : index
    %c0_2 = arith.constant 0 : index
    %1 = vector.load %arg1[%c0_1, %c0_2] : memref<576x128xf32, #tpu.memory_space<vmem>>, vector<576x128xf32>
    %cst = arith.constant dense<0.000000e+00> : vector<50x128xf32>
    %2 = tpu.matmul %0, %1, %cst {dimension_numbers = #tpu.dot_dimension_numbers<[1], [0], [0], [1], [0, 0, 1, 1], [], []>} : vector<50x576xf32>, vector<576x128xf32>, vector<50x128xf32> -> vector<50x128xf32>
    %cst_3 = arith.constant dense<0.000000e+00> : vector<128xf32>
    %3 = vector.multi_reduction <add>, %2, %cst_3 [0] : vector<50x128xf32> to vector<128xf32>
    %4 = vector.shape_cast %3 : vector<128xf32> to vector<1x128xf32>
    %cst_4 = arith.constant 2.000000e-02 : f32
    %5 = vector.broadcast %cst_4 : f32 to vector<1x128xf32>
    %6 = arith.mulf %4, %5 : vector<1x128xf32>
    %7 = vector.broadcast %6 : vector<1x128xf32> to vector<50x128xf32>
    %8 = arith.subf %2, %7 : vector<50x128xf32>
    %9 = arith.mulf %8, %8 : vector<50x128xf32>
    %cst_5 = arith.constant dense<0.000000e+00> : vector<128xf32>
    %10 = vector.multi_reduction <add>, %9, %cst_5 [0] : vector<50x128xf32> to vector<128xf32>
    %11 = vector.shape_cast %10 : vector<128xf32> to vector<1x128xf32>
    %cst_6 = arith.constant 2.000000e-02 : f32
    %12 = vector.broadcast %cst_6 : f32 to vector<1x128xf32>
    %13 = arith.mulf %11, %12 : vector<1x128xf32>
    %c0_7 = arith.constant 0 : index
    %c0_8 = arith.constant 0 : index
    %14 = vector.load %arg2[%c0_7, %c0_8] : memref<1x128xf32, #tpu.memory_space<vmem>>, vector<1x128xf32>
    %cst_9 = arith.constant 9.99999974E-6 : f32
    %15 = vector.broadcast %cst_9 : f32 to vector<1x128xf32>
    %16 = arith.addf %13, %15 : vector<1x128xf32>
    %17 = math.rsqrt %16 : vector<1x128xf32>
    %18 = arith.mulf %14, %17 : vector<1x128xf32>
    %19 = vector.broadcast %18 : vector<1x128xf32> to vector<50x128xf32>
    %20 = arith.mulf %8, %19 : vector<50x128xf32>
    %c0_10 = arith.constant 0 : index
    %c0_11 = arith.constant 0 : index
    %21 = vector.load %arg3[%c0_10, %c0_11] : memref<1x128xf32, #tpu.memory_space<vmem>>, vector<1x128xf32>
    %22 = vector.broadcast %21 : vector<1x128xf32> to vector<50x128xf32>
    %23 = arith.addf %20, %22 : vector<50x128xf32>
    %cst_12 = arith.constant 0.000000e+00 : f32
    %24 = vector.broadcast %cst_12 : f32 to vector<50x128xf32>
    %25 = arith.maximumf %23, %24 : vector<50x128xf32>
    %c0_13 = arith.constant 0 : index
    %c0_14 = arith.constant 0 : index
    %26 = vector.load %arg4[%c0_13, %c0_14] : memref<50x128xf32, #tpu.memory_space<vmem>>, vector<50x128xf32>
    tpu.vector_store %arg4[%c0_13, %c0_14], %25 {strides = array<i32>} : memref<50x128xf32, #tpu.memory_space<vmem>>, vector<50x128xf32>,
    return
  }
}

</mosaic_0001>

<bundles_post_ra>
// kernel: encoder_batch_forward.5
= control target key start
LH: loop header
LB: loop body
LE: loop exit
PB: predicated region body
PF: predicated region fallthrough
CT: control target
= control target key end

     0   :  { %vm563_vm0 = vcmask 1043456   ;;  %vm163_vm1 = vcmask 818176   ;;  %vm983_vm2 = vcmask 64512   ;;  %vm1247_vm3 = vcmask 58368   ;;  %s6003_s1 = inlined_call_operand.vmem [shape: f32[100,8], index: 1, kind: input, shape index: {}]   ;;  %s6004_s0 = inlined_call_operand.vmem [shape: f32[1058,100], index: 0, kind: input, shape index: {}]   ;;  %s6005_s3 = inlined_call_operand.vmem [shape: f32[1,8], index: 3, kind: input, shape index: {}]   ;;  %s6006_s2 = inlined_call_operand.vmem [shape: f32[1,8], index: 2, kind: input, shape index: {}]   ;;  %s6007_s4 = inlined_call_operand.vmem [shape: f32[1058,8], index: 4, kind: output, shape index: {}]  }
   0x1   :  { %v162_v0 = vld [vmem:[%s6003_s1 + $0x60] sm:$0xf]  ;;  %v161_v1 = vld [vmem:[%s6003_s1 + $0x58] sm:$0xff]  ;;  %v160_v2 = vld [vmem:[%s6003_s1 + $0x50] sm:$0xff] }
   0x2   :  { %2351 = vmatpush.msk.msra.mxu0 %vm563_vm0, %v162_v0  ;;  %2485 = vmatpush.msk.msra.mxu1 %vm563_vm0, %v162_v0  ;;  %v159_v3 = vld [vmem:[%s6003_s1 + $0x48] sm:$0xff]  ;;  %v158_v4 = vld [vmem:[%s6003_s1 + $0x40] sm:$0xff]  ;;  %v157_v5 = vld [vmem:[%s6003_s1 + $0x38] sm:$0xff] }
   0x3   :  { %2486 = vmatpush.msk.msra.mxu2 %vm563_vm0, %v162_v0  ;;  %2487 = vmatpush.msk.msra.mxu3 %vm563_vm0, %v162_v0  ;;  %v156_v6 = vld [vmem:[%s6003_s1 + $0x30] sm:$0xff]  ;;  %v155_v7 = vld [vmem:[%s6003_s1 + $0x28] sm:$0xff]  ;;  %v154_v8 = vld [vmem:[%s6003_s1 + $0x20] sm:$0xff] }
   0x4   :  { %571 = vmatpush.msra.mxu0 %v161_v1  ;;  %2488 = vmatpush.msra.mxu1 %v161_v1  ;;  %v153_v9 = vld [vmem:[%s6003_s1 + $0x18] sm:$0xff]  ;;  %v152_v10 = vld [vmem:[%s6003_s1 + $0x10] sm:$0xff]  ;;  %v151_v11 = vld [vmem:[%s6003_s1 + $0x8] sm:$0xff] }
   0x5   :  { %2489 = vmatpush.msra.mxu2 %v161_v1  ;;  %2490 = vmatpush.msra.mxu3 %v161_v1  ;;  %v150_v12 = vld [vmem:[%s6003_s1] sm:$0xff]  ;;  %v18_v14 = vld [vmem:[%s6004_s0 + $0x8] sm:$0xff]  ;;  %v19_v15 = vld [vmem:[%s6004_s0 + $0x10] sm:$0xff] }
   0x6   :  { %572 = vmatpush.msra.mxu0 %v160_v2  ;;  %2491 = vmatpush.msra.mxu1 %v160_v2  ;;  %v17_v13 = vld [vmem:[%s6004_s0] sm:$0xff]  ;;  %v20_v16 = vld [vmem:[%s6004_s0 + $0x18] sm:$0xff]  ;;  %v50_v19 = vld [vmem:[%s6004_s0 + $0x108] sm:$0xff] }
   0x7   :  { %2492 = vmatpush.msra.mxu2 %v160_v2  ;;  %2493 = vmatpush.msra.mxu3 %v160_v2  ;;  %v49_v17 = vld [vmem:[%s6004_s0 + $0x100] sm:$0xff]  ;;  %v22_v20 = vld [vmem:[%s6004_s0 + $0x28] sm:$0xff]  ;;  %v51_v21 = vld [vmem:[%s6004_s0 + $0x110] sm:$0xff] }
   0x8   :  { %573 = vmatpush.msra.mxu0 %v159_v3  ;;  %2494 = vmatpush.msra.mxu1 %v159_v3  ;;  %v21_v18 = vld [vmem:[%s6004_s0 + $0x20] sm:$0xff]  ;;  %v23_v22 = vld [vmem:[%s6004_s0 + $0x30] sm:$0xff]  ;;  %v52_v23 = vld [vmem:[%s6004_s0 + $0x118] sm:$0xff] }
   0x9   :  { %2495 = vmatpush.msra.mxu2 %v159_v3  ;;  %2496 = vmatpush.msra.mxu3 %v159_v3  ;;  %v24_v24 = vld [vmem:[%s6004_s0 + $0x38] sm:$0xff]  ;;  %v53_v25 = vld [vmem:[%s6004_s0 + $0x120] sm:$0xff]  ;;  %v54_v27 = vld [vmem:[%s6004_s0 + $0x128] sm:$0xff] }
   0xa   :  { %574 = vmatpush.msra.mxu0 %v158_v4  ;;  %2497 = vmatpush.msra.mxu1 %v158_v4  ;;  %v25_v26 = vld [vmem:[%s6004_s0 + $0x40] sm:$0xff]  ;;  %v26_v28 = vld [vmem:[%s6004_s0 + $0x48] sm:$0xff]  ;;  %v55_v29 = vld [vmem:[%s6004_s0 + $0x130] sm:$0xff] }
   0xb   :  { %2498 = vmatpush.msra.mxu2 %v158_v4  ;;  %2499 = vmatpush.msra.mxu3 %v158_v4  ;;  %v27_v30 = vld [vmem:[%s6004_s0 + $0x50] sm:$0xff]  ;;  %v82_v31 = vld [vmem:[%s6004_s0 + $0x208] sm:$0xff]  ;;  %v56_v32 = vld [vmem:[%s6004_s0 + $0x138] sm:$0xff] }
   0xc   :  { %575 = vmatpush.msra.mxu0 %v157_v5  ;;  %2500 = vmatpush.msra.mxu1 %v157_v5  ;;  %v28_v33 = vld [vmem:[%s6004_s0 + $0x58] sm:$0xff]  ;;  %v83_v34 = vld [vmem:[%s6004_s0 + $0x210] sm:$0xff]  ;;  %v57_v35 = vld [vmem:[%s6004_s0 + $0x140] sm:$0xff] }
   0xd   :  { %2501 = vmatpush.msra.mxu2 %v157_v5  ;;  %2502 = vmatpush.msra.mxu3 %v157_v5  ;;  %v29_v36 = vld [vmem:[%s6004_s0 + $0x60] sm:$0xff]  ;;  %v84_v37 = vld [vmem:[%s6004_s0 + $0x218] sm:$0xff]  ;;  %v58_v38 = vld [vmem:[%s6004_s0 + $0x148] sm:$0xff] }
   0xe   :  { %576 = vmatpush.msra.mxu0 %v156_v6  ;;  %2503 = vmatpush.msra.mxu1 %v156_v6  ;;  %v30_v39 = vld [vmem:[%s6004_s0 + $0x68] sm:$0xff]  ;;  %v85_v40 = vld [vmem:[%s6004_s0 + $0x220] sm:$0xff]  ;;  %v59_v41 = vld [vmem:[%s6004_s0 + $0x150] sm:$0xff] }
   0xf   :  { %2504 = vmatpush.msra.mxu2 %v156_v6  ;;  %2505 = vmatpush.msra.mxu3 %v156_v6  ;;  %v31_v42 = vld [vmem:[%s6004_s0 + $0x70] sm:$0xff]  ;;  %v86_v43 = vld [vmem:[%s6004_s0 + $0x228] sm:$0xff]  ;;  %v60_v44 = vld [vmem:[%s6004_s0 + $0x158] sm:$0xff] }
  0x10   :  { %577 = vmatpush.msra.mxu0 %v155_v7  ;;  %2506 = vmatpush.msra.mxu1 %v155_v7  ;;  %v32_v45 = vld [vmem:[%s6004_s0 + $0x78] sm:$0xff]  ;;  %v87_v46 = vld [vmem:[%s6004_s0 + $0x230] sm:$0xff]  ;;  %v61_v47 = vld [vmem:[%s6004_s0 + $0x160] sm:$0xff] }
  0x11   :  { %2507 = vmatpush.msra.mxu2 %v155_v7  ;;  %2508 = vmatpush.msra.mxu3 %v155_v7  ;;  %v33_v49 = vld [vmem:[%s6004_s0 + $0x80] sm:$0xff]  ;;  %v88_v50 = vld [vmem:[%s6004_s0 + $0x238] sm:$0xff]  ;;  %v62_v51 = vld [vmem:[%s6004_s0 + $0x168] sm:$0xff] }
  0x12   :  { %578 = vmatpush.msra.mxu0 %v154_v8  ;;  %2509 = vmatpush.msra.mxu1 %v154_v8  ;;  %v34_v53 = vld [vmem:[%s6004_s0 + $0x88] sm:$0xff]  ;;  %v89_v54 = vld [vmem:[%s6004_s0 + $0x240] sm:$0xff]  ;;  %v63_v55 = vld [vmem:[%s6004_s0 + $0x170] sm:$0xff] }
  0x13   :  { %2510 = vmatpush.msra.mxu2 %v154_v8  ;;  %2511 = vmatpush.msra.mxu3 %v154_v8  ;;  %v35_v57 = vld [vmem:[%s6004_s0 + $0x90] sm:$0xff]  ;;  %v90_v58 = vld [vmem:[%s6004_s0 + $0x248] sm:$0xff]  ;;  %v64_v59 = vld [vmem:[%s6004_s0 + $0x178] sm:$0xff] }
  0x14   :  { %579 = vmatpush.msra.mxu0 %v153_v9  ;;  %2512 = vmatpush.msra.mxu1 %v153_v9  ;;  %v116_v60 = vld [vmem:[%s6004_s0 + $0x318] sm:$0xff]  ;;  %v91_v0 = vld [vmem:[%s6004_s0 + $0x250] sm:$0xff]  ;;  %v65_v1 = vld [vmem:[%s6004_s0 + $0x180] sm:$0xff] }
  0x15   :  { %2513 = vmatpush.msra.mxu2 %v153_v9  ;;  %2514 = vmatpush.msra.mxu3 %v153_v9  ;;  %v36_v62 = vld [vmem:[%s6004_s0 + $0x98] sm:$0xff]  ;;  %v117_v2 = vld [vmem:[%s6004_s0 + $0x320] sm:$0xff]  ;;  %v66_v7 = vld [vmem:[%s6004_s0 + $0x188] sm:$0xff] }
  0x16   :  { %580 = vmatpush.msra.mxu0 %v152_v10  ;;  %2515 = vmatpush.msra.mxu1 %v152_v10  ;;  %v37_v4 = vld [vmem:[%s6004_s0 + $0xa0] sm:$0xff]  ;;  %v92_v6 = vld [vmem:[%s6004_s0 + $0x258] sm:$0xff]  ;;  %v118_v8 = vld [vmem:[%s6004_s0 + $0x328] sm:$0xff] }
  0x17   :  { %2516 = vmatpush.msra.mxu2 %v152_v10  ;;  %2517 = vmatpush.msra.mxu3 %v152_v10  ;;  %v38_v10 = vld [vmem:[%s6004_s0 + $0xa8] sm:$0xff] }
  0x18   :  { %581 = vmatpush.msra.mxu0 %v151_v11  ;;  %2518 = vmatpush.msra.mxu1 %v151_v11 }
  0x19   :  { %2519 = vmatpush.msra.mxu2 %v151_v11  ;;  %2520 = vmatpush.msra.mxu3 %v151_v11 }
  0x1a   :  { %582 = vmatpush.msra.mxu0 %v150_v12  ;;  %2521 = vmatpush.msra.mxu1 %v150_v12 }
  0x1b   :  { %2352 = vmatmul.msk.f32.vlgmr.msra.gmra.mxu0 %vm163_vm1, %v17_v13  ;;  %2522 = vmatpush.msra.mxu2 %v150_v12  ;;  %v67_v13 = vld [vmem:[%s6004_s0 + $0x190] sm:$0xff] }
  0x1c   :  { %2523 = vmatpush.msra.mxu3 %v150_v12  ;;  %2384 = vmatmul.msk.f32.vlgmr.msra.gmra.mxu1 %vm163_vm1, %v49_v17  ;;  %v93_v12 = vld [vmem:[%s6004_s0 + $0x260] sm:$0xff] }
  0x1d   :  { %2417 = vmatmul.msk.f32.vlgmr.msra.gmra.mxu2 %vm163_vm1, %v82_v31  ;;  %2451 = vmatmul.msk.f32.vlgmr.msra.gmra.mxu3 %vm163_vm1, %v116_v60  ;;  %v70_v31 = vld [vmem:[%s6004_s0 + $0x1a8] sm:$0xff] }
  0x1e   :  { %v74_v60 = vld [vmem:[%s6004_s0 + $0x1c8] sm:$0xff] }
  0x23   :  { %2353 = vmatmul.msk.f32.gmra.mxu0 %vm163_vm1, %v18_v14  ;;  %v119_v14 = vld [vmem:[%s6004_s0 + $0x330] sm:$0xff] }
  0x24   :  { %2385 = vmatmul.msk.f32.gmra.mxu1 %vm163_vm1, %v50_v19  ;;  %v68_v19 = vld [vmem:[%s6004_s0 + $0x198] sm:$0xff] }
  0x25   :  { %2418 = vmatmul.msk.f32.gmra.mxu2 %vm163_vm1, %v83_v34  ;;  %2452 = vmatmul.msk.f32.gmra.mxu3 %vm163_vm1, %v117_v2  ;;  %v42_v34 = vld [vmem:[%s6004_s0 + $0xc8] sm:$0xff] }
  0x26   :  { %v46_v2 = vld [vmem:[%s6004_s0 + $0xe8] sm:$0xff] }
  0x2b   :  { %2354 = vmatmul.msk.f32.gmra.mxu0 %vm163_vm1, %v19_v15 }
  0x2c   :  { %2386 = vmatmul.msk.f32.gmra.mxu1 %vm163_vm1, %v51_v21 }
  0x2d   :  { %2419 = vmatmul.msk.f32.gmra.mxu2 %vm163_vm1, %v84_v37  ;;  %2453 = vmatmul.msk.f32.gmra.mxu3 %vm163_vm1, %v118_v8  ;;  %v71_v37 = vld [vmem:[%s6004_s0 + $0x1b0] sm:$0xff] }
  0x2e   :  { %v127_v8 = vld [vmem:[%s6004_s0 + $0x370] sm:$0xff] }
  0x33   :  { %2355 = vmatmul.msk.f32.gmra.mxu0 %vm163_vm1, %v20_v16  ;;  %v39_v16 = vld [vmem:[%s6004_s0 + $0xb0] sm:$0xff] }
  0x34   :  { %2387 = vmatmul.msk.f32.gmra.mxu1 %vm163_vm1, %v52_v23 }
  0x35   :  { %2420 = vmatmul.msk.f32.gmra.mxu2 %vm163_vm1, %v85_v40  ;;  %2454 = vmatmul.msk.f32.gmra.mxu3 %vm163_vm1, %v119_v14  ;;  %v43_v40 = vld [vmem:[%s6004_s0 + $0xd0] sm:$0xff] }
  0x3b   :  { %2356 = vmatmul.msk.f32.gmra.mxu0 %vm163_vm1, %v21_v18  ;;  %v94_v18 = vld [vmem:[%s6004_s0 + $0x268] sm:$0xff] }
  0x3c   :  { %2388 = vmatmul.msk.f32.gmra.mxu1 %vm163_vm1, %v53_v25  ;;  %v69_v25 = vld [vmem:[%s6004_s0 + $0x1a0] sm:$0xff] }
  0x3d   :  { %2421 = vmatmul.msk.f32.gmra.mxu2 %vm163_vm1, %v86_v43  ;;  %v72_v43 = vld [vmem:[%s6004_s0 + $0x1b8] sm:$0xff] }
  0x43   :  { %2357 = vmatmul.msk.f32.gmra.mxu0 %vm163_vm1, %v22_v20  ;;  %v120_v20 = vld [vmem:[%s6004_s0 + $0x338] sm:$0xff] }
  0x44   :  { %2389 = vmatmul.msk.f32.gmra.mxu1 %vm163_vm1, %v54_v27  ;;  %2455 = vmatmul.msk.f32.gmra.mxu3 %vm163_vm1, %v120_v20 }
  0x45   :  { %2422 = vmatmul.msk.f32.gmra.mxu2 %vm163_vm1, %v87_v46 }
  0x4b   :  { %2358 = vmatmul.msk.f32.gmra.mxu0 %vm163_vm1, %v23_v22  ;;  %v40_v22 = vld [vmem:[%s6004_s0 + $0xb8] sm:$0xff] }
  0x4c   :  { %2390 = vmatmul.msk.f32.gmra.mxu1 %vm163_vm1, %v55_v29 }
  0x4d   :  { %2423 = vmatmul.msk.f32.gmra.mxu2 %vm163_vm1, %v88_v50  ;;  %v99_v50 = vld [vmem:[%s6004_s0 + $0x290] sm:$0xff] }
  0x53   :  { %2359 = vmatmul.msk.f32.gmra.mxu0 %vm163_vm1, %v24_v24  ;;  %v95_v24 = vld [vmem:[%s6004_s0 + $0x270] sm:$0xff] }
  0x54   :  { %2391 = vmatmul.msk.f32.gmra.mxu1 %vm163_vm1, %v56_v32  ;;  %v122_v32 = vld [vmem:[%s6004_s0 + $0x348] sm:$0xff] }
  0x55   :  { %2424 = vmatmul.msk.f32.gmra.mxu2 %vm163_vm1, %v89_v54 }
  0x5b   :  { %2360 = vmatmul.msk.f32.gmra.mxu0 %vm163_vm1, %v25_v26  ;;  %v121_v26 = vld [vmem:[%s6004_s0 + $0x340] sm:$0xff] }
  0x5c   :  { %2392 = vmatmul.msk.f32.gmra.mxu1 %vm163_vm1, %v57_v35  ;;  %2456 = vmatmul.msk.f32.gmra.mxu3 %vm163_vm1, %v121_v26  ;;  %v103_v26 = vld [vmem:[%s6004_s0 + $0x2b0] sm:$0xff] }
  0x5d   :  { %2425 = vmatmul.msk.f32.gmra.mxu2 %vm163_vm1, %v90_v58 }
  0x63   :  { %2361 = vmatmul.msk.f32.gmra.mxu0 %vm163_vm1, %v26_v28  ;;  %v41_v28 = vld [vmem:[%s6004_s0 + $0xc0] sm:$0xff] }
  0x64   :  { %2393 = vmatmul.msk.f32.gmra.mxu1 %vm163_vm1, %v58_v38  ;;  %2457 = vmatmul.msk.f32.gmra.mxu3 %vm163_vm1, %v122_v32  ;;  %v123_v38 = vld [vmem:[%s6004_s0 + $0x350] sm:$0xff] }
  0x65   :  { %2426 = vmatmul.msk.f32.gmra.mxu2 %vm163_vm1, %v91_v0 }
  0x6b   :  { %2362 = vmatmul.msk.f32.gmra.mxu0 %vm163_vm1, %v27_v30  ;;  %v96_v30 = vld [vmem:[%s6004_s0 + $0x278] sm:$0xff] }
  0x6c   :  { %2394 = vmatmul.msk.f32.gmra.mxu1 %vm163_vm1, %v59_v41  ;;  %2458 = vmatmul.msk.f32.gmra.mxu3 %vm163_vm1, %v123_v38  ;;  %v130_v38 = vld [vmem:[%s6004_s0 + $0x388] sm:$0xff] }
  0x6d   :  { %2427 = vmatmul.msk.f32.gmra.mxu2 %vm163_vm1, %v92_v6  ;;  %v101_v6 = vld [vmem:[%s6004_s0 + $0x2a0] sm:$0xff] }
  0x73   :  { %2363 = vmatmul.msk.f32.gmra.mxu0 %vm163_vm1, %v28_v33 }
  0x74   :  { %2395 = vmatmul.msk.f32.gmra.mxu1 %vm163_vm1, %v60_v44  ;;  %v124_v44 = vld [vmem:[%s6004_s0 + $0x358] sm:$0xff] }
  0x75   :  { %2428 = vmatmul.msk.f32.gmra.mxu2 %vm163_vm1, %v93_v12  ;;  %2459 = vmatmul.msk.f32.gmra.mxu3 %vm163_vm1, %v124_v44  ;;  %v105_v44 = vld [vmem:[%s6004_s0 + $0x2c0] sm:$0xff] }
  0x7b   :  { %2364 = vmatmul.msk.f32.gmra.mxu0 %vm163_vm1, %v29_v36  ;;  %v97_v36 = vld [vmem:[%s6004_s0 + $0x280] sm:$0xff] }
  0x7c   :  { %2396 = vmatmul.msk.f32.gmra.mxu1 %vm163_vm1, %v61_v47  ;;  %v44_v47 = vld [vmem:[%s6004_s0 + $0xd8] sm:$0xff] }
  0x7d   :  { %2429 = vmatmul.msk.f32.gmra.mxu2 %vm163_vm1, %v94_v18  ;;  %v76_v18 = vld [vmem:[%s6004_s0 + $0x1d8] sm:$0xff] }
  0x83   :  { %2365 = vmatmul.msk.f32.gmra.mxu0 %vm163_vm1, %v30_v39 }
  0x84   :  { %2397 = vmatmul.msk.f32.gmra.mxu1 %vm163_vm1, %v62_v51  ;;  %v73_v51 = vld [vmem:[%s6004_s0 + $0x1c0] sm:$0xff] }
  0x85   :  { %2430 = vmatmul.msk.f32.gmra.mxu2 %vm163_vm1, %v95_v24  ;;  %v48_v24 = vld [vmem:[%s6004_s0 + $0xf8] sm:$0xff] }
  0x8b   :  { %2366 = vmatmul.msk.f32.gmra.mxu0 %vm163_vm1, %v31_v42  ;;  %v98_v42 = vld [vmem:[%s6004_s0 + $0x288] sm:$0xff] }
  0x8c   :  { %2398 = vmatmul.msk.f32.gmra.mxu1 %vm163_vm1, %v63_v55 }
  0x8d   :  { %2431 = vmatmul.msk.f32.gmra.mxu2 %vm163_vm1, %v96_v30  ;;  %v129_v30 = vld [vmem:[%s6004_s0 + $0x380] sm:$0xff] }
  0x93   :  { %2367 = vmatmul.msk.f32.gmra.mxu0 %vm163_vm1, %v32_v45 }
  0x94   :  { %2399 = vmatmul.msk.f32.gmra.mxu1 %vm163_vm1, %v64_v59  ;;  %v100_v59 = vld [vmem:[%s6004_s0 + $0x298] sm:$0xff] }
  0x95   :  { %2432 = vmatmul.msk.f32.gmra.mxu2 %vm163_vm1, %v97_v36  ;;  %v104_v36 = vld [vmem:[%s6004_s0 + $0x2b8] sm:$0xff] }
  0x98   :  { %v2731_v48 = vpop.f32.mrf.mxu0 }
  0x99   :  { %6191 = vst [vmem:[#allocation2_spill] sm:$0xff] %v2731_v48  ;;  %v2782_v63 = vpop.f32.mrf.mxu1 }
  0x9a   :  { %6195 = vst [vmem:[#allocation6_spill] sm:$0xff] %v2782_v63 }
  0x9b   :  { %2368 = vmatmul.msk.f32.gmra.mxu0 %vm163_vm1, %v33_v49 }
  0x9c   :  { %2400 = vmatmul.msk.f32.gmra.mxu1 %vm163_vm1, %v65_v1 }
  0x9d   :  { %2433 = vmatmul.msk.f32.gmra.mxu2 %vm163_vm1, %v98_v42 }
  0xa0   :  { %v2745_v52 = vpop.f32.mrf.mxu0  ;;  %v2937_v45 = vpop.f32.mrf.mxu2 }
  0xa1   :  { %6192 = vst [vmem:[#allocation3_spill] sm:$0xff] %v2745_v52  ;;  %v2802_v5 = vpop.f32.mrf.mxu1 }
  0xa2   :  { %6197 = vst [vmem:[#allocation8_spill] sm:$0xff] %v2802_v5 }
  0xa3   :  { %2369 = vmatmul.msk.f32.gmra.mxu0 %vm163_vm1, %v34_v53  ;;  %6208 = vst [vmem:[#allocation19_spill] sm:$0xff] %v2937_v45  ;;  %v125_v53 = vld [vmem:[%s6004_s0 + $0x360] sm:$0xff] }
  0xa4   :  { %2401 = vmatmul.msk.f32.gmra.mxu1 %vm163_vm1, %v66_v7  ;;  %2460 = vmatmul.msk.f32.gmra.mxu3 %vm163_vm1, %v125_v53  ;;  %v75_v7 = vld [vmem:[%s6004_s0 + $0x1d0] sm:$0xff] }
  0xa5   :  { %2434 = vmatmul.msk.f32.gmra.mxu2 %vm163_vm1, %v99_v50  ;;  %v131_v50 = vld [vmem:[%s6004_s0 + $0x390] sm:$0xff] }
  0xa8   :  { %v2759_v56 = vpop.f32.mrf.mxu0  ;;  %v2959_v54 = vpop.f32.mrf.mxu2 }
  0xa9   :  { %6193 = vst [vmem:[#allocation4_spill] sm:$0xff] %v2759_v56  ;;  %v2822_v11 = vpop.f32.mrf.mxu1 }
  0xaa   :  { %6199 = vst [vmem:[#allocation10_spill] sm:$0xff] %v2822_v11 }
  0xab   :  { %2370 = vmatmul.msk.f32.gmra.mxu0 %vm163_vm1, %v35_v57  ;;  %6211 = vst [vmem:[#allocation22_spill] sm:$0xff] %v2959_v54  ;;  %v45_v57 = vld [vmem:[%s6004_s0 + $0xe0] sm:$0xff] }
  0xac   :  { %2402 = vmatmul.msk.f32.gmra.mxu1 %vm163_vm1, %v67_v13  ;;  %v47_v13 = vld [vmem:[%s6004_s0 + $0xf0] sm:$0xff] }
  0xad   :  { %2435 = vmatmul.msk.f32.gmra.mxu2 %vm163_vm1, %v100_v59  ;;  %v106_v59 = vld [vmem:[%s6004_s0 + $0x2c8] sm:$0xff] }
  0xb0   :  { %v2777_v61 = vpop.f32.mrf.mxu0  ;;  %v2981_v0 = vpop.f32.mrf.mxu2 }
  0xb1   :  { %6194 = vst [vmem:[#allocation5_spill] sm:$0xff] %v2777_v61  ;;  %v2842_v17 = vpop.f32.mrf.mxu1 }
  0xb3   :  { %2371 = vmatmul.msk.f32.gmra.mxu0 %vm163_vm1, %v36_v62  ;;  %v126_v62 = vld [vmem:[%s6004_s0 + $0x368] sm:$0xff] }
  0xb4   :  { %2403 = vmatmul.msk.f32.gmra.mxu1 %vm163_vm1, %v68_v19  ;;  %2461 = vmatmul.msk.f32.gmra.mxu3 %vm163_vm1, %v126_v62  ;;  %v128_v19 = vld [vmem:[%s6004_s0 + $0x378] sm:$0xff] }
  0xb5   :  { %2436 = vmatmul.msk.f32.gmra.mxu2 %vm163_vm1, %v101_v6  ;;  %v132_v62 = vld [vmem:[%s6004_s0 + $0x398] sm:$0xff] }
  0xb8   :  { %v2797_v3 = vpop.f32.mrf.mxu0 }
  0xb9   :  { %6196 = vst [vmem:[#allocation7_spill] sm:$0xff] %v2797_v3  ;;  %v2862_v23 = vpop.f32.mrf.mxu1 }
  0xba   :  { %6202 = vst [vmem:[#allocation13_spill] sm:$0xff] %v2862_v23 }
  0xbb   :  { %2372 = vmatmul.msk.f32.gmra.mxu0 %vm163_vm1, %v37_v4 }
  0xbc   :  { %2404 = vmatmul.msk.f32.gmra.mxu1 %vm163_vm1, %v69_v25  ;;  %2462 = vmatmul.msk.f32.gmra.mxu3 %vm163_vm1, %v127_v8  ;;  %v107_v8 = vld [vmem:[%s6004_s0 + $0x2d0] sm:$0xff] }
  0xc0   :  { %v2817_v9 = vpop.f32.mrf.mxu0 }
  0xc1   :  { %6198 = vst [vmem:[#allocation9_spill] sm:$0xff] %v2817_v9  ;;  %v2882_v29 = vpop.f32.mrf.mxu1 }
  0xc2   :  { %6204 = vst [vmem:[#allocation15_spill] sm:$0xff] %v2882_v29 }
  0xc3   :  { %2373 = vmatmul.msk.f32.gmra.mxu0 %vm163_vm1, %v38_v10  ;;  %v3003_v10 = vpop.f32.mrf.mxu2 }
  0xc4   :  { %2405 = vmatmul.msk.f32.gmra.mxu1 %vm163_vm1, %v70_v31  ;;  %2463 = vmatmul.msk.f32.gmra.mxu3 %vm163_vm1, %v128_v19 }
  0xc8   :  { %v2837_v15 = vpop.f32.mrf.mxu0 }
  0xc9   :  { %6200 = vst [vmem:[#allocation11_spill] sm:$0xff] %v2837_v15  ;;  %v2902_v35 = vpop.f32.mrf.mxu1 }
  0xca   :  { %6206 = vst [vmem:[#allocation17_spill] sm:$0xff] %v2902_v35 }
  0xcb   :  { %2374 = vmatmul.msk.f32.gmra.mxu0 %vm163_vm1, %v39_v16  ;;  %v102_v16 = vld [vmem:[%s6004_s0 + $0x2a8] sm:$0xff]  ;;  %v3025_v20 = vpop.f32.mrf.mxu2 }
  0xcc   :  { %2406 = vmatmul.msk.f32.gmra.mxu1 %vm163_vm1, %v71_v37  ;;  %2437 = vmatmul.msk.f32.gmra.mxu2 %vm163_vm1, %v102_v16  ;;  %6215 = vst [vmem:[#allocation26_spill] sm:$0xff] %v3025_v20  ;;  %v78_v37 = vld [vmem:[%s6004_s0 + $0x1e8] sm:$0xff]  ;;  %v133_v16 = vld [vmem:[%s6004_s0 + $0x3a0] sm:$0xff] }
  0xcd   :  { %2464 = vmatmul.msk.f32.gmra.mxu3 %vm163_vm1, %v129_v30  ;;  %v134_v30 = vld [vmem:[%s6004_s0 + $0x3a8] sm:$0xff] }
  0xd0   :  { %v2857_v21 = vpop.f32.mrf.mxu0 }
  0xd1   :  { %6201 = vst [vmem:[#allocation12_spill] sm:$0xff] %v2857_v21  ;;  %v2922_v41 = vpop.f32.mrf.mxu1 }
  0xd3   :  { %2375 = vmatmul.msk.f32.gmra.mxu0 %vm163_vm1, %v40_v22  ;;  %v3047_v31 = vpop.f32.mrf.mxu2 }
  0xd4   :  { %2407 = vmatmul.msk.f32.gmra.mxu1 %vm163_vm1, %v72_v43  ;;  %2438 = vmatmul.msk.f32.gmra.mxu2 %vm163_vm1, %v103_v26  ;;  %6217 = vst [vmem:[#allocation28_spill] sm:$0xff] %v3047_v31 }
  0xd5   :  { %2465 = vmatmul.msk.f32.gmra.mxu3 %vm163_vm1, %v130_v38 }
  0xd8   :  { %v2877_v27 = vpop.f32.mrf.mxu0 }
  0xd9   :  { %6203 = vst [vmem:[#allocation14_spill] sm:$0xff] %v2877_v27  ;;  %v2944_v49 = vpop.f32.mrf.mxu1 }
  0xda   :  { %6210 = vst [vmem:[#allocation21_spill] sm:$0xff] %v2944_v49 }
  0xdb   :  { %2376 = vmatmul.msk.f32.gmra.mxu0 %vm163_vm1, %v41_v28  ;;  %v77_v28 = vld [vmem:[%s6004_s0 + $0x1e0] sm:$0xff] }
  0xdc   :  { %2408 = vmatmul.msk.f32.gmra.mxu1 %vm163_vm1, %v73_v51  ;;  %2439 = vmatmul.msk.f32.gmra.mxu2 %vm163_vm1, %v104_v36 }
  0xdd   :  { %2466 = vmatmul.msk.f32.gmra.mxu3 %vm163_vm1, %v131_v50  ;;  %v135_v50 = vld [vmem:[%s6004_s0 + $0x3b0] sm:$0xff] }
  0xe0   :  { %v2897_v33 = vpop.f32.mrf.mxu0 }
  0xe1   :  { %6205 = vst [vmem:[#allocation16_spill] sm:$0xff] %v2897_v33  ;;  %v2966_v58 = vpop.f32.mrf.mxu1 }
  0xe2   :  { %6213 = vst [vmem:[#allocation24_spill] sm:$0xff] %v2966_v58 }
  0xe3   :  { %2377 = vmatmul.msk.f32.gmra.mxu0 %vm163_vm1, %v42_v34 }
  0xe4   :  { %2409 = vmatmul.msk.f32.gmra.mxu1 %vm163_vm1, %v74_v60  ;;  %2440 = vmatmul.msk.f32.gmra.mxu2 %vm163_vm1, %v105_v44  ;;  %v80_v60 = vld [vmem:[%s6004_s0 + $0x1f8] sm:$0xff] }
  0xe5   :  { %2467 = vmatmul.msk.f32.gmra.mxu3 %vm163_vm1, %v132_v62 }
  0xe8   :  { %v2917_v39 = vpop.f32.mrf.mxu0 }
  0xe9   :  { %6207 = vst [vmem:[#allocation18_spill] sm:$0xff] %v2917_v39  ;;  %v2988_v4 = vpop.f32.mrf.mxu1 }
  0xeb   :  { %2378 = vmatmul.msk.f32.gmra.mxu0 %vm163_vm1, %v43_v40  ;;  %v3065_v40 = vpop.f32.mrf.mxu2 }
  0xec   :  { %2410 = vmatmul.msk.f32.gmra.mxu1 %vm163_vm1, %v75_v7  ;;  %6220 = vst [vmem:[#allocation31_spill] sm:$0xff] %v3065_v40  ;;  %2441 = vmatmul.msk.f32.gmra.mxu2 %vm163_vm1, %v106_v59 }
  0xed   :  { %2468 = vmatmul.msk.f32.gmra.mxu3 %vm163_vm1, %v133_v16 }
  0xf0   :  { %v2939_v46 = vpop.f32.mrf.mxu0 }
  0xf1   :  { %6209 = vst [vmem:[#allocation20_spill] sm:$0xff] %v2939_v46  ;;  %v3010_v14 = vpop.f32.mrf.mxu1 }
  0xf3   :  { %2379 = vmatmul.msk.f32.gmra.mxu0 %vm163_vm1, %v44_v47  ;;  %v79_v47 = vld [vmem:[%s6004_s0 + $0x1f0] sm:$0xff]  ;;  %v3083_v51 = vpop.f32.mrf.mxu2 }
  0xf4   :  { %2411 = vmatmul.msk.f32.gmra.mxu1 %vm163_vm1, %v76_v18  ;;  %6223 = vst [vmem:[#allocation34_spill] sm:$0xff] %v3083_v51  ;;  %2442 = vmatmul.msk.f32.gmra.mxu2 %vm163_vm1, %v107_v8  ;;  %v3119_v18 = vpop.f32.mrf.mxu3  ;;  %v110_v8 = vld [vmem:[%s6004_s0 + $0x2e8] sm:$0xff] }
  0xf5   :  { %6228 = vst [vmem:[#allocation39_spill] sm:$0xff] %v3119_v18  ;;  %2469 = vmatmul.msk.f32.gmra.mxu3 %vm163_vm1, %v134_v30 }
  0xf8   :  { %v2961_v55 = vpop.f32.mrf.mxu0 }
  0xf9   :  { %6212 = vst [vmem:[#allocation23_spill] sm:$0xff] %v2961_v55  ;;  %v3032_v25 = vpop.f32.mrf.mxu1 }
  0xfb   :  { %2380 = vmatmul.msk.f32.gmra.mxu0 %vm163_vm1, %v45_v57 }
  0xfc   :  { %2412 = vmatmul.msk.f32.gmra.mxu1 %vm163_vm1, %v77_v28  ;;  %v108_v28 = vld [vmem:[%s6004_s0 + $0x2d8] sm:$0xff] }
  0xfd   :  { %2443 = vmatmul.msk.f32.gmra.mxu2 %vm163_vm1, %v108_v28  ;;  %2470 = vmatmul.msk.f32.gmra.mxu3 %vm163_vm1, %v135_v50  ;;  %v137_v50 = vld [vmem:[%s6004_s0 + $0x3c0] sm:$0xff] }
 0x100   :  { %v2983_v1 = vpop.f32.mrf.mxu0 }
 0x101   :  { %6214 = vst [vmem:[#allocation25_spill] sm:$0xff] %v2983_v1  ;;  %v3051_v34 = vpop.f32.mrf.mxu1 }
 0x102   :  { %6219 = vst [vmem:[#allocation30_spill] sm:$0xff] %v3051_v34 }
 0x103   :  { %2381 = vmatmul.msk.f32.gmra.mxu0 %vm163_vm1, %v46_v2  ;;  %v3101_v2 = vpop.f32.mrf.mxu2 }
 0x104   :  { %2413 = vmatmul.msk.f32.gmra.mxu1 %vm163_vm1, %v78_v37  ;;  %6225 = vst [vmem:[#allocation36_spill] sm:$0xff] %v3101_v2  ;;  %v3137_v37 = vpop.f32.mrf.mxu3 }
 0x105   :  { %6233 = vst [vmem:[#allocation44_spill] sm:$0xff] %v3137_v37  ;;  %v987_v37 = vsel %vm983_vm2, %v2759_v56, 0.0 }
 0x108   :  { %v3005_v12 = vpop.f32.mrf.mxu0 }
 0x109   :  { %v3069_v43 = vpop.f32.mrf.mxu1 }
 0x10a   :  { %6222 = vst [vmem:[#allocation33_spill] sm:$0xff] %v3069_v43 }
 0x10b   :  { %2382 = vmatmul.msk.f32.gmra.mxu0 %vm163_vm1, %v47_v13  ;;  %v81_v13 = vld [vmem:[%s6004_s0 + $0x200] sm:$0xff]  ;;  %v3121_v19 = vpop.f32.mrf.mxu2 }
 0x10c   :  { %2414 = vmatmul.msk.f32.gmra.mxu1 %vm163_vm1, %v79_v47  ;;  %6229 = vst [vmem:[#allocation40_spill] sm:$0xff] %v3121_v19  ;;  %v109_v47 = vld [vmem:[%s6004_s0 + $0x2e0] sm:$0xff]  ;;  %v3155_v62 = vpop.f32.mrf.mxu3 }
 0x10d   :  { %2444 = vmatmul.msk.f32.gmra.mxu2 %vm163_vm1, %v109_v47  ;;  %6238 = vst [vmem:[#allocation49_spill] sm:$0xff] %v3155_v62  ;;  %v111_v47 = vld [vmem:[%s6004_s0 + $0x2f0] sm:$0xff] }
 0x110   :  { %v3027_v22 = vpop.f32.mrf.mxu0 }
 0x111   :  { %6216 = vst [vmem:[#allocation27_spill] sm:$0xff] %v3027_v22  ;;  %v3087_v57 = vpop.f32.mrf.mxu1 }
 0x113   :  { %2383 = vmatmul.msk.f32.gmra.mxu0 %vm163_vm1, %v48_v24  ;;  %v3135_v36 = vpop.f32.mrf.mxu2 }
 0x114   :  { %2415 = vmatmul.msk.f32.gmra.mxu1 %vm163_vm1, %v80_v60  ;;  %6232 = vst [vmem:[#allocation43_spill] sm:$0xff] %v3135_v36  ;;  %v3179_v62 = vpop.f32.mrf.mxu3 }
 0x115   :  { %2445 = vmatmul.msk.f32.gmra.mxu2 %vm163_vm1, %v110_v8  ;;  %v985_v8 = vsel %vm983_vm2, %v2745_v52, 0.0  ;;  %6242 = vst [vmem:[#allocation53_spill] sm:$0xff] %v3179_v62  ;;  %v989_v52 = vsel %vm983_vm2, %v2777_v61, 0.0  ;;  %v997_v61 = vsel %vm983_vm2, %v2857_v21, 0.0 }
 0x118   :  { %v3049_v32 = vpop.f32.mrf.mxu0 }
 0x119   :  { %6218 = vst [vmem:[#allocation29_spill] sm:$0xff] %v3049_v32  ;;  %v3105_v7 = vpop.f32.mrf.mxu1 }
 0x11a   :  { %6227 = vst [vmem:[#allocation38_spill] sm:$0xff] %v3105_v7 }
 0x11b   :  { %v3151_v59 = vpop.f32.mrf.mxu2 }
 0x11c   :  { %2416 = vmatmul.msk.f32.gmra.mxu1 %vm163_vm1, %v81_v13  ;;  %6236 = vst [vmem:[#allocation47_spill] sm:$0xff] %v3151_v59  ;;  %v136_v13 = vld [vmem:[%s6004_s0 + $0x3b8] sm:$0xff] }
 0x11d   :  { %2471 = vmatmul.msk.f32.gmra.mxu3 %vm163_vm1, %v136_v13  ;;  %2446 = vmatmul.msk.f32.gmra.mxu2 %vm163_vm1, %v111_v47  ;;  %v984_v13 = vsel %vm983_vm2, %v2731_v48, 0.0  ;;  %v991_v47 = vsel %vm983_vm2, %v2797_v3, 0.0  ;;  %v112_v48 = vld [vmem:[%s6004_s0 + $0x2f8] sm:$0xff] }
 0x11e   :  { %v986_v18 = vadd.f32 %v985_v8, %v984_v13  ;;  %v138_v8 = vld [vmem:[%s6004_s0 + $0x3c8] sm:$0xff]  ;;  %v993_v13 = vsel %vm983_vm2, %v2817_v9, 0.0 }
 0x120   :  { %v3067_v42 = vpop.f32.mrf.mxu0  ;;  %v988_v36 = vadd.f32 %v987_v37, %v986_v18  ;;  %v995_v37 = vsel %vm983_vm2, %v2837_v15, 0.0 }
 0x121   :  { %6221 = vst [vmem:[#allocation32_spill] sm:$0xff] %v3067_v42  ;;  %v3125_v26 = vpop.f32.mrf.mxu1 }
 0x122   :  { %6231 = vst [vmem:[#allocation42_spill] sm:$0xff] %v3125_v26 }
 0x123   :  { %v3167_v28 = vpop.f32.mrf.mxu2 }
 0x124   :  { %6240 = vst [vmem:[#allocation51_spill] sm:$0xff] %v3167_v28 }
 0x125   :  { %2472 = vmatmul.msk.f32.gmra.mxu3 %vm163_vm1, %v137_v50  ;;  %v990_v50 = vadd.f32 %v989_v52, %v988_v36  ;;  %2447 = vmatmul.msk.f32.gmra.mxu2 %vm163_vm1, %v112_v48  ;;  %v3209_v52 = vpop.f32.mrf.mxu3  ;;  %v999_v48 = vsel %vm983_vm2, %v2877_v27, 0.0 }
 0x127   :  { %v992_v18 = vadd.f32 %v991_v47, %v990_v50  ;;  %v113_v50 = vld [vmem:[%s6004_s0 + $0x300] sm:$0xff] }
 0x128   :  { %v3085_v53 = vpop.f32.mrf.mxu0 }
 0x129   :  { %6224 = vst [vmem:[#allocation35_spill] sm:$0xff] %v3085_v53  ;;  %v3141_v44 = vpop.f32.mrf.mxu1  ;;  %v994_v36 = vadd.f32 %v993_v13, %v992_v18  ;;  %v1001_v13 = vsel %vm983_vm2, %v2897_v33, 0.0 }
 0x12a   :  { %6235 = vst [vmem:[#allocation46_spill] sm:$0xff] %v3141_v44 }
 0x12b   :  { %v3189_v59 = vpop.f32.mrf.mxu2  ;;  %v996_v56 = vadd.f32 %v995_v37, %v994_v36  ;;  %v1003_v37 = vsel %vm983_vm2, %v2917_v39, 0.0  ;;  %v1005_v36 = vsel %vm983_vm2, %v2939_v46, 0.0 }
 0x12c   :  { %6243 = vst [vmem:[#allocation54_spill] sm:$0xff] %v3189_v59 }
 0x12d   :  { %2473 = vmatmul.msk.f32.gmra.mxu3 %vm163_vm1, %v138_v8  ;;  %v998_v47 = vadd.f32 %v997_v61, %v996_v56  ;;  %v139_v8 = vld [vmem:[%s6004_s0 + $0x3d0] sm:$0xff]  ;;  %2448 = vmatmul.msk.f32.gmra.mxu2 %vm163_vm1, %v113_v50  ;;  %v3237_v27 = vpop.f32.mrf.mxu3  ;;  %v1007_v50 = vsel %vm983_vm2, %v2961_v55, 0.0  ;;  %v1013_v55 = vsel %vm983_vm2, %v3027_v22, 0.0 }
 0x12f   :  { %v1000_v18 = vadd.f32 %v999_v48, %v998_v47 }
 0x130   :  { %v3103_v6 = vpop.f32.mrf.mxu0 }
 0x131   :  { %6226 = vst [vmem:[#allocation37_spill] sm:$0xff] %v3103_v6  ;;  %v3164_v16 = vpop.f32.mrf.mxu1  ;;  %v1002_v56 = vadd.f32 %v1001_v13, %v1000_v18  ;;  %v140_v13 = vld [vmem:[%s6004_s0 + $0x3d8] sm:$0xff]  ;;  %v1009_v18 = vsel %vm983_vm2, %v2983_v1, 0.0  ;;  %v1015_v1 = vsel %vm983_vm2, %v3049_v32, 0.0 }
 0x132   :  { %6239 = vst [vmem:[#allocation50_spill] sm:$0xff] %v3164_v16 }
 0x133   :  { %v3211_v3 = vpop.f32.mrf.mxu2  ;;  %v1004_v21 = vadd.f32 %v1003_v37, %v1002_v56 }
 0x135   :  { %2474 = vmatmul.msk.f32.gmra.mxu3 %vm163_vm1, %v139_v8  ;;  %v1006_v48 = vadd.f32 %v1005_v36, %v1004_v21  ;;  %v114_v8 = vld [vmem:[%s6004_s0 + $0x308] sm:$0xff]  ;;  %v1011_v21 = vsel %vm983_vm2, %v3005_v12, 0.0  ;;  %v3265_v33 = vpop.f32.mrf.mxu3 }
 0x136   :  { %2449 = vmatmul.msk.f32.gmra.mxu2 %vm163_vm1, %v114_v8  ;;  %v1017_v8 = vsel %vm983_vm2, %v3067_v42, 0.0 }
 0x137   :  { %v1008_v37 = vadd.f32 %v1007_v50, %v1006_v48  ;;  %v115_v48 = vld [vmem:[%s6004_s0 + $0x310] sm:$0xff] }
 0x138   :  { %v3123_v24 = vpop.f32.mrf.mxu0 }
 0x139   :  { %6230 = vst [vmem:[#allocation41_spill] sm:$0xff] %v3123_v24  ;;  %v3187_v28 = vpop.f32.mrf.mxu1  ;;  %v1010_v56 = vadd.f32 %v1009_v18, %v1008_v37  ;;  %v1019_v37 = vsel %vm983_vm2, %v3085_v53, 0.0 }
 0x13b   :  { %v3233_v61 = vpop.f32.mrf.mxu2  ;;  %v1012_v46 = vadd.f32 %v1011_v21, %v1010_v56 }
 0x13c   :  { %6245 = vst [vmem:[#allocation56_spill] sm:$0xff] %v3233_v61 }
 0x13d   :  { %2475 = vmatmul.msk.f32.gmra.mxu3 %vm163_vm1, %v140_v13  ;;  %v1014_v50 = vadd.f32 %v1013_v55, %v1012_v46  ;;  %v141_v46 = vld [vmem:[%s6004_s0 + $0x3e0] sm:$0xff]  ;;  %v1021_v55 = vsel %vm983_vm2, %v3103_v6, 0.0 }
 0x13e   :  { %2450 = vmatmul.msk.f32.gmra.mxu2 %vm163_vm1, %v115_v48 }
 0x13f   :  { %v1016_v13 = vadd.f32 %v1015_v1, %v1014_v50  ;;  %v1023_v1 = vsel %vm983_vm2, %v3123_v24, 0.0 }
 0x140   :  { %v3139_v38 = vpop.f32.mrf.mxu0 }
 0x141   :  { %6234 = vst [vmem:[#allocation45_spill] sm:$0xff] %v3139_v38  ;;  %v3217_v9 = vpop.f32.mrf.mxu1  ;;  %v1018_v21 = vadd.f32 %v1017_v8, %v1016_v13  ;;  %v1025_v8 = vsel %vm983_vm2, %v3139_v38, 0.0  ;;  %v3291_v13 = vpop.f32.mrf.mxu3 }
 0x143   :  { %v3257_v36 = vpop.f32.mrf.mxu2  ;;  %v1020_v42 = vadd.f32 %v1019_v37, %v1018_v21  ;;  %v142_v37 = vld [vmem:[%s6004_s0 + $0x3e8] sm:$0xff] }
 0x144   :  { %6248 = vst [vmem:[#allocation59_spill] sm:$0xff] %v3257_v36 }
 0x145   :  { %2476 = vmatmul.msk.f32.gmra.mxu3 %vm163_vm1, %v141_v46  ;;  %v1022_v50 = vadd.f32 %v1021_v55, %v1020_v42 }
 0x147   :  { %v1024_v53 = vadd.f32 %v1023_v1, %v1022_v50 }
 0x148   :  { %v3153_v60 = vpop.f32.mrf.mxu0 }
 0x149   :  { %6237 = vst [vmem:[#allocation48_spill] sm:$0xff] %v3153_v60  ;;  %v3243_v47 = vpop.f32.mrf.mxu1  ;;  %v1027_v32 = vsel %vm983_vm2, %v3153_v60, 0.0  ;;  %v1026_v22 = vadd.f32 %v1025_v8, %v1024_v53  ;;  %v3313_v38 = vpop.f32.mrf.mxu3 }
 0x14a   :  { %6247 = vst [vmem:[#allocation58_spill] sm:$0xff] %v3243_v47 }
 0x14b   :  { %v3277_v56 = vpop.f32.mrf.mxu2  ;;  %v1028_v21 = vadd.f32 %v1027_v32, %v1026_v22  ;;  %v143_v22 = vld [vmem:[%s6004_s0 + $0x3f0] sm:$0xff] }
 0x14d   :  { %2477 = vmatmul.msk.f32.gmra.mxu3 %vm163_vm1, %v142_v37 }
 0x150   :  { %v3169_v30 = vpop.f32.mrf.mxu0 }
 0x151   :  { %6241 = vst [vmem:[#allocation52_spill] sm:$0xff] %v3169_v30  ;;  %v3273_v18 = vpop.f32.mrf.mxu1  ;;  %v1029_v42 = vsel %vm983_vm2, %v3169_v30, 0.0 }
 0x152   :  { %6250 = vst [vmem:[#allocation61_spill] sm:$0xff] %v3273_v18  ;;  %v1030_v53 = vadd.f32 %v1029_v42, %v1028_v21 }
 0x153   :  { %v3297_v46 = vpop.f32.mrf.mxu2 }
 0x155   :  { %2478 = vmatmul.msk.f32.gmra.mxu3 %vm163_vm1, %v143_v22 }
 0x158   :  { %v3193_v62 = vpop.f32.mrf.mxu0 }
 0x159   :  { %v3295_v6 = vpop.f32.mrf.mxu1  ;;  %v1031_v1 = vsel %vm983_vm2, %v3193_v62, 0.0 }
 0x15a   :  { %6251 = vst [vmem:[#allocation62_spill] sm:$0xff] %v3295_v6  ;;  %v1032_v8 = vadd.f32 %v1031_v1, %v1030_v53 }
 0x15b   :  { %v3315_v30 = vpop.f32.mrf.mxu2 }
 0x160   :  { %v3215_v59 = vpop.f32.mrf.mxu0 }
 0x161   :  { %6244 = vst [vmem:[#allocation55_spill] sm:$0xff] %v3215_v59  ;;  %v1033_v50 = vsel %vm983_vm2, %v3215_v59, 0.0  ;;  %v3325_v21 = vpop.f32.mrf.mxu1 }
 0x162   :  { %v1034_v24 = vadd.f32 %v1033_v50, %v1032_v8 }
 0x168   :  { %v3239_v15 = vpop.f32.mrf.mxu0 }
 0x169   :  { %6246 = vst [vmem:[#allocation57_spill] sm:$0xff] %v3239_v15  ;;  %v1035_v60 = vsel %vm983_vm2, %v3239_v15, 0.0 }
 0x16a   :  { %v1036_v37 = vadd.f32 %v1035_v60, %v1034_v24  ;;  %v144_v24 = vld [vmem:[%s6004_s0 + $0x3f8] sm:$0xff]  ;;  %v3336_v60 = vpop.f32.mrf.mxu3 }
 0x16b   :  { %2479 = vmatmul.msk.f32.gmra.mxu3 %vm163_vm1, %v144_v24 }
 0x170   :  { %v3261_v39 = vpop.f32.mrf.mxu0 }
 0x171   :  { %6249 = vst [vmem:[#allocation60_spill] sm:$0xff] %v3261_v39  ;;  %v1037_v32 = vsel %vm983_vm2, %v3261_v39, 0.0 }
 0x172   :  { %v1038_v53 = vadd.f32 %v1037_v32, %v1036_v37  ;;  %v3341_v32 = vpop.f32.mrf.mxu2 }
 0x173   :  { %6254 = vst [vmem:[#allocation65_spill] sm:$0xff] %v3341_v32 }
 0x178   :  { %v3285_v48 = vpop.f32.mrf.mxu0 }
 0x179   :  { %v1039_v1 = vsel %vm983_vm2, %v3285_v48, 0.0 }
 0x17a   :  { %v1040_v8 = vadd.f32 %v1039_v1, %v1038_v53  ;;  %v3345_v53 = vpop.f32.mrf.mxu1 }
 0x180   :  { %v3305_v55 = vpop.f32.mrf.mxu0 }
 0x181   :  { %6252 = vst [vmem:[#allocation63_spill] sm:$0xff] %v3305_v55  ;;  %v1041_v50 = vsel %vm983_vm2, %v3305_v55, 0.0 }
 0x182   :  { %v1042_v59 = vadd.f32 %v1041_v50, %v1040_v8  ;;  %v1047_v50 = vsel %vm983_vm2, %v2782_v63, 0.0  ;;  %v3359_v63 = vpop.f32.mrf.mxu3 }
 0x183   :  { %6255 = vst [vmem:[#allocation66_spill] sm:$0xff] %v3359_v63 }
 0x188   :  { %v3323_v42 = vpop.f32.mrf.mxu0 }
 0x189   :  { %6253 = vst [vmem:[#allocation64_spill] sm:$0xff] %v3323_v42  ;;  %v1043_v15 = vsel %vm983_vm2, %v3323_v42, 0.0  ;;  %v1049_v42 = vsel %vm983_vm2, %v2802_v5, 0.0 }
 0x18a   :  { %v1044_v22 = vadd.f32 %v1043_v15, %v1042_v59  ;;  %v145_v15 = vld [vmem:[%s6004_s0 + $0x400] sm:$0xff]  ;;  %v1051_v59 = vsel %vm983_vm2, %v2822_v11, 0.0  ;;  %v1057_v11 = vsel %vm983_vm2, %v2882_v29, 0.0  ;;  %v3379_v29 = vpop.f32.mrf.mxu3 }
 0x18b   :  { %2480 = vmatmul.msk.f32.gmra.mxu3 %vm163_vm1, %v145_v15  ;;  %v1059_v15 = vsel %vm983_vm2, %v2902_v35, 0.0 }
 0x190   :  { %v3339_v39 = vpop.f32.mrf.mxu0 }
 0x191   :  { %v1045_v37 = vsel %vm983_vm2, %v3339_v39, 0.0 }
 0x192   :  { %v1046_v1 = vadd.f32 %v1045_v37, %v1044_v22  ;;  %v1053_v22 = vsel %vm983_vm2, %v2842_v17, 0.0 }
 0x194   :  { %v1048_v8 = vadd.f32 %v1047_v50, %v1046_v1  ;;  %v3361_v1 = vpop.f32.mrf.mxu2 }
 0x195   :  { %6256 = vst [vmem:[#allocation67_spill] sm:$0xff] %v3361_v1 }
 0x196   :  { %v1050_v55 = vadd.f32 %v1049_v42, %v1048_v8  ;;  %v1055_v42 = vsel %vm983_vm2, %v2862_v23, 0.0  ;;  %v3365_v8 = vpop.f32.mrf.mxu1 }
 0x197   :  { %6257 = vst [vmem:[#allocation68_spill] sm:$0xff] %v3365_v8 }
 0x198   :  { %v1052_v24 = vadd.f32 %v1051_v59, %v1050_v55  ;;  %v146_v55 = vld [vmem:[%s6004_s0 + $0x408] sm:$0xff] }
 0x199   :  { %2481 = vmatmul.msk.f32.gmra.mxu3 %vm163_vm1, %v146_v55  ;;  %v1067_v55 = vsel %vm983_vm2, %v2988_v4, 0.0 }
 0x19a   :  { %v1054_v37 = vadd.f32 %v1053_v22, %v1052_v24  ;;  %v1061_v24 = vsel %vm983_vm2, %v2922_v41, 0.0 }
 0x19c   :  { %v1056_v50 = vadd.f32 %v1055_v42, %v1054_v37  ;;  %v1063_v37 = vsel %vm983_vm2, %v2944_v49, 0.0 }
 0x19e   :  { %v1058_v5 = vadd.f32 %v1057_v11, %v1056_v50  ;;  %v3381_v11 = vpop.f32.mrf.mxu2  ;;  %v1065_v50 = vsel %vm983_vm2, %v2966_v58, 0.0  ;;  %v3385_v35 = vpop.f32.mrf.mxu1 }
 0x19f   :  { %6258 = vst [vmem:[#allocation69_spill] sm:$0xff] %v3385_v35  ;;  %v3399_v58 = vpop.f32.mrf.mxu3 }
 0x1a0   :  { %v1060_v59 = vadd.f32 %v1059_v15, %v1058_v5  ;;  %v147_v5 = vld [vmem:[%s6004_s0 + $0x410] sm:$0xff]  ;;  %6259 = vst [vmem:[#allocation70_spill] sm:$0xff] %v3399_v58 }
 0x1a1   :  { %2482 = vmatmul.msk.f32.gmra.mxu3 %vm163_vm1, %v147_v5  ;;  %v1075_v5 = vsel %vm983_vm2, %v3069_v43, 0.0  ;;  %v149_v43 = vld [vmem:[%s6004_s0 + $0x420] sm:$0x3] }
 0x1a2   :  { %v1062_v22 = vadd.f32 %v1061_v24, %v1060_v59  ;;  %v1069_v59 = vsel %vm983_vm2, %v3010_v14, 0.0 }
 0x1a4   :  { %v1064_v42 = vadd.f32 %v1063_v37, %v1062_v22  ;;  %v1071_v22 = vsel %vm983_vm2, %v3032_v25, 0.0 }
 0x1a6   :  { %v1066_v23 = vadd.f32 %v1065_v50, %v1064_v42  ;;  %v1073_v42 = vsel %vm983_vm2, %v3051_v34, 0.0  ;;  %v3401_v49 = vpop.f32.mrf.mxu2 }
 0x1a8   :  { %v1068_v15 = vadd.f32 %v1067_v55, %v1066_v23  ;;  %v148_v23 = vld [vmem:[%s6004_s0 + $0x418] sm:$0xff] }
 0x1a9   :  { %2483 = vmatmul.msk.f32.gmra.mxu3 %vm163_vm1, %v148_v23 }
 0x1aa   :  { %v1070_v24 = vadd.f32 %v1069_v59, %v1068_v15  ;;  %v3409_v15 = vpop.f32.mrf.mxu1  ;;  %v1077_v59 = vsel %vm983_vm2, %v3087_v57, 0.0 }
 0x1ab   :  { %6260 = vst [vmem:[#allocation71_spill] sm:$0xff] %v3409_v15 }
 0x1ac   :  { %v1072_v37 = vadd.f32 %v1071_v22, %v1070_v24  ;;  %v1079_v22 = vsel %vm983_vm2, %v3105_v7, 0.0 }
 0x1ae   :  { %v1074_v50 = vadd.f32 %v1073_v42, %v1072_v37  ;;  %v1081_v42 = vsel %vm983_vm2, %v3125_v26, 0.0 }
 0x1b0   :  { %v1076_v55 = vadd.f32 %v1075_v5, %v1074_v50  ;;  %v1083_v50 = vsel %vm983_vm2, %v3141_v44, 0.0  ;;  %v3423_v5 = vpop.f32.mrf.mxu3  ;;  %v1089_v44 = vsel %vm983_vm2, %v3217_v9, 0.0 }
 0x1b1   :  { %2484 = vmatmul.msk.f32.gmra.mxu3 %vm163_vm1, %v149_v43 }
 0x1b2   :  { %v1078_v24 = vadd.f32 %v1077_v59, %v1076_v55  ;;  %v3425_v55 = vpop.f32.mrf.mxu2  ;;  %v1085_v59 = vsel %vm983_vm2, %v3164_v16, 0.0 }
 0x1b4   :  { %v1080_v37 = vadd.f32 %v1079_v22, %v1078_v24  ;;  %v3429_v22 = vpop.f32.mrf.mxu1 }
 0x1b6   :  { %v1082_v34 = vadd.f32 %v1081_v42, %v1080_v37  ;;  %v1087_v37 = vsel %vm983_vm2, %v3187_v28, 0.0 }
 0x1b8   :  { %v1084_v23 = vadd.f32 %v1083_v50, %v1082_v34  ;;  %v1091_v34 = vsel %vm983_vm2, %v3243_v47, 0.0  ;;  %v1093_v50 = vsel %vm983_vm2, %v3273_v18, 0.0  ;;  %v3439_v16 = vpop.f32.mrf.mxu3  ;;  %v1103_v18 = vsel %vm983_vm2, %v3385_v35, 0.0 }
 0x1b9   :  { %v1113_v35 = vsel %vm983_vm2, %v2937_v45, 0.0 }
 0x1ba   :  { %v1086_v24 = vadd.f32 %v1085_v59, %v1084_v23  ;;  %v3441_v23 = vpop.f32.mrf.mxu2  ;;  %v1095_v59 = vsel %vm983_vm2, %v3295_v6, 0.0 }
 0x1bb   :  { %6261 = vst [vmem:[#allocation72_spill] sm:$0xff] %v3441_v23 }
 0x1bc   :  { %v1088_v42 = vadd.f32 %v1087_v37, %v1086_v24  ;;  %v3445_v37 = vpop.f32.mrf.mxu1 }
 0x1bd   :  { %6262 = vst [vmem:[#allocation73_spill] sm:$0xff] %v3445_v37 }
 0x1be   :  { %v1090_v26 = vadd.f32 %v1089_v44, %v1088_v42  ;;  %v1097_v44 = vsel %vm983_vm2, %v3325_v21, 0.0 }
 0x1c0   :  { %v1092_v43 = vadd.f32 %v1091_v34, %v1090_v26  ;;  %v1099_v26 = vsel %vm983_vm2, %v3345_v53, 0.0  ;;  %v3455_v6 = vpop.f32.mrf.mxu3 }
 0x1c1   :  { %6263 = vst [vmem:[#allocation74_spill] sm:$0xff] %v3455_v6 }
 0x1c2   :  { %v1094_v7 = vadd.f32 %v1093_v50, %v1092_v43  ;;  %v1101_v43 = vsel %vm983_vm2, %v3365_v8, 0.0 }
 0x1c4   :  { %v1096_v24 = vadd.f32 %v1095_v59, %v1094_v7  ;;  %v3457_v7 = vpop.f32.mrf.mxu2  ;;  %v1105_v59 = vsel %vm983_vm2, %v3409_v15, 0.0 }
 0x1c5   :  { %6264 = vst [vmem:[#allocation75_spill] sm:$0xff] %v3457_v7 }
 0x1c6   :  { %v1098_v42 = vadd.f32 %v1097_v44, %v1096_v24  ;;  %v3461_v44 = vpop.f32.mrf.mxu1 }
 0x1c8   :  { %v1100_v34 = vadd.f32 %v1099_v26, %v1098_v42  ;;  %v1107_v42 = vsel %vm983_vm2, %v3429_v22, 0.0  ;;  %v3471_v15 = vpop.f32.mrf.mxu3 }
 0x1ca   :  { %v1102_v50 = vadd.f32 %v1101_v43, %v1100_v34  ;;  %v1109_v34 = vsel %vm983_vm2, %v3445_v37, 0.0 }
 0x1cc   :  { %v1104_v47 = vadd.f32 %v1103_v18, %v1102_v50  ;;  %v1111_v18 = vsel %vm983_vm2, %v3461_v44, 0.0 }
 0x1ce   :  { %v1106_v24 = vadd.f32 %v1105_v59, %v1104_v47  ;;  %v3473_v47 = vpop.f32.mrf.mxu2  ;;  %v1115_v59 = vsel %vm983_vm2, %v2959_v54, 0.0 }
 0x1cf   :  { %6265 = vst [vmem:[#allocation76_spill] sm:$0xff] %v3473_v47 }
 0x1d0   :  { %v1108_v26 = vadd.f32 %v1107_v42, %v1106_v24  ;;  %v1117_v42 = vsel %vm983_vm2, %v2981_v0, 0.0  ;;  %v3485_v45 = vpop.f32.mrf.mxu3 }
 0x1d1   :  { %6266 = vst [vmem:[#allocation77_spill] sm:$0xff] %v3485_v45 }
 0x1d2   :  { %v1110_v43 = vadd.f32 %v1109_v34, %v1108_v26  ;;  %v1119_v26 = vsel %vm983_vm2, %v3003_v10, 0.0 }
 0x1d4   :  { %v1112_v50 = vadd.f32 %v1111_v18, %v1110_v43  ;;  %v1121_v18 = vsel %vm983_vm2, %v3025_v20, 0.0  ;;  %v1123_v43 = vsel %vm983_vm2, %v3047_v31, 0.0 }
 0x1d6   :  { %v1114_v8 = vadd.f32 %v1113_v35, %v1112_v50  ;;  %v3487_v54 = vpop.f32.mrf.mxu2 }
 0x1d7   :  { %6267 = vst [vmem:[#allocation78_spill] sm:$0xff] %v3487_v54 }
 0x1d8   :  { %v1116_v24 = vadd.f32 %v1115_v59, %v1114_v8  ;;  %v1125_v8 = vsel %vm983_vm2, %v3065_v40, 0.0  ;;  %v3499_v20 = vpop.f32.mrf.mxu3 }
 0x1da   :  { %v1118_v37 = vadd.f32 %v1117_v42, %v1116_v24  ;;  %v1127_v24 = vsel %vm983_vm2, %v3083_v51, 0.0  ;;  %v1129_v42 = vsel %vm983_vm2, %v3101_v2, 0.0 }
 0x1dc   :  { %v1120_v34 = vadd.f32 %v1119_v26, %v1118_v37 }
 0x1de   :  { %v1122_v35 = vadd.f32 %v1121_v18, %v1120_v34  ;;  %v1131_v34 = vsel %vm983_vm2, %v3121_v19, 0.0  ;;  %v3501_v40 = vpop.f32.mrf.mxu2 }
 0x1df   :  { %6269 = vst [vmem:[#allocation79_spill] sm:$0xff] %v3501_v40 }
 0x1e0   :  { %v1124_v50 = vadd.f32 %v1123_v43, %v1122_v35  ;;  %v6268_v35 = vld [vmem:[#allocation43_spill] sm:$0xff]  ;;  %v3513_v51 = vpop.f32.mrf.mxu3 }
 0x1e1   :  { %v1133_v43 = vsel %vm983_vm2, %v6268_v35, 0.0 }
 0x1e2   :  { %v1126_v59 = vadd.f32 %v1125_v8, %v1124_v50  ;;  %v6270_v50 = vld [vmem:[#allocation47_spill] sm:$0xff] }
 0x1e3   :  { %v1135_v8 = vsel %vm983_vm2, %v6270_v50, 0.0 }
 0x1e4   :  { %v1128_v37 = vadd.f32 %v1127_v24, %v1126_v59  ;;  %v6271_v24 = vld [vmem:[#allocation51_spill] sm:$0xff] }
 0x1e5   :  { %v1137_v2 = vsel %vm983_vm2, %v6271_v24, 0.0 }
 0x1e6   :  { %v1130_v26 = vadd.f32 %v1129_v42, %v1128_v37  ;;  %v6272_v42 = vld [vmem:[#allocation54_spill] sm:$0xff]  ;;  %v3515_v50 = vpop.f32.mrf.mxu2 }
 0x1e7   :  { %v1139_v19 = vsel %vm983_vm2, %v6272_v42, 0.0  ;;  %6273 = vst [vmem:[#allocation51_spill] sm:$0xff] %v3515_v50 }
 0x1e8   :  { %v1132_v18 = vadd.f32 %v1131_v34, %v1130_v26  ;;  %v1141_v34 = vsel %vm983_vm2, %v3211_v3, 0.0 }
 0x1ea   :  { %v1134_v31 = vadd.f32 %v1133_v43, %v1132_v18  ;;  %v1143_v43 = vsel %vm983_vm2, %v3233_v61, 0.0  ;;  %v3527_v61 = vpop.f32.mrf.mxu3 }
 0x1eb   :  { %6274 = vst [vmem:[#allocation54_spill] sm:$0xff] %v3527_v61 }
 0x1ec   :  { %v1136_v59 = vadd.f32 %v1135_v8, %v1134_v31  ;;  %v1145_v31 = vsel %vm983_vm2, %v3257_v36, 0.0  ;;  %v1147_v8 = vsel %vm983_vm2, %v3277_v56, 0.0 }
 0x1ee   :  { %v1138_v37 = vadd.f32 %v1137_v2, %v1136_v59  ;;  %v1149_v59 = vsel %vm983_vm2, %v3297_v46, 0.0  ;;  %v3529_v36 = vpop.f32.mrf.mxu2 }
 0x1ef   :  { %6275 = vst [vmem:[#allocation80_spill] sm:$0xff] %v3529_v36 }
 0x1f0   :  { %v1140_v26 = vadd.f32 %v1139_v19, %v1138_v37 }
 0x1f2   :  { %v1142_v18 = vadd.f32 %v1141_v34, %v1140_v26  ;;  %v1151_v26 = vsel %vm983_vm2, %v3315_v30, 0.0 }
 0x1f4   :  { %v1144_v35 = vadd.f32 %v1143_v43, %v1142_v18  ;;  %v1153_v18 = vsel %vm983_vm2, %v3341_v32, 0.0  ;;  %v3541_v32 = vpop.f32.mrf.mxu3 }
 0x1f6   :  { %v1146_v2 = vadd.f32 %v1145_v31, %v1144_v35  ;;  %v1155_v35 = vsel %vm983_vm2, %v3361_v1, 0.0  ;;  %v3543_v1 = vpop.f32.mrf.mxu2 }
 0x1f7   :  { %6276 = vst [vmem:[#allocation81_spill] sm:$0xff] %v3543_v1 }
 0x1f8   :  { %v1148_v19 = vadd.f32 %v1147_v8, %v1146_v2  ;;  %v1157_v2 = vsel %vm983_vm2, %v3381_v11, 0.0 }
 0x1fa   :  { %v1150_v37 = vadd.f32 %v1149_v59, %v1148_v19  ;;  %v1159_v19 = vsel %vm983_vm2, %v3401_v49, 0.0 }
 0x1fc   :  { %v1152_v34 = vadd.f32 %v1151_v26, %v1150_v37  ;;  %v1161_v37 = vsel %vm983_vm2, %v3425_v55, 0.0 }
 0x1fe   :  { %v1154_v43 = vadd.f32 %v1153_v18, %v1152_v34  ;;  %v1163_v34 = vsel %vm983_vm2, %v3441_v23, 0.0  ;;  %v3555_v23 = vpop.f32.mrf.mxu3 }
 0x1ff   :  { %6277 = vst [vmem:[#allocation82_spill] sm:$0xff] %v3555_v23 }
 0x200   :  { %v1156_v31 = vadd.f32 %v1155_v35, %v1154_v43  ;;  %v1165_v43 = vsel %vm983_vm2, %v3457_v7, 0.0  ;;  %v3557_v7 = vpop.f32.mrf.mxu2 }
 0x201   :  { %6278 = vst [vmem:[#allocation83_spill] sm:$0xff] %v3557_v7 }
 0x202   :  { %v1158_v8 = vadd.f32 %v1157_v2, %v1156_v31  ;;  %v1167_v31 = vsel %vm983_vm2, %v3473_v47, 0.0 }
 0x204   :  { %v1160_v59 = vadd.f32 %v1159_v19, %v1158_v8  ;;  %v1169_v8 = vsel %vm983_vm2, %v3487_v54, 0.0 }
 0x206   :  { %v1162_v26 = vadd.f32 %v1161_v37, %v1160_v59  ;;  %v1171_v59 = vsel %vm983_vm2, %v3501_v40, 0.0  ;;  %v3569_v40 = vpop.f32.mrf.mxu3 }
 0x208   :  { %v1164_v18 = vadd.f32 %v1163_v34, %v1162_v26  ;;  %v1173_v26 = vsel %vm983_vm2, %v3515_v50, 0.0 }
 0x20a   :  { %v1166_v35 = vadd.f32 %v1165_v43, %v1164_v18  ;;  %v1175_v18 = vsel %vm983_vm2, %v3529_v36, 0.0  ;;  %v6281_v36 = vld [vmem:[#allocation49_spill] sm:$0xff] }
 0x20c   :  { %v1168_v2 = vadd.f32 %v1167_v31, %v1166_v35  ;;  %v1177_v35 = vsel %vm983_vm2, %v3543_v1, 0.0  ;;  %v1179_v31 = vsel %vm983_vm2, %v3557_v7, 0.0  ;;  %v6282_v1 = vld [vmem:[#allocation53_spill] sm:$0xff] }
 0x20d   :  { %v1187_v47 = vsel %vm983_vm2, %v6282_v1, 0.0 }
 0x20e   :  { %v1170_v19 = vadd.f32 %v1169_v8, %v1168_v2 }
 0x210   :  { %v1172_v37 = vadd.f32 %v1171_v59, %v1170_v19  ;;  %v6279_v19 = vld [vmem:[#allocation39_spill] sm:$0xff] }
 0x211   :  { %v1181_v59 = vsel %vm983_vm2, %v6279_v19, 0.0 }
 0x212   :  { %v1174_v34 = vadd.f32 %v1173_v26, %v1172_v37  ;;  %v6280_v26 = vld [vmem:[#allocation44_spill] sm:$0xff] }
 0x213   :  { %v1183_v50 = vsel %vm983_vm2, %v6280_v26, 0.0 }
 0x214   :  { %v1176_v43 = vadd.f32 %v1175_v18, %v1174_v34  ;;  %v1185_v34 = vsel %vm983_vm2, %v6281_v36, 0.0 }
 0x216   :  { %v1178_v2 = vadd.f32 %v1177_v35, %v1176_v43  ;;  %v1189_v43 = vsel %vm983_vm2, %v3209_v52, 0.0 }
 0x218   :  { %v1180_v8 = vadd.f32 %v1179_v31, %v1178_v2  ;;  %v1191_v31 = vsel %vm983_vm2, %v3237_v27, 0.0 }
 0x21a   :  { %v1182_v37 = vadd.f32 %v1181_v59, %v1180_v8  ;;  %v1193_v8 = vsel %vm983_vm2, %v3265_v33, 0.0 }
 0x21c   :  { %v1184_v54 = vadd.f32 %v1183_v50, %v1182_v37  ;;  %v3581_v50 = vpop.f32.mrf.mxu3 }
 0x21e   :  { %v1186_v18 = vadd.f32 %v1185_v34, %v1184_v54  ;;  %v1195_v54 = vsel %vm983_vm2, %v3291_v13, 0.0 }
 0x220   :  { %v1188_v7 = vadd.f32 %v1187_v47, %v1186_v18  ;;  %v1197_v47 = vsel %vm983_vm2, %v3313_v38, 0.0 }
 0x222   :  { %v1190_v35 = vadd.f32 %v1189_v43, %v1188_v7  ;;  %v1199_v7 = vsel %vm983_vm2, %v3336_v60, 0.0  ;;  %v1201_v43 = vsel %vm983_vm2, %v3359_v63, 0.0 }
 0x224   :  { %v1192_v2 = vadd.f32 %v1191_v31, %v1190_v35  ;;  %v1203_v31 = vsel %vm983_vm2, %v3379_v29, 0.0 }
 0x226   :  { %v1194_v59 = vadd.f32 %v1193_v8, %v1192_v2  ;;  %v3593_v8 = vpop.f32.mrf.mxu3 }
 0x227   :  { %6283 = vst [vmem:[#allocation39_spill] sm:$0xff] %v3593_v8 }
 0x228   :  { %v1196_v37 = vadd.f32 %v1195_v54, %v1194_v59  ;;  %v1205_v59 = vsel %vm983_vm2, %v3399_v58, 0.0 }
 0x22a   :  { %v1198_v34 = vadd.f32 %v1197_v47, %v1196_v37  ;;  %v1207_v37 = vsel %vm983_vm2, %v3423_v5, 0.0 }
 0x22c   :  { %v1200_v18 = vadd.f32 %v1199_v7, %v1198_v34  ;;  %v1209_v34 = vsel %vm983_vm2, %v3439_v16, 0.0 }
 0x22e   :  { %v1202_v35 = vadd.f32 %v1201_v43, %v1200_v18  ;;  %v3601_v63 = vpop.f32.mrf.mxu3  ;;  %v1211_v18 = vsel %vm983_vm2, %v3455_v6, 0.0 }
 0x22f   :  { %6284 = vst [vmem:[#allocation44_spill] sm:$0xff] %v3601_v63 }
 0x230   :  { %v1204_v2 = vadd.f32 %v1203_v31, %v1202_v35  ;;  %v1213_v35 = vsel %vm983_vm2, %v3471_v15, 0.0 }
 0x232   :  { %v1206_v54 = vadd.f32 %v1205_v59, %v1204_v2  ;;  %v1215_v2 = vsel %vm983_vm2, %v3485_v45, 0.0 }
 0x234   :  { %v1208_v47 = vadd.f32 %v1207_v37, %v1206_v54  ;;  %v1217_v54 = vsel %vm983_vm2, %v3499_v20, 0.0 }
 0x236   :  { %v1210_v7 = vadd.f32 %v1209_v34, %v1208_v47  ;;  %v3607_v58 = vpop.f32.mrf.mxu3  ;;  %v1219_v47 = vsel %vm983_vm2, %v3513_v51, 0.0 }
 0x237   :  { %6285 = vst [vmem:[#allocation49_spill] sm:$0xff] %v3607_v58 }
 0x238   :  { %v1212_v43 = vadd.f32 %v1211_v18, %v1210_v7  ;;  %v1221_v7 = vsel %vm983_vm2, %v3527_v61, 0.0 }
 0x23a   :  { %v1214_v31 = vadd.f32 %v1213_v35, %v1212_v43  ;;  %v1223_v43 = vsel %vm983_vm2, %v3541_v32, 0.0 }
 0x23c   :  { %v1216_v59 = vadd.f32 %v1215_v2, %v1214_v31  ;;  %v1225_v31 = vsel %vm983_vm2, %v3555_v23, 0.0 }
 0x23e   :  { %v1218_v37 = vadd.f32 %v1217_v54, %v1216_v59  ;;  %v3615_v6 = vpop.f32.mrf.mxu3  ;;  %v1227_v59 = vsel %vm983_vm2, %v3569_v40, 0.0 }
 0x23f   :  { %6286 = vst [vmem:[#allocation53_spill] sm:$0xff] %v3615_v6 }
 0x240   :  { %v1220_v34 = vadd.f32 %v1219_v47, %v1218_v37  ;;  %v1229_v37 = vsel %vm983_vm2, %v3581_v50, 0.0 }
 0x242   :  { %v1222_v18 = vadd.f32 %v1221_v7, %v1220_v34  ;;  %v1231_v34 = vsel %vm983_vm2, %v3593_v8, 0.0 }
 0x244   :  { %v1224_v35 = vadd.f32 %v1223_v43, %v1222_v18  ;;  %v1233_v18 = vsel %vm983_vm2, %v3601_v63, 0.0 }
 0x246   :  { %v3621_v45 = vpop.f32.mrf.mxu3  ;;  %v1226_v2 = vadd.f32 %v1225_v31, %v1224_v35  ;;  %v1235_v35 = vsel %vm983_vm2, %v3607_v58, 0.0 }
 0x247   :  { %6287 = vst [vmem:[#allocation84_spill] sm:$0xff] %v3621_v45 }
 0x248   :  { %v1228_v54 = vadd.f32 %v1227_v59, %v1226_v2  ;;  %v1237_v2 = vsel %vm983_vm2, %v3615_v6, 0.0 }
 0x24a   :  { %v1230_v47 = vadd.f32 %v1229_v37, %v1228_v54  ;;  %v1239_v54 = vsel %vm983_vm2, %v3621_v45, 0.0 }
 0x24c   :  { %v1232_v7 = vadd.f32 %v1231_v34, %v1230_v47 }
 0x24e   :  { %v3629_v61 = vpop.f32.mrf.mxu3  ;;  %v1234_v43 = vadd.f32 %v1233_v18, %v1232_v7 }
 0x24f   :  { %6288 = vst [vmem:[#allocation85_spill] sm:$0xff] %v3629_v61  ;;  %v1241_v47 = vsel %vm983_vm2, %v3629_v61, 0.0 }
 0x250   :  { %v1236_v31 = vadd.f32 %v1235_v35, %v1234_v43 }
 0x252   :  { %v1238_v59 = vadd.f32 %v1237_v2, %v1236_v31 }
 0x254   :  { %v1240_v37 = vadd.f32 %v1239_v54, %v1238_v59 }
 0x256   :  { %v3635_v23 = vpop.f32.mrf.mxu3  ;;  %v1242_v34 = vadd.f32 %v1241_v47, %v1240_v37 }
 0x257   :  { %6289 = vst [vmem:[#allocation86_spill] sm:$0xff] %v3635_v23  ;;  %v1243_v7 = vsel %vm983_vm2, %v3635_v23, 0.0  ;;  %v6294_v23 = vld [vmem:[#allocation3_spill] sm:$0xff] }
 0x258   :  { %v1244_v18 = vadd.f32 %v1243_v7, %v1242_v34  ;;  %v6292_v34 = vld [vmem:[#allocation2_spill] sm:$0xff] }
 0x25e   :  { %v3643_v8 = vpop.f32.mrf.mxu3 }
 0x25f   :  { %6290 = vst [vmem:[#allocation87_spill] sm:$0xff] %v3643_v8  ;;  %v1245_v43 = vsel %vm983_vm2, %v3643_v8, 0.0 }
 0x260   :  { %v1246_v35 = vadd.f32 %v1245_v43, %v1244_v18  ;;  %v6296_v18 = vld [vmem:[#allocation4_spill] sm:$0xff] }
 0x266   :  { %v3649_v58 = vpop.f32.mrf.mxu3 }
 0x267   :  { %6291 = vst [vmem:[#allocation88_spill] sm:$0xff] %v3649_v58  ;;  %v1248_v31 = vsel %vm1247_vm3, %v3649_v58, 0.0 }
 0x268   :  { %v1249_v2 = vadd.f32 %v1248_v31, %v1246_v35  ;;  %v6298_v35 = vld [vmem:[#allocation5_spill] sm:$0xff] }
 0x26a   :  { %v1250_v59 = vrot.slane %v1249_v2, 4 }
 0x26c   :  { %v1251_v54 = vadd.f32 %v1250_v59, %v1249_v2  ;;  %v6299_v2 = vld [vmem:[#allocation7_spill] sm:$0xff] }
 0x26e   :  { %v1252_v45 = vrot.slane %v1251_v54, 2 }
 0x270   :  { %v1253_v61 = vadd.f32 %v1252_v45, %v1251_v54  ;;  %v6301_v54 = vld [vmem:[#allocation9_spill] sm:$0xff] }
 0x272   :  { %v1254_v37 = vrot.slane %v1253_v61, 1 }
 0x274   :  { %v1255_v47 = vadd.f32 %v1254_v37, %v1253_v61 }
 0x276   :  { %v3655_v6 = vmul.f32 0.0009451796, %v1255_v47 }
 0x278   :  { %v3659_v7 = vsub.f32 %v6292_v34, %v3655_v6  ;;  %v3663_v8 = vsub.f32 %v6294_v23, %v3655_v6  ;;  %v3667_v43 = vsub.f32 %v6296_v18, %v3655_v6  ;;  %v3671_v31 = vsub.f32 %v6298_v35, %v3655_v6 }
 0x279   :  { %v3679_v59 = vsub.f32 %v6299_v2, %v3655_v6  ;;  %v3685_v37 = vsub.f32 %v6301_v54, %v3655_v6  ;;  %v6305_v54 = vld [vmem:[#allocation12_spill] sm:$0xff] }
 0x27a   :  { %6293 = vst [vmem:[#allocation2_spill] sm:$0xff] %v3659_v7  ;;  %v1390_v45 = vmul.f32 %v3659_v7, %v3659_v7  ;;  %v1391_v61 = vmul.f32 %v3663_v8, %v3663_v8  ;;  %v1392_v23 = vmul.f32 %v3667_v43, %v3667_v43  ;;  %v1393_v47 = vmul.f32 %v3671_v31, %v3671_v31 }
 0x27b   :  { %6295 = vst [vmem:[#allocation3_spill] sm:$0xff] %v3663_v8  ;;  %v6303_v8 = vld [vmem:[#allocation11_spill] sm:$0xff]  ;;  %v1394_v2 = vmul.f32 %v3679_v59, %v3679_v59  ;;  %v3700_v63 = vsub.f32 %v6305_v54, %v3655_v6 }
 0x27c   :  { %6297 = vst [vmem:[#allocation4_spill] sm:$0xff] %v3667_v43  ;;  %v1523_v34 = vsel %vm983_vm2, %v1390_v45, 0.0  ;;  %v1524_v18 = vsel %vm983_vm2, %v1391_v61, 0.0  ;;  %v3693_v7 = vsub.f32 %v6303_v8, %v3655_v6  ;;  %v1526_v43 = vsel %vm983_vm2, %v1392_v23, 0.0 }
 0x27d   :  { %6300 = vst [vmem:[#allocation5_spill] sm:$0xff] %v3679_v59  ;;  %v1525_v35 = vadd.f32 %v1524_v18, %v1523_v34  ;;  %v1395_v45 = vmul.f32 %v3685_v37, %v3685_v37  ;;  %v1528_v61 = vsel %vm983_vm2, %v1393_v47, 0.0  ;;  %v6307_v18 = vld [vmem:[#allocation14_spill] sm:$0xff]  ;;  %v1530_v23 = vsel %vm983_vm2, %v1394_v2, 0.0 }
 0x27e   :  { %6302 = vst [vmem:[#allocation7_spill] sm:$0xff] %v3685_v37  ;;  %v3707_v8 = vsub.f32 %v6307_v18, %v3655_v6  ;;  %v1396_v59 = vmul.f32 %v3693_v7, %v3693_v7  ;;  %v1397_v37 = vmul.f32 %v3700_v63, %v3700_v63 }
 0x27f   :  { %6304 = vst [vmem:[#allocation9_spill] sm:$0xff] %v3693_v7  ;;  %v1527_v58 = vadd.f32 %v1526_v43, %v1525_v35  ;;  %v6309_v35 = vld [vmem:[#allocation16_spill] sm:$0xff]  ;;  %v1532_v47 = vsel %vm983_vm2, %v1395_v45, 0.0 }
 0x280   :  { %6306 = vst [vmem:[#allocation11_spill] sm:$0xff] %v3700_v63  ;;  %v3714_v54 = vsub.f32 %v6309_v35, %v3655_v6  ;;  %v1398_v7 = vmul.f32 %v3707_v8, %v3707_v8  ;;  %v1534_v2 = vsel %vm983_vm2, %v1396_v59, 0.0  ;;  %v1536_v45 = vsel %vm983_vm2, %v1397_v37, 0.0 }
 0x281   :  { %v1529_v34 = vadd.f32 %v1528_v61, %v1527_v58  ;;  %6308 = vst [vmem:[#allocation12_spill] sm:$0xff] %v3707_v8  ;;  %v6311_v61 = vld [vmem:[#allocation18_spill] sm:$0xff] }
 0x282   :  { %6310 = vst [vmem:[#allocation14_spill] sm:$0xff] %v3714_v54  ;;  %v3721_v18 = vsub.f32 %v6311_v61, %v3655_v6  ;;  %v1399_v63 = vmul.f32 %v3714_v54, %v3714_v54  ;;  %v1538_v59 = vsel %vm983_vm2, %v1398_v7, 0.0 }
 0x283   :  { %v1531_v43 = vadd.f32 %v1530_v23, %v1529_v34  ;;  %v6312_v23 = vld [vmem:[#allocation20_spill] sm:$0xff] }
 0x284   :  { %v3728_v35 = vsub.f32 %v6312_v23, %v3655_v6  ;;  %v1400_v8 = vmul.f32 %v3721_v18, %v3721_v18  ;;  %v1540_v37 = vsel %vm983_vm2, %v1399_v63, 0.0 }
 0x285   :  { %v1533_v58 = vadd.f32 %v1532_v47, %v1531_v43  ;;  %v6314_v47 = vld [vmem:[#allocation23_spill] sm:$0xff] }
 0x286   :  { %6313 = vst [vmem:[#allocation16_spill] sm:$0xff] %v3728_v35  ;;  %v3735_v61 = vsub.f32 %v6314_v47, %v3655_v6  ;;  %v1401_v54 = vmul.f32 %v3728_v35, %v3728_v35  ;;  %v1542_v7 = vsel %vm983_vm2, %v1400_v8, 0.0 }
 0x287   :  { %v1535_v34 = vadd.f32 %v1534_v2, %v1533_v58  ;;  %v6316_v2 = vld [vmem:[#allocation25_spill] sm:$0xff] }
 0x288   :  { %6315 = vst [vmem:[#allocation18_spill] sm:$0xff] %v3735_v61  ;;  %v3742_v23 = vsub.f32 %v6316_v2, %v3655_v6  ;;  %v1402_v47 = vmul.f32 %v3735_v61, %v3735_v61  ;;  %v1544_v63 = vsel %vm983_vm2, %v1401_v54, 0.0 }
 0x289   :  { %v1537_v43 = vadd.f32 %v1536_v45, %v1535_v34  ;;  %v3749_v45 = vsub.f32 %v3005_v12, %v3655_v6 }
 0x28a   :  { %6317 = vst [vmem:[#allocation20_spill] sm:$0xff] %v3742_v23  ;;  %v1403_v35 = vmul.f32 %v3742_v23, %v3742_v23  ;;  %v1546_v8 = vsel %vm983_vm2, %v1402_v47, 0.0 }
 0x28b   :  { %v1539_v58 = vadd.f32 %v1538_v59, %v1537_v43  ;;  %6318 = vst [vmem:[#allocation23_spill] sm:$0xff] %v3749_v45  ;;  %v6319_v59 = vld [vmem:[#allocation27_spill] sm:$0xff]  ;;  %v1404_v61 = vmul.f32 %v3749_v45, %v3749_v45 }
 0x28c   :  { %v3756_v2 = vsub.f32 %v6319_v59, %v3655_v6  ;;  %v1548_v54 = vsel %vm983_vm2, %v1403_v35, 0.0 }
 0x28d   :  { %v1541_v34 = vadd.f32 %v1540_v37, %v1539_v58  ;;  %v6321_v37 = vld [vmem:[#allocation29_spill] sm:$0xff]  ;;  %v1550_v47 = vsel %vm983_vm2, %v1404_v61, 0.0 }
 0x28e   :  { %6320 = vst [vmem:[#allocation25_spill] sm:$0xff] %v3756_v2  ;;  %v3763_v12 = vsub.f32 %v6321_v37, %v3655_v6  ;;  %v1405_v23 = vmul.f32 %v3756_v2, %v3756_v2 }
 0x28f   :  { %v1543_v43 = vadd.f32 %v1542_v7, %v1541_v34  ;;  %v6323_v7 = vld [vmem:[#allocation32_spill] sm:$0xff] }
 0x290   :  { %6322 = vst [vmem:[#allocation27_spill] sm:$0xff] %v3763_v12  ;;  %v3770_v59 = vsub.f32 %v6323_v7, %v3655_v6  ;;  %v1406_v45 = vmul.f32 %v3763_v12, %v3763_v12  ;;  %v1552_v35 = vsel %vm983_vm2, %v1405_v23, 0.0 }
 0x291   :  { %v1545_v58 = vadd.f32 %v1544_v63, %v1543_v43  ;;  %v6325_v63 = vld [vmem:[#allocation35_spill] sm:$0xff] }
 0x292   :  { %6324 = vst [vmem:[#allocation29_spill] sm:$0xff] %v3770_v59  ;;  %v3777_v37 = vsub.f32 %v6325_v63, %v3655_v6  ;;  %v1407_v2 = vmul.f32 %v3770_v59, %v3770_v59  ;;  %v1554_v61 = vsel %vm983_vm2, %v1406_v45, 0.0 }
 0x293   :  { %v1547_v34 = vadd.f32 %v1546_v8, %v1545_v58  ;;  %v6327_v8 = vld [vmem:[#allocation37_spill] sm:$0xff] }
 0x294   :  { %6326 = vst [vmem:[#allocation32_spill] sm:$0xff] %v3777_v37  ;;  %v3784_v7 = vsub.f32 %v6327_v8, %v3655_v6  ;;  %v1408_v12 = vmul.f32 %v3777_v37, %v3777_v37  ;;  %v1556_v23 = vsel %vm983_vm2, %v1407_v2, 0.0 }
 0x295   :  { %v1549_v43 = vadd.f32 %v1548_v54, %v1547_v34  ;;  %v6329_v54 = vld [vmem:[#allocation41_spill] sm:$0xff] }
 0x296   :  { %6328 = vst [vmem:[#allocation35_spill] sm:$0xff] %v3784_v7  ;;  %v3791_v63 = vsub.f32 %v6329_v54, %v3655_v6  ;;  %v1409_v59 = vmul.f32 %v3784_v7, %v3784_v7  ;;  %v1558_v45 = vsel %vm983_vm2, %v1408_v12, 0.0 }
 0x297   :  { %v1551_v58 = vadd.f32 %v1550_v47, %v1549_v43  ;;  %v6331_v47 = vld [vmem:[#allocation45_spill] sm:$0xff] }
 0x298   :  { %6330 = vst [vmem:[#allocation37_spill] sm:$0xff] %v3791_v63  ;;  %v3798_v8 = vsub.f32 %v6331_v47, %v3655_v6  ;;  %v1410_v37 = vmul.f32 %v3791_v63, %v3791_v63  ;;  %v1560_v2 = vsel %vm983_vm2, %v1409_v59, 0.0 }
 0x299   :  { %v1553_v34 = vadd.f32 %v1552_v35, %v1551_v58  ;;  %v6333_v35 = vld [vmem:[#allocation48_spill] sm:$0xff] }
 0x29a   :  { %6332 = vst [vmem:[#allocation41_spill] sm:$0xff] %v3798_v8  ;;  %v3805_v54 = vsub.f32 %v6333_v35, %v3655_v6  ;;  %v1411_v7 = vmul.f32 %v3798_v8, %v3798_v8  ;;  %v1562_v12 = vsel %vm983_vm2, %v1410_v37, 0.0 }
 0x29b   :  { %v1555_v43 = vadd.f32 %v1554_v61, %v1553_v34  ;;  %v6335_v61 = vld [vmem:[#allocation52_spill] sm:$0xff] }
 0x29c   :  { %6334 = vst [vmem:[#allocation45_spill] sm:$0xff] %v3805_v54  ;;  %v3812_v47 = vsub.f32 %v6335_v61, %v3655_v6  ;;  %v1412_v35 = vmul.f32 %v3805_v54, %v3805_v54  ;;  %v1564_v59 = vsel %vm983_vm2, %v1411_v7, 0.0 }
 0x29d   :  { %v1557_v58 = vadd.f32 %v1556_v23, %v1555_v43  ;;  %v3819_v23 = vsub.f32 %v3193_v62, %v3655_v6 }
 0x29e   :  { %6336 = vst [vmem:[#allocation48_spill] sm:$0xff] %v3812_v47  ;;  %v1413_v8 = vmul.f32 %v3812_v47, %v3812_v47  ;;  %v1566_v37 = vsel %vm983_vm2, %v1412_v35, 0.0 }
 0x29f   :  { %v1559_v34 = vadd.f32 %v1558_v45, %v1557_v58  ;;  %6337 = vst [vmem:[#allocation52_spill] sm:$0xff] %v3819_v23  ;;  %v6338_v45 = vld [vmem:[#allocation55_spill] sm:$0xff]  ;;  %v1414_v54 = vmul.f32 %v3819_v23, %v3819_v23 }
 0x2a0   :  { %v3826_v61 = vsub.f32 %v6338_v45, %v3655_v6  ;;  %v1568_v7 = vsel %vm983_vm2, %v1413_v8, 0.0 }
 0x2a1   :  { %v1561_v43 = vadd.f32 %v1560_v2, %v1559_v34  ;;  %v6340_v2 = vld [vmem:[#allocation57_spill] sm:$0xff]  ;;  %v1570_v35 = vsel %vm983_vm2, %v1414_v54, 0.0 }
 0x2a2   :  { %6339 = vst [vmem:[#allocation55_spill] sm:$0xff] %v3826_v61  ;;  %v3833_v62 = vsub.f32 %v6340_v2, %v3655_v6  ;;  %v1415_v47 = vmul.f32 %v3826_v61, %v3826_v61 }
 0x2a3   :  { %v1563_v58 = vadd.f32 %v1562_v12, %v1561_v43  ;;  %v6342_v12 = vld [vmem:[#allocation60_spill] sm:$0xff] }
 0x2a4   :  { %6341 = vst [vmem:[#allocation57_spill] sm:$0xff] %v3833_v62  ;;  %v3840_v45 = vsub.f32 %v6342_v12, %v3655_v6  ;;  %v1416_v2 = vmul.f32 %v3833_v62, %v3833_v62  ;;  %v1572_v8 = vsel %vm983_vm2, %v1415_v47, 0.0 }
 0x2a5   :  { %v1565_v34 = vadd.f32 %v1564_v59, %v1563_v58  ;;  %v3847_v59 = vsub.f32 %v3285_v48, %v3655_v6 }
 0x2a6   :  { %6343 = vst [vmem:[#allocation60_spill] sm:$0xff] %v3840_v45  ;;  %v1417_v61 = vmul.f32 %v3840_v45, %v3840_v45  ;;  %v1574_v54 = vsel %vm983_vm2, %v1416_v2, 0.0 }
 0x2a7   :  { %v1567_v43 = vadd.f32 %v1566_v37, %v1565_v34  ;;  %6344 = vst [vmem:[#allocation89_spill] sm:$0xff] %v3847_v59  ;;  %v6345_v37 = vld [vmem:[#allocation63_spill] sm:$0xff]  ;;  %v1418_v62 = vmul.f32 %v3847_v59, %v3847_v59 }
 0x2a8   :  { %v3854_v12 = vsub.f32 %v6345_v37, %v3655_v6  ;;  %v1576_v47 = vsel %vm983_vm2, %v1417_v61, 0.0 }
 0x2a9   :  { %v1569_v58 = vadd.f32 %v1568_v7, %v1567_v43  ;;  %v6347_v7 = vld [vmem:[#allocation64_spill] sm:$0xff]  ;;  %v1578_v2 = vsel %vm983_vm2, %v1418_v62, 0.0 }
 0x2aa   :  { %6346 = vst [vmem:[#allocation63_spill] sm:$0xff] %v3854_v12  ;;  %v3861_v48 = vsub.f32 %v6347_v7, %v3655_v6  ;;  %v1419_v37 = vmul.f32 %v3854_v12, %v3854_v12 }
 0x2ab   :  { %v1571_v34 = vadd.f32 %v1570_v35, %v1569_v58  ;;  %v3868_v35 = vsub.f32 %v3339_v39, %v3655_v6 }
 0x2ac   :  { %6348 = vst [vmem:[#allocation64_spill] sm:$0xff] %v3861_v48  ;;  %v1420_v59 = vmul.f32 %v3861_v48, %v3861_v48  ;;  %v1580_v61 = vsel %vm983_vm2, %v1419_v37, 0.0 }
 0x2ad   :  { %v1573_v43 = vadd.f32 %v1572_v8, %v1571_v34  ;;  %6349 = vst [vmem:[#allocation90_spill] sm:$0xff] %v3868_v35  ;;  %v6350_v8 = vld [vmem:[#allocation6_spill] sm:$0xff]  ;;  %v1421_v12 = vmul.f32 %v3868_v35, %v3868_v35 }
 0x2ae   :  { %v3875_v7 = vsub.f32 %v6350_v8, %v3655_v6  ;;  %v1582_v62 = vsel %vm983_vm2, %v1420_v59, 0.0 }
 0x2af   :  { %v1575_v58 = vadd.f32 %v1574_v54, %v1573_v43  ;;  %v6352_v54 = vld [vmem:[#allocation8_spill] sm:$0xff]  ;;  %v1584_v37 = vsel %vm983_vm2, %v1421_v12, 0.0 }
 0x2b0   :  { %6351 = vst [vmem:[#allocation6_spill] sm:$0xff] %v3875_v7  ;;  %v3882_v39 = vsub.f32 %v6352_v54, %v3655_v6  ;;  %v1422_v48 = vmul.f32 %v3875_v7, %v3875_v7 }
 0x2b1   :  { %v1577_v34 = vadd.f32 %v1576_v47, %v1575_v58  ;;  %v6354_v47 = vld [vmem:[#allocation10_spill] sm:$0xff] }
 0x2b2   :  { %6353 = vst [vmem:[#allocation8_spill] sm:$0xff] %v3882_v39  ;;  %v3889_v8 = vsub.f32 %v6354_v47, %v3655_v6  ;;  %v1423_v54 = vmul.f32 %v3882_v39, %v3882_v39  ;;  %v1586_v59 = vsel %vm983_vm2, %v1422_v48, 0.0 }
 0x2b3   :  { %v1579_v43 = vadd.f32 %v1578_v2, %v1577_v34  ;;  %v3896_v2 = vsub.f32 %v2842_v17, %v3655_v6 }
 0x2b4   :  { %6355 = vst [vmem:[#allocation10_spill] sm:$0xff] %v3889_v8  ;;  %v1424_v7 = vmul.f32 %v3889_v8, %v3889_v8  ;;  %v1588_v12 = vsel %vm983_vm2, %v1423_v54, 0.0 }
 0x2b5   :  { %v1581_v58 = vadd.f32 %v1580_v61, %v1579_v43  ;;  %6356 = vst [vmem:[#allocation91_spill] sm:$0xff] %v3896_v2  ;;  %v6357_v61 = vld [vmem:[#allocation13_spill] sm:$0xff]  ;;  %v1425_v39 = vmul.f32 %v3896_v2, %v3896_v2 }
 0x2b6   :  { %v3903_v47 = vsub.f32 %v6357_v61, %v3655_v6  ;;  %v1590_v48 = vsel %vm983_vm2, %v1424_v7, 0.0 }
 0x2b7   :  { %v1583_v34 = vadd.f32 %v1582_v62, %v1581_v58  ;;  %v6359_v62 = vld [vmem:[#allocation15_spill] sm:$0xff]  ;;  %v1592_v54 = vsel %vm983_vm2, %v1425_v39, 0.0 }
 0x2b8   :  { %6358 = vst [vmem:[#allocation13_spill] sm:$0xff] %v3903_v47  ;;  %v3910_v17 = vsub.f32 %v6359_v62, %v3655_v6  ;;  %v1426_v8 = vmul.f32 %v3903_v47, %v3903_v47 }
 0x2b9   :  { %v1585_v43 = vadd.f32 %v1584_v37, %v1583_v34  ;;  %v6361_v37 = vld [vmem:[#allocation17_spill] sm:$0xff] }
 0x2ba   :  { %6360 = vst [vmem:[#allocation15_spill] sm:$0xff] %v3910_v17  ;;  %v3917_v61 = vsub.f32 %v6361_v37, %v3655_v6  ;;  %v1427_v62 = vmul.f32 %v3910_v17, %v3910_v17  ;;  %v1594_v7 = vsel %vm983_vm2, %v1426_v8, 0.0 }
 0x2bb   :  { %v1587_v58 = vadd.f32 %v1586_v59, %v1585_v43  ;;  %v3924_v59 = vsub.f32 %v2922_v41, %v3655_v6 }
 0x2bc   :  { %6362 = vst [vmem:[#allocation17_spill] sm:$0xff] %v3917_v61  ;;  %v1428_v47 = vmul.f32 %v3917_v61, %v3917_v61  ;;  %v1596_v39 = vsel %vm983_vm2, %v1427_v62, 0.0 }
 0x2bd   :  { %v1589_v34 = vadd.f32 %v1588_v12, %v1587_v58  ;;  %6363 = vst [vmem:[#allocation92_spill] sm:$0xff] %v3924_v59  ;;  %v6364_v12 = vld [vmem:[#allocation21_spill] sm:$0xff]  ;;  %v1429_v17 = vmul.f32 %v3924_v59, %v3924_v59 }
 0x2be   :  { %v3931_v37 = vsub.f32 %v6364_v12, %v3655_v6  ;;  %v1598_v8 = vsel %vm983_vm2, %v1428_v47, 0.0 }
 0x2bf   :  { %v1591_v43 = vadd.f32 %v1590_v48, %v1589_v34  ;;  %v6366_v48 = vld [vmem:[#allocation24_spill] sm:$0xff]  ;;  %v1600_v62 = vsel %vm983_vm2, %v1429_v17, 0.0 }
 0x2c0   :  { %6365 = vst [vmem:[#allocation21_spill] sm:$0xff] %v3931_v37  ;;  %v3938_v41 = vsub.f32 %v6366_v48, %v3655_v6  ;;  %v1430_v12 = vmul.f32 %v3931_v37, %v3931_v37 }
 0x2c1   :  { %v1593_v58 = vadd.f32 %v1592_v54, %v1591_v43  ;;  %v3945_v54 = vsub.f32 %v2988_v4, %v3655_v6  ;;  %v3959_v4 = vsub.f32 %v3032_v25, %v3655_v6 }
 0x2c2   :  { %6367 = vst [vmem:[#allocation24_spill] sm:$0xff] %v3938_v41  ;;  %v1431_v48 = vmul.f32 %v3938_v41, %v3938_v41  ;;  %v1602_v47 = vsel %vm983_vm2, %v1430_v12, 0.0 }
 0x2c3   :  { %v1595_v34 = vadd.f32 %v1594_v7, %v1593_v58  ;;  %6368 = vst [vmem:[#allocation93_spill] sm:$0xff] %v3945_v54  ;;  %v3952_v7 = vsub.f32 %v3010_v14, %v3655_v6 }
 0x2c4   :  { %6370 = vst [vmem:[#allocation95_spill] sm:$0xff] %v3959_v4  ;;  %v1604_v17 = vsel %vm983_vm2, %v1431_v48, 0.0 }
 0x2c5   :  { %v1597_v43 = vadd.f32 %v1596_v39, %v1595_v34  ;;  %6369 = vst [vmem:[#allocation94_spill] sm:$0xff] %v3952_v7  ;;  %v1432_v39 = vmul.f32 %v3945_v54, %v3945_v54  ;;  %v1433_v41 = vmul.f32 %v3952_v7, %v3952_v7  ;;  %v1434_v54 = vmul.f32 %v3959_v4, %v3959_v4 }
 0x2c7   :  { %v1599_v58 = vadd.f32 %v1598_v8, %v1597_v43  ;;  %v6371_v8 = vld [vmem:[#allocation30_spill] sm:$0xff]  ;;  %v1606_v12 = vsel %vm983_vm2, %v1432_v39, 0.0  ;;  %v1608_v48 = vsel %vm983_vm2, %v1433_v41, 0.0  ;;  %v1610_v39 = vsel %vm983_vm2, %v1434_v54, 0.0 }
 0x2c8   :  { %v3966_v14 = vsub.f32 %v6371_v8, %v3655_v6 }
 0x2c9   :  { %v1601_v34 = vadd.f32 %v1600_v62, %v1599_v58  ;;  %v6373_v62 = vld [vmem:[#allocation33_spill] sm:$0xff] }
 0x2ca   :  { %6372 = vst [vmem:[#allocation30_spill] sm:$0xff] %v3966_v14  ;;  %v3973_v25 = vsub.f32 %v6373_v62, %v3655_v6  ;;  %v1435_v8 = vmul.f32 %v3966_v14, %v3966_v14 }
 0x2cb   :  { %v1603_v43 = vadd.f32 %v1602_v47, %v1601_v34  ;;  %v3980_v47 = vsub.f32 %v3087_v57, %v3655_v6 }
 0x2cc   :  { %6374 = vst [vmem:[#allocation33_spill] sm:$0xff] %v3973_v25  ;;  %v1436_v4 = vmul.f32 %v3973_v25, %v3973_v25  ;;  %v1612_v41 = vsel %vm983_vm2, %v1435_v8, 0.0 }
 0x2cd   :  { %v1605_v58 = vadd.f32 %v1604_v17, %v1603_v43  ;;  %6375 = vst [vmem:[#allocation96_spill] sm:$0xff] %v3980_v47  ;;  %v6376_v17 = vld [vmem:[#allocation38_spill] sm:$0xff]  ;;  %v1437_v14 = vmul.f32 %v3980_v47, %v3980_v47 }
 0x2ce   :  { %v3987_v62 = vsub.f32 %v6376_v17, %v3655_v6  ;;  %v1614_v54 = vsel %vm983_vm2, %v1436_v4, 0.0 }
 0x2cf   :  { %v1607_v34 = vadd.f32 %v1606_v12, %v1605_v58  ;;  %v6378_v12 = vld [vmem:[#allocation42_spill] sm:$0xff]  ;;  %v1616_v8 = vsel %vm983_vm2, %v1437_v14, 0.0 }
 0x2d0   :  { %6377 = vst [vmem:[#allocation38_spill] sm:$0xff] %v3987_v62  ;;  %v3994_v57 = vsub.f32 %v6378_v12, %v3655_v6  ;;  %v1438_v25 = vmul.f32 %v3987_v62, %v3987_v62 }
 0x2d1   :  { %v1609_v43 = vadd.f32 %v1608_v48, %v1607_v34  ;;  %v6380_v48 = vld [vmem:[#allocation46_spill] sm:$0xff] }
 0x2d2   :  { %6379 = vst [vmem:[#allocation42_spill] sm:$0xff] %v3994_v57  ;;  %v4001_v17 = vsub.f32 %v6380_v48, %v3655_v6  ;;  %v1439_v47 = vmul.f32 %v3994_v57, %v3994_v57  ;;  %v1618_v4 = vsel %vm983_vm2, %v1438_v25, 0.0 }
 0x2d3   :  { %v1611_v58 = vadd.f32 %v1610_v39, %v1609_v43  ;;  %v6382_v39 = vld [vmem:[#allocation50_spill] sm:$0xff] }
 0x2d4   :  { %6381 = vst [vmem:[#allocation46_spill] sm:$0xff] %v4001_v17  ;;  %v4008_v12 = vsub.f32 %v6382_v39, %v3655_v6  ;;  %v1440_v48 = vmul.f32 %v4001_v17, %v4001_v17  ;;  %v1620_v14 = vsel %vm983_vm2, %v1439_v47, 0.0 }
 0x2d5   :  { %v1613_v34 = vadd.f32 %v1612_v41, %v1611_v58  ;;  %v4015_v41 = vsub.f32 %v3187_v28, %v3655_v6 }
 0x2d6   :  { %6383 = vst [vmem:[#allocation50_spill] sm:$0xff] %v4008_v12  ;;  %v1441_v39 = vmul.f32 %v4008_v12, %v4008_v12  ;;  %v1622_v25 = vsel %vm983_vm2, %v1440_v48, 0.0 }
 0x2d7   :  { %v1615_v43 = vadd.f32 %v1614_v54, %v1613_v34  ;;  %6384 = vst [vmem:[#allocation97_spill] sm:$0xff] %v4015_v41  ;;  %v4022_v54 = vsub.f32 %v3217_v9, %v3655_v6  ;;  %v1442_v17 = vmul.f32 %v4015_v41, %v4015_v41 }
 0x2d8   :  { %v1624_v47 = vsel %vm983_vm2, %v1441_v39, 0.0 }
 0x2d9   :  { %v1617_v58 = vadd.f32 %v1616_v8, %v1615_v43  ;;  %6385 = vst [vmem:[#allocation98_spill] sm:$0xff] %v4022_v54  ;;  %v6386_v8 = vld [vmem:[#allocation58_spill] sm:$0xff]  ;;  %v1443_v12 = vmul.f32 %v4022_v54, %v4022_v54  ;;  %v1626_v48 = vsel %vm983_vm2, %v1442_v17, 0.0 }
 0x2da   :  { %v4029_v28 = vsub.f32 %v6386_v8, %v3655_v6 }
 0x2db   :  { %v1619_v34 = vadd.f32 %v1618_v4, %v1617_v58  ;;  %v6388_v4 = vld [vmem:[#allocation61_spill] sm:$0xff]  ;;  %v1628_v39 = vsel %vm983_vm2, %v1443_v12, 0.0 }
 0x2dc   :  { %6387 = vst [vmem:[#allocation58_spill] sm:$0xff] %v4029_v28  ;;  %v4036_v9 = vsub.f32 %v6388_v4, %v3655_v6  ;;  %v1444_v41 = vmul.f32 %v4029_v28, %v4029_v28 }
 0x2dd   :  { %v1621_v43 = vadd.f32 %v1620_v14, %v1619_v34  ;;  %v6390_v14 = vld [vmem:[#allocation62_spill] sm:$0xff] }
 0x2de   :  { %6389 = vst [vmem:[#allocation61_spill] sm:$0xff] %v4036_v9  ;;  %v4043_v8 = vsub.f32 %v6390_v14, %v3655_v6  ;;  %v1445_v4 = vmul.f32 %v4036_v9, %v4036_v9  ;;  %v1630_v17 = vsel %vm983_vm2, %v1444_v41, 0.0 }
 0x2df   :  { %v1623_v58 = vadd.f32 %v1622_v25, %v1621_v43  ;;  %v4050_v25 = vsub.f32 %v3325_v21, %v3655_v6 }
 0x2e0   :  { %6391 = vst [vmem:[#allocation62_spill] sm:$0xff] %v4043_v8  ;;  %v1446_v14 = vmul.f32 %v4043_v8, %v4043_v8  ;;  %v1632_v12 = vsel %vm983_vm2, %v1445_v4, 0.0 }
 0x2e1   :  { %v1625_v34 = vadd.f32 %v1624_v47, %v1623_v58  ;;  %6392 = vst [vmem:[#allocation99_spill] sm:$0xff] %v4050_v25  ;;  %v4057_v47 = vsub.f32 %v3345_v53, %v3655_v6  ;;  %v1447_v9 = vmul.f32 %v4050_v25, %v4050_v25 }
 0x2e2   :  { %v1634_v41 = vsel %vm983_vm2, %v1446_v14, 0.0 }
 0x2e3   :  { %v1627_v43 = vadd.f32 %v1626_v48, %v1625_v34  ;;  %6393 = vst [vmem:[#allocation100_spill] sm:$0xff] %v4057_v47  ;;  %v6394_v48 = vld [vmem:[#allocation68_spill] sm:$0xff]  ;;  %v1448_v8 = vmul.f32 %v4057_v47, %v4057_v47  ;;  %v1636_v4 = vsel %vm983_vm2, %v1447_v9, 0.0 }
 0x2e4   :  { %v4064_v21 = vsub.f32 %v6394_v48, %v3655_v6 }
 0x2e5   :  { %v1629_v58 = vadd.f32 %v1628_v39, %v1627_v43  ;;  %v6396_v39 = vld [vmem:[#allocation69_spill] sm:$0xff]  ;;  %v1638_v14 = vsel %vm983_vm2, %v1448_v8, 0.0 }
 0x2e6   :  { %6395 = vst [vmem:[#allocation68_spill] sm:$0xff] %v4064_v21  ;;  %v4071_v53 = vsub.f32 %v6396_v39, %v3655_v6  ;;  %v1449_v25 = vmul.f32 %v4064_v21, %v4064_v21 }
 0x2e7   :  { %v1631_v34 = vadd.f32 %v1630_v17, %v1629_v58  ;;  %v6398_v17 = vld [vmem:[#allocation71_spill] sm:$0xff] }
 0x2e8   :  { %6397 = vst [vmem:[#allocation69_spill] sm:$0xff] %v4071_v53  ;;  %v4078_v48 = vsub.f32 %v6398_v17, %v3655_v6  ;;  %v1450_v39 = vmul.f32 %v4071_v53, %v4071_v53  ;;  %v1640_v9 = vsel %vm983_vm2, %v1449_v25, 0.0 }
 0x2e9   :  { %v1633_v43 = vadd.f32 %v1632_v12, %v1631_v34  ;;  %v4085_v12 = vsub.f32 %v3429_v22, %v3655_v6  ;;  %v4099_v22 = vsub.f32 %v3461_v44, %v3655_v6 }
 0x2ea   :  { %6399 = vst [vmem:[#allocation71_spill] sm:$0xff] %v4078_v48  ;;  %v1451_v21 = vmul.f32 %v4078_v48, %v4078_v48  ;;  %v1642_v8 = vsel %vm983_vm2, %v1450_v39, 0.0 }
 0x2eb   :  { %v1635_v58 = vadd.f32 %v1634_v41, %v1633_v43  ;;  %6400 = vst [vmem:[#allocation101_spill] sm:$0xff] %v4085_v12  ;;  %v6401_v41 = vld [vmem:[#allocation73_spill] sm:$0xff] }
 0x2ec   :  { %v4092_v17 = vsub.f32 %v6401_v41, %v3655_v6  ;;  %v1644_v25 = vsel %vm983_vm2, %v1451_v21, 0.0 }
 0x2ed   :  { %v1637_v34 = vadd.f32 %v1636_v4, %v1635_v58  ;;  %v1452_v4 = vmul.f32 %v4085_v12, %v4085_v12  ;;  %v1454_v12 = vmul.f32 %v4099_v22, %v4099_v22 }
 0x2ee   :  { %v1453_v48 = vmul.f32 %v4092_v17, %v4092_v17 }
 0x2ef   :  { %v1639_v43 = vadd.f32 %v1638_v14, %v1637_v34  ;;  %v6402_v14 = vld [vmem:[#allocation19_spill] sm:$0xff]  ;;  %v1646_v39 = vsel %vm983_vm2, %v1452_v4, 0.0  ;;  %v1650_v4 = vsel %vm983_vm2, %v1454_v12, 0.0 }
 0x2f0   :  { %v4106_v41 = vsub.f32 %v6402_v14, %v3655_v6  ;;  %v1648_v21 = vsel %vm983_vm2, %v1453_v48, 0.0 }
 0x2f1   :  { %v1641_v58 = vadd.f32 %v1640_v9, %v1639_v43  ;;  %v6403_v9 = vld [vmem:[#allocation22_spill] sm:$0xff] }
 0x2f2   :  { %v4113_v44 = vsub.f32 %v6403_v9, %v3655_v6  ;;  %v1455_v14 = vmul.f32 %v4106_v41, %v4106_v41 }
 0x2f3   :  { %v1643_v34 = vadd.f32 %v1642_v8, %v1641_v58  ;;  %v4120_v8 = vsub.f32 %v2981_v0, %v3655_v6 }
 0x2f4   :  { %v1456_v9 = vmul.f32 %v4113_v44, %v4113_v44  ;;  %v1652_v48 = vsel %vm983_vm2, %v1455_v14, 0.0 }
 0x2f5   :  { %v1645_v43 = vadd.f32 %v1644_v25, %v1643_v34  ;;  %v4127_v25 = vsub.f32 %v3003_v10, %v3655_v6  ;;  %v1457_v53 = vmul.f32 %v4120_v8, %v4120_v8 }
 0x2f6   :  { %v1654_v12 = vsel %vm983_vm2, %v1456_v9, 0.0 }
 0x2f7   :  { %v1647_v58 = vadd.f32 %v1646_v39, %v1645_v43  ;;  %v6404_v39 = vld [vmem:[#allocation26_spill] sm:$0xff]  ;;  %v1458_v47 = vmul.f32 %v4127_v25, %v4127_v25  ;;  %v1656_v14 = vsel %vm983_vm2, %v1457_v53, 0.0 }
 0x2f8   :  { %v4134_v0 = vsub.f32 %v6404_v39, %v3655_v6 }
 0x2f9   :  { %v1649_v34 = vadd.f32 %v1648_v21, %v1647_v58  ;;  %v6405_v21 = vld [vmem:[#allocation28_spill] sm:$0xff]  ;;  %v1658_v9 = vsel %vm983_vm2, %v1458_v47, 0.0 }
 0x2fa   :  { %v4141_v10 = vsub.f32 %v6405_v21, %v3655_v6  ;;  %v1459_v28 = vmul.f32 %v4134_v0, %v4134_v0 }
 0x2fb   :  { %v1651_v43 = vadd.f32 %v1650_v4, %v1649_v34  ;;  %v6406_v4 = vld [vmem:[#allocation31_spill] sm:$0xff] }
 0x2fc   :  { %v4148_v39 = vsub.f32 %v6406_v4, %v3655_v6  ;;  %v1460_v54 = vmul.f32 %v4141_v10, %v4141_v10  ;;  %v1660_v53 = vsel %vm983_vm2, %v1459_v28, 0.0 }
 0x2fd   :  { %v1653_v58 = vadd.f32 %v1652_v48, %v1651_v43  ;;  %v6407_v48 = vld [vmem:[#allocation34_spill] sm:$0xff] }
 0x2fe   :  { %v4155_v21 = vsub.f32 %v6407_v48, %v3655_v6  ;;  %v1461_v57 = vmul.f32 %v4148_v39, %v4148_v39  ;;  %v1662_v47 = vsel %vm983_vm2, %v1460_v54, 0.0 }
 0x2ff   :  { %v1655_v34 = vadd.f32 %v1654_v12, %v1653_v58  ;;  %v6408_v12 = vld [vmem:[#allocation36_spill] sm:$0xff] }
 0x300   :  { %v4162_v4 = vsub.f32 %v6408_v12, %v3655_v6  ;;  %v1462_v62 = vmul.f32 %v4155_v21, %v4155_v21  ;;  %v1664_v28 = vsel %vm983_vm2, %v1461_v57, 0.0 }
 0x301   :  { %v1657_v43 = vadd.f32 %v1656_v14, %v1655_v34  ;;  %v6409_v14 = vld [vmem:[#allocation40_spill] sm:$0xff] }
 0x302   :  { %v4169_v48 = vsub.f32 %v6409_v14, %v3655_v6  ;;  %v1463_v7 = vmul.f32 %v4162_v4, %v4162_v4  ;;  %v1666_v54 = vsel %vm983_vm2, %v1462_v62, 0.0 }
 0x303   :  { %v1659_v58 = vadd.f32 %v1658_v9, %v1657_v43  ;;  %v6410_v9 = vld [vmem:[#allocation43_spill] sm:$0xff] }
 0x304   :  { %v4176_v12 = vsub.f32 %v6410_v9, %v3655_v6  ;;  %v1464_v37 = vmul.f32 %v4169_v48, %v4169_v48  ;;  %v1668_v57 = vsel %vm983_vm2, %v1463_v7, 0.0 }
 0x305   :  { %v1661_v34 = vadd.f32 %v1660_v53, %v1659_v58  ;;  %v6411_v53 = vld [vmem:[#allocation47_spill] sm:$0xff] }
 0x306   :  { %v4183_v14 = vsub.f32 %v6411_v53, %v3655_v6  ;;  %v1465_v9 = vmul.f32 %v4176_v12, %v4176_v12  ;;  %v1670_v62 = vsel %vm983_vm2, %v1464_v37, 0.0 }
 0x307   :  { %v1663_v43 = vadd.f32 %v1662_v47, %v1661_v34  ;;  %v4190_v47 = vsub.f32 %v6271_v24, %v3655_v6  ;;  %v4204_v24 = vsub.f32 %v3211_v3, %v3655_v6 }
 0x308   :  { %v1466_v53 = vmul.f32 %v4183_v14, %v4183_v14  ;;  %v1672_v7 = vsel %vm983_vm2, %v1465_v9, 0.0 }
 0x309   :  { %v1665_v58 = vadd.f32 %v1664_v28, %v1663_v43  ;;  %v4197_v28 = vsub.f32 %v6272_v42, %v3655_v6  ;;  %v1469_v61 = vmul.f32 %v4204_v24, %v4204_v24 }
 0x30a   :  { %v1674_v37 = vsel %vm983_vm2, %v1466_v53, 0.0 }
 0x30b   :  { %v1667_v34 = vadd.f32 %v1666_v54, %v1665_v58  ;;  %v1467_v54 = vmul.f32 %v4190_v47, %v4190_v47  ;;  %v1468_v59 = vmul.f32 %v4197_v28, %v4197_v28 }
 0x30d   :  { %v1669_v43 = vadd.f32 %v1668_v57, %v1667_v34  ;;  %v6412_v57 = vld [vmem:[#allocation56_spill] sm:$0xff]  ;;  %v1676_v9 = vsel %vm983_vm2, %v1467_v54, 0.0  ;;  %v1678_v53 = vsel %vm983_vm2, %v1468_v59, 0.0  ;;  %v1680_v54 = vsel %vm983_vm2, %v1469_v61, 0.0 }
 0x30e   :  { %v4211_v42 = vsub.f32 %v6412_v57, %v3655_v6 }
 0x30f   :  { %v1671_v58 = vadd.f32 %v1670_v62, %v1669_v43  ;;  %v6413_v62 = vld [vmem:[#allocation59_spill] sm:$0xff] }
 0x310   :  { %v4218_v3 = vsub.f32 %v6413_v62, %v3655_v6  ;;  %v1470_v57 = vmul.f32 %v4211_v42, %v4211_v42 }
 0x311   :  { %v1673_v34 = vadd.f32 %v1672_v7, %v1671_v58  ;;  %v4225_v7 = vsub.f32 %v3277_v56, %v3655_v6  ;;  %v4239_v56 = vsub.f32 %v3315_v30, %v3655_v6 }
 0x312   :  { %v1471_v62 = vmul.f32 %v4218_v3, %v4218_v3  ;;  %v1682_v59 = vsel %vm983_vm2, %v1470_v57, 0.0 }
 0x313   :  { %v1675_v43 = vadd.f32 %v1674_v37, %v1673_v34  ;;  %v4232_v37 = vsub.f32 %v3297_v46, %v3655_v6  ;;  %v1474_v35 = vmul.f32 %v4239_v56, %v4239_v56 }
 0x314   :  { %v1684_v61 = vsel %vm983_vm2, %v1471_v62, 0.0 }
 0x315   :  { %v1677_v58 = vadd.f32 %v1676_v9, %v1675_v43  ;;  %v1472_v9 = vmul.f32 %v4225_v7, %v4225_v7  ;;  %v1473_v2 = vmul.f32 %v4232_v37, %v4232_v37 }
 0x317   :  { %v1679_v34 = vadd.f32 %v1678_v53, %v1677_v58  ;;  %v6414_v53 = vld [vmem:[#allocation65_spill] sm:$0xff]  ;;  %v1686_v57 = vsel %vm983_vm2, %v1472_v9, 0.0  ;;  %v1688_v62 = vsel %vm983_vm2, %v1473_v2, 0.0  ;;  %v1690_v9 = vsel %vm983_vm2, %v1474_v35, 0.0 }
 0x318   :  { %v4246_v46 = vsub.f32 %v6414_v53, %v3655_v6 }
 0x319   :  { %v1681_v43 = vadd.f32 %v1680_v54, %v1679_v34  ;;  %v6415_v54 = vld [vmem:[#allocation67_spill] sm:$0xff] }
 0x31a   :  { %v4253_v30 = vsub.f32 %v6415_v54, %v3655_v6  ;;  %v1475_v53 = vmul.f32 %v4246_v46, %v4246_v46 }
 0x31b   :  { %v1683_v58 = vadd.f32 %v1682_v59, %v1681_v43  ;;  %v4260_v59 = vsub.f32 %v3381_v11, %v3655_v6  ;;  %v4274_v11 = vsub.f32 %v3425_v55, %v3655_v6 }
 0x31c   :  { %v1476_v54 = vmul.f32 %v4253_v30, %v4253_v30  ;;  %v1692_v2 = vsel %vm983_vm2, %v1475_v53, 0.0 }
 0x31d   :  { %v1685_v34 = vadd.f32 %v1684_v61, %v1683_v58  ;;  %v4267_v61 = vsub.f32 %v3401_v49, %v3655_v6  ;;  %6416 = vst [vmem:[#allocation73_spill] sm:$0xff] %v4274_v11  ;;  %v1479_v23 = vmul.f32 %v4274_v11, %v4274_v11 }
 0x31e   :  { %v1694_v35 = vsel %vm983_vm2, %v1476_v54, 0.0 }
 0x31f   :  { %v1687_v43 = vadd.f32 %v1686_v57, %v1685_v34  ;;  %v1477_v57 = vmul.f32 %v4260_v59, %v4260_v59  ;;  %v1478_v45 = vmul.f32 %v4267_v61, %v4267_v61 }
 0x321   :  { %v1689_v58 = vadd.f32 %v1688_v62, %v1687_v43  ;;  %v6417_v62 = vld [vmem:[#allocation72_spill] sm:$0xff]  ;;  %v1696_v53 = vsel %vm983_vm2, %v1477_v57, 0.0  ;;  %v1698_v54 = vsel %vm983_vm2, %v1478_v45, 0.0  ;;  %v1700_v57 = vsel %vm983_vm2, %v1479_v23, 0.0 }
 0x322   :  { %v4281_v49 = vsub.f32 %v6417_v62, %v3655_v6 }
 0x323   :  { %v1691_v34 = vadd.f32 %v1690_v9, %v1689_v58  ;;  %v6419_v9 = vld [vmem:[#allocation75_spill] sm:$0xff] }
 0x324   :  { %6418 = vst [vmem:[#allocation19_spill] sm:$0xff] %v4281_v49  ;;  %v4288_v55 = vsub.f32 %v6419_v9, %v3655_v6  ;;  %v1480_v63 = vmul.f32 %v4281_v49, %v4281_v49 }
 0x325   :  { %v1693_v43 = vadd.f32 %v1692_v2, %v1691_v34  ;;  %v6421_v2 = vld [vmem:[#allocation76_spill] sm:$0xff] }
 0x326   :  { %6420 = vst [vmem:[#allocation22_spill] sm:$0xff] %v4288_v55  ;;  %v4295_v62 = vsub.f32 %v6421_v2, %v3655_v6  ;;  %v1481_v11 = vmul.f32 %v4288_v55, %v4288_v55  ;;  %v1702_v45 = vsel %vm983_vm2, %v1480_v63, 0.0 }
 0x327   :  { %v1695_v58 = vadd.f32 %v1694_v35, %v1693_v43  ;;  %v6423_v35 = vld [vmem:[#allocation78_spill] sm:$0xff] }
 0x328   :  { %6422 = vst [vmem:[#allocation26_spill] sm:$0xff] %v4295_v62  ;;  %v4302_v9 = vsub.f32 %v6423_v35, %v3655_v6  ;;  %v1482_v49 = vmul.f32 %v4295_v62, %v4295_v62  ;;  %v1704_v23 = vsel %vm983_vm2, %v1481_v11, 0.0 }
 0x329   :  { %v1697_v34 = vadd.f32 %v1696_v53, %v1695_v58  ;;  %v6425_v53 = vld [vmem:[#allocation79_spill] sm:$0xff] }
 0x32a   :  { %6424 = vst [vmem:[#allocation28_spill] sm:$0xff] %v4302_v9  ;;  %v4309_v2 = vsub.f32 %v6425_v53, %v3655_v6  ;;  %v1483_v55 = vmul.f32 %v4302_v9, %v4302_v9  ;;  %v1706_v63 = vsel %vm983_vm2, %v1482_v49, 0.0 }
 0x32b   :  { %v1699_v43 = vadd.f32 %v1698_v54, %v1697_v34  ;;  %v6427_v54 = vld [vmem:[#allocation51_spill] sm:$0xff] }
 0x32c   :  { %6426 = vst [vmem:[#allocation31_spill] sm:$0xff] %v4309_v2  ;;  %v4316_v35 = vsub.f32 %v6427_v54, %v3655_v6  ;;  %v1484_v62 = vmul.f32 %v4309_v2, %v4309_v2  ;;  %v1708_v11 = vsel %vm983_vm2, %v1483_v55, 0.0 }
 0x32d   :  { %v1701_v58 = vadd.f32 %v1700_v57, %v1699_v43  ;;  %v6428_v57 = vld [vmem:[#allocation80_spill] sm:$0xff] }
 0x32e   :  { %v4323_v53 = vsub.f32 %v6428_v57, %v3655_v6  ;;  %v1485_v9 = vmul.f32 %v4316_v35, %v4316_v35  ;;  %v1710_v49 = vsel %vm983_vm2, %v1484_v62, 0.0 }
 0x32f   :  { %v1703_v34 = vadd.f32 %v1702_v45, %v1701_v58  ;;  %v6429_v45 = vld [vmem:[#allocation81_spill] sm:$0xff] }
 0x330   :  { %v4330_v54 = vsub.f32 %v6429_v45, %v3655_v6  ;;  %v1486_v2 = vmul.f32 %v4323_v53, %v4323_v53  ;;  %v1712_v55 = vsel %vm983_vm2, %v1485_v9, 0.0 }
 0x331   :  { %v1705_v43 = vadd.f32 %v1704_v23, %v1703_v34  ;;  %v6430_v23 = vld [vmem:[#allocation83_spill] sm:$0xff] }
 0x332   :  { %v4337_v57 = vsub.f32 %v6430_v23, %v3655_v6  ;;  %v1487_v45 = vmul.f32 %v4330_v54, %v4330_v54  ;;  %v1714_v62 = vsel %vm983_vm2, %v1486_v2, 0.0 }
 0x333   :  { %v1707_v58 = vadd.f32 %v1706_v63, %v1705_v43  ;;  %v4344_v63 = vsub.f32 %v6279_v19, %v3655_v6  ;;  %v4358_v19 = vsub.f32 %v6281_v36, %v3655_v6  ;;  %v4372_v36 = vsub.f32 %v3209_v52, %v3655_v6 }
 0x334   :  { %v1488_v23 = vmul.f32 %v4337_v57, %v4337_v57  ;;  %v1716_v9 = vsel %vm983_vm2, %v1487_v45, 0.0  ;;  %v4386_v52 = vsub.f32 %v3265_v33, %v3655_v6  ;;  %v4400_v33 = vsub.f32 %v3313_v38, %v3655_v6 }
 0x335   :  { %v1709_v34 = vadd.f32 %v1708_v11, %v1707_v58  ;;  %v4351_v11 = vsub.f32 %v6280_v26, %v3655_v6  ;;  %v4365_v26 = vsub.f32 %v6282_v1, %v3655_v6  ;;  %v4379_v1 = vsub.f32 %v3237_v27, %v3655_v6 }
 0x336   :  { %v1718_v2 = vsel %vm983_vm2, %v1488_v23, 0.0  ;;  %6431 = vst [vmem:[#allocation34_spill] sm:$0xff] %v4386_v52  ;;  %v4393_v27 = vsub.f32 %v3291_v13, %v3655_v6  ;;  %v4407_v13 = vsub.f32 %v3336_v60, %v3655_v6  ;;  %v4421_v60 = vsub.f32 %v3379_v29, %v3655_v6 }
 0x337   :  { %v1711_v43 = vadd.f32 %v1710_v49, %v1709_v34  ;;  %v1489_v49 = vmul.f32 %v4344_v63, %v4344_v63  ;;  %6432 = vst [vmem:[#allocation36_spill] sm:$0xff] %v4400_v33  ;;  %v4435_v29 = vsub.f32 %v3423_v5, %v3655_v6 }
 0x338   :  { %6434 = vst [vmem:[#allocation40_spill] sm:$0xff] %v4421_v60 }
 0x339   :  { %v1713_v58 = vadd.f32 %v1712_v55, %v1711_v43  ;;  %v1490_v55 = vmul.f32 %v4351_v11, %v4351_v11  ;;  %v1720_v45 = vsel %vm983_vm2, %v1489_v49, 0.0  ;;  %6436 = vst [vmem:[#allocation43_spill] sm:$0xff] %v4435_v29 }
 0x33b   :  { %v1715_v34 = vadd.f32 %v1714_v62, %v1713_v58  ;;  %v1491_v62 = vmul.f32 %v4358_v19, %v4358_v19  ;;  %v1722_v23 = vsel %vm983_vm2, %v1490_v55, 0.0 }
 0x33d   :  { %v1717_v43 = vadd.f32 %v1716_v9, %v1715_v34  ;;  %v1492_v9 = vmul.f32 %v4365_v26, %v4365_v26  ;;  %v1724_v49 = vsel %vm983_vm2, %v1491_v62, 0.0 }
 0x33f   :  { %v1719_v58 = vadd.f32 %v1718_v2, %v1717_v43  ;;  %v1493_v2 = vmul.f32 %v4372_v36, %v4372_v36  ;;  %v1726_v55 = vsel %vm983_vm2, %v1492_v9, 0.0 }
 0x341   :  { %v1721_v34 = vadd.f32 %v1720_v45, %v1719_v58  ;;  %v1494_v45 = vmul.f32 %v4379_v1, %v4379_v1  ;;  %v1728_v62 = vsel %vm983_vm2, %v1493_v2, 0.0 }
 0x343   :  { %v1723_v43 = vadd.f32 %v1722_v23, %v1721_v34  ;;  %v1495_v23 = vmul.f32 %v4386_v52, %v4386_v52  ;;  %v1730_v9 = vsel %vm983_vm2, %v1494_v45, 0.0  ;;  %v1497_v52 = vmul.f32 %v4400_v33, %v4400_v33 }
 0x345   :  { %v1725_v58 = vadd.f32 %v1724_v49, %v1723_v43  ;;  %v1496_v49 = vmul.f32 %v4393_v27, %v4393_v27  ;;  %v1732_v2 = vsel %vm983_vm2, %v1495_v23, 0.0  ;;  %v1736_v23 = vsel %vm983_vm2, %v1497_v52, 0.0 }
 0x347   :  { %v1727_v34 = vadd.f32 %v1726_v55, %v1725_v58  ;;  %v6433_v55 = vld [vmem:[#allocation66_spill] sm:$0xff]  ;;  %v1734_v45 = vsel %vm983_vm2, %v1496_v49, 0.0 }
 0x348   :  { %v4414_v38 = vsub.f32 %v6433_v55, %v3655_v6 }
 0x349   :  { %v1729_v43 = vadd.f32 %v1728_v62, %v1727_v34  ;;  %v1498_v62 = vmul.f32 %v4407_v13, %v4407_v13 }
 0x34a   :  { %v1499_v33 = vmul.f32 %v4414_v38, %v4414_v38 }
 0x34b   :  { %v1731_v58 = vadd.f32 %v1730_v9, %v1729_v43  ;;  %v6435_v9 = vld [vmem:[#allocation70_spill] sm:$0xff]  ;;  %v1738_v49 = vsel %vm983_vm2, %v1498_v62, 0.0 }
 0x34c   :  { %v4428_v55 = vsub.f32 %v6435_v9, %v3655_v6  ;;  %v1740_v52 = vsel %vm983_vm2, %v1499_v33, 0.0 }
 0x34d   :  { %v1733_v34 = vadd.f32 %v1732_v2, %v1731_v58  ;;  %v1500_v2 = vmul.f32 %v4421_v60, %v4421_v60  ;;  %v1502_v60 = vmul.f32 %v4435_v29, %v4435_v29 }
 0x34e   :  { %v1501_v9 = vmul.f32 %v4428_v55, %v4428_v55 }
 0x34f   :  { %v1735_v43 = vadd.f32 %v1734_v45, %v1733_v34  ;;  %v4442_v45 = vsub.f32 %v3439_v16, %v3655_v6  ;;  %v1742_v62 = vsel %vm983_vm2, %v1500_v2, 0.0  ;;  %v4456_v16 = vsub.f32 %v3471_v15, %v3655_v6 }
 0x350   :  { %v1744_v33 = vsel %vm983_vm2, %v1501_v9, 0.0  ;;  %v1746_v2 = vsel %vm983_vm2, %v1502_v60, 0.0  ;;  %v4470_v15 = vsub.f32 %v3499_v20, %v3655_v6 }
 0x351   :  { %v1737_v58 = vadd.f32 %v1736_v23, %v1735_v43  ;;  %v6437_v23 = vld [vmem:[#allocation74_spill] sm:$0xff]  ;;  %6439 = vst [vmem:[#allocation56_spill] sm:$0xff] %v4456_v16 }
 0x352   :  { %v4449_v5 = vsub.f32 %v6437_v23, %v3655_v6  ;;  %6442 = vst [vmem:[#allocation65_spill] sm:$0xff] %v4470_v15 }
 0x353   :  { %v1739_v34 = vadd.f32 %v1738_v49, %v1737_v58  ;;  %v1503_v49 = vmul.f32 %v4442_v45, %v4442_v45 }
 0x354   :  { %6438 = vst [vmem:[#allocation47_spill] sm:$0xff] %v4449_v5  ;;  %v1504_v29 = vmul.f32 %v4449_v5, %v4449_v5 }
 0x355   :  { %v1741_v43 = vadd.f32 %v1740_v52, %v1739_v34  ;;  %v6440_v52 = vld [vmem:[#allocation77_spill] sm:$0xff]  ;;  %v1748_v9 = vsel %vm983_vm2, %v1503_v49, 0.0 }
 0x356   :  { %v4463_v23 = vsub.f32 %v6440_v52, %v3655_v6  ;;  %v1750_v60 = vsel %vm983_vm2, %v1504_v29, 0.0 }
 0x357   :  { %v1743_v58 = vadd.f32 %v1742_v62, %v1741_v43  ;;  %v1505_v62 = vmul.f32 %v4456_v16, %v4456_v16  ;;  %v1507_v16 = vmul.f32 %v4470_v15, %v4470_v15 }
 0x358   :  { %6441 = vst [vmem:[#allocation59_spill] sm:$0xff] %v4463_v23  ;;  %v1506_v52 = vmul.f32 %v4463_v23, %v4463_v23 }
 0x359   :  { %v1745_v34 = vadd.f32 %v1744_v33, %v1743_v58  ;;  %v4477_v33 = vsub.f32 %v3513_v51, %v3655_v6  ;;  %v1752_v49 = vsel %vm983_vm2, %v1505_v62, 0.0  ;;  %v4491_v51 = vsub.f32 %v3541_v32, %v3655_v6 }
 0x35a   :  { %v1754_v29 = vsel %vm983_vm2, %v1506_v52, 0.0  ;;  %v1756_v62 = vsel %vm983_vm2, %v1507_v16, 0.0  ;;  %v4505_v32 = vsub.f32 %v3569_v40, %v3655_v6 }
 0x35b   :  { %v1747_v43 = vadd.f32 %v1746_v2, %v1745_v34  ;;  %6443 = vst [vmem:[#allocation67_spill] sm:$0xff] %v4477_v33  ;;  %v6444_v2 = vld [vmem:[#allocation54_spill] sm:$0xff] }
 0x35c   :  { %v4484_v20 = vsub.f32 %v6444_v2, %v3655_v6  ;;  %6446 = vst [vmem:[#allocation75_spill] sm:$0xff] %v4491_v51 }
 0x35d   :  { %v1749_v58 = vadd.f32 %v1748_v9, %v1747_v43  ;;  %v1508_v9 = vmul.f32 %v4477_v33, %v4477_v33  ;;  %6449 = vst [vmem:[#allocation78_spill] sm:$0xff] %v4505_v32 }
 0x35e   :  { %6445 = vst [vmem:[#allocation72_spill] sm:$0xff] %v4484_v20  ;;  %v1509_v15 = vmul.f32 %v4484_v20, %v4484_v20 }
 0x35f   :  { %v1751_v34 = vadd.f32 %v1750_v60, %v1749_v58  ;;  %v6447_v60 = vld [vmem:[#allocation82_spill] sm:$0xff]  ;;  %v1758_v52 = vsel %vm983_vm2, %v1508_v9, 0.0 }
 0x360   :  { %v4498_v2 = vsub.f32 %v6447_v60, %v3655_v6  ;;  %v1760_v16 = vsel %vm983_vm2, %v1509_v15, 0.0 }
 0x361   :  { %v1753_v43 = vadd.f32 %v1752_v49, %v1751_v34  ;;  %v1510_v49 = vmul.f32 %v4491_v51, %v4491_v51  ;;  %v1512_v51 = vmul.f32 %v4505_v32, %v4505_v32 }
 0x362   :  { %6448 = vst [vmem:[#allocation76_spill] sm:$0xff] %v4498_v2  ;;  %v1511_v60 = vmul.f32 %v4498_v2, %v4498_v2 }
 0x363   :  { %v1755_v58 = vadd.f32 %v1754_v29, %v1753_v43  ;;  %v4512_v29 = vsub.f32 %v3581_v50, %v3655_v6  ;;  %v1762_v9 = vsel %vm983_vm2, %v1510_v49, 0.0  ;;  %v1766_v49 = vsel %vm983_vm2, %v1512_v51, 0.0 }
 0x364   :  { %v1764_v15 = vsel %vm983_vm2, %v1511_v60, 0.0 }
 0x365   :  { %v1757_v34 = vadd.f32 %v1756_v62, %v1755_v58  ;;  %6450 = vst [vmem:[#allocation79_spill] sm:$0xff] %v4512_v29  ;;  %v6451_v62 = vld [vmem:[#allocation39_spill] sm:$0xff]  ;;  %v1513_v2 = vmul.f32 %v4512_v29, %v4512_v29 }
 0x366   :  { %v4519_v40 = vsub.f32 %v6451_v62, %v3655_v6 }
 0x367   :  { %v1759_v43 = vadd.f32 %v1758_v52, %v1757_v34  ;;  %v6453_v52 = vld [vmem:[#allocation44_spill] sm:$0xff]  ;;  %v1768_v60 = vsel %vm983_vm2, %v1513_v2, 0.0 }
 0x368   :  { %6452 = vst [vmem:[#allocation51_spill] sm:$0xff] %v4519_v40  ;;  %v4526_v50 = vsub.f32 %v6453_v52, %v3655_v6  ;;  %v1514_v32 = vmul.f32 %v4519_v40, %v4519_v40 }
 0x369   :  { %v1761_v58 = vadd.f32 %v1760_v16, %v1759_v43  ;;  %v6455_v16 = vld [vmem:[#allocation49_spill] sm:$0xff] }
 0x36a   :  { %6454 = vst [vmem:[#allocation80_spill] sm:$0xff] %v4526_v50  ;;  %v4533_v62 = vsub.f32 %v6455_v16, %v3655_v6  ;;  %v1515_v29 = vmul.f32 %v4526_v50, %v4526_v50  ;;  %v1770_v51 = vsel %vm983_vm2, %v1514_v32, 0.0 }
 0x36b   :  { %v1763_v34 = vadd.f32 %v1762_v9, %v1761_v58  ;;  %v6457_v9 = vld [vmem:[#allocation53_spill] sm:$0xff] }
 0x36c   :  { %6456 = vst [vmem:[#allocation81_spill] sm:$0xff] %v4533_v62  ;;  %v4540_v52 = vsub.f32 %v6457_v9, %v3655_v6  ;;  %v1516_v40 = vmul.f32 %v4533_v62, %v4533_v62  ;;  %v1772_v2 = vsel %vm983_vm2, %v1515_v29, 0.0 }
 0x36d   :  { %v1765_v43 = vadd.f32 %v1764_v15, %v1763_v34  ;;  %v6459_v15 = vld [vmem:[#allocation84_spill] sm:$0xff] }
 0x36e   :  { %6458 = vst [vmem:[#allocation83_spill] sm:$0xff] %v4540_v52  ;;  %v4547_v16 = vsub.f32 %v6459_v15, %v3655_v6  ;;  %v1517_v50 = vmul.f32 %v4540_v52, %v4540_v52  ;;  %v1774_v32 = vsel %vm983_vm2, %v1516_v40, 0.0 }
 0x36f   :  { %v1767_v58 = vadd.f32 %v1766_v49, %v1765_v43  ;;  %v6461_v49 = vld [vmem:[#allocation85_spill] sm:$0xff] }
 0x370   :  { %6460 = vst [vmem:[#allocation66_spill] sm:$0xff] %v4547_v16  ;;  %v4554_v9 = vsub.f32 %v6461_v49, %v3655_v6  ;;  %v1518_v62 = vmul.f32 %v4547_v16, %v4547_v16  ;;  %v1776_v29 = vsel %vm983_vm2, %v1517_v50, 0.0 }
 0x371   :  { %v1769_v34 = vadd.f32 %v1768_v60, %v1767_v58  ;;  %v6463_v60 = vld [vmem:[#allocation86_spill] sm:$0xff] }
 0x372   :  { %6462 = vst [vmem:[#allocation70_spill] sm:$0xff] %v4554_v9  ;;  %v4561_v15 = vsub.f32 %v6463_v60, %v3655_v6  ;;  %v1519_v52 = vmul.f32 %v4554_v9, %v4554_v9  ;;  %v1778_v40 = vsel %vm983_vm2, %v1518_v62, 0.0 }
 0x373   :  { %v1771_v43 = vadd.f32 %v1770_v51, %v1769_v34  ;;  %v6465_v51 = vld [vmem:[#allocation87_spill] sm:$0xff] }
 0x374   :  { %6464 = vst [vmem:[#allocation74_spill] sm:$0xff] %v4561_v15  ;;  %v4568_v49 = vsub.f32 %v6465_v51, %v3655_v6  ;;  %v1520_v16 = vmul.f32 %v4561_v15, %v4561_v15  ;;  %v1780_v51 = vsel %vm983_vm2, %v1519_v52, 0.0 }
 0x375   :  { %v1773_v58 = vadd.f32 %v1772_v2, %v1771_v43  ;;  %v6467_v2 = vld [vmem:[#allocation88_spill] sm:$0xff] }
 0x376   :  { %6466 = vst [vmem:[#allocation77_spill] sm:$0xff] %v4568_v49  ;;  %v4575_v60 = vsub.f32 %v6467_v2, %v3655_v6 }
 0x377   :  { %v1775_v34 = vadd.f32 %v1774_v32, %v1773_v58  ;;  %v1521_v32 = vmul.f32 %v4568_v49, %v4568_v49 }
 0x378   :  { %6468 = vst [vmem:[#allocation54_spill] sm:$0xff] %v4575_v60  ;;  %v1522_v50 = vmul.f32 %v4575_v60, %v4575_v60 }
 0x379   :  { %v1777_v43 = vadd.f32 %v1776_v29, %v1775_v34  ;;  %v1782_v34 = vsel %vm983_vm2, %v1520_v16, 0.0  ;;  %v1784_v6 = vsel %vm983_vm2, %v1521_v32, 0.0 }
 0x37a   :  { %v1786_v15 = vsel %vm1247_vm3, %v1522_v50, 0.0 }
 0x37b   :  { %v1779_v58 = vadd.f32 %v1778_v40, %v1777_v43 }
 0x37d   :  { %v1781_v20 = vadd.f32 %v1780_v51, %v1779_v58 }
 0x37f   :  { %v1783_v29 = vadd.f32 %v1782_v34, %v1781_v20 }
 0x381   :  { %v1785_v2 = vadd.f32 %v1784_v6, %v1783_v29 }
 0x383   :  { %v1787_v9 = vadd.f32 %v1786_v15, %v1785_v2  ;;  %v6472_v2 = vld [vmem:[#allocation5_spill] sm:$0xff] }
 0x385   :  { %v1788_v62 = vrot.slane %v1787_v9, 4 }
 0x387   :  { %v1789_v43 = vadd.f32 %v1788_v62, %v1787_v9  ;;  %v1795_v9 = vld [vmem:[%s6006_s2] sm:$0x1] }
 0x389   :  { %v1790_v40 = vrot.slane %v1789_v43, 2 }
 0x38b   :  { %v1791_v33 = vadd.f32 %v1790_v40, %v1789_v43  ;;  %v6473_v43 = vld [vmem:[#allocation7_spill] sm:$0xff] }
 0x38d   :  { %v1792_v49 = vrot.slane %v1791_v33, 1 }
 0x38f   :  { %v1793_v23 = vadd.f32 %v1792_v49, %v1791_v33  ;;  %v6470_v49 = vld [vmem:[#allocation3_spill] sm:$0xff] }
 0x391   :  { %v1794_v52 = vmul.f32 0.0009451796, %v1793_v23  ;;  %v6469_v23 = vld [vmem:[#allocation2_spill] sm:$0xff] }
 0x393   :  { %v1796_v58 = vadd.f32 1e-05, %v1794_v52  ;;  %v6474_v52 = vld [vmem:[#allocation9_spill] sm:$0xff] }
 0x395   :  { %2525 = vrsqrt.f32 %v1796_v58  ;;  %vm1803_vm5 = vweird.f32 %v1796_v58 }
 0x39b   :  { %v2526_v51 = vpop.eup %2525 }
 0x39c   :  { %v1798_v60 = vmul.f32 %v2526_v51, %v1796_v58  ;;  %vm1804_vm4 = vweird.f32 %v2526_v51 }
 0x39d   :  { %vm1805_vm6 = vmor %vm1803_vm5, %vm1804_vm4 }
 0x39e   :  { %v1799_v5 = vmul.f32 %v2526_v51, %v1798_v60  ;;  %v6471_v60 = vld [vmem:[#allocation4_spill] sm:$0xff] }
 0x3a0   :  { %v1800_v16 = vmul.f32 0.5, %v1799_v5 }
 0x3a2   :  { %v1801_v20 = vsub.f32 1.5, %v1800_v16 }
 0x3a4   :  { %v1802_v34 = vmul.f32 %v2526_v51, %v1801_v20  ;;  %v6477_v20 = vld [vmem:[#allocation12_spill] sm:$0xff] }
 0x3a6   :  { %v1806_v15 = vsel %vm1805_vm6, %v2526_v51, %v1802_v34  ;;  %v6475_v51 = vld [vmem:[#allocation11_spill] sm:$0xff]  ;;  %v6479_v34 = vld [vmem:[#allocation14_spill] sm:$0xff] }
 0x3a7   :  { %v1807_v32 = vmul.f32 %v1806_v15, %v1795_v9 }
 0x3a9   :  { %v4591_v50 = vperm.slane %v1807_v32, 0 }
 0x3ab   :  { %v4595_v33 = vmul.f32 %v4591_v50, %v6469_v23  ;;  %v4599_v5 = vmul.f32 %v4591_v50, %v6470_v49  ;;  %v4603_v29 = vmul.f32 %v4591_v50, %v6471_v60  ;;  %v4607_v6 = vmul.f32 %v4591_v50, %v3671_v31 }
 0x3ac   :  { %v4611_v62 = vmul.f32 %v4591_v50, %v6472_v2  ;;  %v4615_v40 = vmul.f32 %v4591_v50, %v6473_v43  ;;  %v4619_v58 = vmul.f32 %v4591_v50, %v6474_v52  ;;  %v4623_v16 = vmul.f32 %v4591_v50, %v6475_v51  ;;  %v6482_v2 = vld [vmem:[#allocation73_spill] sm:$0xff]  ;;  %v6483_v43 = vld [vmem:[#allocation19_spill] sm:$0xff]  ;;  %v6484_v52 = vld [vmem:[#allocation22_spill] sm:$0xff] }
 0x3ad   :  { %v4627_v31 = vmul.f32 %v4591_v50, %v6477_v20  ;;  %v4631_v9 = vmul.f32 %v4591_v50, %v6479_v34  ;;  %v4635_v15 = vmul.f32 %v4591_v50, %v3721_v18  ;;  %v4639_v32 = vmul.f32 %v4591_v50, %v4092_v17  ;;  %v6485_v51 = vld [vmem:[#allocation26_spill] sm:$0xff]  ;;  %v6486_v20 = vld [vmem:[#allocation28_spill] sm:$0xff]  ;;  %v6487_v34 = vld [vmem:[#allocation31_spill] sm:$0xff] }
 0x3ae   :  { %6476 = vst [vmem:[#allocation82_spill] sm:$0xff] %v4623_v16  ;;  %v4643_v23 = vmul.f32 %v4591_v50, %v4099_v22  ;;  %v4647_v49 = vmul.f32 %v4591_v50, %v4106_v41  ;;  %v4651_v60 = vmul.f32 %v4591_v50, %v4113_v44  ;;  %v4655_v18 = vmul.f32 %v4591_v50, %v4120_v8  ;;  %v6496_v16 = vld [vmem:[#allocation43_spill] sm:$0xff] }
 0x3af   :  { %6478 = vst [vmem:[#allocation39_spill] sm:$0xff] %v4627_v31  ;;  %v4659_v17 = vmul.f32 %v4591_v50, %v4127_v25  ;;  %v4663_v22 = vmul.f32 %v4591_v50, %v4134_v0  ;;  %v4667_v41 = vmul.f32 %v4591_v50, %v4141_v10  ;;  %v4671_v44 = vmul.f32 %v4591_v50, %v4148_v39  ;;  %v6493_v31 = vld [vmem:[#allocation40_spill] sm:$0xff] }
 0x3b0   :  { %6480 = vst [vmem:[#allocation44_spill] sm:$0xff] %v4631_v9  ;;  %v4675_v8 = vmul.f32 %v4591_v50, %v4155_v21  ;;  %v4679_v25 = vmul.f32 %v4591_v50, %v4162_v4  ;;  %v4683_v0 = vmul.f32 %v4591_v50, %v4169_v48  ;;  %v4687_v10 = vmul.f32 %v4591_v50, %v4176_v12  ;;  %v6489_v9 = vld [vmem:[#allocation36_spill] sm:$0xff] }
 0x3b1   :  { %6481 = vst [vmem:[#allocation49_spill] sm:$0xff] %v4635_v15  ;;  %v4691_v39 = vmul.f32 %v4591_v50, %v4183_v14  ;;  %v4695_v21 = vmul.f32 %v4591_v50, %v4190_v47  ;;  %v4699_v4 = vmul.f32 %v4591_v50, %v4197_v28  ;;  %v4703_v48 = vmul.f32 %v4591_v50, %v4204_v24  ;;  %v6488_v15 = vld [vmem:[#allocation34_spill] sm:$0xff] }
 0x3b2   :  { %v4707_v12 = vmul.f32 %v4591_v50, %v4211_v42  ;;  %v4711_v14 = vmul.f32 %v4591_v50, %v4218_v3  ;;  %v4715_v47 = vmul.f32 %v4591_v50, %v4225_v7  ;;  %v4719_v28 = vmul.f32 %v4591_v50, %v4232_v37 }
 0x3b3   :  { %v4723_v24 = vmul.f32 %v4591_v50, %v4239_v56  ;;  %v4727_v42 = vmul.f32 %v4591_v50, %v4246_v46  ;;  %v4731_v3 = vmul.f32 %v4591_v50, %v4253_v30  ;;  %v4735_v7 = vmul.f32 %v4591_v50, %v4260_v59 }
 0x3b4   :  { %v4739_v37 = vmul.f32 %v4591_v50, %v4267_v61  ;;  %v4743_v56 = vmul.f32 %v4591_v50, %v6482_v2  ;;  %v4747_v46 = vmul.f32 %v4591_v50, %v6483_v43  ;;  %v4751_v30 = vmul.f32 %v4591_v50, %v6484_v52 }
 0x3b5   :  { %v4755_v59 = vmul.f32 %v4591_v50, %v6485_v51  ;;  %v4759_v61 = vmul.f32 %v4591_v50, %v6486_v20  ;;  %v4763_v2 = vmul.f32 %v4591_v50, %v6487_v34  ;;  %v4767_v43 = vmul.f32 %v4591_v50, %v4316_v35 }
 0x3b6   :  { %v4771_v52 = vmul.f32 %v4591_v50, %v4323_v53  ;;  %v4775_v51 = vmul.f32 %v4591_v50, %v4330_v54  ;;  %v4779_v20 = vmul.f32 %v4591_v50, %v4337_v57  ;;  %v4783_v34 = vmul.f32 %v4591_v50, %v4344_v63 }
 0x3b7   :  { %v4787_v35 = vmul.f32 %v4591_v50, %v4351_v11  ;;  %v4791_v53 = vmul.f32 %v4591_v50, %v4358_v19  ;;  %v4795_v54 = vmul.f32 %v4591_v50, %v4365_v26  ;;  %v4799_v57 = vmul.f32 %v4591_v50, %v4372_v36 }
 0x3b8   :  { %v4803_v63 = vmul.f32 %v4591_v50, %v4379_v1  ;;  %v4807_v11 = vmul.f32 %v4591_v50, %v6488_v15  ;;  %v4811_v19 = vmul.f32 %v4591_v50, %v4393_v27  ;;  %v4815_v26 = vmul.f32 %v4591_v50, %v6489_v9 }
 0x3b9   :  { %v4819_v36 = vmul.f32 %v4591_v50, %v4407_v13  ;;  %v4823_v1 = vmul.f32 %v4591_v50, %v4414_v38  ;;  %v4827_v15 = vmul.f32 %v4591_v50, %v6493_v31  ;;  %v4831_v27 = vmul.f32 %v4591_v50, %v4428_v55 }
 0x3ba   :  { %6490 = vst [vmem:[#allocation53_spill] sm:$0xff] %v4815_v26  ;;  %v4835_v9 = vmul.f32 %v4591_v50, %v6496_v16  ;;  %v4839_v13 = vmul.f32 %v4591_v50, %v4442_v45  ;;  %v6521_v26 = vld [vmem:[#allocation80_spill] sm:$0xff] }
 0x3bb   :  { %6491 = vst [vmem:[#allocation84_spill] sm:$0xff] %v4819_v36  ;;  %v6499_v36 = vld [vmem:[#allocation47_spill] sm:$0xff] }
 0x3bc   :  { %6492 = vst [vmem:[#allocation85_spill] sm:$0xff] %v4823_v1  ;;  %v4843_v38 = vmul.f32 %v4591_v50, %v6499_v36  ;;  %v6501_v1 = vld [vmem:[#allocation56_spill] sm:$0xff] }
 0x3bd   :  { %6494 = vst [vmem:[#allocation86_spill] sm:$0xff] %v4827_v15  ;;  %v4847_v31 = vmul.f32 %v4591_v50, %v6501_v1  ;;  %v6503_v15 = vld [vmem:[#allocation59_spill] sm:$0xff]  ;;  %v4868_v1 = vld [vmem:[%s6005_s3] ss:$0 sm:$0xff] }
 0x3be   :  { %6495 = vst [vmem:[#allocation87_spill] sm:$0xff] %v4831_v27  ;;  %v4851_v55 = vmul.f32 %v4591_v50, %v6503_v15  ;;  %v6505_v27 = vld [vmem:[#allocation65_spill] sm:$0xff] }
 0x3bf   :  { %6497 = vst [vmem:[#allocation88_spill] sm:$0xff] %v4835_v9  ;;  %v4855_v16 = vmul.f32 %v4591_v50, %v6505_v27  ;;  %v6507_v9 = vld [vmem:[#allocation67_spill] sm:$0xff] }
 0x3c0   :  { %6498 = vst [vmem:[#allocation2_spill] sm:$0xff] %v4839_v13  ;;  %v4859_v45 = vmul.f32 %v4591_v50, %v6507_v9  ;;  %v6509_v13 = vld [vmem:[#allocation72_spill] sm:$0xff] }
 0x3c1   :  { %6500 = vst [vmem:[#allocation3_spill] sm:$0xff] %v4843_v38  ;;  %v4863_v36 = vmul.f32 %v4591_v50, %v6509_v13 }
 0x3c2   :  { %6502 = vst [vmem:[#allocation4_spill] sm:$0xff] %v4847_v31  ;;  %v6511_v31 = vld [vmem:[#allocation75_spill] sm:$0xff] }
 0x3c3   :  { %6504 = vst [vmem:[#allocation5_spill] sm:$0xff] %v4851_v55  ;;  %v4872_v15 = vmul.f32 %v4591_v50, %v6511_v31  ;;  %v6513_v55 = vld [vmem:[#allocation76_spill] sm:$0xff]  ;;  %v4892_v31 = vmul.f32 %v4591_v50, %v6521_v26 }
 0x3c4   :  { %6506 = vst [vmem:[#allocation7_spill] sm:$0xff] %v4855_v16  ;;  %v4876_v27 = vmul.f32 %v4591_v50, %v6513_v55  ;;  %v6515_v16 = vld [vmem:[#allocation78_spill] sm:$0xff] }
 0x3c5   :  { %6508 = vst [vmem:[#allocation9_spill] sm:$0xff] %v4859_v45  ;;  %v4880_v9 = vmul.f32 %v4591_v50, %v6515_v16  ;;  %v6517_v45 = vld [vmem:[#allocation79_spill] sm:$0xff] }
 0x3c6   :  { %6510 = vst [vmem:[#allocation11_spill] sm:$0xff] %v4863_v36  ;;  %v4884_v13 = vmul.f32 %v4591_v50, %v6517_v45  ;;  %v6519_v36 = vld [vmem:[#allocation51_spill] sm:$0xff] }
 0x3c7   :  { %6512 = vst [vmem:[#allocation12_spill] sm:$0xff] %v4872_v15  ;;  %v4888_v38 = vmul.f32 %v4591_v50, %v6519_v36  ;;  %v6523_v15 = vld [vmem:[#allocation81_spill] sm:$0xff] }
 0x3c8   :  { %6514 = vst [vmem:[#allocation14_spill] sm:$0xff] %v4876_v27  ;;  %v4896_v55 = vmul.f32 %v4591_v50, %v6523_v15  ;;  %v6525_v27 = vld [vmem:[#allocation83_spill] sm:$0xff] }
 0x3c9   :  { %6516 = vst [vmem:[#allocation73_spill] sm:$0xff] %v4880_v9  ;;  %v4900_v16 = vmul.f32 %v4591_v50, %v6525_v27  ;;  %v6526_v9 = vld [vmem:[#allocation66_spill] sm:$0xff] }
 0x3ca   :  { %6518 = vst [vmem:[#allocation19_spill] sm:$0xff] %v4884_v13  ;;  %v4904_v45 = vmul.f32 %v4591_v50, %v6526_v9  ;;  %v6527_v13 = vld [vmem:[#allocation70_spill] sm:$0xff]  ;;  %v4924_v9 = vadd.f32 %v4868_v1, %v4595_v33  ;;  %v4944_v33 = vadd.f32 %v4868_v1, %v4615_v40  ;;  %v4964_v40 = vadd.f32 %v4868_v1, %v4651_v60 }
 0x3cb   :  { %6520 = vst [vmem:[#allocation22_spill] sm:$0xff] %v4888_v38  ;;  %v4908_v36 = vmul.f32 %v4591_v50, %v6527_v13  ;;  %v6528_v38 = vld [vmem:[#allocation74_spill] sm:$0xff]  ;;  %v4928_v13 = vadd.f32 %v4868_v1, %v4599_v5  ;;  %v4948_v5 = vadd.f32 %v4868_v1, %v4619_v58  ;;  %v4968_v58 = vadd.f32 %v4868_v1, %v4655_v18 }
 0x3cc   :  { %6522 = vst [vmem:[#allocation26_spill] sm:$0xff] %v4892_v31  ;;  %v4912_v26 = vmul.f32 %v4591_v50, %v6528_v38  ;;  %v6529_v31 = vld [vmem:[#allocation77_spill] sm:$0xff]  ;;  %v4932_v38 = vadd.f32 %v4868_v1, %v4603_v29  ;;  %v4952_v29 = vadd.f32 %v4868_v1, %v4639_v32  ;;  %v4972_v32 = vadd.f32 %v4868_v1, %v4659_v17 }
 0x3cd   :  { %6524 = vst [vmem:[#allocation28_spill] sm:$0xff] %v4896_v55  ;;  %v4916_v15 = vmul.f32 %v4591_v50, %v6529_v31  ;;  %v6530_v55 = vld [vmem:[#allocation54_spill] sm:$0xff]  ;;  %v4936_v31 = vadd.f32 %v4868_v1, %v4607_v6  ;;  %v4956_v6 = vadd.f32 %v4868_v1, %v4643_v23  ;;  %v4976_v23 = vadd.f32 %v4868_v1, %v4663_v22 }
 0x3ce   :  { %v4920_v27 = vmul.f32 %v4591_v50, %v6530_v55  ;;  %v4940_v55 = vadd.f32 %v4868_v1, %v4611_v62  ;;  %v4960_v62 = vadd.f32 %v4868_v1, %v4647_v49  ;;  %v4980_v49 = vadd.f32 %v4868_v1, %v4667_v41 }
 0x3cf   :  { %v4984_v60 = vadd.f32 %v4868_v1, %v4671_v44  ;;  %v4988_v18 = vadd.f32 %v4868_v1, %v4675_v8  ;;  %v4992_v17 = vadd.f32 %v4868_v1, %v4679_v25  ;;  %v4996_v22 = vadd.f32 %v4868_v1, %v4683_v0 }
 0x3d0   :  { %v5000_v41 = vadd.f32 %v4868_v1, %v4687_v10  ;;  %v5004_v44 = vadd.f32 %v4868_v1, %v4691_v39  ;;  %v5008_v8 = vadd.f32 %v4868_v1, %v4695_v21  ;;  %v5012_v25 = vadd.f32 %v4868_v1, %v4699_v4 }
 0x3d1   :  { %v5016_v0 = vadd.f32 %v4868_v1, %v4703_v48  ;;  %v5020_v10 = vadd.f32 %v4868_v1, %v4707_v12  ;;  %v5024_v39 = vadd.f32 %v4868_v1, %v4711_v14  ;;  %v5028_v21 = vadd.f32 %v4868_v1, %v4715_v47 }
 0x3d2   :  { %v5032_v4 = vadd.f32 %v4868_v1, %v4719_v28  ;;  %v5036_v48 = vadd.f32 %v4868_v1, %v4723_v24  ;;  %v5040_v12 = vadd.f32 %v4868_v1, %v4727_v42  ;;  %v5044_v14 = vadd.f32 %v4868_v1, %v4731_v3 }
 0x3d3   :  { %v5048_v47 = vadd.f32 %v4868_v1, %v4735_v7  ;;  %v5052_v28 = vadd.f32 %v4868_v1, %v4739_v37  ;;  %v5056_v24 = vadd.f32 %v4868_v1, %v4743_v56  ;;  %v5060_v42 = vadd.f32 %v4868_v1, %v4747_v46 }
 0x3d4   :  { %v5064_v3 = vadd.f32 %v4868_v1, %v4751_v30  ;;  %v5068_v7 = vadd.f32 %v4868_v1, %v4755_v59  ;;  %v5072_v37 = vadd.f32 %v4868_v1, %v4759_v61  ;;  %v5076_v56 = vadd.f32 %v4868_v1, %v4763_v2 }
 0x3d5   :  { %v5080_v46 = vadd.f32 %v4868_v1, %v4767_v43  ;;  %v5084_v30 = vadd.f32 %v4868_v1, %v4771_v52  ;;  %v5088_v59 = vadd.f32 %v4868_v1, %v4775_v51  ;;  %v5092_v61 = vadd.f32 %v4868_v1, %v4779_v20 }
 0x3d6   :  { %v5096_v2 = vadd.f32 %v4868_v1, %v4783_v34  ;;  %v5100_v43 = vadd.f32 %v4868_v1, %v4787_v35  ;;  %v5104_v52 = vadd.f32 %v4868_v1, %v4791_v53  ;;  %v5108_v51 = vadd.f32 %v4868_v1, %v4795_v54 }
 0x3d7   :  { %v5112_v20 = vadd.f32 %v4868_v1, %v4799_v57  ;;  %v5116_v34 = vadd.f32 %v4868_v1, %v4803_v63  ;;  %v5120_v35 = vadd.f32 %v4868_v1, %v4807_v11  ;;  %v5124_v53 = vadd.f32 %v4868_v1, %v4811_v19 }
 0x3d8   :  { %6531 = vst [vmem:[#allocation31_spill] sm:$0xff] %v5104_v52  ;;  %v6537_v52 = vld [vmem:[#allocation53_spill] sm:$0xff] }
 0x3d9   :  { %6532 = vst [vmem:[#allocation34_spill] sm:$0xff] %v5108_v51  ;;  %v5128_v54 = vadd.f32 %v4868_v1, %v6537_v52  ;;  %v6539_v51 = vld [vmem:[#allocation84_spill] sm:$0xff] }
 0x3da   :  { %6533 = vst [vmem:[#allocation36_spill] sm:$0xff] %v5112_v20  ;;  %v5132_v57 = vadd.f32 %v4868_v1, %v6539_v51  ;;  %v6541_v20 = vld [vmem:[#allocation85_spill] sm:$0xff] }
 0x3db   :  { %6534 = vst [vmem:[#allocation40_spill] sm:$0xff] %v5116_v34  ;;  %v5136_v63 = vadd.f32 %v4868_v1, %v6541_v20  ;;  %v6543_v34 = vld [vmem:[#allocation86_spill] sm:$0xff] }
 0x3dc   :  { %6535 = vst [vmem:[#allocation43_spill] sm:$0xff] %v5120_v35  ;;  %v5140_v11 = vadd.f32 %v4868_v1, %v6543_v34  ;;  %v6545_v35 = vld [vmem:[#allocation87_spill] sm:$0xff] }
 0x3dd   :  { %6536 = vst [vmem:[#allocation47_spill] sm:$0xff] %v5124_v53  ;;  %v5144_v19 = vadd.f32 %v4868_v1, %v6545_v35  ;;  %v6547_v53 = vld [vmem:[#allocation88_spill] sm:$0xff] }
 0x3de   :  { %6538 = vst [vmem:[#allocation56_spill] sm:$0xff] %v5128_v54  ;;  %v5148_v52 = vadd.f32 %v4868_v1, %v6547_v53  ;;  %v6549_v54 = vld [vmem:[#allocation2_spill] sm:$0xff] }
 0x3df   :  { %6540 = vst [vmem:[#allocation59_spill] sm:$0xff] %v5132_v57  ;;  %v5152_v51 = vadd.f32 %v4868_v1, %v6549_v54  ;;  %v6551_v57 = vld [vmem:[#allocation3_spill] sm:$0xff] }
 0x3e0   :  { %6542 = vst [vmem:[#allocation65_spill] sm:$0xff] %v5136_v63  ;;  %v5156_v20 = vadd.f32 %v4868_v1, %v6551_v57  ;;  %v6553_v63 = vld [vmem:[#allocation4_spill] sm:$0xff] }
 0x3e1   :  { %6544 = vst [vmem:[#allocation67_spill] sm:$0xff] %v5140_v11  ;;  %v5160_v34 = vadd.f32 %v4868_v1, %v6553_v63  ;;  %v6555_v11 = vld [vmem:[#allocation5_spill] sm:$0xff] }
 0x3e2   :  { %6546 = vst [vmem:[#allocation72_spill] sm:$0xff] %v5144_v19  ;;  %v5164_v35 = vadd.f32 %v4868_v1, %v6555_v11  ;;  %v6557_v19 = vld [vmem:[#allocation7_spill] sm:$0xff] }
 0x3e3   :  { %6548 = vst [vmem:[#allocation75_spill] sm:$0xff] %v5148_v52  ;;  %v5168_v53 = vadd.f32 %v4868_v1, %v6557_v19  ;;  %v6559_v52 = vld [vmem:[#allocation9_spill] sm:$0xff] }
 0x3e4   :  { %6550 = vst [vmem:[#allocation76_spill] sm:$0xff] %v5152_v51  ;;  %v5172_v54 = vadd.f32 %v4868_v1, %v6559_v52  ;;  %v6561_v51 = vld [vmem:[#allocation11_spill] sm:$0xff] }
 0x3e5   :  { %6552 = vst [vmem:[#allocation78_spill] sm:$0xff] %v5156_v20  ;;  %v5176_v57 = vadd.f32 %v4868_v1, %v6561_v51  ;;  %v6563_v20 = vld [vmem:[#allocation12_spill] sm:$0xff] }
 0x3e6   :  { %6554 = vst [vmem:[#allocation79_spill] sm:$0xff] %v5160_v34  ;;  %v5180_v63 = vadd.f32 %v4868_v1, %v6563_v20  ;;  %v6565_v34 = vld [vmem:[#allocation14_spill] sm:$0xff] }
 0x3e7   :  { %6556 = vst [vmem:[#allocation51_spill] sm:$0xff] %v5164_v35  ;;  %v5184_v11 = vadd.f32 %v4868_v1, %v6565_v34  ;;  %v6566_v35 = vld [vmem:[#allocation73_spill] sm:$0xff] }
 0x3e8   :  { %6558 = vst [vmem:[#allocation80_spill] sm:$0xff] %v5168_v53  ;;  %v5188_v19 = vadd.f32 %v4868_v1, %v6566_v35  ;;  %v6567_v53 = vld [vmem:[#allocation19_spill] sm:$0xff]  ;;  %v5208_v35 = vadd.f32 %v4868_v1, %v4900_v16  ;;  %v5228_v16 = vadd.f32 %v4868_v1, %v4920_v27 }
 0x3e9   :  { %6560 = vst [vmem:[#allocation81_spill] sm:$0xff] %v5172_v54  ;;  %v5192_v52 = vadd.f32 %v4868_v1, %v6567_v53  ;;  %v6568_v54 = vld [vmem:[#allocation22_spill] sm:$0xff]  ;;  %v5212_v53 = vadd.f32 %v4868_v1, %v4904_v45  ;;  %v2082_v45 = vmax.f32 %v4928_v13, 0.0  ;;  %v6584_v13 = vld [vmem:[#allocation20_spill] sm:$0xff] }
 0x3ea   :  { %6562 = vst [vmem:[#allocation83_spill] sm:$0xff] %v5176_v57  ;;  %v5196_v51 = vadd.f32 %v4868_v1, %v6568_v54  ;;  %v6570_v57 = vld [vmem:[#allocation26_spill] sm:$0xff]  ;;  %v5216_v54 = vadd.f32 %v4868_v1, %v4908_v36 }
 0x3eb   :  { %6564 = vst [vmem:[#allocation66_spill] sm:$0xff] %v5180_v63  ;;  %v5200_v20 = vadd.f32 %v4868_v1, %v6570_v57  ;;  %v6572_v63 = vld [vmem:[#allocation28_spill] sm:$0xff]  ;;  %v5220_v57 = vadd.f32 %v4868_v1, %v4912_v26  ;;  %v2083_v26 = vmax.f32 %v4932_v38, 0.0 }
 0x3ec   :  { %6569 = vst [vmem:[#allocation70_spill] sm:$0xff] %v5196_v51  ;;  %v5204_v34 = vadd.f32 %v4868_v1, %v6572_v63  ;;  %v5224_v63 = vadd.f32 %v4868_v1, %v4916_v15  ;;  %v6582_v15 = vld [vmem:[#allocation18_spill] sm:$0xff] }
 0x3ed   :  { %6571 = vst [vmem:[#allocation74_spill] sm:$0xff] %v5200_v20  ;;  %v6583_v20 = vld [vmem:[#allocation39_spill] sm:$0xff] }
 0x3ee   :  { %6573 = vst [vmem:[#allocation77_spill] sm:$0xff] %v5204_v34  ;;  %v1956_v27 = vadd.f32 %v4868_v1, %v6583_v20  ;;  %v6586_v20 = vld [vmem:[#allocation23_spill] sm:$0xff] }
 0x3ef   :  { %6574 = vst [vmem:[#allocation54_spill] sm:$0xff] %v5208_v35  ;;  %v2081_v35 = vmax.f32 %v4924_v9, 0.0  ;;  %v2085_v9 = vmax.f32 %v4940_v55, 0.0  ;;  %v1825_v55 = vmul.f32 %v4591_v50, %v6586_v20 }
 0x3f0   :  { %6575 = vst [vmem:[#allocation53_spill] sm:$0xff] %v5212_v53  ;;  %v6580_v53 = vld [vmem:[#allocation16_spill] sm:$0xff] }
 0x3f1   :  { %6576 = vst [vmem:[#allocation84_spill] sm:$0xff] %v5216_v54  ;;  %v1822_v36 = vmul.f32 %v4591_v50, %v6580_v53  ;;  %v6581_v54 = vld [vmem:[#allocation82_spill] sm:$0xff]  ;;  %v1824_v53 = vmul.f32 %v4591_v50, %v6584_v13  ;;  %v6588_v13 = vld [vmem:[#allocation25_spill] sm:$0xff] }
 0x3f2   :  { %6577 = vst [vmem:[#allocation85_spill] sm:$0xff] %v5220_v57  ;;  %v1955_v34 = vadd.f32 %v4868_v1, %v6581_v54  ;;  %v2084_v57 = vmax.f32 %v4936_v31, 0.0  ;;  %v6585_v54 = vld [vmem:[#allocation44_spill] sm:$0xff]  ;;  %v2086_v31 = vmax.f32 %v4944_v33, 0.0  ;;  %v1826_v33 = vmul.f32 %v4591_v50, %v6588_v13 }
 0x3f3   :  { %6578 = vst [vmem:[#allocation86_spill] sm:$0xff] %v5224_v63  ;;  %v1823_v63 = vmul.f32 %v4591_v50, %v6582_v15  ;;  %v1957_v38 = vadd.f32 %v4868_v1, %v6585_v54  ;;  %v6587_v15 = vld [vmem:[#allocation49_spill] sm:$0xff]  ;;  %v1959_v54 = vadd.f32 %v4868_v1, %v1822_v36 }
 0x3f4   :  { %6579 = vst [vmem:[#allocation87_spill] sm:$0xff] %v5228_v16  ;;  %v1958_v16 = vadd.f32 %v4868_v1, %v6587_v15  ;;  %v2088_v51 = vmax.f32 %v1955_v34, 0.0  ;;  %v2089_v15 = vmax.f32 %v1956_v27, 0.0  ;;  %v1961_v34 = vadd.f32 %v4868_v1, %v1824_v53 }
 0x3f5   :  { %2214 = vst.msk [vmem:[%s6007_s4] sm:$0xff] %vm983_vm2, %v2081_v35  ;;  %v2087_v35 = vmax.f32 %v4948_v5, 0.0  ;;  %v1960_v5 = vadd.f32 %v4868_v1, %v1823_v63  ;;  %v2090_v13 = vmax.f32 %v1957_v38, 0.0  ;;  %v1962_v27 = vadd.f32 %v4868_v1, %v1825_v55 }
 0x3f6   :  { %2215 = vst.msk [vmem:[%s6007_s4 + $0x8] sm:$0xff] %vm983_vm2, %v2082_v45  ;;  %v6589_v45 = vld [vmem:[#allocation27_spill] sm:$0xff]  ;;  %v1963_v38 = vadd.f32 %v4868_v1, %v1826_v33 }
 0x3f7   :  { %2216 = vst.msk [vmem:[%s6007_s4 + $0x10] sm:$0xff] %vm983_vm2, %v2083_v26  ;;  %v1827_v20 = vmul.f32 %v4591_v50, %v6589_v45  ;;  %v6590_v26 = vld [vmem:[#allocation29_spill] sm:$0xff]  ;;  %v2091_v45 = vmax.f32 %v1958_v16, 0.0 }
 0x3f8   :  { %2217 = vst.msk [vmem:[%s6007_s4 + $0x18] sm:$0xff] %vm983_vm2, %v2084_v57  ;;  %v1828_v36 = vmul.f32 %v4591_v50, %v6590_v26  ;;  %v6591_v57 = vld [vmem:[#allocation32_spill] sm:$0xff]  ;;  %v2092_v26 = vmax.f32 %v1959_v54, 0.0 }
 0x3f9   :  { %2218 = vst.msk [vmem:[%s6007_s4 + $0x20] sm:$0xff] %vm983_vm2, %v2085_v9  ;;  %v1829_v63 = vmul.f32 %v4591_v50, %v6591_v57  ;;  %v6592_v9 = vld [vmem:[#allocation35_spill] sm:$0xff]  ;;  %v1964_v16 = vadd.f32 %v4868_v1, %v1827_v20  ;;  %v2093_v57 = vmax.f32 %v1960_v5, 0.0 }
 0x3fa   :  { %2219 = vst.msk [vmem:[%s6007_s4 + $0x28] sm:$0xff] %vm983_vm2, %v2086_v31  ;;  %v1830_v53 = vmul.f32 %v4591_v50, %v6592_v9  ;;  %v6593_v31 = vld [vmem:[#allocation37_spill] sm:$0xff]  ;;  %v1965_v54 = vadd.f32 %v4868_v1, %v1828_v36  ;;  %v2094_v9 = vmax.f32 %v1961_v34, 0.0 }
 0x3fb   :  { %2220 = vst.msk [vmem:[%s6007_s4 + $0x30] sm:$0xff] %vm983_vm2, %v2087_v35  ;;  %v1831_v55 = vmul.f32 %v4591_v50, %v6593_v31  ;;  %v6594_v35 = vld [vmem:[#allocation41_spill] sm:$0xff]  ;;  %v1966_v5 = vadd.f32 %v4868_v1, %v1829_v63  ;;  %v2095_v31 = vmax.f32 %v1962_v27, 0.0 }
 0x3fc   :  { %2221 = vst.msk [vmem:[%s6007_s4 + $0x38] sm:$0xff] %vm983_vm2, %v2088_v51  ;;  %v1832_v33 = vmul.f32 %v4591_v50, %v6594_v35  ;;  %v6595_v51 = vld [vmem:[#allocation45_spill] sm:$0xff]  ;;  %v1967_v34 = vadd.f32 %v4868_v1, %v1830_v53  ;;  %v2096_v35 = vmax.f32 %v1963_v38, 0.0 }
 0x3fd   :  { %2222 = vst.msk [vmem:[%s6007_s4 + $0x40] sm:$0xff] %vm983_vm2, %v2089_v15  ;;  %v1833_v20 = vmul.f32 %v4591_v50, %v6595_v51  ;;  %v6596_v15 = vld [vmem:[#allocation48_spill] sm:$0xff]  ;;  %v1968_v27 = vadd.f32 %v4868_v1, %v1831_v55  ;;  %v2097_v51 = vmax.f32 %v1964_v16, 0.0 }
 0x3fe   :  { %2223 = vst.msk [vmem:[%s6007_s4 + $0x48] sm:$0xff] %vm983_vm2, %v2090_v13  ;;  %v1834_v36 = vmul.f32 %v4591_v50, %v6596_v15  ;;  %v6597_v13 = vld [vmem:[#allocation52_spill] sm:$0xff]  ;;  %v1969_v38 = vadd.f32 %v4868_v1, %v1832_v33  ;;  %v2098_v15 = vmax.f32 %v1965_v54, 0.0 }
 0x3ff   :  { %2224 = vst.msk [vmem:[%s6007_s4 + $0x50] sm:$0xff] %vm983_vm2, %v2091_v45  ;;  %v1835_v63 = vmul.f32 %v4591_v50, %v6597_v13  ;;  %v6598_v45 = vld [vmem:[#allocation55_spill] sm:$0xff]  ;;  %v1970_v16 = vadd.f32 %v4868_v1, %v1833_v20  ;;  %v2099_v13 = vmax.f32 %v1966_v5, 0.0 }
 0x400   :  { %2225 = vst.msk [vmem:[%s6007_s4 + $0x58] sm:$0xff] %vm983_vm2, %v2092_v26  ;;  %v1836_v53 = vmul.f32 %v4591_v50, %v6598_v45  ;;  %v6599_v26 = vld [vmem:[#allocation57_spill] sm:$0xff]  ;;  %v1971_v54 = vadd.f32 %v4868_v1, %v1834_v36  ;;  %v2100_v45 = vmax.f32 %v1967_v34, 0.0 }
 0x401   :  { %2226 = vst.msk [vmem:[%s6007_s4 + $0x60] sm:$0xff] %vm983_vm2, %v2093_v57  ;;  %v1837_v55 = vmul.f32 %v4591_v50, %v6599_v26  ;;  %v6600_v57 = vld [vmem:[#allocation60_spill] sm:$0xff]  ;;  %v1972_v5 = vadd.f32 %v4868_v1, %v1835_v63  ;;  %v2101_v26 = vmax.f32 %v1968_v27, 0.0 }
 0x402   :  { %2227 = vst.msk [vmem:[%s6007_s4 + $0x68] sm:$0xff] %vm983_vm2, %v2094_v9  ;;  %v1838_v33 = vmul.f32 %v4591_v50, %v6600_v57  ;;  %v6601_v9 = vld [vmem:[#allocation89_spill] sm:$0xff]  ;;  %v1973_v34 = vadd.f32 %v4868_v1, %v1836_v53  ;;  %v2102_v57 = vmax.f32 %v1969_v38, 0.0 }
 0x403   :  { %2228 = vst.msk [vmem:[%s6007_s4 + $0x70] sm:$0xff] %vm983_vm2, %v2095_v31  ;;  %v1839_v20 = vmul.f32 %v4591_v50, %v6601_v9  ;;  %v6602_v31 = vld [vmem:[#allocation63_spill] sm:$0xff]  ;;  %v1974_v27 = vadd.f32 %v4868_v1, %v1837_v55  ;;  %v2103_v9 = vmax.f32 %v1970_v16, 0.0 }
 0x404   :  { %2229 = vst.msk [vmem:[%s6007_s4 + $0x78] sm:$0xff] %vm983_vm2, %v2096_v35  ;;  %v1840_v36 = vmul.f32 %v4591_v50, %v6602_v31  ;;  %v6603_v35 = vld [vmem:[#allocation64_spill] sm:$0xff]  ;;  %v1975_v38 = vadd.f32 %v4868_v1, %v1838_v33  ;;  %v2104_v31 = vmax.f32 %v1971_v54, 0.0 }
 0x405   :  { %2230 = vst.msk [vmem:[%s6007_s4 + $0x80] sm:$0xff] %vm983_vm2, %v2097_v51  ;;  %v1841_v63 = vmul.f32 %v4591_v50, %v6603_v35  ;;  %v6604_v51 = vld [vmem:[#allocation90_spill] sm:$0xff]  ;;  %v1976_v16 = vadd.f32 %v4868_v1, %v1839_v20  ;;  %v2105_v35 = vmax.f32 %v1972_v5, 0.0 }
 0x406   :  { %2231 = vst.msk [vmem:[%s6007_s4 + $0x88] sm:$0xff] %vm983_vm2, %v2098_v15  ;;  %v1842_v53 = vmul.f32 %v4591_v50, %v6604_v51  ;;  %v6605_v15 = vld [vmem:[#allocation6_spill] sm:$0xff]  ;;  %v1977_v54 = vadd.f32 %v4868_v1, %v1840_v36  ;;  %v2106_v51 = vmax.f32 %v1973_v34, 0.0 }
 0x407   :  { %2232 = vst.msk [vmem:[%s6007_s4 + $0x90] sm:$0xff] %vm983_vm2, %v2099_v13  ;;  %v1843_v55 = vmul.f32 %v4591_v50, %v6605_v15  ;;  %v6606_v13 = vld [vmem:[#allocation8_spill] sm:$0xff]  ;;  %v1978_v5 = vadd.f32 %v4868_v1, %v1841_v63  ;;  %v2107_v15 = vmax.f32 %v1974_v27, 0.0 }
 0x408   :  { %2233 = vst.msk [vmem:[%s6007_s4 + $0x98] sm:$0xff] %vm983_vm2, %v2100_v45  ;;  %v1844_v33 = vmul.f32 %v4591_v50, %v6606_v13  ;;  %v6607_v45 = vld [vmem:[#allocation10_spill] sm:$0xff]  ;;  %v1979_v34 = vadd.f32 %v4868_v1, %v1842_v53  ;;  %v2108_v13 = vmax.f32 %v1975_v38, 0.0 }
 0x409   :  { %2234 = vst.msk [vmem:[%s6007_s4 + $0xa0] sm:$0xff] %vm983_vm2, %v2101_v26  ;;  %v1845_v20 = vmul.f32 %v4591_v50, %v6607_v45  ;;  %v6608_v26 = vld [vmem:[#allocation91_spill] sm:$0xff]  ;;  %v1980_v27 = vadd.f32 %v4868_v1, %v1843_v55  ;;  %v2109_v45 = vmax.f32 %v1976_v16, 0.0 }
 0x40a   :  { %2235 = vst.msk [vmem:[%s6007_s4 + $0xa8] sm:$0xff] %vm983_vm2, %v2102_v57  ;;  %v1846_v36 = vmul.f32 %v4591_v50, %v6608_v26  ;;  %v6609_v57 = vld [vmem:[#allocation13_spill] sm:$0xff]  ;;  %v1981_v38 = vadd.f32 %v4868_v1, %v1844_v33  ;;  %v2110_v26 = vmax.f32 %v1977_v54, 0.0 }
 0x40b   :  { %2236 = vst.msk [vmem:[%s6007_s4 + $0xb0] sm:$0xff] %vm983_vm2, %v2103_v9  ;;  %v1847_v63 = vmul.f32 %v4591_v50, %v6609_v57  ;;  %v6610_v9 = vld [vmem:[#allocation15_spill] sm:$0xff]  ;;  %v1982_v16 = vadd.f32 %v4868_v1, %v1845_v20  ;;  %v2111_v57 = vmax.f32 %v1978_v5, 0.0 }
 0x40c   :  { %2237 = vst.msk [vmem:[%s6007_s4 + $0xb8] sm:$0xff] %vm983_vm2, %v2104_v31  ;;  %v1848_v53 = vmul.f32 %v4591_v50, %v6610_v9  ;;  %v6611_v31 = vld [vmem:[#allocation17_spill] sm:$0xff]  ;;  %v1983_v54 = vadd.f32 %v4868_v1, %v1846_v36  ;;  %v2112_v9 = vmax.f32 %v1979_v34, 0.0 }
 0x40d   :  { %2238 = vst.msk [vmem:[%s6007_s4 + $0xc0] sm:$0xff] %vm983_vm2, %v2105_v35  ;;  %v1849_v55 = vmul.f32 %v4591_v50, %v6611_v31  ;;  %v6612_v35 = vld [vmem:[#allocation92_spill] sm:$0xff]  ;;  %v1984_v5 = vadd.f32 %v4868_v1, %v1847_v63  ;;  %v2113_v31 = vmax.f32 %v1980_v27, 0.0 }
 0x40e   :  { %2239 = vst.msk [vmem:[%s6007_s4 + $0xc8] sm:$0xff] %vm983_vm2, %v2106_v51  ;;  %v1850_v33 = vmul.f32 %v4591_v50, %v6612_v35  ;;  %v6613_v51 = vld [vmem:[#allocation21_spill] sm:$0xff]  ;;  %v1985_v34 = vadd.f32 %v4868_v1, %v1848_v53  ;;  %v2114_v35 = vmax.f32 %v1981_v38, 0.0 }
 0x40f   :  { %2240 = vst.msk [vmem:[%s6007_s4 + $0xd0] sm:$0xff] %vm983_vm2, %v2107_v15  ;;  %v1851_v20 = vmul.f32 %v4591_v50, %v6613_v51  ;;  %v6614_v15 = vld [vmem:[#allocation24_spill] sm:$0xff]  ;;  %v1986_v27 = vadd.f32 %v4868_v1, %v1849_v55  ;;  %v2115_v51 = vmax.f32 %v1982_v16, 0.0 }
 0x410   :  { %2241 = vst.msk [vmem:[%s6007_s4 + $0xd8] sm:$0xff] %vm983_vm2, %v2108_v13  ;;  %v1852_v36 = vmul.f32 %v4591_v50, %v6614_v15  ;;  %v6615_v13 = vld [vmem:[#allocation93_spill] sm:$0xff]  ;;  %v1987_v38 = vadd.f32 %v4868_v1, %v1850_v33  ;;  %v2116_v15 = vmax.f32 %v1983_v54, 0.0 }
 0x411   :  { %2242 = vst.msk [vmem:[%s6007_s4 + $0xe0] sm:$0xff] %vm983_vm2, %v2109_v45  ;;  %v1853_v63 = vmul.f32 %v4591_v50, %v6615_v13  ;;  %v6616_v45 = vld [vmem:[#allocation94_spill] sm:$0xff]  ;;  %v1988_v16 = vadd.f32 %v4868_v1, %v1851_v20  ;;  %v2117_v13 = vmax.f32 %v1984_v5, 0.0 }
 0x412   :  { %2243 = vst.msk [vmem:[%s6007_s4 + $0xe8] sm:$0xff] %vm983_vm2, %v2110_v26  ;;  %v1854_v53 = vmul.f32 %v4591_v50, %v6616_v45  ;;  %v6617_v26 = vld [vmem:[#allocation95_spill] sm:$0xff]  ;;  %v1989_v54 = vadd.f32 %v4868_v1, %v1852_v36  ;;  %v2118_v45 = vmax.f32 %v1985_v34, 0.0 }
 0x413   :  { %2244 = vst.msk [vmem:[%s6007_s4 + $0xf0] sm:$0xff] %vm983_vm2, %v2111_v57  ;;  %v1855_v55 = vmul.f32 %v4591_v50, %v6617_v26  ;;  %v6618_v57 = vld [vmem:[#allocation30_spill] sm:$0xff]  ;;  %v1990_v5 = vadd.f32 %v4868_v1, %v1853_v63  ;;  %v2119_v26 = vmax.f32 %v1986_v27, 0.0 }
 0x414   :  { %2245 = vst.msk [vmem:[%s6007_s4 + $0xf8] sm:$0xff] %vm983_vm2, %v2112_v9  ;;  %v1856_v33 = vmul.f32 %v4591_v50, %v6618_v57  ;;  %v6619_v9 = vld [vmem:[#allocation33_spill] sm:$0xff]  ;;  %v1991_v34 = vadd.f32 %v4868_v1, %v1854_v53  ;;  %v2120_v57 = vmax.f32 %v1987_v38, 0.0 }
 0x415   :  { %2246 = vst.msk [vmem:[%s6007_s4 + $0x100] sm:$0xff] %vm983_vm2, %v2113_v31  ;;  %v1857_v20 = vmul.f32 %v4591_v50, %v6619_v9  ;;  %v6620_v31 = vld [vmem:[#allocation96_spill] sm:$0xff]  ;;  %v1992_v27 = vadd.f32 %v4868_v1, %v1855_v55  ;;  %v2121_v9 = vmax.f32 %v1988_v16, 0.0 }
 0x416   :  { %2247 = vst.msk [vmem:[%s6007_s4 + $0x108] sm:$0xff] %vm983_vm2, %v2114_v35  ;;  %v1858_v36 = vmul.f32 %v4591_v50, %v6620_v31  ;;  %v6621_v35 = vld [vmem:[#allocation38_spill] sm:$0xff]  ;;  %v1993_v38 = vadd.f32 %v4868_v1, %v1856_v33  ;;  %v2122_v31 = vmax.f32 %v1989_v54, 0.0 }
 0x417   :  { %2248 = vst.msk [vmem:[%s6007_s4 + $0x110] sm:$0xff] %vm983_vm2, %v2115_v51  ;;  %v1859_v63 = vmul.f32 %v4591_v50, %v6621_v35  ;;  %v6622_v51 = vld [vmem:[#allocation42_spill] sm:$0xff]  ;;  %v1994_v16 = vadd.f32 %v4868_v1, %v1857_v20  ;;  %v2123_v35 = vmax.f32 %v1990_v5, 0.0 }
 0x418   :  { %2249 = vst.msk [vmem:[%s6007_s4 + $0x118] sm:$0xff] %vm983_vm2, %v2116_v15  ;;  %v1860_v53 = vmul.f32 %v4591_v50, %v6622_v51  ;;  %v6623_v15 = vld [vmem:[#allocation46_spill] sm:$0xff]  ;;  %v1995_v54 = vadd.f32 %v4868_v1, %v1858_v36  ;;  %v2124_v51 = vmax.f32 %v1991_v34, 0.0 }
 0x419   :  { %2250 = vst.msk [vmem:[%s6007_s4 + $0x120] sm:$0xff] %vm983_vm2, %v2117_v13  ;;  %v1861_v55 = vmul.f32 %v4591_v50, %v6623_v15  ;;  %v6624_v13 = vld [vmem:[#allocation50_spill] sm:$0xff]  ;;  %v1996_v5 = vadd.f32 %v4868_v1, %v1859_v63  ;;  %v2125_v15 = vmax.f32 %v1992_v27, 0.0 }
 0x41a   :  { %2251 = vst.msk [vmem:[%s6007_s4 + $0x128] sm:$0xff] %vm983_vm2, %v2118_v45  ;;  %v1862_v33 = vmul.f32 %v4591_v50, %v6624_v13  ;;  %v6625_v45 = vld [vmem:[#allocation97_spill] sm:$0xff]  ;;  %v1997_v34 = vadd.f32 %v4868_v1, %v1860_v53  ;;  %v2126_v13 = vmax.f32 %v1993_v38, 0.0 }
 0x41b   :  { %2252 = vst.msk [vmem:[%s6007_s4 + $0x130] sm:$0xff] %vm983_vm2, %v2119_v26  ;;  %v1863_v20 = vmul.f32 %v4591_v50, %v6625_v45  ;;  %v6626_v26 = vld [vmem:[#allocation98_spill] sm:$0xff]  ;;  %v1998_v27 = vadd.f32 %v4868_v1, %v1861_v55  ;;  %v2127_v45 = vmax.f32 %v1994_v16, 0.0 }
 0x41c   :  { %2253 = vst.msk [vmem:[%s6007_s4 + $0x138] sm:$0xff] %vm983_vm2, %v2120_v57  ;;  %v1864_v36 = vmul.f32 %v4591_v50, %v6626_v26  ;;  %v6627_v57 = vld [vmem:[#allocation58_spill] sm:$0xff]  ;;  %v1999_v38 = vadd.f32 %v4868_v1, %v1862_v33  ;;  %v2128_v26 = vmax.f32 %v1995_v54, 0.0 }
 0x41d   :  { %2254 = vst.msk [vmem:[%s6007_s4 + $0x140] sm:$0xff] %vm983_vm2, %v2121_v9  ;;  %v1865_v63 = vmul.f32 %v4591_v50, %v6627_v57  ;;  %v6628_v9 = vld [vmem:[#allocation61_spill] sm:$0xff]  ;;  %v2000_v16 = vadd.f32 %v4868_v1, %v1863_v20  ;;  %v2129_v57 = vmax.f32 %v1996_v5, 0.0 }
 0x41e   :  { %2255 = vst.msk [vmem:[%s6007_s4 + $0x148] sm:$0xff] %vm983_vm2, %v2122_v31  ;;  %v1866_v53 = vmul.f32 %v4591_v50, %v6628_v9  ;;  %v6629_v31 = vld [vmem:[#allocation62_spill] sm:$0xff]  ;;  %v2001_v54 = vadd.f32 %v4868_v1, %v1864_v36  ;;  %v2130_v9 = vmax.f32 %v1997_v34, 0.0 }
 0x41f   :  { %2256 = vst.msk [vmem:[%s6007_s4 + $0x150] sm:$0xff] %vm983_vm2, %v2123_v35  ;;  %v1867_v55 = vmul.f32 %v4591_v50, %v6629_v31  ;;  %v6630_v35 = vld [vmem:[#allocation99_spill] sm:$0xff]  ;;  %v2002_v5 = vadd.f32 %v4868_v1, %v1865_v63  ;;  %v2131_v31 = vmax.f32 %v1998_v27, 0.0 }
 0x420   :  { %2257 = vst.msk [vmem:[%s6007_s4 + $0x158] sm:$0xff] %vm983_vm2, %v2124_v51  ;;  %v1868_v33 = vmul.f32 %v4591_v50, %v6630_v35  ;;  %v6631_v51 = vld [vmem:[#allocation100_spill] sm:$0xff]  ;;  %v2003_v34 = vadd.f32 %v4868_v1, %v1866_v53  ;;  %v2132_v35 = vmax.f32 %v1999_v38, 0.0 }
 0x421   :  { %2258 = vst.msk [vmem:[%s6007_s4 + $0x160] sm:$0xff] %vm983_vm2, %v2125_v15  ;;  %v1869_v20 = vmul.f32 %v4591_v50, %v6631_v51  ;;  %v6632_v15 = vld [vmem:[#allocation68_spill] sm:$0xff]  ;;  %v2004_v27 = vadd.f32 %v4868_v1, %v1867_v55  ;;  %v2133_v51 = vmax.f32 %v2000_v16, 0.0 }
 0x422   :  { %2259 = vst.msk [vmem:[%s6007_s4 + $0x168] sm:$0xff] %vm983_vm2, %v2126_v13  ;;  %v1870_v36 = vmul.f32 %v4591_v50, %v6632_v15  ;;  %v6633_v13 = vld [vmem:[#allocation69_spill] sm:$0xff]  ;;  %v2005_v38 = vadd.f32 %v4868_v1, %v1868_v33  ;;  %v2134_v15 = vmax.f32 %v2001_v54, 0.0  ;;  %v2136_v33 = vmax.f32 %v2003_v34, 0.0 }
 0x423   :  { %2260 = vst.msk [vmem:[%s6007_s4 + $0x170] sm:$0xff] %vm983_vm2, %v2127_v45  ;;  %v1871_v63 = vmul.f32 %v4591_v50, %v6633_v13  ;;  %v6634_v45 = vld [vmem:[#allocation71_spill] sm:$0xff]  ;;  %v2006_v16 = vadd.f32 %v4868_v1, %v1869_v20  ;;  %v2135_v13 = vmax.f32 %v2002_v5, 0.0 }
 0x424   :  { %2261 = vst.msk [vmem:[%s6007_s4 + $0x178] sm:$0xff] %vm983_vm2, %v2128_v26  ;;  %v1872_v53 = vmul.f32 %v4591_v50, %v6634_v45  ;;  %v6635_v26 = vld [vmem:[#allocation101_spill] sm:$0xff]  ;;  %v2138_v20 = vmax.f32 %v2005_v38, 0.0 }
 0x425   :  { %2262 = vst.msk [vmem:[%s6007_s4 + $0x180] sm:$0xff] %vm983_vm2, %v2129_v57  ;;  %v1873_v55 = vmul.f32 %v4591_v50, %v6635_v26  ;;  %v2007_v57 = vadd.f32 %v4868_v1, %v1870_v36  ;;  %v2008_v54 = vadd.f32 %v4868_v1, %v1871_v63  ;;  %v2144_v63 = vmax.f32 %v4952_v29, 0.0 }
 0x426   :  { %2263 = vst.msk [vmem:[%s6007_s4 + $0x188] sm:$0xff] %vm983_vm2, %v2130_v9  ;;  %v2137_v9 = vmax.f32 %v2004_v27, 0.0  ;;  %v2009_v50 = vadd.f32 %v4868_v1, %v1872_v53  ;;  %v2145_v27 = vmax.f32 %v4956_v6, 0.0  ;;  %v2147_v29 = vmax.f32 %v4964_v40, 0.0 }
 0x427   :  { %2264 = vst.msk [vmem:[%s6007_s4 + $0x190] sm:$0xff] %vm983_vm2, %v2131_v31  ;;  %v2010_v5 = vadd.f32 %v4868_v1, %v1873_v55  ;;  %v2139_v31 = vmax.f32 %v2006_v16, 0.0  ;;  %v2140_v36 = vmax.f32 %v2007_v57, 0.0  ;;  %v2141_v34 = vmax.f32 %v2008_v54, 0.0  ;;  %v6640_v55 = vld [vmem:[#allocation43_spill] sm:$0xff] }
 0x428   :  { %2265 = vst.msk [vmem:[%s6007_s4 + $0x198] sm:$0xff] %vm983_vm2, %v2132_v35  ;;  %v2142_v35 = vmax.f32 %v2009_v50, 0.0  ;;  %v2148_v6 = vmax.f32 %v4968_v58, 0.0  ;;  %v2150_v40 = vmax.f32 %v4976_v23, 0.0  ;;  %v2151_v58 = vmax.f32 %v4980_v49, 0.0 }
 0x429   :  { %2266 = vst.msk [vmem:[%s6007_s4 + $0x1a0] sm:$0xff] %vm983_vm2, %v2133_v51  ;;  %v2143_v1 = vmax.f32 %v2010_v5, 0.0  ;;  %v2146_v51 = vmax.f32 %v4960_v62, 0.0  ;;  %v2149_v62 = vmax.f32 %v4972_v32, 0.0  ;;  %v2152_v32 = vmax.f32 %v4984_v60, 0.0 }
 0x42a   :  { %2267 = vst.msk [vmem:[%s6007_s4 + $0x1a8] sm:$0xff] %vm983_vm2, %v2134_v15  ;;  %v2153_v23 = vmax.f32 %v4988_v18, 0.0  ;;  %v2154_v49 = vmax.f32 %v4992_v17, 0.0  ;;  %v2155_v60 = vmax.f32 %v4996_v22, 0.0  ;;  %v2156_v18 = vmax.f32 %v5000_v41, 0.0  ;;  %v6639_v15 = vld [vmem:[#allocation40_spill] sm:$0xff] }
 0x42b   :  { %2268 = vst.msk [vmem:[%s6007_s4 + $0x1b0] sm:$0xff] %vm983_vm2, %v2135_v13  ;;  %v2157_v17 = vmax.f32 %v5004_v44, 0.0  ;;  %v2158_v22 = vmax.f32 %v5008_v8, 0.0  ;;  %v2159_v41 = vmax.f32 %v5012_v25, 0.0  ;;  %v2160_v44 = vmax.f32 %v5016_v0, 0.0  ;;  %v6641_v13 = vld [vmem:[#allocation47_spill] sm:$0xff] }
 0x42c   :  { %2269 = vst.msk [vmem:[%s6007_s4 + $0x1b8] sm:$0xff] %vm983_vm2, %v2136_v33  ;;  %v2161_v8 = vmax.f32 %v5020_v10, 0.0  ;;  %v2162_v25 = vmax.f32 %v5024_v39, 0.0  ;;  %v2163_v0 = vmax.f32 %v5028_v21, 0.0  ;;  %v2164_v10 = vmax.f32 %v5032_v4, 0.0  ;;  %v6642_v33 = vld [vmem:[#allocation56_spill] sm:$0xff] }
 0x42d   :  { %2270 = vst.msk [vmem:[%s6007_s4 + $0x1c0] sm:$0xff] %vm983_vm2, %v2137_v9  ;;  %v2165_v39 = vmax.f32 %v5036_v48, 0.0  ;;  %v2166_v21 = vmax.f32 %v5040_v12, 0.0  ;;  %v2167_v4 = vmax.f32 %v5044_v14, 0.0  ;;  %v2168_v48 = vmax.f32 %v5048_v47, 0.0  ;;  %v6643_v9 = vld [vmem:[#allocation59_spill] sm:$0xff] }
 0x42e   :  { %2271 = vst.msk [vmem:[%s6007_s4 + $0x1c8] sm:$0xff] %vm983_vm2, %v2138_v20  ;;  %v2169_v12 = vmax.f32 %v5052_v28, 0.0  ;;  %v2170_v14 = vmax.f32 %v5056_v24, 0.0  ;;  %v2171_v47 = vmax.f32 %v5060_v42, 0.0  ;;  %v2172_v28 = vmax.f32 %v5064_v3, 0.0  ;;  %v6644_v20 = vld [vmem:[#allocation65_spill] sm:$0xff] }
 0x42f   :  { %2272 = vst.msk [vmem:[%s6007_s4 + $0x1d0] sm:$0xff] %vm983_vm2, %v2139_v31  ;;  %v2173_v24 = vmax.f32 %v5068_v7, 0.0  ;;  %v2174_v42 = vmax.f32 %v5072_v37, 0.0  ;;  %v2175_v3 = vmax.f32 %v5076_v56, 0.0  ;;  %v2176_v7 = vmax.f32 %v5080_v46, 0.0  ;;  %v6645_v31 = vld [vmem:[#allocation67_spill] sm:$0xff] }
 0x430   :  { %2273 = vst.msk [vmem:[%s6007_s4 + $0x1d8] sm:$0xff] %vm983_vm2, %v2140_v36  ;;  %v2177_v37 = vmax.f32 %v5084_v30, 0.0  ;;  %v2178_v56 = vmax.f32 %v5088_v59, 0.0  ;;  %v2179_v46 = vmax.f32 %v5092_v61, 0.0  ;;  %v2180_v30 = vmax.f32 %v5096_v2, 0.0  ;;  %v6636_v61 = vld [vmem:[#allocation31_spill] sm:$0xff] }
 0x431   :  { %2274 = vst.msk [vmem:[%s6007_s4 + $0x1e0] sm:$0xff] %vm983_vm2, %v2141_v34  ;;  %v2181_v59 = vmax.f32 %v5100_v43, 0.0  ;;  %v2182_v45 = vmax.f32 %v6636_v61, 0.0  ;;  %v6637_v2 = vld [vmem:[#allocation34_spill] sm:$0xff]  ;;  %v6638_v43 = vld [vmem:[#allocation36_spill] sm:$0xff]  ;;  %v2185_v26 = vmax.f32 %v6639_v15, 0.0 }
 0x432   :  { %2275 = vst.msk [vmem:[%s6007_s4 + $0x1e8] sm:$0xff] %vm983_vm2, %v2142_v35  ;;  %v2183_v53 = vmax.f32 %v6637_v2, 0.0  ;;  %v2184_v38 = vmax.f32 %v6638_v43, 0.0  ;;  %v2186_v16 = vmax.f32 %v6640_v55, 0.0  ;;  %v2187_v57 = vmax.f32 %v6641_v13, 0.0  ;;  %v6646_v34 = vld [vmem:[#allocation72_spill] sm:$0xff] }
 0x433   :  { %2276 = vst.msk [vmem:[%s6007_s4 + $0x1f0] sm:$0xff] %vm983_vm2, %v2143_v1  ;;  %v2188_v54 = vmax.f32 %v6642_v33, 0.0  ;;  %v2189_v50 = vmax.f32 %v6643_v9, 0.0  ;;  %v2190_v5 = vmax.f32 %v6644_v20, 0.0  ;;  %v2191_v36 = vmax.f32 %v6645_v31, 0.0  ;;  %v6647_v1 = vld [vmem:[#allocation75_spill] sm:$0xff] }
 0x434   :  { %2277 = vst.msk [vmem:[%s6007_s4 + $0x1f8] sm:$0xff] %vm983_vm2, %v2144_v63  ;;  %v2192_v35 = vmax.f32 %v6646_v34, 0.0  ;;  %v2193_v63 = vmax.f32 %v6647_v1, 0.0 }
 0x435   :  { %2278 = vst.msk [vmem:[%s6007_s4 + $0x200] sm:$0xff] %vm983_vm2, %v2145_v27  ;;  %v6648_v27 = vld [vmem:[#allocation76_spill] sm:$0xff] }
 0x436   :  { %2279 = vst.msk [vmem:[%s6007_s4 + $0x208] sm:$0xff] %vm983_vm2, %v2146_v51  ;;  %v2194_v51 = vmax.f32 %v6648_v27, 0.0 }
 0x437   :  { %2280 = vst.msk [vmem:[%s6007_s4 + $0x210] sm:$0xff] %vm983_vm2, %v2147_v29  ;;  %v6649_v29 = vld [vmem:[#allocation78_spill] sm:$0xff] }
 0x438   :  { %2281 = vst.msk [vmem:[%s6007_s4 + $0x218] sm:$0xff] %vm983_vm2, %v2148_v6  ;;  %v2195_v6 = vmax.f32 %v6649_v29, 0.0 }
 0x439   :  { %2282 = vst.msk [vmem:[%s6007_s4 + $0x220] sm:$0xff] %vm983_vm2, %v2149_v62  ;;  %v6650_v62 = vld [vmem:[#allocation79_spill] sm:$0xff] }
 0x43a   :  { %2283 = vst.msk [vmem:[%s6007_s4 + $0x228] sm:$0xff] %vm983_vm2, %v2150_v40  ;;  %v2196_v40 = vmax.f32 %v6650_v62, 0.0 }
 0x43b   :  { %2284 = vst.msk [vmem:[%s6007_s4 + $0x230] sm:$0xff] %vm983_vm2, %v2151_v58  ;;  %v6651_v58 = vld [vmem:[#allocation51_spill] sm:$0xff] }
 0x43c   :  { %2285 = vst.msk [vmem:[%s6007_s4 + $0x238] sm:$0xff] %vm983_vm2, %v2152_v32  ;;  %v2197_v32 = vmax.f32 %v6651_v58, 0.0 }
 0x43d   :  { %2286 = vst.msk [vmem:[%s6007_s4 + $0x240] sm:$0xff] %vm983_vm2, %v2153_v23  ;;  %v6652_v23 = vld [vmem:[#allocation80_spill] sm:$0xff] }
 0x43e   :  { %2287 = vst.msk [vmem:[%s6007_s4 + $0x248] sm:$0xff] %vm983_vm2, %v2154_v49  ;;  %v2198_v49 = vmax.f32 %v6652_v23, 0.0 }
 0x43f   :  { %2288 = vst.msk [vmem:[%s6007_s4 + $0x250] sm:$0xff] %vm983_vm2, %v2155_v60  ;;  %v6653_v60 = vld [vmem:[#allocation81_spill] sm:$0xff] }
 0x440   :  { %2289 = vst.msk [vmem:[%s6007_s4 + $0x258] sm:$0xff] %vm983_vm2, %v2156_v18  ;;  %v2199_v18 = vmax.f32 %v6653_v60, 0.0 }
 0x441   :  { %2290 = vst.msk [vmem:[%s6007_s4 + $0x260] sm:$0xff] %vm983_vm2, %v2157_v17  ;;  %v6654_v17 = vld [vmem:[#allocation83_spill] sm:$0xff] }
 0x442   :  { %2291 = vst.msk [vmem:[%s6007_s4 + $0x268] sm:$0xff] %vm983_vm2, %v2158_v22  ;;  %v2200_v22 = vmax.f32 %v6654_v17, 0.0 }
 0x443   :  { %2292 = vst.msk [vmem:[%s6007_s4 + $0x270] sm:$0xff] %vm983_vm2, %v2159_v41  ;;  %v6655_v41 = vld [vmem:[#allocation66_spill] sm:$0xff] }
 0x444   :  { %2293 = vst.msk [vmem:[%s6007_s4 + $0x278] sm:$0xff] %vm983_vm2, %v2160_v44  ;;  %v2201_v44 = vmax.f32 %v6655_v41, 0.0 }
 0x445   :  { %2294 = vst.msk [vmem:[%s6007_s4 + $0x280] sm:$0xff] %vm983_vm2, %v2161_v8  ;;  %v2202_v8 = vmax.f32 %v5184_v11, 0.0  ;;  %v6656_v11 = vld [vmem:[#allocation70_spill] sm:$0xff] }
 0x446   :  { %2295 = vst.msk [vmem:[%s6007_s4 + $0x288] sm:$0xff] %vm983_vm2, %v2162_v25  ;;  %v2203_v25 = vmax.f32 %v5188_v19, 0.0  ;;  %v6657_v19 = vld [vmem:[#allocation74_spill] sm:$0xff] }
 0x447   :  { %2296 = vst.msk [vmem:[%s6007_s4 + $0x290] sm:$0xff] %vm983_vm2, %v2163_v0  ;;  %v2204_v0 = vmax.f32 %v5192_v52, 0.0  ;;  %v6658_v52 = vld [vmem:[#allocation77_spill] sm:$0xff] }
 0x448   :  { %2297 = vst.msk [vmem:[%s6007_s4 + $0x298] sm:$0xff] %vm983_vm2, %v2164_v10  ;;  %v2205_v10 = vmax.f32 %v6656_v11, 0.0 }
 0x449   :  { %2298 = vst.msk [vmem:[%s6007_s4 + $0x2a0] sm:$0xff] %vm983_vm2, %v2165_v39  ;;  %v2206_v39 = vmax.f32 %v6657_v19, 0.0 }
 0x44a   :  { %2299 = vst.msk [vmem:[%s6007_s4 + $0x2a8] sm:$0xff] %vm983_vm2, %v2166_v21  ;;  %v2207_v21 = vmax.f32 %v6658_v52, 0.0 }
 0x44b   :  { %2300 = vst.msk [vmem:[%s6007_s4 + $0x2b0] sm:$0xff] %vm983_vm2, %v2167_v4  ;;  %v6659_v4 = vld [vmem:[#allocation54_spill] sm:$0xff] }
 0x44c   :  { %2301 = vst.msk [vmem:[%s6007_s4 + $0x2b8] sm:$0xff] %vm983_vm2, %v2168_v48  ;;  %v2208_v48 = vmax.f32 %v6659_v4, 0.0 }
 0x44d   :  { %2302 = vst.msk [vmem:[%s6007_s4 + $0x2c0] sm:$0xff] %vm983_vm2, %v2169_v12  ;;  %v6660_v12 = vld [vmem:[#allocation53_spill] sm:$0xff] }
 0x44e   :  { %2303 = vst.msk [vmem:[%s6007_s4 + $0x2c8] sm:$0xff] %vm983_vm2, %v2170_v14  ;;  %v2209_v14 = vmax.f32 %v6660_v12, 0.0 }
 0x44f   :  { %2304 = vst.msk [vmem:[%s6007_s4 + $0x2d0] sm:$0xff] %vm983_vm2, %v2171_v47  ;;  %v6661_v47 = vld [vmem:[#allocation84_spill] sm:$0xff] }
 0x450   :  { %2305 = vst.msk [vmem:[%s6007_s4 + $0x2d8] sm:$0xff] %vm983_vm2, %v2172_v28  ;;  %v2210_v28 = vmax.f32 %v6661_v47, 0.0 }
 0x451   :  { %2306 = vst.msk [vmem:[%s6007_s4 + $0x2e0] sm:$0xff] %vm983_vm2, %v2173_v24  ;;  %v6662_v24 = vld [vmem:[#allocation85_spill] sm:$0xff] }
 0x452   :  { %2307 = vst.msk [vmem:[%s6007_s4 + $0x2e8] sm:$0xff] %vm983_vm2, %v2174_v42  ;;  %v2211_v42 = vmax.f32 %v6662_v24, 0.0 }
 0x453   :  { %2308 = vst.msk [vmem:[%s6007_s4 + $0x2f0] sm:$0xff] %vm983_vm2, %v2175_v3  ;;  %v6663_v3 = vld [vmem:[#allocation86_spill] sm:$0xff] }
 0x454   :  { %2309 = vst.msk [vmem:[%s6007_s4 + $0x2f8] sm:$0xff] %vm983_vm2, %v2176_v7  ;;  %v2212_v7 = vmax.f32 %v6663_v3, 0.0 }
 0x455   :  { %2310 = vst.msk [vmem:[%s6007_s4 + $0x300] sm:$0xff] %vm983_vm2, %v2177_v37  ;;  %v6664_v37 = vld [vmem:[#allocation87_spill] sm:$0xff] }
 0x456   :  { %2311 = vst.msk [vmem:[%s6007_s4 + $0x308] sm:$0xff] %vm983_vm2, %v2178_v56  ;;  %v2213_v56 = vmax.f32 %v6664_v37, 0.0 }
 0x457   :  { %2312 = vst.msk [vmem:[%s6007_s4 + $0x310] sm:$0xff] %vm983_vm2, %v2179_v46 }
 0x458   :  { %2313 = vst.msk [vmem:[%s6007_s4 + $0x318] sm:$0xff] %vm983_vm2, %v2180_v30 }
 0x459   :  { %2314 = vst.msk [vmem:[%s6007_s4 + $0x320] sm:$0xff] %vm983_vm2, %v2181_v59 }
 0x45a   :  { %2315 = vst.msk [vmem:[%s6007_s4 + $0x328] sm:$0xff] %vm983_vm2, %v2182_v45 }
 0x45b   :  { %2316 = vst.msk [vmem:[%s6007_s4 + $0x330] sm:$0xff] %vm983_vm2, %v2183_v53 }
 0x45c   :  { %2317 = vst.msk [vmem:[%s6007_s4 + $0x338] sm:$0xff] %vm983_vm2, %v2184_v38 }
 0x45d   :  { %2318 = vst.msk [vmem:[%s6007_s4 + $0x340] sm:$0xff] %vm983_vm2, %v2185_v26 }
 0x45e   :  { %2319 = vst.msk [vmem:[%s6007_s4 + $0x348] sm:$0xff] %vm983_vm2, %v2186_v16 }
 0x45f   :  { %2320 = vst.msk [vmem:[%s6007_s4 + $0x350] sm:$0xff] %vm983_vm2, %v2187_v57 }
 0x460   :  { %2321 = vst.msk [vmem:[%s6007_s4 + $0x358] sm:$0xff] %vm983_vm2, %v2188_v54 }
 0x461   :  { %2322 = vst.msk [vmem:[%s6007_s4 + $0x360] sm:$0xff] %vm983_vm2, %v2189_v50 }
 0x462   :  { %2323 = vst.msk [vmem:[%s6007_s4 + $0x368] sm:$0xff] %vm983_vm2, %v2190_v5 }
 0x463   :  { %2324 = vst.msk [vmem:[%s6007_s4 + $0x370] sm:$0xff] %vm983_vm2, %v2191_v36 }
 0x464   :  { %2325 = vst.msk [vmem:[%s6007_s4 + $0x378] sm:$0xff] %vm983_vm2, %v2192_v35 }
 0x465   :  { %2326 = vst.msk [vmem:[%s6007_s4 + $0x380] sm:$0xff] %vm983_vm2, %v2193_v63 }
 0x466   :  { %2327 = vst.msk [vmem:[%s6007_s4 + $0x388] sm:$0xff] %vm983_vm2, %v2194_v51 }
 0x467   :  { %2328 = vst.msk [vmem:[%s6007_s4 + $0x390] sm:$0xff] %vm983_vm2, %v2195_v6 }
 0x468   :  { %2329 = vst.msk [vmem:[%s6007_s4 + $0x398] sm:$0xff] %vm983_vm2, %v2196_v40 }
 0x469   :  { %2330 = vst.msk [vmem:[%s6007_s4 + $0x3a0] sm:$0xff] %vm983_vm2, %v2197_v32 }
 0x46a   :  { %2331 = vst.msk [vmem:[%s6007_s4 + $0x3a8] sm:$0xff] %vm983_vm2, %v2198_v49 }
 0x46b   :  { %2332 = vst.msk [vmem:[%s6007_s4 + $0x3b0] sm:$0xff] %vm983_vm2, %v2199_v18 }
 0x46c   :  { %2333 = vst.msk [vmem:[%s6007_s4 + $0x3b8] sm:$0xff] %vm983_vm2, %v2200_v22 }
 0x46d   :  { %2334 = vst.msk [vmem:[%s6007_s4 + $0x3c0] sm:$0xff] %vm983_vm2, %v2201_v44 }
 0x46e   :  { %2335 = vst.msk [vmem:[%s6007_s4 + $0x3c8] sm:$0xff] %vm983_vm2, %v2202_v8 }
 0x46f   :  { %2336 = vst.msk [vmem:[%s6007_s4 + $0x3d0] sm:$0xff] %vm983_vm2, %v2203_v25 }
 0x470   :  { %2337 = vst.msk [vmem:[%s6007_s4 + $0x3d8] sm:$0xff] %vm983_vm2, %v2204_v0 }
 0x471   :  { %2338 = vst.msk [vmem:[%s6007_s4 + $0x3e0] sm:$0xff] %vm983_vm2, %v2205_v10 }
 0x472   :  { %2339 = vst.msk [vmem:[%s6007_s4 + $0x3e8] sm:$0xff] %vm983_vm2, %v2206_v39 }
 0x473   :  { %2340 = vst.msk [vmem:[%s6007_s4 + $0x3f0] sm:$0xff] %vm983_vm2, %v2207_v21 }
 0x474   :  { %2341 = vst.msk [vmem:[%s6007_s4 + $0x3f8] sm:$0xff] %vm983_vm2, %v2208_v48 }
 0x475   :  { %2342 = vst.msk [vmem:[%s6007_s4 + $0x400] sm:$0xff] %vm983_vm2, %v2209_v14 }
 0x476   :  { %2343 = vst.msk [vmem:[%s6007_s4 + $0x408] sm:$0xff] %vm983_vm2, %v2210_v28 }
 0x477   :  { %2344 = vst.msk [vmem:[%s6007_s4 + $0x410] sm:$0xff] %vm983_vm2, %v2211_v42 }
 0x478   :  { %2345 = vst.msk [vmem:[%s6007_s4 + $0x418] sm:$0xff] %vm983_vm2, %v2212_v7 }
 0x479   :  { %2346 = vst.msk [vmem:[%s6007_s4 + $0x420] sm:$0x3] %vm1247_vm3, %v2213_v56 }

// kernel: encoder_batch_forward.6
= control target key start
LH: loop header
LB: loop body
LE: loop exit
PB: predicated region body
PF: predicated region fallthrough
CT: control target
= control target key end

     0   :  { %vm57_vm0 = vcmask 588800   ;;  %vm261_vm1 = vcmask 130048   ;;  %vm321_vm2 = vcmask 123904   ;;  %s1416_s1 = inlined_call_operand.vmem [shape: f32[72,16], index: 1, kind: input, shape index: {}]   ;;  %s1417_s0 = inlined_call_operand.vmem [shape: f32[242,72], index: 0, kind: input, shape index: {}]   ;;  %s1418_s3 = inlined_call_operand.vmem [shape: f32[1,16], index: 3, kind: input, shape index: {}]   ;;  %s1419_s2 = inlined_call_operand.vmem [shape: f32[1,16], index: 2, kind: input, shape index: {}]   ;;  %s1420_s4 = inlined_call_operand.vmem [shape: f32[242,16], index: 4, kind: output, shape index: {}]  }
   0x1   :  { %v56_v0 = vld [vmem:[%s1416_s1 + $0x40] sm:$0xff]  ;;  %v55_v1 = vld [vmem:[%s1416_s1 + $0x38] sm:$0xff]  ;;  %v54_v2 = vld [vmem:[%s1416_s1 + $0x30] sm:$0xff] }
   0x2   :  { %158 = vmatpush.msra.mxu0 %v56_v0  ;;  %640 = vmatpush.msra.mxu1 %v56_v0  ;;  %v53_v3 = vld [vmem:[%s1416_s1 + $0x28] sm:$0xff]  ;;  %v52_v4 = vld [vmem:[%s1416_s1 + $0x20] sm:$0xff]  ;;  %v51_v5 = vld [vmem:[%s1416_s1 + $0x18] sm:$0xff] }
   0x3   :  { %641 = vmatpush.msra.mxu2 %v56_v0  ;;  %642 = vmatpush.msra.mxu3 %v56_v0  ;;  %v50_v6 = vld [vmem:[%s1416_s1 + $0x10] sm:$0xff]  ;;  %v49_v7 = vld [vmem:[%s1416_s1 + $0x8] sm:$0xff]  ;;  %v48_v8 = vld [vmem:[%s1416_s1] sm:$0xff] }
   0x4   :  { %159 = vmatpush.msra.mxu0 %v55_v1  ;;  %643 = vmatpush.msra.mxu1 %v55_v1  ;;  %v17_v9 = vld [vmem:[%s1417_s0] sm:$0xff]  ;;  %v24_v10 = vld [vmem:[%s1417_s0 + $0x38] sm:$0xff]  ;;  %v18_v13 = vld [vmem:[%s1417_s0 + $0x8] sm:$0xff] }
   0x5   :  { %644 = vmatpush.msra.mxu2 %v55_v1  ;;  %645 = vmatpush.msra.mxu3 %v55_v1  ;;  %v32_v11 = vld [vmem:[%s1417_s0 + $0x78] sm:$0xff]  ;;  %v25_v14 = vld [vmem:[%s1417_s0 + $0x40] sm:$0xff]  ;;  %v19_v17 = vld [vmem:[%s1417_s0 + $0x10] sm:$0xff] }
   0x6   :  { %160 = vmatpush.msra.mxu0 %v54_v2  ;;  %646 = vmatpush.msra.mxu1 %v54_v2  ;;  %v40_v12 = vld [vmem:[%s1417_s0 + $0xb8] sm:$0xff]  ;;  %v33_v15 = vld [vmem:[%s1417_s0 + $0x80] sm:$0xff]  ;;  %v26_v18 = vld [vmem:[%s1417_s0 + $0x48] sm:$0xff] }
   0x7   :  { %647 = vmatpush.msra.mxu2 %v54_v2  ;;  %648 = vmatpush.msra.mxu3 %v54_v2  ;;  %v41_v16 = vld [vmem:[%s1417_s0 + $0xc0] sm:$0xff]  ;;  %v34_v19 = vld [vmem:[%s1417_s0 + $0x88] sm:$0xff]  ;;  %v20_v21 = vld [vmem:[%s1417_s0 + $0x18] sm:$0xff] }
   0x8   :  { %161 = vmatpush.msra.mxu0 %v53_v3  ;;  %649 = vmatpush.msra.mxu1 %v53_v3  ;;  %v42_v20 = vld [vmem:[%s1417_s0 + $0xc8] sm:$0xff]  ;;  %v27_v22 = vld [vmem:[%s1417_s0 + $0x50] sm:$0xff]  ;;  %v21_v25 = vld [vmem:[%s1417_s0 + $0x20] sm:$0xff] }
   0x9   :  { %650 = vmatpush.msra.mxu2 %v53_v3  ;;  %651 = vmatpush.msra.mxu3 %v53_v3  ;;  %v35_v23 = vld [vmem:[%s1417_s0 + $0x90] sm:$0xff]  ;;  %v28_v26 = vld [vmem:[%s1417_s0 + $0x58] sm:$0xff]  ;;  %v22_v29 = vld [vmem:[%s1417_s0 + $0x28] sm:$0xff] }
   0xa   :  { %162 = vmatpush.msra.mxu0 %v52_v4  ;;  %652 = vmatpush.msra.mxu1 %v52_v4  ;;  %v43_v24 = vld [vmem:[%s1417_s0 + $0xd0] sm:$0xff]  ;;  %v36_v27 = vld [vmem:[%s1417_s0 + $0x98] sm:$0xff]  ;;  %v29_v30 = vld [vmem:[%s1417_s0 + $0x60] sm:$0xff] }
   0xb   :  { %653 = vmatpush.msra.mxu2 %v52_v4  ;;  %654 = vmatpush.msra.mxu3 %v52_v4  ;;  %v44_v28 = vld [vmem:[%s1417_s0 + $0xd8] sm:$0xff]  ;;  %v37_v31 = vld [vmem:[%s1417_s0 + $0xa0] sm:$0xff]  ;;  %v23_v33 = vld [vmem:[%s1417_s0 + $0x30] sm:$0xff] }
   0xc   :  { %163 = vmatpush.msra.mxu0 %v51_v5  ;;  %655 = vmatpush.msra.mxu1 %v51_v5  ;;  %v45_v32 = vld [vmem:[%s1417_s0 + $0xe0] sm:$0xff]  ;;  %v30_v34 = vld [vmem:[%s1417_s0 + $0x68] sm:$0xff]  ;;  %v31_v37 = vld [vmem:[%s1417_s0 + $0x70] sm:$0xff] }
   0xd   :  { %656 = vmatpush.msra.mxu2 %v51_v5  ;;  %657 = vmatpush.msra.mxu3 %v51_v5  ;;  %v38_v35 = vld [vmem:[%s1417_s0 + $0xa8] sm:$0xff]  ;;  %v39_v38 = vld [vmem:[%s1417_s0 + $0xb0] sm:$0xff] }
   0xe   :  { %164 = vmatpush.msra.mxu0 %v50_v6  ;;  %658 = vmatpush.msra.mxu1 %v50_v6  ;;  %v46_v36 = vld [vmem:[%s1417_s0 + $0xe8] sm:$0xff]  ;;  %v47_v39 = vld [vmem:[%s1417_s0 + $0xf0] sm:$0x3] }
   0xf   :  { %659 = vmatpush.msra.mxu2 %v50_v6  ;;  %660 = vmatpush.msra.mxu3 %v50_v6 }
  0x10   :  { %165 = vmatpush.msra.mxu0 %v49_v7  ;;  %661 = vmatpush.msra.mxu1 %v49_v7 }
  0x11   :  { %662 = vmatpush.msra.mxu2 %v49_v7  ;;  %663 = vmatpush.msra.mxu3 %v49_v7 }
  0x12   :  { %166 = vmatpush.msra.mxu0 %v48_v8  ;;  %664 = vmatpush.msra.mxu1 %v48_v8 }
  0x13   :  { %609 = vmatmul.msk.f32.vlgmr.msra.gmra.mxu0 %vm57_vm0, %v17_v9  ;;  %616 = vmatmul.msk.f32.vlgmr.msra.gmra.mxu1 %vm57_vm0, %v24_v10 }
  0x14   :  { %665 = vmatpush.msra.mxu2 %v48_v8  ;;  %666 = vmatpush.msra.mxu3 %v48_v8 }
  0x15   :  { %624 = vmatmul.msk.f32.vlgmr.msra.gmra.mxu2 %vm57_vm0, %v32_v11  ;;  %632 = vmatmul.msk.f32.vlgmr.msra.gmra.mxu3 %vm57_vm0, %v40_v12 }
  0x1b   :  { %610 = vmatmul.msk.f32.gmra.mxu0 %vm57_vm0, %v18_v13  ;;  %617 = vmatmul.msk.f32.gmra.mxu1 %vm57_vm0, %v25_v14 }
  0x1d   :  { %625 = vmatmul.msk.f32.gmra.mxu2 %vm57_vm0, %v33_v15  ;;  %633 = vmatmul.msk.f32.gmra.mxu3 %vm57_vm0, %v41_v16 }
  0x23   :  { %611 = vmatmul.msk.f32.gmra.mxu0 %vm57_vm0, %v19_v17  ;;  %618 = vmatmul.msk.f32.gmra.mxu1 %vm57_vm0, %v26_v18 }
  0x25   :  { %626 = vmatmul.msk.f32.gmra.mxu2 %vm57_vm0, %v34_v19  ;;  %634 = vmatmul.msk.f32.gmra.mxu3 %vm57_vm0, %v42_v20 }
  0x2b   :  { %612 = vmatmul.msk.f32.gmra.mxu0 %vm57_vm0, %v20_v21  ;;  %619 = vmatmul.msk.f32.gmra.mxu1 %vm57_vm0, %v27_v22 }
  0x2d   :  { %627 = vmatmul.msk.f32.gmra.mxu2 %vm57_vm0, %v35_v23  ;;  %635 = vmatmul.msk.f32.gmra.mxu3 %vm57_vm0, %v43_v24 }
  0x33   :  { %613 = vmatmul.msk.f32.gmra.mxu0 %vm57_vm0, %v21_v25  ;;  %620 = vmatmul.msk.f32.gmra.mxu1 %vm57_vm0, %v28_v26 }
  0x35   :  { %628 = vmatmul.msk.f32.gmra.mxu2 %vm57_vm0, %v36_v27  ;;  %636 = vmatmul.msk.f32.gmra.mxu3 %vm57_vm0, %v44_v28 }
  0x3b   :  { %614 = vmatmul.msk.f32.gmra.mxu0 %vm57_vm0, %v22_v29  ;;  %621 = vmatmul.msk.f32.gmra.mxu1 %vm57_vm0, %v29_v30 }
  0x3d   :  { %629 = vmatmul.msk.f32.gmra.mxu2 %vm57_vm0, %v37_v31  ;;  %637 = vmatmul.msk.f32.gmra.mxu3 %vm57_vm0, %v45_v32 }
  0x43   :  { %615 = vmatmul.msk.f32.gmra.mxu0 %vm57_vm0, %v23_v33  ;;  %622 = vmatmul.msk.f32.gmra.mxu1 %vm57_vm0, %v30_v34 }
  0x45   :  { %630 = vmatmul.msk.f32.gmra.mxu2 %vm57_vm0, %v38_v35  ;;  %638 = vmatmul.msk.f32.gmra.mxu3 %vm57_vm0, %v46_v36 }
  0x4b   :  { %623 = vmatmul.msk.f32.gmra.mxu1 %vm57_vm0, %v31_v37 }
  0x4d   :  { %631 = vmatmul.msk.f32.gmra.mxu2 %vm57_vm0, %v39_v38  ;;  %639 = vmatmul.msk.f32.gmra.mxu3 %vm57_vm0, %v47_v39 }
  0x90   :  { %v846_v40 = vpop.f32.mrf.mxu0  ;;  %v848_v41 = vpop.f32.mrf.mxu1 }
  0x91   :  { %v262_v57 = vsel %vm261_vm1, %v846_v40, 0.0  ;;  %v275_v11 = vsel %vm261_vm1, %v848_v41, 0.0 }
  0x98   :  { %v850_v42 = vpop.f32.mrf.mxu0  ;;  %v852_v43 = vpop.f32.mrf.mxu1 }
  0x99   :  { %v854_v44 = vpop.f32.mrf.mxu2  ;;  %v862_v48 = vpop.f32.mrf.mxu3  ;;  %v263_v56 = vsel %vm261_vm1, %v850_v42, 0.0  ;;  %v277_v14 = vsel %vm261_vm1, %v852_v43, 0.0 }
  0x9a   :  { %v264_v59 = vadd.f32 %v263_v56, %v262_v57  ;;  %v291_v32 = vsel %vm261_vm1, %v854_v44, 0.0 }
  0xa0   :  { %v856_v45 = vpop.f32.mrf.mxu0  ;;  %v858_v46 = vpop.f32.mrf.mxu1 }
  0xa1   :  { %v860_v47 = vpop.f32.mrf.mxu2  ;;  %v870_v52 = vpop.f32.mrf.mxu3  ;;  %v265_v58 = vsel %vm261_vm1, %v856_v45, 0.0  ;;  %v279_v16 = vsel %vm261_vm1, %v858_v46, 0.0 }
  0xa2   :  { %v266_v63 = vadd.f32 %v265_v58, %v264_v59  ;;  %v293_v34 = vsel %vm261_vm1, %v860_v47, 0.0 }
  0xa8   :  { %v864_v49 = vpop.f32.mrf.mxu0  ;;  %v866_v50 = vpop.f32.mrf.mxu1 }
  0xa9   :  { %v868_v51 = vpop.f32.mrf.mxu2  ;;  %v267_v62 = vsel %vm261_vm1, %v864_v49, 0.0  ;;  %v890_v0 = vpop.f32.mrf.mxu3  ;;  %v281_v19 = vsel %vm261_vm1, %v866_v50, 0.0 }
  0xaa   :  { %v268_v2 = vadd.f32 %v267_v62, %v266_v63  ;;  %v295_v36 = vsel %vm261_vm1, %v868_v51, 0.0 }
  0xb0   :  { %v872_v53 = vpop.f32.mrf.mxu0  ;;  %v874_v54 = vpop.f32.mrf.mxu1 }
  0xb1   :  { %v876_v55 = vpop.f32.mrf.mxu2  ;;  %v269_v1 = vsel %vm261_vm1, %v872_v53, 0.0  ;;  %v906_v13 = vpop.f32.mrf.mxu3  ;;  %v283_v21 = vsel %vm261_vm1, %v874_v54, 0.0 }
  0xb2   :  { %v270_v4 = vadd.f32 %v269_v1, %v268_v2  ;;  %v297_v39 = vsel %vm261_vm1, %v876_v55, 0.0 }
  0xb8   :  { %v884_v60 = vpop.f32.mrf.mxu0  ;;  %v886_v61 = vpop.f32.mrf.mxu1 }
  0xb9   :  { %v271_v3 = vsel %vm261_vm1, %v884_v60, 0.0  ;;  %v896_v5 = vpop.f32.mrf.mxu2  ;;  %v285_v24 = vsel %vm261_vm1, %v886_v61, 0.0  ;;  %v922_v26 = vpop.f32.mrf.mxu3 }
  0xba   :  { %v272_v6 = vadd.f32 %v271_v3, %v270_v4  ;;  %v299_v57 = vsel %vm261_vm1, %v896_v5, 0.0 }
  0xc0   :  { %v898_v7 = vpop.f32.mrf.mxu0  ;;  %v902_v10 = vpop.f32.mrf.mxu1 }
  0xc1   :  { %v273_v8 = vsel %vm261_vm1, %v898_v7, 0.0  ;;  %v912_v18 = vpop.f32.mrf.mxu2  ;;  %v287_v27 = vsel %vm261_vm1, %v902_v10, 0.0  ;;  %v936_v38 = vpop.f32.mrf.mxu3 }
  0xc2   :  { %v274_v9 = vadd.f32 %v273_v8, %v272_v6  ;;  %v301_v62 = vsel %vm261_vm1, %v912_v18, 0.0  ;;  %v307_v8 = vsel %vm261_vm1, %v862_v48, 0.0 }
  0xc4   :  { %v276_v12 = vadd.f32 %v275_v11, %v274_v9  ;;  %v309_v11 = vsel %vm261_vm1, %v870_v52, 0.0 }
  0xc6   :  { %v278_v15 = vadd.f32 %v277_v14, %v276_v12  ;;  %v311_v14 = vsel %vm261_vm1, %v890_v0, 0.0 }
  0xc8   :  { %v280_v17 = vadd.f32 %v279_v16, %v278_v15  ;;  %v918_v23 = vpop.f32.mrf.mxu1  ;;  %v313_v16 = vsel %vm261_vm1, %v906_v13, 0.0 }
  0xc9   :  { %v289_v28 = vsel %vm261_vm1, %v918_v23, 0.0  ;;  %v928_v31 = vpop.f32.mrf.mxu2  ;;  %v950_v6 = vpop.f32.mrf.mxu3 }
  0xca   :  { %v282_v20 = vadd.f32 %v281_v19, %v280_v17  ;;  %v303_v1 = vsel %vm261_vm1, %v928_v31, 0.0  ;;  %v315_v19 = vsel %vm261_vm1, %v922_v26, 0.0 }
  0xcc   :  { %v284_v22 = vadd.f32 %v283_v21, %v282_v20 }
  0xce   :  { %v286_v25 = vadd.f32 %v285_v24, %v284_v22  ;;  %v317_v22 = vsel %vm261_vm1, %v936_v38, 0.0 }
  0xd0   :  { %v288_v29 = vadd.f32 %v287_v27, %v286_v25  ;;  %v319_v25 = vsel %vm261_vm1, %v950_v6, 0.0 }
  0xd1   :  { %v942_v59 = vpop.f32.mrf.mxu2  ;;  %v962_v21 = vpop.f32.mrf.mxu3 }
  0xd2   :  { %v290_v30 = vadd.f32 %v289_v28, %v288_v29  ;;  %v305_v2 = vsel %vm261_vm1, %v942_v59, 0.0  ;;  %v322_v27 = vsel %vm321_vm2, %v962_v21, 0.0 }
  0xd4   :  { %v292_v33 = vadd.f32 %v291_v32, %v290_v30 }
  0xd6   :  { %v294_v35 = vadd.f32 %v293_v34, %v292_v33 }
  0xd8   :  { %v296_v37 = vadd.f32 %v295_v36, %v294_v35 }
  0xda   :  { %v298_v56 = vadd.f32 %v297_v39, %v296_v37 }
  0xdc   :  { %v300_v58 = vadd.f32 %v299_v57, %v298_v56 }
  0xde   :  { %v302_v63 = vadd.f32 %v301_v62, %v300_v58 }
  0xe0   :  { %v304_v3 = vadd.f32 %v303_v1, %v302_v63 }
  0xe2   :  { %v306_v4 = vadd.f32 %v305_v2, %v304_v3 }
  0xe4   :  { %v308_v9 = vadd.f32 %v307_v8, %v306_v4 }
  0xe6   :  { %v310_v12 = vadd.f32 %v309_v11, %v308_v9 }
  0xe8   :  { %v312_v15 = vadd.f32 %v311_v14, %v310_v12 }
  0xea   :  { %v314_v17 = vadd.f32 %v313_v16, %v312_v15 }
  0xec   :  { %v316_v20 = vadd.f32 %v315_v19, %v314_v17 }
  0xee   :  { %v318_v24 = vadd.f32 %v317_v22, %v316_v20 }
  0xf0   :  { %v320_v28 = vadd.f32 %v319_v25, %v318_v24 }
  0xf2   :  { %v323_v29 = vadd.f32 %v322_v27, %v320_v28 }
  0xf4   :  { %v324_v30 = vrot.slane %v323_v29, 4 }
  0xf6   :  { %v325_v32 = vadd.f32 %v324_v30, %v323_v29 }
  0xf8   :  { %v326_v33 = vrot.slane %v325_v32, 2 }
  0xfa   :  { %v327_v34 = vadd.f32 %v326_v33, %v325_v32 }
  0xfc   :  { %v328_v35 = vrot.slane %v327_v34, 1 }
  0xfe   :  { %v329_v36 = vadd.f32 %v328_v35, %v327_v34 }
 0x100   :  { %v970_v37 = vmul.f32 0.004132231, %v329_v36 }
 0x102   :  { %v974_v39 = vsub.f32 %v846_v40, %v970_v37  ;;  %v978_v56 = vsub.f32 %v850_v42, %v970_v37  ;;  %v982_v57 = vsub.f32 %v856_v45, %v970_v37  ;;  %v986_v58 = vsub.f32 %v864_v49, %v970_v37 }
 0x103   :  { %v994_v40 = vsub.f32 %v872_v53, %v970_v37  ;;  %v1000_v45 = vsub.f32 %v884_v60, %v970_v37  ;;  %v1008_v4 = vsub.f32 %v898_v7, %v970_v37  ;;  %v1015_v60 = vsub.f32 %v848_v41, %v970_v37 }
 0x104   :  { %v362_v62 = vmul.f32 %v974_v39, %v974_v39  ;;  %v363_v63 = vmul.f32 %v978_v56, %v978_v56  ;;  %v364_v42 = vmul.f32 %v982_v57, %v982_v57  ;;  %v365_v49 = vmul.f32 %v986_v58, %v986_v58 }
 0x105   :  { %v366_v53 = vmul.f32 %v994_v40, %v994_v40  ;;  %v367_v11 = vmul.f32 %v1000_v45, %v1000_v45  ;;  %v1022_v7 = vsub.f32 %v852_v43, %v970_v37  ;;  %v368_v15 = vmul.f32 %v1008_v4, %v1008_v4 }
 0x106   :  { %v393_v1 = vsel %vm261_vm1, %v362_v62, 0.0  ;;  %v394_v2 = vsel %vm261_vm1, %v363_v63, 0.0  ;;  %v396_v8 = vsel %vm261_vm1, %v364_v42, 0.0  ;;  %v398_v12 = vsel %vm261_vm1, %v365_v49, 0.0 }
 0x107   :  { %v395_v3 = vadd.f32 %v394_v2, %v393_v1  ;;  %v400_v16 = vsel %vm261_vm1, %v366_v53, 0.0  ;;  %v1029_v41 = vsub.f32 %v858_v46, %v970_v37  ;;  %v369_v19 = vmul.f32 %v1015_v60, %v1015_v60 }
 0x108   :  { %v402_v20 = vsel %vm261_vm1, %v367_v11, 0.0  ;;  %v1036_v43 = vsub.f32 %v866_v50, %v970_v37  ;;  %v370_v24 = vmul.f32 %v1022_v7, %v1022_v7  ;;  %v404_v25 = vsel %vm261_vm1, %v368_v15, 0.0 }
 0x109   :  { %v397_v9 = vadd.f32 %v396_v8, %v395_v3  ;;  %v1043_v46 = vsub.f32 %v874_v54, %v970_v37  ;;  %v371_v28 = vmul.f32 %v1029_v41, %v1029_v41  ;;  %v406_v29 = vsel %vm261_vm1, %v369_v19, 0.0 }
 0x10a   :  { %v1050_v50 = vsub.f32 %v886_v61, %v970_v37  ;;  %v372_v32 = vmul.f32 %v1036_v43, %v1036_v43  ;;  %v408_v33 = vsel %vm261_vm1, %v370_v24, 0.0  ;;  %v1057_v54 = vsub.f32 %v902_v10, %v970_v37 }
 0x10b   :  { %v399_v14 = vadd.f32 %v398_v12, %v397_v9  ;;  %v373_v35 = vmul.f32 %v1043_v46, %v1043_v46  ;;  %v410_v36 = vsel %vm261_vm1, %v371_v28, 0.0  ;;  %v1064_v61 = vsub.f32 %v918_v23, %v970_v37 }
 0x10c   :  { %v374_v63 = vmul.f32 %v1050_v50, %v1050_v50  ;;  %v412_v42 = vsel %vm261_vm1, %v372_v32, 0.0  ;;  %v1071_v10 = vsub.f32 %v854_v44, %v970_v37  ;;  %v375_v1 = vmul.f32 %v1057_v54, %v1057_v54 }
 0x10d   :  { %v401_v17 = vadd.f32 %v400_v16, %v399_v14  ;;  %v414_v2 = vsel %vm261_vm1, %v373_v35, 0.0  ;;  %v1078_v23 = vsub.f32 %v860_v47, %v970_v37  ;;  %v376_v53 = vmul.f32 %v1064_v61, %v1064_v61 }
 0x10e   :  { %v416_v8 = vsel %vm261_vm1, %v374_v63, 0.0  ;;  %v1085_v44 = vsub.f32 %v868_v51, %v970_v37  ;;  %v377_v11 = vmul.f32 %v1071_v10, %v1071_v10  ;;  %v418_v12 = vsel %vm261_vm1, %v375_v1, 0.0 }
 0x10f   :  { %v403_v22 = vadd.f32 %v402_v20, %v401_v17  ;;  %v1092_v47 = vsub.f32 %v876_v55, %v970_v37  ;;  %v378_v15 = vmul.f32 %v1078_v23, %v1078_v23  ;;  %v420_v16 = vsel %vm261_vm1, %v376_v53, 0.0 }
 0x110   :  { %v1099_v51 = vsub.f32 %v896_v5, %v970_v37  ;;  %v379_v19 = vmul.f32 %v1085_v44, %v1085_v44  ;;  %v422_v20 = vsel %vm261_vm1, %v377_v11, 0.0  ;;  %v1106_v55 = vsub.f32 %v912_v18, %v970_v37 }
 0x111   :  { %v405_v27 = vadd.f32 %v404_v25, %v403_v22  ;;  %v380_v24 = vmul.f32 %v1092_v47, %v1092_v47  ;;  %v424_v25 = vsel %vm261_vm1, %v378_v15, 0.0  ;;  %v1113_v5 = vsub.f32 %v928_v31, %v970_v37 }
 0x112   :  { %v381_v28 = vmul.f32 %v1099_v51, %v1099_v51  ;;  %v1120_v18 = vsub.f32 %v942_v59, %v970_v37  ;;  %v382_v32 = vmul.f32 %v1106_v55, %v1106_v55  ;;  %v1127_v31 = vsub.f32 %v862_v48, %v970_v37 }
 0x113   :  { %v407_v30 = vadd.f32 %v406_v29, %v405_v27  ;;  %v426_v29 = vsel %vm261_vm1, %v379_v19, 0.0  ;;  %v383_v35 = vmul.f32 %v1113_v5, %v1113_v5  ;;  %v1134_v59 = vsub.f32 %v870_v52, %v970_v37 }
 0x114   :  { %v384_v63 = vmul.f32 %v1120_v18, %v1120_v18  ;;  %v1141_v48 = vsub.f32 %v890_v0, %v970_v37  ;;  %v385_v1 = vmul.f32 %v1127_v31, %v1127_v31  ;;  %v1148_v52 = vsub.f32 %v906_v13, %v970_v37 }
 0x115   :  { %v409_v34 = vadd.f32 %v408_v33, %v407_v30  ;;  %v428_v33 = vsel %vm261_vm1, %v380_v24, 0.0  ;;  %v386_v53 = vmul.f32 %v1134_v59, %v1134_v59  ;;  %v1155_v0 = vsub.f32 %v922_v26, %v970_v37 }
 0x116   :  { %v387_v11 = vmul.f32 %v1141_v48, %v1141_v48  ;;  %v1162_v13 = vsub.f32 %v936_v38, %v970_v37  ;;  %v388_v15 = vmul.f32 %v1148_v52, %v1148_v52  ;;  %v1169_v26 = vsub.f32 %v950_v6, %v970_v37 }
 0x117   :  { %v411_v62 = vadd.f32 %v410_v36, %v409_v34  ;;  %v430_v36 = vsel %vm261_vm1, %v381_v28, 0.0  ;;  %v389_v19 = vmul.f32 %v1155_v0, %v1155_v0  ;;  %v1176_v38 = vsub.f32 %v962_v21, %v970_v37 }
 0x118   :  { %v390_v24 = vmul.f32 %v1162_v13, %v1162_v13  ;;  %v391_v6 = vmul.f32 %v1169_v26, %v1169_v26 }
 0x119   :  { %v413_v49 = vadd.f32 %v412_v42, %v411_v62  ;;  %v432_v42 = vsel %vm261_vm1, %v382_v32, 0.0  ;;  %v446_v28 = vsel %vm261_vm1, %v389_v19, 0.0 }
 0x11a   :  { %v448_v32 = vsel %vm261_vm1, %v390_v24, 0.0  ;;  %v450_v21 = vsel %vm261_vm1, %v391_v6, 0.0  ;;  %v1201_v24 = vld [vmem:[%s1418_s3] ss:$0 sm:$0xff] }
 0x11b   :  { %v415_v3 = vadd.f32 %v414_v2, %v413_v49  ;;  %v434_v2 = vsel %vm261_vm1, %v383_v35, 0.0 }
 0x11d   :  { %v417_v9 = vadd.f32 %v416_v8, %v415_v3  ;;  %v436_v8 = vsel %vm261_vm1, %v384_v63, 0.0 }
 0x11f   :  { %v419_v14 = vadd.f32 %v418_v12, %v417_v9  ;;  %v438_v12 = vsel %vm261_vm1, %v385_v1, 0.0 }
 0x121   :  { %v421_v17 = vadd.f32 %v420_v16, %v419_v14  ;;  %v440_v16 = vsel %vm261_vm1, %v386_v53, 0.0 }
 0x123   :  { %v423_v22 = vadd.f32 %v422_v20, %v421_v17  ;;  %v442_v20 = vsel %vm261_vm1, %v387_v11, 0.0 }
 0x125   :  { %v425_v27 = vadd.f32 %v424_v25, %v423_v22  ;;  %v444_v25 = vsel %vm261_vm1, %v388_v15, 0.0  ;;  %v461_v15 = vld [vmem:[%s1419_s2] sm:$0x1] }
 0x127   :  { %v427_v30 = vadd.f32 %v426_v29, %v425_v27 }
 0x129   :  { %v429_v34 = vadd.f32 %v428_v33, %v427_v30  ;;  %v392_v30 = vmul.f32 %v1176_v38, %v1176_v38 }
 0x12b   :  { %v431_v62 = vadd.f32 %v430_v36, %v429_v34  ;;  %v452_v34 = vsel %vm321_vm2, %v392_v30, 0.0 }
 0x12d   :  { %v433_v49 = vadd.f32 %v432_v42, %v431_v62 }
 0x12f   :  { %v435_v3 = vadd.f32 %v434_v2, %v433_v49 }
 0x131   :  { %v437_v9 = vadd.f32 %v436_v8, %v435_v3 }
 0x133   :  { %v439_v14 = vadd.f32 %v438_v12, %v437_v9 }
 0x135   :  { %v441_v17 = vadd.f32 %v440_v16, %v439_v14 }
 0x137   :  { %v443_v22 = vadd.f32 %v442_v20, %v441_v17 }
 0x139   :  { %v445_v27 = vadd.f32 %v444_v25, %v443_v22 }
 0x13b   :  { %v447_v29 = vadd.f32 %v446_v28, %v445_v27 }
 0x13d   :  { %v449_v33 = vadd.f32 %v448_v32, %v447_v29 }
 0x13f   :  { %v451_v37 = vadd.f32 %v450_v21, %v449_v33 }
 0x141   :  { %v453_v35 = vadd.f32 %v452_v34, %v451_v37 }
 0x143   :  { %v454_v36 = vrot.slane %v453_v35, 4 }
 0x145   :  { %v455_v62 = vadd.f32 %v454_v36, %v453_v35 }
 0x147   :  { %v456_v63 = vrot.slane %v455_v62, 2 }
 0x149   :  { %v457_v42 = vadd.f32 %v456_v63, %v455_v62 }
 0x14b   :  { %v458_v49 = vrot.slane %v457_v42, 1 }
 0x14d   :  { %v459_v1 = vadd.f32 %v458_v49, %v457_v42 }
 0x14f   :  { %v460_v2 = vmul.f32 0.004132231, %v459_v1 }
 0x151   :  { %v462_v3 = vadd.f32 1e-05, %v460_v2 }
 0x153   :  { %668 = vrsqrt.f32 %v462_v3  ;;  %vm469_vm4 = vweird.f32 %v462_v3 }
 0x159   :  { %v669_v53 = vpop.eup %668 }
 0x15a   :  { %v464_v8 = vmul.f32 %v669_v53, %v462_v3  ;;  %vm470_vm3 = vweird.f32 %v669_v53 }
 0x15b   :  { %vm471_vm5 = vmor %vm469_vm4, %vm470_vm3 }
 0x15c   :  { %v465_v9 = vmul.f32 %v669_v53, %v464_v8 }
 0x15e   :  { %v466_v11 = vmul.f32 0.5, %v465_v9 }
 0x160   :  { %v467_v12 = vsub.f32 1.5, %v466_v11 }
 0x162   :  { %v468_v14 = vmul.f32 %v669_v53, %v467_v12 }
 0x164   :  { %v472_v16 = vsel %vm471_vm5, %v669_v53, %v468_v14 }
 0x165   :  { %v473_v17 = vmul.f32 %v472_v16, %v461_v15 }
 0x167   :  { %v1192_v19 = vperm.slane %v473_v17, 0 }
 0x169   :  { %v477_v20 = vmul.f32 %v1192_v19, %v974_v39  ;;  %v478_v22 = vmul.f32 %v1192_v19, %v978_v56  ;;  %v479_v25 = vmul.f32 %v1192_v19, %v982_v57  ;;  %v480_v27 = vmul.f32 %v1192_v19, %v986_v58 }
 0x16a   :  { %v481_v6 = vmul.f32 %v1192_v19, %v994_v40  ;;  %v482_v39 = vmul.f32 %v1192_v19, %v1000_v45  ;;  %v483_v56 = vmul.f32 %v1192_v19, %v1008_v4  ;;  %v484_v30 = vmul.f32 %v1192_v19, %v1015_v60 }
 0x16b   :  { %v512_v28 = vadd.f32 %v1201_v24, %v477_v20  ;;  %v513_v29 = vadd.f32 %v1201_v24, %v478_v22  ;;  %v514_v57 = vadd.f32 %v1201_v24, %v479_v25  ;;  %v515_v58 = vadd.f32 %v1201_v24, %v480_v27 }
 0x16c   :  { %v485_v40 = vmul.f32 %v1192_v19, %v1022_v7  ;;  %v516_v32 = vadd.f32 %v1201_v24, %v481_v6  ;;  %v486_v45 = vmul.f32 %v1192_v19, %v1029_v41  ;;  %v517_v4 = vadd.f32 %v1201_v24, %v482_v39 }
 0x16d   :  { %v487_v33 = vmul.f32 %v1192_v19, %v1036_v43  ;;  %v518_v21 = vadd.f32 %v1201_v24, %v483_v56  ;;  %v543_v60 = vmax.f32 %v512_v28, 0.0  ;;  %v544_v37 = vmax.f32 %v513_v29, 0.0 }
 0x16e   :  { %v488_v34 = vmul.f32 %v1192_v19, %v1043_v46  ;;  %v519_v35 = vadd.f32 %v1201_v24, %v484_v30  ;;  %v545_v7 = vmax.f32 %v514_v57, 0.0  ;;  %v546_v36 = vmax.f32 %v515_v58, 0.0 }
 0x16f   :  { %v489_v62 = vmul.f32 %v1192_v19, %v1050_v50  ;;  %v520_v41 = vadd.f32 %v1201_v24, %v485_v40  ;;  %v547_v63 = vmax.f32 %v516_v32, 0.0  ;;  %574 = vst.msk [vmem:[%s1420_s4] sm:$0xff] %vm261_vm1, %v543_v60  ;;  %v490_v43 = vmul.f32 %v1192_v19, %v1057_v54 }
 0x170   :  { %v521_v46 = vadd.f32 %v1201_v24, %v486_v45  ;;  %v548_v42 = vmax.f32 %v517_v4, 0.0  ;;  %575 = vst.msk [vmem:[%s1420_s4 + $0x8] sm:$0xff] %vm261_vm1, %v544_v37  ;;  %v491_v50 = vmul.f32 %v1192_v19, %v1064_v61  ;;  %v522_v49 = vadd.f32 %v1201_v24, %v487_v33 }
 0x171   :  { %v549_v1 = vmax.f32 %v518_v21, 0.0  ;;  %576 = vst.msk [vmem:[%s1420_s4 + $0x10] sm:$0xff] %vm261_vm1, %v545_v7  ;;  %v492_v54 = vmul.f32 %v1192_v19, %v1071_v10  ;;  %v523_v2 = vadd.f32 %v1201_v24, %v488_v34  ;;  %v550_v3 = vmax.f32 %v519_v35, 0.0 }
 0x172   :  { %577 = vst.msk [vmem:[%s1420_s4 + $0x18] sm:$0xff] %vm261_vm1, %v546_v36  ;;  %v493_v61 = vmul.f32 %v1192_v19, %v1078_v23  ;;  %v524_v53 = vadd.f32 %v1201_v24, %v489_v62  ;;  %v551_v8 = vmax.f32 %v520_v41, 0.0  ;;  %v494_v10 = vmul.f32 %v1192_v19, %v1085_v44 }
 0x173   :  { %578 = vst.msk [vmem:[%s1420_s4 + $0x20] sm:$0xff] %vm261_vm1, %v547_v63  ;;  %v525_v9 = vadd.f32 %v1201_v24, %v490_v43  ;;  %v552_v11 = vmax.f32 %v521_v46, 0.0  ;;  %v495_v23 = vmul.f32 %v1192_v19, %v1092_v47  ;;  %v526_v12 = vadd.f32 %v1201_v24, %v491_v50 }
 0x174   :  { %579 = vst.msk [vmem:[%s1420_s4 + $0x28] sm:$0xff] %vm261_vm1, %v548_v42  ;;  %v553_v14 = vmax.f32 %v522_v49, 0.0  ;;  %v496_v44 = vmul.f32 %v1192_v19, %v1099_v51  ;;  %v527_v15 = vadd.f32 %v1201_v24, %v492_v54  ;;  %v554_v16 = vmax.f32 %v523_v2, 0.0 }
 0x175   :  { %580 = vst.msk [vmem:[%s1420_s4 + $0x30] sm:$0xff] %vm261_vm1, %v549_v1  ;;  %v497_v47 = vmul.f32 %v1192_v19, %v1106_v55  ;;  %v528_v17 = vadd.f32 %v1201_v24, %v493_v61  ;;  %v555_v20 = vmax.f32 %v524_v53, 0.0  ;;  %v498_v51 = vmul.f32 %v1192_v19, %v1113_v5 }
 0x176   :  { %581 = vst.msk [vmem:[%s1420_s4 + $0x38] sm:$0xff] %vm261_vm1, %v550_v3  ;;  %v529_v22 = vadd.f32 %v1201_v24, %v494_v10  ;;  %v556_v25 = vmax.f32 %v525_v9, 0.0  ;;  %v499_v55 = vmul.f32 %v1192_v19, %v1120_v18  ;;  %v530_v27 = vadd.f32 %v1201_v24, %v495_v23 }
 0x177   :  { %582 = vst.msk [vmem:[%s1420_s4 + $0x40] sm:$0xff] %vm261_vm1, %v551_v8  ;;  %v557_v6 = vmax.f32 %v526_v12, 0.0  ;;  %v500_v5 = vmul.f32 %v1192_v19, %v1127_v31  ;;  %v531_v39 = vadd.f32 %v1201_v24, %v496_v44  ;;  %v558_v56 = vmax.f32 %v527_v15, 0.0 }
 0x178   :  { %583 = vst.msk [vmem:[%s1420_s4 + $0x48] sm:$0xff] %vm261_vm1, %v552_v11  ;;  %v501_v18 = vmul.f32 %v1192_v19, %v1134_v59  ;;  %v532_v28 = vadd.f32 %v1201_v24, %v497_v47  ;;  %v559_v29 = vmax.f32 %v528_v17, 0.0  ;;  %v502_v31 = vmul.f32 %v1192_v19, %v1141_v48 }
 0x179   :  { %584 = vst.msk [vmem:[%s1420_s4 + $0x50] sm:$0xff] %vm261_vm1, %v553_v14  ;;  %v533_v30 = vadd.f32 %v1201_v24, %v498_v51  ;;  %v560_v57 = vmax.f32 %v529_v22, 0.0  ;;  %v503_v59 = vmul.f32 %v1192_v19, %v1148_v52  ;;  %v534_v58 = vadd.f32 %v1201_v24, %v499_v55 }
 0x17a   :  { %585 = vst.msk [vmem:[%s1420_s4 + $0x58] sm:$0xff] %vm261_vm1, %v554_v16  ;;  %v561_v40 = vmax.f32 %v530_v27, 0.0  ;;  %v504_v48 = vmul.f32 %v1192_v19, %v1155_v0  ;;  %v535_v32 = vadd.f32 %v1201_v24, %v500_v5  ;;  %v562_v45 = vmax.f32 %v531_v39, 0.0 }
 0x17b   :  { %586 = vst.msk [vmem:[%s1420_s4 + $0x60] sm:$0xff] %vm261_vm1, %v555_v20  ;;  %v505_v52 = vmul.f32 %v1192_v19, %v1162_v13  ;;  %v536_v4 = vadd.f32 %v1201_v24, %v501_v18  ;;  %v563_v33 = vmax.f32 %v532_v28, 0.0  ;;  %v506_v0 = vmul.f32 %v1192_v19, %v1169_v26 }
 0x17c   :  { %587 = vst.msk [vmem:[%s1420_s4 + $0x68] sm:$0xff] %vm261_vm1, %v556_v25  ;;  %v537_v21 = vadd.f32 %v1201_v24, %v502_v31  ;;  %v564_v60 = vmax.f32 %v533_v30, 0.0  ;;  %v507_v13 = vmul.f32 %v1192_v19, %v1176_v38  ;;  %v538_v37 = vadd.f32 %v1201_v24, %v503_v59 }
 0x17d   :  { %588 = vst.msk [vmem:[%s1420_s4 + $0x70] sm:$0xff] %vm261_vm1, %v557_v6  ;;  %v565_v34 = vmax.f32 %v534_v58, 0.0  ;;  %v539_v26 = vadd.f32 %v1201_v24, %v504_v48  ;;  %v566_v35 = vmax.f32 %v535_v32, 0.0  ;;  %v540_v7 = vadd.f32 %v1201_v24, %v505_v52 }
 0x17e   :  { %589 = vst.msk [vmem:[%s1420_s4 + $0x78] sm:$0xff] %vm261_vm1, %v558_v56  ;;  %v567_v36 = vmax.f32 %v536_v4, 0.0  ;;  %v541_v38 = vadd.f32 %v1201_v24, %v506_v0  ;;  %v568_v19 = vmax.f32 %v537_v21, 0.0  ;;  %v542_v62 = vadd.f32 %v1201_v24, %v507_v13 }
 0x17f   :  { %590 = vst.msk [vmem:[%s1420_s4 + $0x80] sm:$0xff] %vm261_vm1, %v559_v29  ;;  %v569_v41 = vmax.f32 %v538_v37, 0.0  ;;  %v570_v63 = vmax.f32 %v539_v26, 0.0  ;;  %v571_v43 = vmax.f32 %v540_v7, 0.0 }
 0x180   :  { %591 = vst.msk [vmem:[%s1420_s4 + $0x88] sm:$0xff] %vm261_vm1, %v560_v57  ;;  %v572_v46 = vmax.f32 %v541_v38, 0.0  ;;  %v573_v24 = vmax.f32 %v542_v62, 0.0 }
 0x181   :  { %592 = vst.msk [vmem:[%s1420_s4 + $0x90] sm:$0xff] %vm261_vm1, %v561_v40 }
 0x182   :  { %593 = vst.msk [vmem:[%s1420_s4 + $0x98] sm:$0xff] %vm261_vm1, %v562_v45 }
 0x183   :  { %594 = vst.msk [vmem:[%s1420_s4 + $0xa0] sm:$0xff] %vm261_vm1, %v563_v33 }
 0x184   :  { %595 = vst.msk [vmem:[%s1420_s4 + $0xa8] sm:$0xff] %vm261_vm1, %v564_v60 }
 0x185   :  { %596 = vst.msk [vmem:[%s1420_s4 + $0xb0] sm:$0xff] %vm261_vm1, %v565_v34 }
 0x186   :  { %597 = vst.msk [vmem:[%s1420_s4 + $0xb8] sm:$0xff] %vm261_vm1, %v566_v35 }
 0x187   :  { %598 = vst.msk [vmem:[%s1420_s4 + $0xc0] sm:$0xff] %vm261_vm1, %v567_v36 }
 0x188   :  { %599 = vst.msk [vmem:[%s1420_s4 + $0xc8] sm:$0xff] %vm261_vm1, %v568_v19 }
 0x189   :  { %600 = vst.msk [vmem:[%s1420_s4 + $0xd0] sm:$0xff] %vm261_vm1, %v569_v41 }
 0x18a   :  { %601 = vst.msk [vmem:[%s1420_s4 + $0xd8] sm:$0xff] %vm261_vm1, %v570_v63 }
 0x18b   :  { %602 = vst.msk [vmem:[%s1420_s4 + $0xe0] sm:$0xff] %vm261_vm1, %v571_v43 }
 0x18c   :  { %603 = vst.msk [vmem:[%s1420_s4 + $0xe8] sm:$0xff] %vm261_vm1, %v572_v46 }
 0x18d   :  { %604 = vst.msk [vmem:[%s1420_s4 + $0xf0] sm:$0x3] %vm321_vm2, %v573_v24 }

// kernel: encoder_batch_forward.7
= control target key start
LH: loop header
LB: loop body
LE: loop exit
PB: predicated region body
PF: predicated region fallthrough
CT: control target
= control target key end

     0   :  { %vm77_vm0 = vcmask 130048   ;;  %vm301_vm1 = vcmask 261120   ;;  %vm341_vm2 = vcmask 254976   ;;  %s1209_s1 = inlined_call_operand.vmem [shape: f32[144,32], index: 1, kind: input, shape index: {}]   ;;  %s1210_s0 = inlined_call_operand.vmem [shape: f32[162,144], index: 0, kind: input, shape index: {}]   ;;  %s1211_s3 = inlined_call_operand.vmem [shape: f32[1,32], index: 3, kind: input, shape index: {}]   ;;  %s1212_s2 = inlined_call_operand.vmem [shape: f32[1,32], index: 2, kind: input, shape index: {}]   ;;  %s1213_s4 = inlined_call_operand.vmem [shape: f32[162,32], index: 4, kind: output, shape index: {}]  }
   0x1   :  { %v74_v0 = vld [vmem:[%s1209_s1 + $0x78] sm:$0xff]  ;;  %v638_v1 = vld [vmem:[%s1209_s1 + $0x88] sm:$0xff]  ;;  %v73_v2 = vld [vmem:[%s1209_s1 + $0x70] sm:$0xff] }
   0x2   :  { %141 = vmatpush.msra.mxu0 %v74_v0  ;;  %570 = vmatpush.msra.mxu2 %v74_v0  ;;  %v646_v3 = vld [vmem:[%s1209_s1 + $0x80] sm:$0xff]  ;;  %v18_v4 = vld [vmem:[%s1210_s0 + $0x8] sm:$0xff]  ;;  %v70_v7 = vld [vmem:[%s1209_s1 + $0x58] sm:$0xff] }
   0x3   :  { %571 = vmatpush.msra.mxu3 %v74_v0  ;;  %235 = vmatpush.msra.mxu1 %v638_v1  ;;  %v72_v5 = vld [vmem:[%s1209_s1 + $0x68] sm:$0xff]  ;;  %v71_v6 = vld [vmem:[%s1209_s1 + $0x60] sm:$0xff]  ;;  %v69_v8 = vld [vmem:[%s1209_s1 + $0x50] sm:$0xff] }
   0x4   :  { %142 = vmatpush.msra.mxu0 %v73_v2  ;;  %572 = vmatpush.msra.mxu2 %v73_v2  ;;  %v20_v9 = vld [vmem:[%s1210_s0 + $0x18] sm:$0xff]  ;;  %v68_v10 = vld [vmem:[%s1209_s1 + $0x48] sm:$0xff]  ;;  %v67_v11 = vld [vmem:[%s1209_s1 + $0x40] sm:$0xff] }
   0x5   :  { %573 = vmatpush.msra.mxu3 %v73_v2  ;;  %236 = vmatpush.msra.mxu1 %v646_v3  ;;  %v66_v12 = vld [vmem:[%s1209_s1 + $0x38] sm:$0xff]  ;;  %v65_v13 = vld [vmem:[%s1209_s1 + $0x30] sm:$0xff]  ;;  %v22_v14 = vld [vmem:[%s1210_s0 + $0x28] sm:$0xff] }
   0x6   :  { %549 = vmatmul.msk.f32.vlgmr.msra.gmra.mxu1 %vm77_vm0, %v18_v4  ;;  %143 = vmatpush.msra.mxu0 %v72_v5  ;;  %v64_v15 = vld [vmem:[%s1209_s1 + $0x28] sm:$0xff]  ;;  %v63_v16 = vld [vmem:[%s1209_s1 + $0x20] sm:$0xff]  ;;  %v62_v17 = vld [vmem:[%s1209_s1 + $0x18] sm:$0xff] }
   0x7   :  { %574 = vmatpush.msra.mxu2 %v72_v5  ;;  %575 = vmatpush.msra.mxu3 %v72_v5  ;;  %v61_v18 = vld [vmem:[%s1209_s1 + $0x10] sm:$0xff]  ;;  %v24_v19 = vld [vmem:[%s1210_s0 + $0x38] sm:$0xff]  ;;  %v60_v20 = vld [vmem:[%s1209_s1 + $0x8] sm:$0xff] }
   0x8   :  { %144 = vmatpush.msra.mxu0 %v71_v6  ;;  %v59_v21 = vld [vmem:[%s1209_s1] sm:$0xff]  ;;  %v35_v23 = vld [vmem:[%s1210_s0 + $0x90] sm:$0xff]  ;;  %v26_v25 = vld [vmem:[%s1210_s0 + $0x48] sm:$0xff] }
   0x9   :  { %576 = vmatpush.msra.mxu2 %v71_v6  ;;  %577 = vmatpush.msra.mxu3 %v71_v6  ;;  %v17_v22 = vld [vmem:[%s1210_s0] sm:$0xff]  ;;  %v55_v24 = vld [vmem:[%s1210_s0 + $0x130] sm:$0xff]  ;;  %v28_v29 = vld [vmem:[%s1210_s0 + $0x58] sm:$0xff] }
   0xa   :  { %145 = vmatpush.msra.mxu0 %v70_v7  ;;  %v19_v26 = vld [vmem:[%s1210_s0 + $0x10] sm:$0xff]  ;;  %v37_v27 = vld [vmem:[%s1210_s0 + $0xa0] sm:$0xff]  ;;  %v44_v32 = vld [vmem:[%s1210_s0 + $0xd8] sm:$0xff] }
   0xb   :  { %578 = vmatpush.msra.mxu2 %v70_v7  ;;  %579 = vmatpush.msra.mxu3 %v70_v7  ;;  %v57_v28 = vld [vmem:[%s1210_s0 + $0x140] sm:$0x3]  ;;  %v39_v31 = vld [vmem:[%s1210_s0 + $0xb0] sm:$0xff]  ;;  %v30_v33 = vld [vmem:[%s1210_s0 + $0x68] sm:$0xff] }
   0xc   :  { %146 = vmatpush.msra.mxu0 %v69_v8  ;;  %v21_v30 = vld [vmem:[%s1210_s0 + $0x20] sm:$0xff]  ;;  %v23_v34 = vld [vmem:[%s1210_s0 + $0x30] sm:$0xff]  ;;  %v46_v36 = vld [vmem:[%s1210_s0 + $0xe8] sm:$0xff] }
   0xd   :  { %580 = vmatpush.msra.mxu2 %v69_v8  ;;  %581 = vmatpush.msra.mxu3 %v69_v8  ;;  %v41_v35 = vld [vmem:[%s1210_s0 + $0xc0] sm:$0xff]  ;;  %v32_v37 = vld [vmem:[%s1210_s0 + $0x78] sm:$0xff]  ;;  %v43_v39 = vld [vmem:[%s1210_s0 + $0xd0] sm:$0xff] }
   0xe   :  { %550 = vmatmul.msk.f32.gmra.mxu1 %vm77_vm0, %v20_v9  ;;  %147 = vmatpush.msra.mxu0 %v68_v10  ;;  %v25_v38 = vld [vmem:[%s1210_s0 + $0x40] sm:$0xff]  ;;  %v48_v40 = vld [vmem:[%s1210_s0 + $0xf8] sm:$0xff]  ;;  %v34_v41 = vld [vmem:[%s1210_s0 + $0x88] sm:$0xff] }
   0xf   :  { %582 = vmatpush.msra.mxu2 %v68_v10  ;;  %583 = vmatpush.msra.mxu3 %v68_v10  ;;  %v27_v42 = vld [vmem:[%s1210_s0 + $0x50] sm:$0xff]  ;;  %v45_v43 = vld [vmem:[%s1210_s0 + $0xe0] sm:$0xff]  ;;  %v50_v44 = vld [vmem:[%s1210_s0 + $0x108] sm:$0xff] }
  0x10   :  { %148 = vmatpush.msra.mxu0 %v67_v11  ;;  %v36_v45 = vld [vmem:[%s1210_s0 + $0x98] sm:$0xff]  ;;  %v29_v46 = vld [vmem:[%s1210_s0 + $0x60] sm:$0xff]  ;;  %v47_v47 = vld [vmem:[%s1210_s0 + $0xf0] sm:$0xff] }
  0x11   :  { %584 = vmatpush.msra.mxu2 %v67_v11  ;;  %585 = vmatpush.msra.mxu3 %v67_v11  ;;  %v52_v48 = vld [vmem:[%s1210_s0 + $0x118] sm:$0xff]  ;;  %v38_v49 = vld [vmem:[%s1210_s0 + $0xa8] sm:$0xff]  ;;  %v31_v50 = vld [vmem:[%s1210_s0 + $0x70] sm:$0xff] }
  0x12   :  { %149 = vmatpush.msra.mxu0 %v66_v12  ;;  %v49_v51 = vld [vmem:[%s1210_s0 + $0x100] sm:$0xff]  ;;  %v54_v52 = vld [vmem:[%s1210_s0 + $0x128] sm:$0xff]  ;;  %v40_v53 = vld [vmem:[%s1210_s0 + $0xb8] sm:$0xff] }
  0x13   :  { %586 = vmatpush.msra.mxu2 %v66_v12  ;;  %587 = vmatpush.msra.mxu3 %v66_v12  ;;  %v33_v54 = vld [vmem:[%s1210_s0 + $0x80] sm:$0xff]  ;;  %v51_v55 = vld [vmem:[%s1210_s0 + $0x110] sm:$0xff]  ;;  %v56_v56 = vld [vmem:[%s1210_s0 + $0x138] sm:$0xff] }
  0x14   :  { %150 = vmatpush.msra.mxu0 %v65_v13  ;;  %v42_v57 = vld [vmem:[%s1210_s0 + $0xc8] sm:$0xff]  ;;  %v53_v58 = vld [vmem:[%s1210_s0 + $0x120] sm:$0xff] }
  0x15   :  { %588 = vmatpush.msra.mxu2 %v65_v13  ;;  %589 = vmatpush.msra.mxu3 %v65_v13  ;;  %v58_v59 = vld [vmem:[%s1210_s0 + $0x148] sm:$0x3] }
  0x16   :  { %551 = vmatmul.msk.f32.gmra.mxu1 %vm77_vm0, %v22_v14  ;;  %151 = vmatpush.msra.mxu0 %v64_v15 }
  0x17   :  { %590 = vmatpush.msra.mxu2 %v64_v15  ;;  %591 = vmatpush.msra.mxu3 %v64_v15 }
  0x18   :  { %152 = vmatpush.msra.mxu0 %v63_v16 }
  0x19   :  { %592 = vmatpush.msra.mxu2 %v63_v16  ;;  %593 = vmatpush.msra.mxu3 %v63_v16 }
  0x1a   :  { %153 = vmatpush.msra.mxu0 %v62_v17 }
  0x1b   :  { %594 = vmatpush.msra.mxu2 %v62_v17  ;;  %595 = vmatpush.msra.mxu3 %v62_v17 }
  0x1c   :  { %154 = vmatpush.msra.mxu0 %v61_v18 }
  0x1d   :  { %596 = vmatpush.msra.mxu2 %v61_v18  ;;  %597 = vmatpush.msra.mxu3 %v61_v18 }
  0x1e   :  { %552 = vmatmul.msk.f32.gmra.mxu1 %vm77_vm0, %v24_v19  ;;  %155 = vmatpush.msra.mxu0 %v60_v20 }
  0x1f   :  { %598 = vmatpush.msra.mxu2 %v60_v20  ;;  %599 = vmatpush.msra.mxu3 %v60_v20 }
  0x20   :  { %156 = vmatpush.msra.mxu0 %v59_v21 }
  0x21   :  { %600 = vmatpush.msra.mxu2 %v59_v21  ;;  %601 = vmatpush.msra.mxu3 %v59_v21 }
  0x22   :  { %157 = vmatmul.f32.vlgmr.msra.gmra.mxu0 %v17_v22  ;;  %184 = vmatmul.f32.vlgmr.msra.gmra.mxu2 %v35_v23 }
  0x23   :  { %214 = vmatmul.f32.vlgmr.msra.gmra.mxu3 %v55_v24 }
  0x24   :  { %602 = vmatpush.msrb.mxu3 %v638_v1 }
  0x26   :  { %553 = vmatmul.msk.f32.gmra.mxu1 %vm77_vm0, %v26_v25  ;;  %603 = vmatpush.msrb.mxu3 %v646_v3 }
  0x2a   :  { %160 = vmatmul.f32.gmra.mxu0 %v19_v26  ;;  %187 = vmatmul.f32.gmra.mxu2 %v37_v27 }
  0x2b   :  { %217 = vmatmul.f32.gmra.mxu3 %v57_v28 }
  0x2e   :  { %554 = vmatmul.msk.f32.gmra.mxu1 %vm77_vm0, %v28_v29 }
  0x32   :  { %163 = vmatmul.f32.gmra.mxu0 %v21_v30  ;;  %190 = vmatmul.f32.gmra.mxu2 %v39_v31 }
  0x33   :  { %562 = vmatmul.msk.f32.vlgmr.msrb.gmra.mxu3 %vm77_vm0, %v44_v32 }
  0x36   :  { %555 = vmatmul.msk.f32.gmra.mxu1 %vm77_vm0, %v30_v33 }
  0x3a   :  { %166 = vmatmul.f32.gmra.mxu0 %v23_v34  ;;  %193 = vmatmul.f32.gmra.mxu2 %v41_v35 }
  0x3b   :  { %563 = vmatmul.msk.f32.gmra.mxu3 %vm77_vm0, %v46_v36 }
  0x3e   :  { %556 = vmatmul.msk.f32.gmra.mxu1 %vm77_vm0, %v32_v37 }
  0x42   :  { %169 = vmatmul.f32.gmra.mxu0 %v25_v38  ;;  %196 = vmatmul.f32.gmra.mxu2 %v43_v39 }
  0x43   :  { %564 = vmatmul.msk.f32.gmra.mxu3 %vm77_vm0, %v48_v40 }
  0x46   :  { %557 = vmatmul.msk.f32.gmra.mxu1 %vm77_vm0, %v34_v41 }
  0x4a   :  { %172 = vmatmul.f32.gmra.mxu0 %v27_v42  ;;  %199 = vmatmul.f32.gmra.mxu2 %v45_v43 }
  0x4b   :  { %565 = vmatmul.msk.f32.gmra.mxu3 %vm77_vm0, %v50_v44 }
  0x4e   :  { %558 = vmatmul.msk.f32.gmra.mxu1 %vm77_vm0, %v36_v45 }
  0x52   :  { %175 = vmatmul.f32.gmra.mxu0 %v29_v46  ;;  %202 = vmatmul.f32.gmra.mxu2 %v47_v47 }
  0x53   :  { %566 = vmatmul.msk.f32.gmra.mxu3 %vm77_vm0, %v52_v48 }
  0x56   :  { %559 = vmatmul.msk.f32.gmra.mxu1 %vm77_vm0, %v38_v49 }
  0x5a   :  { %178 = vmatmul.f32.gmra.mxu0 %v31_v50  ;;  %205 = vmatmul.f32.gmra.mxu2 %v49_v51 }
  0x5b   :  { %567 = vmatmul.msk.f32.gmra.mxu3 %vm77_vm0, %v54_v52 }
  0x5e   :  { %560 = vmatmul.msk.f32.gmra.mxu1 %vm77_vm0, %v40_v53 }
  0x62   :  { %181 = vmatmul.f32.gmra.mxu0 %v33_v54  ;;  %208 = vmatmul.f32.gmra.mxu2 %v51_v55 }
  0x63   :  { %568 = vmatmul.msk.f32.gmra.mxu3 %vm77_vm0, %v56_v56 }
  0x66   :  { %561 = vmatmul.msk.f32.gmra.mxu1 %vm77_vm0, %v42_v57 }
  0x6a   :  { %211 = vmatmul.f32.gmra.mxu2 %v53_v58 }
  0x6b   :  { %569 = vmatmul.msk.f32.gmra.mxu3 %vm77_vm0, %v58_v59 }
  0x83   :  { %v238_v60 = vpop.f32.mrf.mxu1 }
  0x8b   :  { %v241_v61 = vpop.f32.mrf.mxu1 }
  0x93   :  { %v244_v62 = vpop.f32.mrf.mxu1 }
  0x9b   :  { %v247_v63 = vpop.f32.mrf.mxu1 }
  0x9f   :  { %v158_v0 = vpop.f32.mrf.mxu0 }
  0xa0   :  { %v841_v3 = vadd.f32 %v238_v60, %v158_v0 }
  0xa2   :  { %v302_v7 = vsel %vm301_vm1, %v841_v3, 0.0 }
  0xa3   :  { %v250_v1 = vpop.f32.mrf.mxu1 }
  0xa5   :  { %v185_v2 = vpop.f32.mrf.mxu2 }
  0xa6   :  { %v843_v4 = vpop.f32.mrf.mxu3 }
  0xa7   :  { %v161_v5 = vpop.f32.mrf.mxu0 }
  0xa8   :  { %v845_v6 = vadd.f32 %v241_v61, %v161_v5 }
  0xaa   :  { %v303_v8 = vsel %vm301_vm1, %v845_v6, 0.0 }
  0xab   :  { %v304_v9 = vadd.f32 %v303_v8, %v302_v7  ;;  %v253_v10 = vpop.f32.mrf.mxu1 }
  0xad   :  { %v188_v11 = vpop.f32.mrf.mxu2 }
  0xae   :  { %v851_v12 = vpop.f32.mrf.mxu3 }
  0xaf   :  { %v164_v13 = vpop.f32.mrf.mxu0 }
  0xb0   :  { %v853_v30 = vadd.f32 %v244_v62, %v164_v13 }
  0xb2   :  { %v305_v33 = vsel %vm301_vm1, %v853_v30, 0.0 }
  0xb3   :  { %v256_v14 = vpop.f32.mrf.mxu1  ;;  %v306_v39 = vadd.f32 %v305_v33, %v304_v9 }
  0xb5   :  { %v191_v15 = vpop.f32.mrf.mxu2 }
  0xb6   :  { %v277_v16 = vpop.f32.mrf.mxu3 }
  0xb7   :  { %v167_v17 = vpop.f32.mrf.mxu0 }
  0xb8   :  { %v855_v31 = vadd.f32 %v247_v63, %v167_v17 }
  0xba   :  { %v307_v36 = vsel %vm301_vm1, %v855_v31, 0.0 }
  0xbb   :  { %v259_v18 = vpop.f32.mrf.mxu1  ;;  %v308_v43 = vadd.f32 %v307_v36, %v306_v39 }
  0xbd   :  { %v194_v19 = vpop.f32.mrf.mxu2 }
  0xbe   :  { %v280_v20 = vpop.f32.mrf.mxu3 }
  0xbf   :  { %v170_v21 = vpop.f32.mrf.mxu0 }
  0xc0   :  { %v859_v34 = vadd.f32 %v250_v1, %v170_v21 }
  0xc2   :  { %v309_v41 = vsel %vm301_vm1, %v859_v34, 0.0 }
  0xc3   :  { %v262_v22 = vpop.f32.mrf.mxu1  ;;  %v310_v46 = vadd.f32 %v309_v41, %v308_v43 }
  0xc5   :  { %v197_v23 = vpop.f32.mrf.mxu2 }
  0xc6   :  { %v283_v24 = vpop.f32.mrf.mxu3  ;;  %v893_v8 = vadd.f32 %v277_v16, %v197_v23 }
  0xc7   :  { %v173_v25 = vpop.f32.mrf.mxu0 }
  0xc8   :  { %v863_v37 = vadd.f32 %v253_v10, %v173_v25  ;;  %v327_v17 = vsel %vm301_vm1, %v893_v8, 0.0 }
  0xca   :  { %v311_v44 = vsel %vm301_vm1, %v863_v37, 0.0 }
  0xcb   :  { %v265_v26 = vpop.f32.mrf.mxu1  ;;  %v312_v49 = vadd.f32 %v311_v44, %v310_v46 }
  0xcc   :  { %v877_v55 = vadd.f32 %v265_v26, %v185_v2 }
  0xcd   :  { %v200_v27 = vpop.f32.mrf.mxu2 }
  0xce   :  { %v286_v28 = vpop.f32.mrf.mxu3  ;;  %v319_v62 = vsel %vm301_vm1, %v877_v55, 0.0  ;;  %v897_v13 = vadd.f32 %v280_v20, %v200_v27 }
  0xcf   :  { %v176_v29 = vpop.f32.mrf.mxu0 }
  0xd0   :  { %v867_v42 = vadd.f32 %v256_v14, %v176_v29  ;;  %v329_v16 = vsel %vm301_vm1, %v897_v13, 0.0 }
  0xd2   :  { %v313_v48 = vsel %vm301_vm1, %v867_v42, 0.0 }
  0xd3   :  { %v268_v32 = vpop.f32.mrf.mxu1  ;;  %v314_v52 = vadd.f32 %v313_v48, %v312_v49 }
  0xd4   :  { %v881_v58 = vadd.f32 %v268_v32, %v188_v11 }
  0xd5   :  { %v203_v35 = vpop.f32.mrf.mxu2 }
  0xd6   :  { %v289_v38 = vpop.f32.mrf.mxu3  ;;  %v321_v2 = vsel %vm301_vm1, %v881_v58, 0.0 }
  0xd7   :  { %v179_v40 = vpop.f32.mrf.mxu0 }
  0xd8   :  { %v871_v45 = vadd.f32 %v259_v18, %v179_v40  ;;  %v903_v18 = vadd.f32 %v283_v24, %v203_v35 }
  0xda   :  { %v315_v51 = vsel %vm301_vm1, %v871_v45, 0.0  ;;  %v331_v20 = vsel %vm301_vm1, %v903_v18, 0.0 }
  0xdb   :  { %v271_v47 = vpop.f32.mrf.mxu1  ;;  %v316_v57 = vadd.f32 %v315_v51, %v314_v52 }
  0xdc   :  { %v887_v63 = vadd.f32 %v271_v47, %v191_v15 }
  0xdd   :  { %v206_v50 = vpop.f32.mrf.mxu2 }
  0xde   :  { %v292_v53 = vpop.f32.mrf.mxu3  ;;  %v323_v9 = vsel %vm301_vm1, %v887_v63, 0.0  ;;  %v907_v21 = vadd.f32 %v286_v28, %v206_v50 }
  0xdf   :  { %v182_v54 = vpop.f32.mrf.mxu0 }
  0xe0   :  { %v879_v56 = vadd.f32 %v262_v22, %v182_v54  ;;  %v333_v27 = vsel %vm301_vm1, %v907_v21, 0.0 }
  0xe2   :  { %v317_v59 = vsel %vm301_vm1, %v879_v56, 0.0 }
  0xe3   :  { %v318_v60 = vadd.f32 %v317_v59, %v316_v57  ;;  %v274_v61 = vpop.f32.mrf.mxu1 }
  0xe4   :  { %v891_v5 = vadd.f32 %v274_v61, %v194_v19 }
  0xe5   :  { %v320_v0 = vadd.f32 %v319_v62, %v318_v60  ;;  %v209_v1 = vpop.f32.mrf.mxu2 }
  0xe6   :  { %v295_v11 = vpop.f32.mrf.mxu3  ;;  %v325_v14 = vsel %vm301_vm1, %v891_v5, 0.0  ;;  %v911_v25 = vadd.f32 %v289_v38, %v209_v1 }
  0xe7   :  { %v322_v7 = vadd.f32 %v321_v2, %v320_v0  ;;  %v296_v28 = vadd.f32 %v295_v11, %v843_v4 }
  0xe8   :  { %v335_v33 = vsel %vm301_vm1, %v911_v25, 0.0 }
  0xe9   :  { %v324_v10 = vadd.f32 %v323_v9, %v322_v7  ;;  %v339_v40 = vsel %vm301_vm1, %v296_v28, 0.0 }
  0xeb   :  { %v326_v15 = vadd.f32 %v325_v14, %v324_v10 }
  0xed   :  { %v328_v19 = vadd.f32 %v327_v17, %v326_v15  ;;  %v212_v23 = vpop.f32.mrf.mxu2 }
  0xee   :  { %v915_v29 = vadd.f32 %v292_v53, %v212_v23  ;;  %v298_v32 = vpop.f32.mrf.mxu3 }
  0xef   :  { %v330_v22 = vadd.f32 %v329_v16, %v328_v19  ;;  %v299_v38 = vadd.f32 %v298_v32, %v851_v12 }
  0xf0   :  { %v337_v36 = vsel %vm301_vm1, %v915_v29, 0.0 }
  0xf1   :  { %v332_v26 = vadd.f32 %v331_v20, %v330_v22  ;;  %v342_v43 = vsel %vm341_vm2, %v299_v38, 0.0 }
  0xf3   :  { %v334_v24 = vadd.f32 %v333_v27, %v332_v26 }
  0xf5   :  { %v336_v35 = vadd.f32 %v335_v33, %v334_v24 }
  0xf7   :  { %v338_v39 = vadd.f32 %v337_v36, %v336_v35 }
  0xf9   :  { %v340_v41 = vadd.f32 %v339_v40, %v338_v39 }
  0xfb   :  { %v343_v44 = vadd.f32 %v342_v43, %v340_v41 }
  0xfd   :  { %v344_v46 = vrot.slane %v343_v44, 4 }
  0xff   :  { %v345_v47 = vadd.f32 %v344_v46, %v343_v44 }
 0x101   :  { %v346_v48 = vrot.slane %v345_v47, 2 }
 0x103   :  { %v347_v49 = vadd.f32 %v346_v48, %v345_v47 }
 0x105   :  { %v348_v50 = vrot.slane %v347_v49, 1 }
 0x107   :  { %v349_v4 = vadd.f32 %v348_v50, %v347_v49 }
 0x109   :  { %v925_v51 = vmul.f32 0.0061728396, %v349_v4 }
 0x10b   :  { %v929_v52 = vsub.f32 %v841_v3, %v925_v51  ;;  %v933_v12 = vsub.f32 %v845_v6, %v925_v51  ;;  %v937_v53 = vsub.f32 %v853_v30, %v925_v51  ;;  %v940_v54 = vsub.f32 %v296_v28, %v925_v51 }
 0x10c   :  { %v943_v57 = vsub.f32 %v299_v38, %v925_v51  ;;  %v947_v59 = vsub.f32 %v855_v31, %v925_v51  ;;  %v955_v30 = vsub.f32 %v859_v34, %v925_v51  ;;  %v961_v61 = vsub.f32 %v863_v37, %v925_v51 }
 0x10d   :  { %v372_v3 = vmul.f32 %v929_v52, %v929_v52  ;;  %v373_v6 = vmul.f32 %v933_v12, %v933_v12  ;;  %v374_v60 = vmul.f32 %v937_v53, %v937_v53  ;;  %v969_v2 = vsub.f32 %v867_v42, %v925_v51 }
 0x10e   :  { %v375_v31 = vmul.f32 %v947_v59, %v947_v59  ;;  %v376_v34 = vmul.f32 %v955_v30, %v955_v30  ;;  %v976_v37 = vsub.f32 %v871_v45, %v925_v51  ;;  %v377_v10 = vmul.f32 %v961_v61, %v961_v61 }
 0x10f   :  { %v393_v62 = vsel %vm301_vm1, %v372_v3, 0.0  ;;  %v394_v0 = vsel %vm301_vm1, %v373_v6, 0.0  ;;  %v396_v7 = vsel %vm301_vm1, %v374_v60, 0.0  ;;  %v983_v42 = vsub.f32 %v879_v56, %v925_v51 }
 0x110   :  { %v395_v1 = vadd.f32 %v394_v0, %v393_v62  ;;  %v398_v11 = vsel %vm301_vm1, %v375_v31, 0.0  ;;  %v378_v15 = vmul.f32 %v969_v2, %v969_v2  ;;  %v400_v17 = vsel %vm301_vm1, %v376_v34, 0.0 }
 0x111   :  { %v990_v45 = vsub.f32 %v877_v55, %v925_v51  ;;  %v379_v16 = vmul.f32 %v976_v37, %v976_v37  ;;  %v402_v22 = vsel %vm301_vm1, %v377_v10, 0.0  ;;  %v997_v56 = vsub.f32 %v881_v58, %v925_v51 }
 0x112   :  { %v397_v9 = vadd.f32 %v396_v7, %v395_v1  ;;  %v380_v20 = vmul.f32 %v983_v42, %v983_v42  ;;  %v404_v26 = vsel %vm301_vm1, %v378_v15, 0.0  ;;  %v1004_v55 = vsub.f32 %v887_v63, %v925_v51 }
 0x113   :  { %v381_v24 = vmul.f32 %v990_v45, %v990_v45  ;;  %v406_v32 = vsel %vm301_vm1, %v379_v16, 0.0  ;;  %v1011_v58 = vsub.f32 %v891_v5, %v925_v51  ;;  %v382_v28 = vmul.f32 %v997_v56, %v997_v56 }
 0x114   :  { %v399_v14 = vadd.f32 %v398_v11, %v397_v9  ;;  %v408_v35 = vsel %vm301_vm1, %v380_v20, 0.0  ;;  %v1018_v63 = vsub.f32 %v893_v8, %v925_v51  ;;  %v383_v38 = vmul.f32 %v1004_v55, %v1004_v55 }
 0x115   :  { %v410_v39 = vsel %vm301_vm1, %v381_v24, 0.0  ;;  %v1025_v5 = vsub.f32 %v897_v13, %v925_v51  ;;  %v384_v41 = vmul.f32 %v1011_v58, %v1011_v58  ;;  %v412_v43 = vsel %vm301_vm1, %v382_v28, 0.0 }
 0x116   :  { %v401_v19 = vadd.f32 %v400_v17, %v399_v14  ;;  %v1032_v8 = vsub.f32 %v903_v18, %v925_v51  ;;  %v385_v46 = vmul.f32 %v1018_v63, %v1018_v63  ;;  %v414_v47 = vsel %vm301_vm1, %v383_v38, 0.0 }
 0x117   :  { %v1039_v13 = vsub.f32 %v907_v21, %v925_v51  ;;  %v386_v49 = vmul.f32 %v1025_v5, %v1025_v5  ;;  %v416_v50 = vsel %vm301_vm1, %v384_v41, 0.0  ;;  %v1046_v18 = vsub.f32 %v911_v25, %v925_v51 }
 0x118   :  { %v403_v23 = vadd.f32 %v402_v22, %v401_v19  ;;  %v387_v3 = vmul.f32 %v1032_v8, %v1032_v8  ;;  %v418_v6 = vsel %vm301_vm1, %v385_v46, 0.0  ;;  %v1053_v21 = vsub.f32 %v915_v29, %v925_v51 }
 0x119   :  { %v388_v31 = vmul.f32 %v1039_v13, %v1039_v13  ;;  %v420_v62 = vsel %vm301_vm1, %v386_v49, 0.0  ;;  %v389_v25 = vmul.f32 %v1046_v18, %v1046_v18  ;;  %v391_v29 = vmul.f32 %v940_v54, %v940_v54 }
 0x11a   :  { %v405_v27 = vadd.f32 %v404_v26, %v403_v23  ;;  %v422_v1 = vsel %vm301_vm1, %v387_v3, 0.0  ;;  %v390_v7 = vmul.f32 %v1053_v21, %v1053_v21  ;;  %v392_v14 = vmul.f32 %v943_v57, %v943_v57 }
 0x11b   :  { %v424_v9 = vsel %vm301_vm1, %v388_v31, 0.0  ;;  %v426_v51 = vsel %vm301_vm1, %v389_v25, 0.0  ;;  %v430_v19 = vsel %vm301_vm1, %v391_v29, 0.0 }
 0x11c   :  { %v407_v33 = vadd.f32 %v406_v32, %v405_v27  ;;  %v428_v15 = vsel %vm301_vm1, %v390_v7, 0.0  ;;  %v432_v22 = vsel %vm341_vm2, %v392_v14, 0.0 }
 0x11e   :  { %v409_v36 = vadd.f32 %v408_v35, %v407_v33 }
 0x120   :  { %v411_v40 = vadd.f32 %v410_v39, %v409_v36 }
 0x122   :  { %v413_v44 = vadd.f32 %v412_v43, %v411_v40  ;;  %v441_v43 = vld [vmem:[%s1212_s2] sm:$0x1] }
 0x124   :  { %v415_v48 = vadd.f32 %v414_v47, %v413_v44 }
 0x126   :  { %v417_v4 = vadd.f32 %v416_v50, %v415_v48 }
 0x128   :  { %v419_v60 = vadd.f32 %v418_v6, %v417_v4  ;;  %v1080_v4 = vld [vmem:[%s1211_s3] ss:$0 sm:$0xff] }
 0x12a   :  { %v421_v0 = vadd.f32 %v420_v62, %v419_v60 }
 0x12c   :  { %v423_v34 = vadd.f32 %v422_v1, %v421_v0 }
 0x12e   :  { %v425_v10 = vadd.f32 %v424_v9, %v423_v34 }
 0x130   :  { %v427_v11 = vadd.f32 %v426_v51, %v425_v10 }
 0x132   :  { %v429_v17 = vadd.f32 %v428_v15, %v427_v11 }
 0x134   :  { %v431_v16 = vadd.f32 %v430_v19, %v429_v17 }
 0x136   :  { %v433_v23 = vadd.f32 %v432_v22, %v431_v16 }
 0x138   :  { %v434_v20 = vrot.slane %v433_v23, 4 }
 0x13a   :  { %v435_v26 = vadd.f32 %v434_v20, %v433_v23 }
 0x13c   :  { %v436_v27 = vrot.slane %v435_v26, 2 }
 0x13e   :  { %v437_v24 = vadd.f32 %v436_v27, %v435_v26 }
 0x140   :  { %v438_v32 = vrot.slane %v437_v24, 1 }
 0x142   :  { %v439_v33 = vadd.f32 %v438_v32, %v437_v24 }
 0x144   :  { %v440_v28 = vmul.f32 0.0061728396, %v439_v33 }
 0x146   :  { %v442_v35 = vadd.f32 1e-05, %v440_v28 }
 0x148   :  { %605 = vrsqrt.f32 %v442_v35  ;;  %vm449_vm4 = vweird.f32 %v442_v35 }
 0x14e   :  { %v606_v36 = vpop.eup %605 }
 0x14f   :  { %v444_v38 = vmul.f32 %v606_v36, %v442_v35  ;;  %vm450_vm3 = vweird.f32 %v606_v36 }
 0x150   :  { %vm451_vm5 = vmor %vm449_vm4, %vm450_vm3 }
 0x151   :  { %v445_v39 = vmul.f32 %v606_v36, %v444_v38 }
 0x153   :  { %v446_v40 = vmul.f32 0.5, %v445_v39 }
 0x155   :  { %v447_v41 = vsub.f32 1.5, %v446_v40 }
 0x157   :  { %v448_v44 = vmul.f32 %v606_v36, %v447_v41 }
 0x159   :  { %v452_v46 = vsel %vm451_vm5, %v606_v36, %v448_v44 }
 0x15a   :  { %v453_v47 = vmul.f32 %v452_v46, %v441_v43 }
 0x15c   :  { %v455_v48 = vperm.slane %v453_v47, 0 }
 0x15e   :  { %v457_v49 = vmul.f32 %v455_v48, %v929_v52  ;;  %v458_v50 = vmul.f32 %v455_v48, %v933_v12  ;;  %v459_v3 = vmul.f32 %v455_v48, %v937_v53  ;;  %v460_v6 = vmul.f32 %v455_v48, %v947_v59 }
 0x15f   :  { %v461_v60 = vmul.f32 %v455_v48, %v955_v30  ;;  %v476_v31 = vmul.f32 %v455_v48, %v940_v54  ;;  %v462_v62 = vmul.f32 %v455_v48, %v961_v61  ;;  %v1088_v0 = vmul.f32 %v455_v48, %v943_v57 }
 0x160   :  { %v463_v52 = vmul.f32 %v455_v48, %v969_v2  ;;  %v482_v12 = vadd.f32 %v1080_v4, %v457_v49  ;;  %v483_v25 = vadd.f32 %v1080_v4, %v458_v50  ;;  %v464_v1 = vmul.f32 %v455_v48, %v976_v37 }
 0x161   :  { %v484_v53 = vadd.f32 %v1080_v4, %v459_v3  ;;  %v485_v59 = vadd.f32 %v1080_v4, %v460_v6  ;;  %v465_v30 = vmul.f32 %v455_v48, %v983_v42  ;;  %v486_v54 = vadd.f32 %v1080_v4, %v461_v60 }
 0x162   :  { %v466_v61 = vmul.f32 %v455_v48, %v990_v45  ;;  %v487_v57 = vadd.f32 %v1080_v4, %v462_v62  ;;  %v467_v2 = vmul.f32 %v455_v48, %v997_v56  ;;  %v488_v34 = vadd.f32 %v1080_v4, %v463_v52 }
 0x163   :  { %v503_v7 = vmax.f32 %v482_v12, 0.0  ;;  %v504_v9 = vmax.f32 %v483_v25, 0.0  ;;  %v468_v37 = vmul.f32 %v455_v48, %v1004_v55  ;;  %v489_v10 = vadd.f32 %v1080_v4, %v464_v1 }
 0x164   :  { %v505_v29 = vmax.f32 %v484_v53, 0.0  ;;  %v506_v51 = vmax.f32 %v485_v59, 0.0  ;;  %v469_v42 = vmul.f32 %v455_v48, %v1011_v58  ;;  %v490_v11 = vadd.f32 %v1080_v4, %v465_v30 }
 0x165   :  { %v507_v14 = vmax.f32 %v486_v54, 0.0  ;;  %524 = vst.msk [vmem:[%s1213_s4] sm:$0xff] %vm301_vm1, %v503_v7  ;;  %v470_v45 = vmul.f32 %v455_v48, %v1018_v63  ;;  %v491_v56 = vadd.f32 %v1080_v4, %v466_v61  ;;  %v508_v15 = vmax.f32 %v487_v57, 0.0 }
 0x166   :  { %525 = vst.msk [vmem:[%s1213_s4 + $0x8] sm:$0xff] %vm301_vm1, %v504_v9  ;;  %v471_v55 = vmul.f32 %v455_v48, %v1025_v5  ;;  %v492_v58 = vadd.f32 %v1080_v4, %v467_v2  ;;  %v509_v17 = vmax.f32 %v488_v34, 0.0  ;;  %v472_v63 = vmul.f32 %v455_v48, %v1032_v8 }
 0x167   :  { %526 = vst.msk [vmem:[%s1213_s4 + $0x10] sm:$0xff] %vm301_vm1, %v505_v29  ;;  %v493_v19 = vadd.f32 %v1080_v4, %v468_v37  ;;  %v510_v16 = vmax.f32 %v489_v10, 0.0  ;;  %v473_v5 = vmul.f32 %v455_v48, %v1039_v13  ;;  %v494_v22 = vadd.f32 %v1080_v4, %v469_v42 }
 0x168   :  { %527 = vst.msk [vmem:[%s1213_s4 + $0x18] sm:$0xff] %vm301_vm1, %v506_v51  ;;  %v511_v23 = vmax.f32 %v490_v11, 0.0  ;;  %v474_v8 = vmul.f32 %v455_v48, %v1046_v18  ;;  %v495_v20 = vadd.f32 %v1080_v4, %v470_v45  ;;  %v512_v26 = vmax.f32 %v491_v56, 0.0 }
 0x169   :  { %528 = vst.msk [vmem:[%s1213_s4 + $0x20] sm:$0xff] %vm301_vm1, %v507_v14  ;;  %v475_v13 = vmul.f32 %v455_v48, %v1053_v21  ;;  %v496_v27 = vadd.f32 %v1080_v4, %v471_v55  ;;  %v513_v24 = vmax.f32 %v492_v58, 0.0  ;;  %v497_v18 = vadd.f32 %v1080_v4, %v472_v63 }
 0x16a   :  { %529 = vst.msk [vmem:[%s1213_s4 + $0x28] sm:$0xff] %vm301_vm1, %v508_v15  ;;  %v514_v32 = vmax.f32 %v493_v19, 0.0  ;;  %v498_v33 = vadd.f32 %v1080_v4, %v473_v5  ;;  %v515_v28 = vmax.f32 %v494_v22, 0.0  ;;  %v499_v21 = vadd.f32 %v1080_v4, %v474_v8 }
 0x16b   :  { %530 = vst.msk [vmem:[%s1213_s4 + $0x30] sm:$0xff] %vm301_vm1, %v509_v17  ;;  %v516_v35 = vmax.f32 %v495_v20, 0.0  ;;  %v500_v36 = vadd.f32 %v1080_v4, %v475_v13  ;;  %v517_v38 = vmax.f32 %v496_v27, 0.0  ;;  %v501_v39 = vadd.f32 %v1080_v4, %v476_v31 }
 0x16c   :  { %531 = vst.msk [vmem:[%s1213_s4 + $0x38] sm:$0xff] %vm301_vm1, %v510_v16  ;;  %v518_v40 = vmax.f32 %v497_v18, 0.0  ;;  %v502_v41 = vadd.f32 %v1080_v4, %v1088_v0  ;;  %v519_v43 = vmax.f32 %v498_v33, 0.0  ;;  %v520_v44 = vmax.f32 %v499_v21, 0.0 }
 0x16d   :  { %532 = vst.msk [vmem:[%s1213_s4 + $0x40] sm:$0xff] %vm301_vm1, %v511_v23  ;;  %v521_v46 = vmax.f32 %v500_v36, 0.0  ;;  %v522_v47 = vmax.f32 %v501_v39, 0.0 }
 0x16e   :  { %533 = vst.msk [vmem:[%s1213_s4 + $0x48] sm:$0xff] %vm301_vm1, %v512_v26  ;;  %v523_v48 = vmax.f32 %v502_v41, 0.0 }
 0x16f   :  { %534 = vst.msk [vmem:[%s1213_s4 + $0x50] sm:$0xff] %vm301_vm1, %v513_v24 }
 0x170   :  { %535 = vst.msk [vmem:[%s1213_s4 + $0x58] sm:$0xff] %vm301_vm1, %v514_v32 }
 0x171   :  { %536 = vst.msk [vmem:[%s1213_s4 + $0x60] sm:$0xff] %vm301_vm1, %v515_v28 }
 0x172   :  { %537 = vst.msk [vmem:[%s1213_s4 + $0x68] sm:$0xff] %vm301_vm1, %v516_v35 }
 0x173   :  { %538 = vst.msk [vmem:[%s1213_s4 + $0x70] sm:$0xff] %vm301_vm1, %v517_v38 }
 0x174   :  { %539 = vst.msk [vmem:[%s1213_s4 + $0x78] sm:$0xff] %vm301_vm1, %v518_v40 }
 0x175   :  { %540 = vst.msk [vmem:[%s1213_s4 + $0x80] sm:$0xff] %vm301_vm1, %v519_v43 }
 0x176   :  { %541 = vst.msk [vmem:[%s1213_s4 + $0x88] sm:$0xff] %vm301_vm1, %v520_v44 }
 0x177   :  { %542 = vst.msk [vmem:[%s1213_s4 + $0x90] sm:$0xff] %vm301_vm1, %v521_v46 }
 0x178   :  { %543 = vst.msk [vmem:[%s1213_s4 + $0x98] sm:$0xff] %vm301_vm1, %v522_v47 }
 0x179   :  { %544 = vst.msk [vmem:[%s1213_s4 + $0xa0] sm:$0x3] %vm341_vm2, %v523_v48 }

// kernel: encoder_batch_forward.8
= control target key start
LH: loop header
LB: loop body
LE: loop exit
PB: predicated region body
PF: predicated region fallthrough
CT: control target
= control target key end

     0   :  { %vm92_vm0 = vcmask 261120   ;;  %vm300_vm1 = vcmask 523264   ;;  %vm324_vm2 = vcmask 517120   ;;  %s1022_s1 = inlined_call_operand.vmem [shape: f32[288,64], index: 1, kind: input, shape index: {}]   ;;  %s1023_s0 = inlined_call_operand.vmem [shape: f32[98,288], index: 0, kind: input, shape index: {}]   ;;  %s1024_s3 = inlined_call_operand.vmem [shape: f32[1,64], index: 3, kind: input, shape index: {}]   ;;  %s1025_s2 = inlined_call_operand.vmem [shape: f32[1,64], index: 2, kind: input, shape index: {}]   ;;  %s1026_s4 = inlined_call_operand.vmem [shape: f32[98,64], index: 4, kind: output, shape index: {}]  }
   0x1   :  { %v71_v0 = vld [vmem:[%s1022_s1 + $0x78] sm:$0xff]  ;;  %v70_v3 = vld [vmem:[%s1022_s1 + $0x70] sm:$0xff]  ;;  %v69_v6 = vld [vmem:[%s1022_s1 + $0x68] sm:$0xff] }
   0x2   :  { %v551_v1 = vld [vmem:[%s1022_s1 + $0xf8] sm:$0xff]  ;;  %132 = vmatpush.msra.mxu0 %v71_v0  ;;  %481 = vmatpush.msra.mxu3 %v71_v0  ;;  %v564_v4 = vld [vmem:[%s1022_s1 + $0xf0] sm:$0xff]  ;;  %v579_v7 = vld [vmem:[%s1022_s1 + $0xe8] sm:$0xff] }
   0x3   :  { %v556_v2 = vld [vmem:[%s1022_s1 + $0x118] sm:$0xff]  ;;  %v569_v5 = vld [vmem:[%s1022_s1 + $0x110] sm:$0xff]  ;;  %188 = vmatpush.msra.mxu1 %v551_v1  ;;  %v584_v8 = vld [vmem:[%s1022_s1 + $0x108] sm:$0xff] }
   0x4   :  { %256 = vmatpush.msra.mxu2 %v556_v2  ;;  %133 = vmatpush.msra.mxu0 %v70_v3  ;;  %v68_v9 = vld [vmem:[%s1022_s1 + $0x60] sm:$0xff]  ;;  %v19_v12 = vld [vmem:[%s1023_s0 + $0x10] sm:$0xff]  ;;  %v67_v13 = vld [vmem:[%s1022_s1 + $0x58] sm:$0xff] }
   0x5   :  { %482 = vmatpush.msra.mxu3 %v70_v3  ;;  %189 = vmatpush.msra.mxu1 %v564_v4  ;;  %v594_v10 = vld [vmem:[%s1022_s1 + $0xe0] sm:$0xff]  ;;  %v612_v14 = vld [vmem:[%s1022_s1 + $0xd8] sm:$0xff]  ;;  %v66_v15 = vld [vmem:[%s1022_s1 + $0x50] sm:$0xff] }
   0x6   :  { %257 = vmatpush.msra.mxu2 %v569_v5  ;;  %134 = vmatpush.msra.mxu0 %v69_v6  ;;  %v599_v11 = vld [vmem:[%s1022_s1 + $0x100] sm:$0xff]  ;;  %v623_v16 = vld [vmem:[%s1022_s1 + $0xd0] sm:$0xff]  ;;  %v65_v17 = vld [vmem:[%s1022_s1 + $0x48] sm:$0xff] }
   0x7   :  { %483 = vmatpush.msra.mxu3 %v69_v6  ;;  %190 = vmatpush.msra.mxu1 %v579_v7  ;;  %v632_v18 = vld [vmem:[%s1022_s1 + $0xc8] sm:$0xff]  ;;  %v64_v19 = vld [vmem:[%s1022_s1 + $0x40] sm:$0xff]  ;;  %v63_v22 = vld [vmem:[%s1022_s1 + $0x38] sm:$0xff] }
   0x8   :  { %258 = vmatpush.msra.mxu2 %v584_v8  ;;  %135 = vmatpush.msra.mxu0 %v68_v9  ;;  %v641_v20 = vld [vmem:[%s1022_s1 + $0xc0] sm:$0xff]  ;;  %v22_v21 = vld [vmem:[%s1023_s0 + $0x28] sm:$0xff]  ;;  %v653_v23 = vld [vmem:[%s1022_s1 + $0xb8] sm:$0xff] }
   0x9   :  { %484 = vmatpush.msra.mxu3 %v68_v9  ;;  %191 = vmatpush.msra.mxu1 %v594_v10  ;;  %v62_v24 = vld [vmem:[%s1022_s1 + $0x30] sm:$0xff]  ;;  %v61_v26 = vld [vmem:[%s1022_s1 + $0x28] sm:$0xff]  ;;  %v60_v28 = vld [vmem:[%s1022_s1 + $0x20] sm:$0xff] }
   0xa   :  { %259 = vmatpush.msra.mxu2 %v599_v11  ;;  %136 = vmatpush.msra.mxu0 %v67_v13  ;;  %v663_v25 = vld [vmem:[%s1022_s1 + $0xb0] sm:$0xff]  ;;  %v672_v27 = vld [vmem:[%s1022_s1 + $0xa8] sm:$0xff]  ;;  %v681_v29 = vld [vmem:[%s1022_s1 + $0xa0] sm:$0xff] }
   0xb   :  { %468 = vmatmul.msk.f32.vlgmr.msra.gmra.mxu2 %vm92_vm0, %v19_v12  ;;  %485 = vmatpush.msra.mxu3 %v67_v13  ;;  %v25_v30 = vld [vmem:[%s1023_s0 + $0x40] sm:$0xff]  ;;  %v59_v31 = vld [vmem:[%s1022_s1 + $0x18] sm:$0xff]  ;;  %v58_v33 = vld [vmem:[%s1022_s1 + $0x10] sm:$0xff] }
   0xc   :  { %192 = vmatpush.msra.mxu1 %v612_v14  ;;  %137 = vmatpush.msra.mxu0 %v66_v15  ;;  %v693_v32 = vld [vmem:[%s1022_s1 + $0x98] sm:$0xff]  ;;  %v74_v34 = vld [vmem:[%s1022_s1 + $0x90] sm:$0xff]  ;;  %v57_v35 = vld [vmem:[%s1022_s1 + $0x8] sm:$0xff] }
   0xd   :  { %486 = vmatpush.msra.mxu3 %v66_v15  ;;  %v73_v36 = vld [vmem:[%s1022_s1 + $0x88] sm:$0xff]  ;;  %v56_v37 = vld [vmem:[%s1022_s1] sm:$0xff]  ;;  %v44_v40 = vld [vmem:[%s1023_s0 + $0xd8] sm:$0xff] }
   0xe   :  { %193 = vmatpush.msra.mxu1 %v623_v16  ;;  %138 = vmatpush.msra.mxu0 %v65_v17  ;;  %v72_v38 = vld [vmem:[%s1022_s1 + $0x80] sm:$0xff]  ;;  %v18_v41 = vld [vmem:[%s1023_s0 + $0x8] sm:$0xff]  ;;  %v28_v42 = vld [vmem:[%s1023_s0 + $0x58] sm:$0xff] }
   0xf   :  { %487 = vmatpush.msra.mxu3 %v65_v17  ;;  %v17_v39 = vld [vmem:[%s1023_s0] sm:$0xff]  ;;  %v20_v43 = vld [vmem:[%s1023_s0 + $0x18] sm:$0xff]  ;;  %v47_v44 = vld [vmem:[%s1023_s0 + $0xf0] sm:$0xff] }
  0x10   :  { %194 = vmatpush.msra.mxu1 %v632_v18  ;;  %139 = vmatpush.msra.mxu0 %v64_v19  ;;  %v21_v45 = vld [vmem:[%s1023_s0 + $0x20] sm:$0xff]  ;;  %v31_v46 = vld [vmem:[%s1023_s0 + $0x70] sm:$0xff]  ;;  %v50_v48 = vld [vmem:[%s1023_s0 + $0x108] sm:$0xff] }
  0x11   :  { %488 = vmatpush.msra.mxu3 %v64_v19  ;;  %v23_v47 = vld [vmem:[%s1023_s0 + $0x30] sm:$0xff]  ;;  %v24_v49 = vld [vmem:[%s1023_s0 + $0x38] sm:$0xff]  ;;  %v34_v50 = vld [vmem:[%s1023_s0 + $0x88] sm:$0xff] }
  0x12   :  { %195 = vmatpush.msra.mxu1 %v641_v20  ;;  %140 = vmatpush.msra.mxu0 %v63_v22  ;;  %v26_v51 = vld [vmem:[%s1023_s0 + $0x48] sm:$0xff]  ;;  %v53_v52 = vld [vmem:[%s1023_s0 + $0x120] sm:$0x3]  ;;  %v27_v53 = vld [vmem:[%s1023_s0 + $0x50] sm:$0xff] }
  0x13   :  { %469 = vmatmul.msk.f32.gmra.mxu2 %vm92_vm0, %v22_v21  ;;  %489 = vmatpush.msra.mxu3 %v63_v22  ;;  %v37_v54 = vld [vmem:[%s1023_s0 + $0xa0] sm:$0xff]  ;;  %v30_v56 = vld [vmem:[%s1023_s0 + $0x68] sm:$0xff]  ;;  %v40_v58 = vld [vmem:[%s1023_s0 + $0xb8] sm:$0xff] }
  0x14   :  { %196 = vmatpush.msra.mxu1 %v653_v23  ;;  %141 = vmatpush.msra.mxu0 %v62_v24  ;;  %v29_v55 = vld [vmem:[%s1023_s0 + $0x60] sm:$0xff]  ;;  %v32_v59 = vld [vmem:[%s1023_s0 + $0x78] sm:$0xff]  ;;  %v43_v62 = vld [vmem:[%s1023_s0 + $0xd0] sm:$0xff] }
  0x15   :  { %490 = vmatpush.msra.mxu3 %v62_v24  ;;  %v45_v57 = vld [vmem:[%s1023_s0 + $0xe0] sm:$0xff]  ;;  %v48_v61 = vld [vmem:[%s1023_s0 + $0xf8] sm:$0xff]  ;;  %v35_v63 = vld [vmem:[%s1023_s0 + $0x90] sm:$0xff] }
  0x16   :  { %197 = vmatpush.msra.mxu1 %v663_v25  ;;  %142 = vmatpush.msra.mxu0 %v61_v26  ;;  %v33_v60 = vld [vmem:[%s1023_s0 + $0x80] sm:$0xff]  ;;  %v36_v0 = vld [vmem:[%s1023_s0 + $0x98] sm:$0xff]  ;;  %v38_v3 = vld [vmem:[%s1023_s0 + $0xa8] sm:$0xff] }
  0x17   :  { %491 = vmatpush.msra.mxu3 %v61_v26  ;;  %v49_v6 = vld [vmem:[%s1023_s0 + $0x100] sm:$0xff]  ;;  %v55_v9 = vld [vmem:[%s1023_s0 + $0x130] sm:$0x3] }
  0x18   :  { %198 = vmatpush.msra.mxu1 %v672_v27  ;;  %143 = vmatpush.msra.mxu0 %v60_v28 }
  0x19   :  { %492 = vmatpush.msra.mxu3 %v60_v28 }
  0x1a   :  { %199 = vmatpush.msra.mxu1 %v681_v29  ;;  %144 = vmatpush.msra.mxu0 %v59_v31 }
  0x1b   :  { %470 = vmatmul.msk.f32.gmra.mxu2 %vm92_vm0, %v25_v30  ;;  %493 = vmatpush.msra.mxu3 %v59_v31 }
  0x1c   :  { %200 = vmatpush.msra.mxu1 %v693_v32  ;;  %145 = vmatpush.msra.mxu0 %v58_v33 }
  0x1d   :  { %494 = vmatpush.msra.mxu3 %v58_v33 }
  0x1e   :  { %201 = vmatpush.msra.mxu1 %v74_v34  ;;  %146 = vmatpush.msra.mxu0 %v57_v35 }
  0x1f   :  { %495 = vmatpush.msra.mxu3 %v57_v35 }
  0x20   :  { %202 = vmatpush.msra.mxu1 %v73_v36  ;;  %147 = vmatpush.msra.mxu0 %v56_v37 }
  0x21   :  { %496 = vmatpush.msra.mxu3 %v56_v37  ;;  %148 = vmatmul.f32.vlgmr.msra.gmra.mxu0 %v17_v39 }
  0x22   :  { %203 = vmatpush.msra.mxu1 %v72_v38  ;;  %175 = vmatmul.f32.vlgmr.msra.gmra.mxu3 %v44_v40 }
  0x23   :  { %204 = vmatmul.f32.vlgmr.msra.gmra.mxu1 %v18_v41  ;;  %471 = vmatmul.msk.f32.gmra.mxu2 %vm92_vm0, %v28_v42 }
  0x24   :  { %497 = vmatpush.msrb.mxu3 %v551_v1  ;;  %v51_v1 = vld [vmem:[%s1023_s0 + $0x110] sm:$0xff] }
  0x26   :  { %498 = vmatpush.msrb.mxu3 %v564_v4  ;;  %v39_v4 = vld [vmem:[%s1023_s0 + $0xb0] sm:$0xff] }
  0x28   :  { %499 = vmatpush.msrb.mxu3 %v579_v7  ;;  %v41_v7 = vld [vmem:[%s1023_s0 + $0xc0] sm:$0xff] }
  0x29   :  { %151 = vmatmul.f32.gmra.mxu0 %v20_v43 }
  0x2a   :  { %500 = vmatpush.msrb.mxu3 %v594_v10  ;;  %v52_v10 = vld [vmem:[%s1023_s0 + $0x118] sm:$0xff] }
  0x2b   :  { %178 = vmatmul.f32.gmra.mxu3 %v47_v44  ;;  %207 = vmatmul.f32.gmra.mxu1 %v21_v45 }
  0x2c   :  { %472 = vmatmul.msk.f32.gmra.mxu2 %vm92_vm0, %v31_v46  ;;  %501 = vmatpush.msrb.mxu3 %v612_v14 }
  0x2e   :  { %502 = vmatpush.msrb.mxu3 %v623_v16 }
  0x30   :  { %503 = vmatpush.msrb.mxu3 %v632_v18 }
  0x31   :  { %154 = vmatmul.f32.gmra.mxu0 %v23_v47 }
  0x32   :  { %504 = vmatpush.msrb.mxu3 %v641_v20 }
  0x33   :  { %181 = vmatmul.f32.gmra.mxu3 %v50_v48  ;;  %210 = vmatmul.f32.gmra.mxu1 %v24_v49 }
  0x34   :  { %473 = vmatmul.msk.f32.gmra.mxu2 %vm92_vm0, %v34_v50  ;;  %505 = vmatpush.msrb.mxu3 %v653_v23 }
  0x36   :  { %506 = vmatpush.msrb.mxu3 %v663_v25 }
  0x38   :  { %507 = vmatpush.msrb.mxu3 %v672_v27 }
  0x39   :  { %157 = vmatmul.f32.gmra.mxu0 %v26_v51 }
  0x3a   :  { %508 = vmatpush.msrb.mxu3 %v681_v29 }
  0x3b   :  { %184 = vmatmul.f32.gmra.mxu3 %v53_v52  ;;  %213 = vmatmul.f32.gmra.mxu1 %v27_v53 }
  0x3c   :  { %474 = vmatmul.msk.f32.gmra.mxu2 %vm92_vm0, %v37_v54  ;;  %509 = vmatpush.msrb.mxu3 %v693_v32 }
  0x3e   :  { %510 = vmatpush.msrb.mxu3 %v74_v34 }
  0x40   :  { %511 = vmatpush.msrb.mxu3 %v73_v36 }
  0x41   :  { %160 = vmatmul.f32.gmra.mxu0 %v29_v55 }
  0x42   :  { %512 = vmatpush.msrb.mxu3 %v72_v38 }
  0x43   :  { %216 = vmatmul.f32.gmra.mxu1 %v30_v56  ;;  %231 = vmatmul.f32.vlgmr.msrb.gmra.mxu3 %v45_v57 }
  0x44   :  { %475 = vmatmul.msk.f32.gmra.mxu2 %vm92_vm0, %v40_v58  ;;  %513 = vmatpush.msra.mxu3 %v556_v2  ;;  %v46_v2 = vld [vmem:[%s1023_s0 + $0xe8] sm:$0xff] }
  0x46   :  { %514 = vmatpush.msra.mxu3 %v569_v5  ;;  %v54_v5 = vld [vmem:[%s1023_s0 + $0x128] sm:$0x3] }
  0x48   :  { %515 = vmatpush.msra.mxu3 %v584_v8  ;;  %v42_v8 = vld [vmem:[%s1023_s0 + $0xc8] sm:$0xff] }
  0x49   :  { %163 = vmatmul.f32.gmra.mxu0 %v32_v59 }
  0x4a   :  { %516 = vmatpush.msra.mxu3 %v599_v11 }
  0x4b   :  { %219 = vmatmul.f32.gmra.mxu1 %v33_v60  ;;  %234 = vmatmul.f32.gmra.mxu3 %v48_v61 }
  0x4c   :  { %476 = vmatmul.msk.f32.gmra.mxu2 %vm92_vm0, %v43_v62 }
  0x51   :  { %166 = vmatmul.f32.gmra.mxu0 %v35_v63 }
  0x53   :  { %222 = vmatmul.f32.gmra.mxu1 %v36_v0  ;;  %237 = vmatmul.f32.gmra.mxu3 %v51_v1 }
  0x54   :  { %477 = vmatmul.msk.f32.gmra.mxu2 %vm92_vm0, %v46_v2 }
  0x59   :  { %169 = vmatmul.f32.gmra.mxu0 %v38_v3 }
  0x5b   :  { %225 = vmatmul.f32.gmra.mxu1 %v39_v4  ;;  %240 = vmatmul.f32.gmra.mxu3 %v54_v5 }
  0x5c   :  { %478 = vmatmul.msk.f32.gmra.mxu2 %vm92_vm0, %v49_v6 }
  0x61   :  { %172 = vmatmul.f32.gmra.mxu0 %v41_v7 }
  0x63   :  { %228 = vmatmul.f32.gmra.mxu1 %v42_v8  ;;  %480 = vmatmul.msk.f32.vlgmr.msra.gmra.mxu3 %vm92_vm0, %v55_v9 }
  0x64   :  { %479 = vmatmul.msk.f32.gmra.mxu2 %vm92_vm0, %v52_v10 }
  0x8e   :  { %v261_v11 = vpop.f32.mrf.mxu2 }
  0x96   :  { %v264_v12 = vpop.f32.mrf.mxu2 }
  0x9e   :  { %v267_v13 = vpop.f32.mrf.mxu2  ;;  %v149_v14 = vpop.f32.mrf.mxu0 }
  0xa0   :  { %v205_v15 = vpop.f32.mrf.mxu1 }
  0xa1   :  { %v206_v38 = vadd.f32 %v205_v15, %v149_v14 }
  0xa3   :  { %v857_v45 = vadd.f32 %v261_v11, %v206_v38 }
  0xa5   :  { %v176_v16 = vpop.f32.mrf.mxu3  ;;  %v301_v52 = vsel %vm300_vm1, %v857_v45, 0.0 }
  0xa6   :  { %v270_v17 = vpop.f32.mrf.mxu2  ;;  %v152_v18 = vpop.f32.mrf.mxu0 }
  0xa8   :  { %v208_v19 = vpop.f32.mrf.mxu1 }
  0xa9   :  { %v209_v36 = vadd.f32 %v208_v19, %v152_v18 }
  0xab   :  { %v855_v43 = vadd.f32 %v264_v12, %v209_v36 }
  0xad   :  { %v302_v48 = vsel %vm300_vm1, %v855_v43, 0.0 }
  0xae   :  { %v179_v20 = vpop.f32.mrf.mxu3  ;;  %v155_v22 = vpop.f32.mrf.mxu0  ;;  %v303_v58 = vadd.f32 %v302_v48, %v301_v52 }
  0xaf   :  { %v273_v21 = vpop.f32.mrf.mxu2 }
  0xb0   :  { %v211_v23 = vpop.f32.mrf.mxu1 }
  0xb1   :  { %v212_v39 = vadd.f32 %v211_v23, %v155_v22 }
  0xb3   :  { %v859_v46 = vadd.f32 %v267_v13, %v212_v39 }
  0xb5   :  { %v304_v53 = vsel %vm300_vm1, %v859_v46, 0.0 }
  0xb6   :  { %v851_v24 = vpop.f32.mrf.mxu3  ;;  %v158_v26 = vpop.f32.mrf.mxu0  ;;  %v305_v63 = vadd.f32 %v304_v53, %v303_v58 }
  0xb7   :  { %v276_v25 = vpop.f32.mrf.mxu2 }
  0xb8   :  { %v214_v27 = vpop.f32.mrf.mxu1 }
  0xb9   :  { %v215_v44 = vadd.f32 %v214_v27, %v158_v26 }
  0xbb   :  { %v863_v49 = vadd.f32 %v270_v17, %v215_v44 }
  0xbd   :  { %v306_v60 = vsel %vm300_vm1, %v863_v49, 0.0 }
  0xbe   :  { %v853_v28 = vpop.f32.mrf.mxu3  ;;  %v161_v30 = vpop.f32.mrf.mxu0  ;;  %v307_v2 = vadd.f32 %v306_v60, %v305_v63 }
  0xbf   :  { %v279_v29 = vpop.f32.mrf.mxu2 }
  0xc0   :  { %v217_v31 = vpop.f32.mrf.mxu1 }
  0xc1   :  { %v218_v47 = vadd.f32 %v217_v31, %v161_v30 }
  0xc3   :  { %v274_v54 = vadd.f32 %v273_v21, %v218_v47 }
  0xc5   :  { %v308_v0 = vsel %vm300_vm1, %v274_v54, 0.0 }
  0xc6   :  { %v232_v32 = vpop.f32.mrf.mxu3  ;;  %v164_v34 = vpop.f32.mrf.mxu0  ;;  %v309_v5 = vadd.f32 %v308_v0, %v307_v2 }
  0xc7   :  { %v282_v33 = vpop.f32.mrf.mxu2  ;;  %v233_v12 = vadd.f32 %v232_v32, %v176_v16 }
  0xc8   :  { %v220_v35 = vpop.f32.mrf.mxu1 }
  0xc9   :  { %v221_v50 = vadd.f32 %v220_v35, %v164_v34 }
  0xcb   :  { %v277_v61 = vadd.f32 %v276_v25, %v221_v50 }
  0xcd   :  { %v310_v3 = vsel %vm300_vm1, %v277_v61, 0.0 }
  0xce   :  { %v235_v37 = vpop.f32.mrf.mxu3  ;;  %v167_v41 = vpop.f32.mrf.mxu0  ;;  %v311_v10 = vadd.f32 %v310_v3, %v309_v5 }
  0xcf   :  { %v285_v40 = vpop.f32.mrf.mxu2  ;;  %v236_v17 = vadd.f32 %v235_v37, %v179_v20 }
  0xd0   :  { %v223_v42 = vpop.f32.mrf.mxu1 }
  0xd1   :  { %v224_v55 = vadd.f32 %v223_v42, %v167_v41 }
  0xd3   :  { %v280_v1 = vadd.f32 %v279_v29, %v224_v55 }
  0xd5   :  { %v312_v7 = vsel %vm300_vm1, %v280_v1, 0.0 }
  0xd6   :  { %v238_v51 = vpop.f32.mrf.mxu3  ;;  %v170_v57 = vpop.f32.mrf.mxu0  ;;  %v313_v15 = vadd.f32 %v312_v7, %v311_v10 }
  0xd7   :  { %v288_v56 = vpop.f32.mrf.mxu2  ;;  %v239_v25 = vadd.f32 %v238_v51, %v851_v24 }
  0xd8   :  { %v226_v59 = vpop.f32.mrf.mxu1  ;;  %v289_v18 = vadd.f32 %v288_v56, %v233_v12 }
  0xd9   :  { %v227_v62 = vadd.f32 %v226_v59, %v170_v57 }
  0xda   :  { %v318_v29 = vsel %vm300_vm1, %v289_v18, 0.0 }
  0xdb   :  { %v283_v4 = vadd.f32 %v282_v33, %v227_v62 }
  0xdd   :  { %v314_v13 = vsel %vm300_vm1, %v283_v4, 0.0 }
  0xde   :  { %v241_v6 = vpop.f32.mrf.mxu3  ;;  %v173_v9 = vpop.f32.mrf.mxu0  ;;  %v315_v21 = vadd.f32 %v314_v13, %v313_v15 }
  0xdf   :  { %v291_v8 = vpop.f32.mrf.mxu2  ;;  %v242_v30 = vadd.f32 %v241_v6, %v853_v28 }
  0xe0   :  { %v229_v11 = vpop.f32.mrf.mxu1  ;;  %v292_v22 = vadd.f32 %v291_v8, %v236_v17 }
  0xe1   :  { %v230_v14 = vadd.f32 %v229_v11, %v173_v9 }
  0xe2   :  { %v320_v33 = vsel %vm300_vm1, %v292_v22, 0.0 }
  0xe3   :  { %v286_v19 = vadd.f32 %v285_v40, %v230_v14 }
  0xe5   :  { %v316_v23 = vsel %vm300_vm1, %v286_v19, 0.0 }
  0xe6   :  { %v317_v26 = vadd.f32 %v316_v23, %v315_v21  ;;  %v297_v27 = vpop.f32.mrf.mxu3 }
  0xe7   :  { %v294_v16 = vpop.f32.mrf.mxu2  ;;  %v298_v20 = vadd.f32 %v297_v27, %v242_v30 }
  0xe8   :  { %v295_v31 = vadd.f32 %v294_v16, %v239_v25  ;;  %v319_v32 = vadd.f32 %v318_v29, %v317_v26 }
  0xe9   :  { %v325_v37 = vsel %vm324_vm2, %v298_v20, 0.0 }
  0xea   :  { %v321_v34 = vadd.f32 %v320_v33, %v319_v32  ;;  %v322_v35 = vsel %vm300_vm1, %v295_v31, 0.0 }
  0xec   :  { %v323_v36 = vadd.f32 %v322_v35, %v321_v34 }
  0xee   :  { %v326_v24 = vadd.f32 %v325_v37, %v323_v36 }
  0xf0   :  { %v327_v38 = vrot.slane %v326_v24, 4 }
  0xf2   :  { %v328_v39 = vadd.f32 %v327_v38, %v326_v24 }
  0xf4   :  { %v329_v40 = vrot.slane %v328_v39, 2 }
  0xf6   :  { %v330_v41 = vadd.f32 %v329_v40, %v328_v39 }
  0xf8   :  { %v331_v42 = vrot.slane %v330_v41, 1 }
  0xfa   :  { %v332_v28 = vadd.f32 %v331_v42, %v330_v41 }
  0xfc   :  { %v333_v44 = vmul.f32 0.010204081, %v332_v28 }
  0xfe   :  { %v883_v47 = vsub.f32 %v857_v45, %v333_v44  ;;  %v886_v48 = vsub.f32 %v855_v43, %v333_v44  ;;  %v889_v50 = vsub.f32 %v859_v46, %v333_v44  ;;  %v892_v51 = vsub.f32 %v863_v49, %v333_v44 }
  0xff   :  { %v898_v55 = vsub.f32 %v274_v54, %v333_v44  ;;  %v902_v56 = vsub.f32 %v277_v61, %v333_v44  ;;  %v908_v58 = vsub.f32 %v280_v1, %v333_v44  ;;  %v913_v62 = vsub.f32 %v283_v4, %v333_v44 }
 0x100   :  { %v347_v52 = vmul.f32 %v883_v47, %v883_v47  ;;  %v348_v53 = vmul.f32 %v886_v48, %v886_v48  ;;  %v349_v45 = vmul.f32 %v889_v50, %v889_v50  ;;  %v350_v43 = vmul.f32 %v892_v51, %v892_v51 }
 0x101   :  { %v351_v59 = vmul.f32 %v898_v55, %v898_v55  ;;  %v352_v61 = vmul.f32 %v902_v56, %v902_v56  ;;  %v918_v2 = vsub.f32 %v286_v19, %v333_v44  ;;  %v353_v1 = vmul.f32 %v908_v58, %v908_v58 }
 0x102   :  { %v360_v46 = vsel %vm300_vm1, %v347_v52, 0.0  ;;  %v361_v49 = vsel %vm300_vm1, %v348_v53, 0.0  ;;  %v363_v54 = vsel %vm300_vm1, %v349_v45, 0.0  ;;  %v365_v63 = vsel %vm300_vm1, %v350_v43, 0.0  ;;  %v392_v52 = vld [vmem:[%s1025_s2] sm:$0x1] }
 0x103   :  { %v362_v57 = vadd.f32 %v361_v49, %v360_v46  ;;  %v367_v3 = vsel %vm300_vm1, %v351_v59, 0.0  ;;  %v923_v6 = vsub.f32 %v289_v18, %v333_v44  ;;  %v354_v4 = vmul.f32 %v913_v62, %v913_v62  ;;  %v517_v49 = vld [vmem:[%s1024_s3] ss:$0 sm:$0xff] }
 0x104   :  { %v369_v7 = vsel %vm300_vm1, %v352_v61, 0.0  ;;  %v928_v9 = vsub.f32 %v292_v22, %v333_v44  ;;  %v355_v10 = vmul.f32 %v918_v2, %v918_v2  ;;  %v371_v11 = vsel %vm300_vm1, %v353_v1, 0.0 }
 0x105   :  { %v364_v60 = vadd.f32 %v363_v54, %v362_v57  ;;  %v933_v13 = vsub.f32 %v295_v31, %v333_v44  ;;  %v356_v14 = vmul.f32 %v923_v6, %v923_v6  ;;  %v373_v15 = vsel %vm300_vm1, %v354_v4, 0.0 }
 0x106   :  { %v938_v18 = vsub.f32 %v298_v20, %v333_v44  ;;  %v357_v19 = vmul.f32 %v928_v9, %v928_v9  ;;  %v375_v21 = vsel %vm300_vm1, %v355_v10, 0.0 }
 0x107   :  { %v366_v0 = vadd.f32 %v365_v63, %v364_v60  ;;  %v358_v23 = vmul.f32 %v933_v13, %v933_v13  ;;  %v377_v25 = vsel %vm300_vm1, %v356_v14, 0.0 }
 0x108   :  { %v359_v27 = vmul.f32 %v938_v18, %v938_v18  ;;  %v379_v29 = vsel %vm300_vm1, %v357_v19, 0.0 }
 0x109   :  { %v368_v5 = vadd.f32 %v367_v3, %v366_v0  ;;  %v381_v16 = vsel %vm300_vm1, %v358_v23, 0.0 }
 0x10a   :  { %v383_v32 = vsel %vm324_vm2, %v359_v27, 0.0 }
 0x10b   :  { %v370_v8 = vadd.f32 %v369_v7, %v368_v5 }
 0x10d   :  { %v372_v12 = vadd.f32 %v371_v11, %v370_v8 }
 0x10f   :  { %v374_v17 = vadd.f32 %v373_v15, %v372_v12 }
 0x111   :  { %v376_v22 = vadd.f32 %v375_v21, %v374_v17 }
 0x113   :  { %v378_v26 = vadd.f32 %v377_v25, %v376_v22 }
 0x115   :  { %v380_v30 = vadd.f32 %v379_v29, %v378_v26 }
 0x117   :  { %v382_v31 = vadd.f32 %v381_v16, %v380_v30 }
 0x119   :  { %v384_v33 = vadd.f32 %v383_v32, %v382_v31 }
 0x11b   :  { %v385_v20 = vrot.slane %v384_v33, 4 }
 0x11d   :  { %v386_v34 = vadd.f32 %v385_v20, %v384_v33 }
 0x11f   :  { %v387_v35 = vrot.slane %v386_v34, 2 }
 0x121   :  { %v388_v36 = vadd.f32 %v387_v35, %v386_v34 }
 0x123   :  { %v389_v37 = vrot.slane %v388_v36, 1 }
 0x125   :  { %v390_v24 = vadd.f32 %v389_v37, %v388_v36 }
 0x127   :  { %v391_v38 = vmul.f32 0.010204081, %v390_v24 }
 0x129   :  { %v393_v39 = vadd.f32 1e-05, %v391_v38 }
 0x12b   :  { %518 = vrsqrt.f32 %v393_v39  ;;  %vm400_vm4 = vweird.f32 %v393_v39 }
 0x131   :  { %v519_v40 = vpop.eup %518 }
 0x132   :  { %v395_v41 = vmul.f32 %v519_v40, %v393_v39  ;;  %vm401_vm3 = vweird.f32 %v519_v40 }
 0x133   :  { %vm402_vm5 = vmor %vm400_vm4, %vm401_vm3 }
 0x134   :  { %v396_v42 = vmul.f32 %v519_v40, %v395_v41 }
 0x136   :  { %v397_v28 = vmul.f32 0.5, %v396_v42 }
 0x138   :  { %v398_v44 = vsub.f32 1.5, %v397_v28 }
 0x13a   :  { %v399_v53 = vmul.f32 %v519_v40, %v398_v44 }
 0x13c   :  { %v403_v45 = vsel %vm402_vm5, %v519_v40, %v399_v53 }
 0x13d   :  { %v404_v43 = vmul.f32 %v403_v45, %v392_v52 }
 0x13f   :  { %v406_v46 = vperm.slane %v404_v43, 0 }
 0x141   :  { %v408_v57 = vmul.f32 %v406_v46, %v883_v47  ;;  %v409_v59 = vmul.f32 %v406_v46, %v886_v48  ;;  %v410_v54 = vmul.f32 %v406_v46, %v889_v50  ;;  %v411_v60 = vmul.f32 %v406_v46, %v892_v51 }
 0x142   :  { %v412_v61 = vmul.f32 %v406_v46, %v898_v55  ;;  %v413_v63 = vmul.f32 %v406_v46, %v902_v56  ;;  %v414_v0 = vmul.f32 %v406_v46, %v908_v58  ;;  %v415_v1 = vmul.f32 %v406_v46, %v913_v62 }
 0x143   :  { %v425_v3 = vadd.f32 %v517_v49, %v408_v57  ;;  %v426_v5 = vadd.f32 %v517_v49, %v409_v59  ;;  %v427_v4 = vadd.f32 %v517_v49, %v410_v54  ;;  %v416_v7 = vmul.f32 %v406_v46, %v918_v2 }
 0x144   :  { %v428_v47 = vadd.f32 %v517_v49, %v411_v60  ;;  %v429_v8 = vadd.f32 %v517_v49, %v412_v61  ;;  %v417_v48 = vmul.f32 %v406_v46, %v923_v6  ;;  %v430_v50 = vadd.f32 %v517_v49, %v413_v63 }
 0x145   :  { %v418_v51 = vmul.f32 %v406_v46, %v928_v9  ;;  %v431_v10 = vadd.f32 %v517_v49, %v414_v0  ;;  %v438_v55 = vmax.f32 %v425_v3, 0.0  ;;  %v439_v11 = vmax.f32 %v426_v5, 0.0 }
 0x146   :  { %v419_v56 = vmul.f32 %v406_v46, %v933_v13  ;;  %v432_v58 = vadd.f32 %v517_v49, %v415_v1  ;;  %v440_v12 = vmax.f32 %v427_v4, 0.0  ;;  %v441_v62 = vmax.f32 %v428_v47, 0.0 }
 0x147   :  { %v420_v14 = vmul.f32 %v406_v46, %v938_v18  ;;  %v433_v15 = vadd.f32 %v517_v49, %v416_v7  ;;  %v442_v17 = vmax.f32 %v429_v8, 0.0  ;;  %451 = vst.msk [vmem:[%s1026_s4] sm:$0xff] %vm300_vm1, %v438_v55  ;;  %v434_v2 = vadd.f32 %v517_v49, %v417_v48 }
 0x148   :  { %v443_v6 = vmax.f32 %v430_v50, 0.0  ;;  %452 = vst.msk [vmem:[%s1026_s4 + $0x8] sm:$0xff] %vm300_vm1, %v439_v11  ;;  %v435_v9 = vadd.f32 %v517_v49, %v418_v51  ;;  %v444_v13 = vmax.f32 %v431_v10, 0.0  ;;  %v436_v18 = vadd.f32 %v517_v49, %v419_v56 }
 0x149   :  { %453 = vst.msk [vmem:[%s1026_s4 + $0x10] sm:$0xff] %vm300_vm1, %v440_v12  ;;  %v445_v19 = vmax.f32 %v432_v58, 0.0  ;;  %v437_v21 = vadd.f32 %v517_v49, %v420_v14  ;;  %v446_v22 = vmax.f32 %v433_v15, 0.0  ;;  %v447_v23 = vmax.f32 %v434_v2, 0.0 }
 0x14a   :  { %454 = vst.msk [vmem:[%s1026_s4 + $0x18] sm:$0xff] %vm300_vm1, %v441_v62  ;;  %v448_v25 = vmax.f32 %v435_v9, 0.0  ;;  %v449_v26 = vmax.f32 %v436_v18, 0.0 }
 0x14b   :  { %455 = vst.msk [vmem:[%s1026_s4 + $0x20] sm:$0xff] %vm300_vm1, %v442_v17  ;;  %v450_v27 = vmax.f32 %v437_v21, 0.0 }
 0x14c   :  { %456 = vst.msk [vmem:[%s1026_s4 + $0x28] sm:$0xff] %vm300_vm1, %v443_v6 }
 0x14d   :  { %457 = vst.msk [vmem:[%s1026_s4 + $0x30] sm:$0xff] %vm300_vm1, %v444_v13 }
 0x14e   :  { %458 = vst.msk [vmem:[%s1026_s4 + $0x38] sm:$0xff] %vm300_vm1, %v445_v19 }
 0x14f   :  { %459 = vst.msk [vmem:[%s1026_s4 + $0x40] sm:$0xff] %vm300_vm1, %v446_v22 }
 0x150   :  { %460 = vst.msk [vmem:[%s1026_s4 + $0x48] sm:$0xff] %vm300_vm1, %v447_v23 }
 0x151   :  { %461 = vst.msk [vmem:[%s1026_s4 + $0x50] sm:$0xff] %vm300_vm1, %v448_v25 }
 0x152   :  { %462 = vst.msk [vmem:[%s1026_s4 + $0x58] sm:$0xff] %vm300_vm1, %v449_v26 }
 0x153   :  { %463 = vst.msk [vmem:[%s1026_s4 + $0x60] sm:$0x3] %vm324_vm2, %v450_v27 }

// kernel: encoder_batch_forward.9
= control target key start
LH: loop header
LB: loop body
LE: loop exit
PB: predicated region body
PF: predicated region fallthrough
CT: control target
= control target key end

     0   :  { %vm124_vm0 = vcmask 523264   ;;  %vm341_vm1 = vcmask 1041408   ;;  %s855_s1 = inlined_call_operand.vmem [shape: f32[576,128], index: 1, kind: input, shape index: {}]   ;;  %s856_s0 = inlined_call_operand.vmem [shape: f32[50,576], index: 0, kind: input, shape index: {}]   ;;  %s857_s3 = inlined_call_operand.vmem [shape: f32[1,128], index: 3, kind: input, shape index: {}]   ;;  %s858_s2 = inlined_call_operand.vmem [shape: f32[1,128], index: 2, kind: input, shape index: {}]   ;;  %s859_s4 = inlined_call_operand.vmem [shape: f32[50,128], index: 4, kind: output, shape index: {}]  }
   0x1   :  { %v67_v0 = vld [vmem:[%s855_s1 + $0x78] sm:$0xff]  ;;  %v66_v1 = vld [vmem:[%s855_s1 + $0x70] sm:$0xff]  ;;  %v65_v2 = vld [vmem:[%s855_s1 + $0x68] sm:$0xff] }
   0x2   :  { %438 = vmatpush.msra.mxu1 %v67_v0  ;;  %439 = vmatpush.msra.mxu2 %v67_v0  ;;  %v64_v3 = vld [vmem:[%s855_s1 + $0x60] sm:$0xff]  ;;  %v63_v4 = vld [vmem:[%s855_s1 + $0x58] sm:$0xff]  ;;  %v114_v6 = vld [vmem:[%s855_s1 + $0x1f0] sm:$0xff] }
   0x3   :  { %146 = vmatpush.msra.mxu0 %v67_v0  ;;  %v115_v5 = vld [vmem:[%s855_s1 + $0x1f8] sm:$0xff]  ;;  %v62_v7 = vld [vmem:[%s855_s1 + $0x50] sm:$0xff]  ;;  %v113_v8 = vld [vmem:[%s855_s1 + $0x1e8] sm:$0xff] }
   0x4   :  { %440 = vmatpush.msra.mxu1 %v66_v1  ;;  %441 = vmatpush.msra.mxu2 %v66_v1  ;;  %v61_v9 = vld [vmem:[%s855_s1 + $0x48] sm:$0xff]  ;;  %v112_v10 = vld [vmem:[%s855_s1 + $0x1e0] sm:$0xff]  ;;  %v111_v12 = vld [vmem:[%s855_s1 + $0x1d8] sm:$0xff] }
   0x5   :  { %147 = vmatpush.msra.mxu0 %v66_v1  ;;  %260 = vmatpush.msra.mxu3 %v115_v5  ;;  %v60_v11 = vld [vmem:[%s855_s1 + $0x40] sm:$0xff]  ;;  %v59_v13 = vld [vmem:[%s855_s1 + $0x38] sm:$0xff]  ;;  %v110_v14 = vld [vmem:[%s855_s1 + $0x1d0] sm:$0xff] }
   0x6   :  { %442 = vmatpush.msra.mxu1 %v65_v2  ;;  %443 = vmatpush.msra.mxu2 %v65_v2  ;;  %v58_v15 = vld [vmem:[%s855_s1 + $0x30] sm:$0xff]  ;;  %v109_v16 = vld [vmem:[%s855_s1 + $0x1c8] sm:$0xff]  ;;  %v108_v18 = vld [vmem:[%s855_s1 + $0x1c0] sm:$0xff] }
   0x7   :  { %148 = vmatpush.msra.mxu0 %v65_v2  ;;  %261 = vmatpush.msra.mxu3 %v114_v6  ;;  %v57_v17 = vld [vmem:[%s855_s1 + $0x28] sm:$0xff]  ;;  %v56_v19 = vld [vmem:[%s855_s1 + $0x20] sm:$0xff]  ;;  %v107_v20 = vld [vmem:[%s855_s1 + $0x1b8] sm:$0xff] }
   0x8   :  { %444 = vmatpush.msra.mxu1 %v64_v3  ;;  %445 = vmatpush.msra.mxu2 %v64_v3  ;;  %v55_v21 = vld [vmem:[%s855_s1 + $0x18] sm:$0xff]  ;;  %v106_v22 = vld [vmem:[%s855_s1 + $0x1b0] sm:$0xff]  ;;  %v105_v24 = vld [vmem:[%s855_s1 + $0x1a8] sm:$0xff] }
   0x9   :  { %149 = vmatpush.msra.mxu0 %v64_v3  ;;  %262 = vmatpush.msra.mxu3 %v113_v8  ;;  %v54_v23 = vld [vmem:[%s855_s1 + $0x10] sm:$0xff]  ;;  %v53_v25 = vld [vmem:[%s855_s1 + $0x8] sm:$0xff]  ;;  %v104_v26 = vld [vmem:[%s855_s1 + $0x1a0] sm:$0xff] }
   0xa   :  { %446 = vmatpush.msra.mxu1 %v63_v4  ;;  %447 = vmatpush.msra.mxu2 %v63_v4  ;;  %v52_v27 = vld [vmem:[%s855_s1] sm:$0xff]  ;;  %v27_v28 = vld [vmem:[%s856_s0 + $0x50] sm:$0xff]  ;;  %v99_v29 = vld [vmem:[%s855_s1 + $0x178] sm:$0xff] }
   0xb   :  { %150 = vmatpush.msra.mxu0 %v63_v4  ;;  %263 = vmatpush.msra.mxu3 %v112_v10  ;;  %v83_v30 = vld [vmem:[%s855_s1 + $0xf8] sm:$0xff]  ;;  %v47_v31 = vld [vmem:[%s856_s0 + $0xf0] sm:$0x3]  ;;  %v17_v34 = vld [vmem:[%s856_s0] sm:$0xff] }
   0xc   :  { %448 = vmatpush.msra.mxu1 %v62_v7  ;;  %449 = vmatpush.msra.mxu2 %v62_v7  ;;  %v98_v32 = vld [vmem:[%s855_s1 + $0x170] sm:$0xff]  ;;  %v97_v35 = vld [vmem:[%s855_s1 + $0x168] sm:$0xff]  ;;  %v123_v36 = vld [vmem:[%s855_s1 + $0x238] sm:$0xff] }
   0xd   :  { %151 = vmatpush.msra.mxu0 %v62_v7  ;;  %264 = vmatpush.msra.mxu3 %v111_v12  ;;  %v82_v33 = vld [vmem:[%s855_s1 + $0xf0] sm:$0xff]  ;;  %v81_v37 = vld [vmem:[%s855_s1 + $0xe8] sm:$0xff]  ;;  %v103_v38 = vld [vmem:[%s855_s1 + $0x198] sm:$0xff] }
   0xe   :  { %450 = vmatpush.msra.mxu1 %v61_v9  ;;  %451 = vmatpush.msra.mxu2 %v61_v9  ;;  %v96_v39 = vld [vmem:[%s855_s1 + $0x160] sm:$0xff]  ;;  %v122_v40 = vld [vmem:[%s855_s1 + $0x230] sm:$0xff]  ;;  %v32_v43 = vld [vmem:[%s856_s0 + $0x78] sm:$0xff] }
   0xf   :  { %152 = vmatpush.msra.mxu0 %v61_v9  ;;  %265 = vmatpush.msra.mxu3 %v110_v14  ;;  %v80_v41 = vld [vmem:[%s855_s1 + $0xe0] sm:$0xff]  ;;  %v102_v42 = vld [vmem:[%s855_s1 + $0x190] sm:$0xff]  ;;  %v95_v44 = vld [vmem:[%s855_s1 + $0x158] sm:$0xff] }
  0x10   :  { %452 = vmatpush.msra.mxu1 %v60_v11  ;;  %453 = vmatpush.msra.mxu2 %v60_v11  ;;  %v79_v45 = vld [vmem:[%s855_s1 + $0xd8] sm:$0xff]  ;;  %v121_v46 = vld [vmem:[%s855_s1 + $0x228] sm:$0xff]  ;;  %v94_v47 = vld [vmem:[%s855_s1 + $0x150] sm:$0xff] }
  0x11   :  { %153 = vmatpush.msra.mxu0 %v60_v11  ;;  %266 = vmatpush.msra.mxu3 %v109_v16  ;;  %v101_v48 = vld [vmem:[%s855_s1 + $0x188] sm:$0xff]  ;;  %v78_v49 = vld [vmem:[%s855_s1 + $0xd0] sm:$0xff]  ;;  %v120_v50 = vld [vmem:[%s855_s1 + $0x220] sm:$0xff] }
  0x12   :  { %454 = vmatpush.msra.mxu1 %v59_v13  ;;  %455 = vmatpush.msra.mxu2 %v59_v13  ;;  %v93_v51 = vld [vmem:[%s855_s1 + $0x148] sm:$0xff]  ;;  %v100_v52 = vld [vmem:[%s855_s1 + $0x180] sm:$0xff]  ;;  %v20_v56 = vld [vmem:[%s856_s0 + $0x18] sm:$0xff] }
  0x13   :  { %154 = vmatpush.msra.mxu0 %v59_v13  ;;  %267 = vmatpush.msra.mxu3 %v108_v18  ;;  %v77_v53 = vld [vmem:[%s855_s1 + $0xc8] sm:$0xff]  ;;  %v92_v55 = vld [vmem:[%s855_s1 + $0x140] sm:$0xff]  ;;  %v119_v58 = vld [vmem:[%s855_s1 + $0x218] sm:$0xff] }
  0x14   :  { %456 = vmatpush.msra.mxu1 %v58_v15  ;;  %457 = vmatpush.msra.mxu2 %v58_v15  ;;  %v22_v54 = vld [vmem:[%s856_s0 + $0x28] sm:$0xff]  ;;  %v76_v57 = vld [vmem:[%s855_s1 + $0xc0] sm:$0xff]  ;;  %v91_v60 = vld [vmem:[%s855_s1 + $0x138] sm:$0xff] }
  0x15   :  { %155 = vmatpush.msra.mxu0 %v58_v15  ;;  %268 = vmatpush.msra.mxu3 %v107_v20  ;;  %v37_v59 = vld [vmem:[%s856_s0 + $0xa0] sm:$0xff]  ;;  %v75_v61 = vld [vmem:[%s855_s1 + $0xb8] sm:$0xff]  ;;  %v118_v62 = vld [vmem:[%s855_s1 + $0x210] sm:$0xff] }
  0x16   :  { %458 = vmatpush.msra.mxu1 %v57_v17  ;;  %459 = vmatpush.msra.mxu2 %v57_v17  ;;  %v90_v63 = vld [vmem:[%s855_s1 + $0x130] sm:$0xff]  ;;  %v117_v1 = vld [vmem:[%s855_s1 + $0x208] sm:$0xff]  ;;  %v116_v4 = vld [vmem:[%s855_s1 + $0x200] sm:$0xff] }
  0x17   :  { %156 = vmatpush.msra.mxu0 %v57_v17  ;;  %269 = vmatpush.msra.mxu3 %v106_v22  ;;  %v74_v0 = vld [vmem:[%s855_s1 + $0xb0] sm:$0xff]  ;;  %v89_v2 = vld [vmem:[%s855_s1 + $0x128] sm:$0xff]  ;;  %v88_v5 = vld [vmem:[%s855_s1 + $0x120] sm:$0xff] }
  0x18   :  { %460 = vmatpush.msra.mxu1 %v56_v19  ;;  %461 = vmatpush.msra.mxu2 %v56_v19  ;;  %v73_v3 = vld [vmem:[%s855_s1 + $0xa8] sm:$0xff]  ;;  %v25_v6 = vld [vmem:[%s856_s0 + $0x40] sm:$0xff]  ;;  %v87_v10 = vld [vmem:[%s855_s1 + $0x118] sm:$0xff] }
  0x19   :  { %157 = vmatpush.msra.mxu0 %v56_v19  ;;  %270 = vmatpush.msra.mxu3 %v105_v24  ;;  %v72_v7 = vld [vmem:[%s855_s1 + $0xa0] sm:$0xff]  ;;  %v42_v9 = vld [vmem:[%s856_s0 + $0xc8] sm:$0xff]  ;;  %v71_v11 = vld [vmem:[%s855_s1 + $0x98] sm:$0xff] }
  0x1a   :  { %462 = vmatpush.msra.mxu1 %v55_v21  ;;  %463 = vmatpush.msra.mxu2 %v55_v21  ;;  %v21_v8 = vld [vmem:[%s856_s0 + $0x20] sm:$0xff]  ;;  %v86_v12 = vld [vmem:[%s855_s1 + $0x110] sm:$0xff]  ;;  %v85_v14 = vld [vmem:[%s855_s1 + $0x108] sm:$0xff] }
  0x1b   :  { %158 = vmatpush.msra.mxu0 %v55_v21  ;;  %271 = vmatpush.msra.mxu3 %v104_v26  ;;  %v70_v13 = vld [vmem:[%s855_s1 + $0x90] sm:$0xff]  ;;  %v69_v15 = vld [vmem:[%s855_s1 + $0x88] sm:$0xff]  ;;  %v84_v16 = vld [vmem:[%s855_s1 + $0x100] sm:$0xff] }
  0x1c   :  { %464 = vmatpush.msra.mxu1 %v54_v23  ;;  %465 = vmatpush.msra.mxu2 %v54_v23  ;;  %v30_v17 = vld [vmem:[%s856_s0 + $0x68] sm:$0xff]  ;;  %v68_v18 = vld [vmem:[%s855_s1 + $0x80] sm:$0xff]  ;;  %v19_v19 = vld [vmem:[%s856_s0 + $0x10] sm:$0xff] }
  0x1d   :  { %159 = vmatpush.msra.mxu0 %v54_v23  ;;  %272 = vmatpush.msra.mxu3 %v103_v38  ;;  %v18_v20 = vld [vmem:[%s856_s0 + $0x8] sm:$0xff]  ;;  %v35_v22 = vld [vmem:[%s856_s0 + $0x90] sm:$0xff]  ;;  %v24_v23 = vld [vmem:[%s856_s0 + $0x38] sm:$0xff] }
  0x1e   :  { %466 = vmatpush.msra.mxu1 %v53_v25  ;;  %467 = vmatpush.msra.mxu2 %v53_v25  ;;  %v26_v21 = vld [vmem:[%s856_s0 + $0x48] sm:$0xff]  ;;  %v23_v24 = vld [vmem:[%s856_s0 + $0x30] sm:$0xff]  ;;  %v40_v26 = vld [vmem:[%s856_s0 + $0xb8] sm:$0xff] }
  0x1f   :  { %160 = vmatpush.msra.mxu0 %v53_v25  ;;  %273 = vmatpush.msra.mxu3 %v102_v42  ;;  %v31_v25 = vld [vmem:[%s856_s0 + $0x70] sm:$0xff]  ;;  %v44_v38 = vld [vmem:[%s856_s0 + $0xd8] sm:$0xff] }
  0x20   :  { %468 = vmatpush.msra.mxu1 %v52_v27  ;;  %469 = vmatpush.msra.mxu2 %v52_v27  ;;  %v48_v42 = vld [vmem:[%s856_s0 + $0xf8] sm:$0x3] }
  0x21   :  { %168 = vmatmul.f32.vlgmr.msra.gmra.mxu1 %v27_v28  ;;  %180 = vmatmul.f32.vlgmr.msra.gmra.mxu2 %v47_v31  ;;  %v28_v28 = vld [vmem:[%s856_s0 + $0x58] sm:$0xff]  ;;  %v34_v31 = vld [vmem:[%s856_s0 + $0x88] sm:$0xff] }
  0x22   :  { %222 = vmatpush.msrb.mxu2 %v99_v29  ;;  %184 = vmatpush.msrb.mxu1 %v83_v30  ;;  %v36_v29 = vld [vmem:[%s856_s0 + $0x98] sm:$0xff]  ;;  %v45_v30 = vld [vmem:[%s856_s0 + $0xe0] sm:$0xff] }
  0x23   :  { %161 = vmatpush.msra.mxu0 %v52_v27  ;;  %274 = vmatpush.msra.mxu3 %v101_v48  ;;  %v29_v27 = vld [vmem:[%s856_s0 + $0x60] sm:$0xff] }
  0x24   :  { %223 = vmatpush.msrb.mxu2 %v98_v32  ;;  %185 = vmatpush.msrb.mxu1 %v82_v33  ;;  %v33_v32 = vld [vmem:[%s856_s0 + $0x80] sm:$0xff] }
  0x25   :  { %162 = vmatmul.f32.vlgmr.msra.gmra.mxu0 %v17_v34  ;;  %275 = vmatpush.msra.mxu3 %v100_v52  ;;  %v41_v33 = vld [vmem:[%s856_s0 + $0xc0] sm:$0xff]  ;;  %v50_v34 = vld [vmem:[%s856_s0 + $0x108] sm:$0x3] }
  0x26   :  { %224 = vmatpush.msrb.mxu2 %v97_v35  ;;  %306 = vmatpush.msrb.mxu0 %v123_v36  ;;  %v39_v35 = vld [vmem:[%s856_s0 + $0xb0] sm:$0xff]  ;;  %v38_v36 = vld [vmem:[%s856_s0 + $0xa8] sm:$0xff] }
  0x27   :  { %186 = vmatpush.msrb.mxu1 %v81_v37  ;;  %276 = vmatmul.f32.vlgmr.msra.gmra.mxu3 %v20_v56  ;;  %v46_v37 = vld [vmem:[%s856_s0 + $0xe8] sm:$0xff] }
  0x28   :  { %225 = vmatpush.msrb.mxu2 %v96_v39  ;;  %307 = vmatpush.msrb.mxu0 %v122_v40  ;;  %v43_v39 = vld [vmem:[%s856_s0 + $0xd0] sm:$0xff] }
  0x29   :  { %187 = vmatpush.msrb.mxu1 %v80_v41  ;;  %v51_v40 = vld [vmem:[%s856_s0 + $0x110] sm:$0x3]  ;;  %v49_v41 = vld [vmem:[%s856_s0 + $0x100] sm:$0x3] }
  0x2a   :  { %171 = vmatmul.f32.gmra.mxu1 %v32_v43  ;;  %226 = vmatpush.msrb.mxu2 %v95_v44 }
  0x2b   :  { %188 = vmatpush.msrb.mxu1 %v79_v45  ;;  %308 = vmatpush.msrb.mxu0 %v121_v46 }
  0x2c   :  { %227 = vmatpush.msrb.mxu2 %v94_v47 }
  0x2d   :  { %189 = vmatpush.msrb.mxu1 %v78_v49  ;;  %309 = vmatpush.msrb.mxu0 %v120_v50 }
  0x2e   :  { %228 = vmatpush.msrb.mxu2 %v93_v51  ;;  %165 = vmatmul.f32.gmra.mxu0 %v22_v54 }
  0x2f   :  { %190 = vmatpush.msrb.mxu1 %v77_v53  ;;  %310 = vmatpush.msrb.mxu0 %v119_v58 }
  0x30   :  { %229 = vmatpush.msrb.mxu2 %v92_v55  ;;  %279 = vmatmul.f32.gmra.mxu3 %v25_v6 }
  0x31   :  { %191 = vmatpush.msrb.mxu1 %v76_v57  ;;  %311 = vmatpush.msrb.mxu0 %v118_v62 }
  0x32   :  { %174 = vmatmul.f32.gmra.mxu1 %v37_v59  ;;  %230 = vmatpush.msrb.mxu2 %v91_v60 }
  0x33   :  { %192 = vmatpush.msrb.mxu1 %v75_v61  ;;  %312 = vmatpush.msrb.mxu0 %v117_v1 }
  0x34   :  { %231 = vmatpush.msrb.mxu2 %v90_v63 }
  0x35   :  { %193 = vmatpush.msrb.mxu1 %v74_v0  ;;  %313 = vmatpush.msrb.mxu0 %v116_v4 }
  0x36   :  { %232 = vmatpush.msrb.mxu2 %v89_v2  ;;  %431 = vmatmul.msk.f32.vlgmr.msrb.gmra.mxu0 %vm124_vm0, %v21_v8 }
  0x37   :  { %194 = vmatpush.msrb.mxu1 %v73_v3 }
  0x38   :  { %233 = vmatpush.msrb.mxu2 %v88_v5  ;;  %282 = vmatmul.f32.gmra.mxu3 %v30_v17 }
  0x39   :  { %195 = vmatpush.msrb.mxu1 %v72_v7 }
  0x3a   :  { %177 = vmatmul.f32.gmra.mxu1 %v42_v9  ;;  %234 = vmatpush.msrb.mxu2 %v87_v10 }
  0x3b   :  { %196 = vmatpush.msrb.mxu1 %v71_v11 }
  0x3c   :  { %235 = vmatpush.msrb.mxu2 %v86_v12 }
  0x3d   :  { %197 = vmatpush.msrb.mxu1 %v70_v13 }
  0x3e   :  { %236 = vmatpush.msrb.mxu2 %v85_v14  ;;  %432 = vmatmul.msk.f32.gmra.mxu0 %vm124_vm0, %v26_v21 }
  0x3f   :  { %198 = vmatpush.msrb.mxu1 %v69_v15 }
  0x40   :  { %237 = vmatpush.msrb.mxu2 %v84_v16  ;;  %285 = vmatmul.f32.gmra.mxu3 %v35_v22 }
  0x41   :  { %199 = vmatpush.msrb.mxu1 %v68_v18  ;;  %238 = vmatmul.f32.vlgmr.msrb.gmra.mxu2 %v19_v19 }
  0x42   :  { %200 = vmatmul.f32.vlgmr.msrb.gmra.mxu1 %v18_v20 }
  0x46   :  { %433 = vmatmul.msk.f32.gmra.mxu0 %vm124_vm0, %v31_v25 }
  0x48   :  { %288 = vmatmul.f32.gmra.mxu3 %v40_v26 }
  0x49   :  { %241 = vmatmul.f32.gmra.mxu2 %v24_v23 }
  0x4a   :  { %203 = vmatmul.f32.gmra.mxu1 %v23_v24 }
  0x4e   :  { %434 = vmatmul.msk.f32.gmra.mxu0 %vm124_vm0, %v36_v29 }
  0x50   :  { %291 = vmatmul.f32.gmra.mxu3 %v45_v30 }
  0x51   :  { %244 = vmatmul.f32.gmra.mxu2 %v29_v27 }
  0x52   :  { %206 = vmatmul.f32.gmra.mxu1 %v28_v28 }
  0x56   :  { %435 = vmatmul.msk.f32.gmra.mxu0 %vm124_vm0, %v41_v33 }
  0x58   :  { %294 = vmatmul.f32.gmra.mxu3 %v50_v34 }
  0x59   :  { %247 = vmatmul.f32.gmra.mxu2 %v34_v31 }
  0x5a   :  { %209 = vmatmul.f32.gmra.mxu1 %v33_v32 }
  0x5e   :  { %436 = vmatmul.msk.f32.gmra.mxu0 %vm124_vm0, %v46_v37 }
  0x61   :  { %250 = vmatmul.f32.gmra.mxu2 %v39_v35 }
  0x62   :  { %212 = vmatmul.f32.gmra.mxu1 %v38_v36 }
  0x66   :  { %437 = vmatmul.msk.f32.gmra.mxu0 %vm124_vm0, %v51_v40 }
  0x69   :  { %253 = vmatmul.f32.gmra.mxu2 %v44_v38 }
  0x6a   :  { %215 = vmatmul.f32.gmra.mxu1 %v43_v39 }
  0x71   :  { %256 = vmatmul.f32.gmra.mxu2 %v49_v41 }
  0x72   :  { %218 = vmatmul.f32.gmra.mxu1 %v48_v42 }
  0x9e   :  { %v169_v43 = vpop.f32.mrf.mxu1 }
  0xa2   :  { %v163_v44 = vpop.f32.mrf.mxu0 }
  0xa4   :  { %v181_v50 = vpop.f32.mrf.mxu2 }
  0xa7   :  { %v172_v45 = vpop.f32.mrf.mxu1 }
  0xaa   :  { %v277_v49 = vpop.f32.mrf.mxu3 }
  0xab   :  { %v166_v47 = vpop.f32.mrf.mxu0 }
  0xaf   :  { %v175_v46 = vpop.f32.mrf.mxu1 }
  0xb3   :  { %v315_v51 = vpop.f32.mrf.mxu0  ;;  %v280_v53 = vpop.f32.mrf.mxu3 }
  0xb7   :  { %v178_v48 = vpop.f32.mrf.mxu1 }
  0xbb   :  { %v318_v55 = vpop.f32.mrf.mxu0  ;;  %v283_v58 = vpop.f32.mrf.mxu3 }
  0xbf   :  { %v201_v52 = vpop.f32.mrf.mxu1 }
  0xc0   :  { %v202_v62 = vadd.f32 %v201_v52, %v163_v44 }
  0xc3   :  { %v321_v59 = vpop.f32.mrf.mxu0  ;;  %v286_v4 = vpop.f32.mrf.mxu3 }
  0xc4   :  { %v239_v54 = vpop.f32.mrf.mxu2 }
  0xc5   :  { %v240_v2 = vadd.f32 %v239_v54, %v202_v62 }
  0xc7   :  { %v204_v56 = vpop.f32.mrf.mxu1  ;;  %v278_v8 = vadd.f32 %v277_v49, %v240_v2 }
  0xc8   :  { %v205_v61 = vadd.f32 %v204_v56, %v166_v47 }
  0xc9   :  { %v316_v13 = vadd.f32 %v315_v51, %v278_v8 }
  0xcb   :  { %v324_v7 = vpop.f32.mrf.mxu0  ;;  %v289_v19 = vpop.f32.mrf.mxu3 }
  0xcc   :  { %v242_v57 = vpop.f32.mrf.mxu2 }
  0xcd   :  { %v243_v63 = vadd.f32 %v242_v57, %v205_v61 }
  0xcf   :  { %v207_v60 = vpop.f32.mrf.mxu1  ;;  %v281_v5 = vadd.f32 %v280_v53, %v243_v63 }
  0xd0   :  { %v208_v0 = vadd.f32 %v207_v60, %v169_v43 }
  0xd1   :  { %v319_v10 = vadd.f32 %v318_v55, %v281_v5 }
  0xd3   :  { %v336_v16 = vadd.f32 %v319_v10, %v316_v13  ;;  %v327_v22 = vpop.f32.mrf.mxu0  ;;  %v292_v27 = vpop.f32.mrf.mxu3 }
  0xd4   :  { %v245_v1 = vpop.f32.mrf.mxu2 }
  0xd5   :  { %v246_v3 = vadd.f32 %v245_v1, %v208_v0 }
  0xd7   :  { %v210_v6 = vpop.f32.mrf.mxu1  ;;  %v284_v9 = vadd.f32 %v283_v58, %v246_v3 }
  0xd8   :  { %v211_v11 = vadd.f32 %v210_v6, %v172_v45 }
  0xd9   :  { %v322_v14 = vadd.f32 %v321_v59, %v284_v9 }
  0xdb   :  { %v337_v20 = vadd.f32 %v336_v16, %v322_v14  ;;  %v330_v31 = vpop.f32.mrf.mxu0  ;;  %v295_v39 = vpop.f32.mrf.mxu3 }
  0xdc   :  { %v248_v12 = vpop.f32.mrf.mxu2 }
  0xdd   :  { %v249_v15 = vadd.f32 %v248_v12, %v211_v11 }
  0xdf   :  { %v287_v17 = vadd.f32 %v286_v4, %v249_v15  ;;  %v213_v18 = vpop.f32.mrf.mxu1 }
  0xe0   :  { %v214_v26 = vadd.f32 %v213_v18, %v175_v46 }
  0xe1   :  { %v325_v21 = vadd.f32 %v324_v7, %v287_v17 }
  0xe3   :  { %v338_v23 = vadd.f32 %v337_v20, %v325_v21  ;;  %v333_v42 = vpop.f32.mrf.mxu0 }
  0xe4   :  { %v251_v24 = vpop.f32.mrf.mxu2 }
  0xe5   :  { %v252_v28 = vadd.f32 %v251_v24, %v214_v26  ;;  %v379_v26 = vld [vmem:[%s858_s2] sm:$0x1] }
  0xe7   :  { %v216_v25 = vpop.f32.mrf.mxu1  ;;  %v290_v33 = vadd.f32 %v289_v19, %v252_v28 }
  0xe8   :  { %v217_v29 = vadd.f32 %v216_v25, %v178_v48 }
  0xe9   :  { %v328_v37 = vadd.f32 %v327_v22, %v290_v33 }
  0xeb   :  { %v339_v44 = vadd.f32 %v338_v23, %v328_v37 }
  0xec   :  { %v254_v30 = vpop.f32.mrf.mxu2 }
  0xed   :  { %v255_v32 = vadd.f32 %v254_v30, %v217_v29 }
  0xef   :  { %v219_v34 = vpop.f32.mrf.mxu1  ;;  %v293_v35 = vadd.f32 %v292_v27, %v255_v32 }
  0xf0   :  { %v220_v36 = vadd.f32 %v219_v34, %v181_v50 }
  0xf1   :  { %v331_v41 = vadd.f32 %v330_v31, %v293_v35  ;;  %v470_v31 = vld [vmem:[%s857_s3] ss:$0 sm:$0xff] }
  0xf3   :  { %v340_v46 = vadd.f32 %v339_v44, %v331_v41 }
  0xf4   :  { %v257_v38 = vpop.f32.mrf.mxu2 }
  0xf5   :  { %v258_v40 = vadd.f32 %v257_v38, %v220_v36 }
  0xf7   :  { %v296_v43 = vadd.f32 %v295_v39, %v258_v40 }
  0xf9   :  { %v334_v45 = vadd.f32 %v333_v42, %v296_v43 }
  0xfb   :  { %v342_v47 = vsel %vm341_vm1, %v334_v45, 0.0 }
  0xfc   :  { %v343_v48 = vadd.f32 %v342_v47, %v340_v46 }
  0xfe   :  { %v344_v49 = vrot.slane %v343_v48, 4 }
 0x100   :  { %v345_v51 = vadd.f32 %v344_v49, %v343_v48 }
 0x102   :  { %v346_v52 = vrot.slane %v345_v51, 2 }
 0x104   :  { %v347_v53 = vadd.f32 %v346_v52, %v345_v51 }
 0x106   :  { %v348_v54 = vrot.slane %v347_v53, 1 }
 0x108   :  { %v349_v50 = vadd.f32 %v348_v54, %v347_v53 }
 0x10a   :  { %v350_v55 = vmul.f32 0.02, %v349_v50 }
 0x10c   :  { %v351_v56 = vsub.f32 %v316_v13, %v350_v55  ;;  %v352_v57 = vsub.f32 %v319_v10, %v350_v55  ;;  %v353_v58 = vsub.f32 %v322_v14, %v350_v55  ;;  %v354_v59 = vsub.f32 %v325_v21, %v350_v55 }
 0x10d   :  { %v355_v62 = vsub.f32 %v328_v37, %v350_v55  ;;  %v357_v1 = vsub.f32 %v334_v45, %v350_v55  ;;  %v356_v2 = vsub.f32 %v331_v41, %v350_v55 }
 0x10e   :  { %v358_v60 = vmul.f32 %v351_v56, %v351_v56  ;;  %v359_v61 = vmul.f32 %v352_v57, %v352_v57  ;;  %v360_v63 = vmul.f32 %v353_v58, %v353_v58  ;;  %v361_v3 = vmul.f32 %v354_v59, %v354_v59 }
 0x10f   :  { %v362_v5 = vmul.f32 %v355_v62, %v355_v62  ;;  %v364_v7 = vmul.f32 %v357_v1, %v357_v1  ;;  %v363_v8 = vmul.f32 %v356_v2, %v356_v2 }
 0x110   :  { %v365_v0 = vadd.f32 %v359_v61, %v358_v60 }
 0x111   :  { %v370_v12 = vsel %vm341_vm1, %v364_v7, 0.0 }
 0x112   :  { %v366_v4 = vadd.f32 %v365_v0, %v360_v63 }
 0x114   :  { %v367_v6 = vadd.f32 %v366_v4, %v361_v3 }
 0x116   :  { %v368_v9 = vadd.f32 %v367_v6, %v362_v5 }
 0x118   :  { %v369_v11 = vadd.f32 %v368_v9, %v363_v8 }
 0x11a   :  { %v371_v10 = vadd.f32 %v370_v12, %v369_v11 }
 0x11c   :  { %v372_v13 = vrot.slane %v371_v10, 4 }
 0x11e   :  { %v373_v14 = vadd.f32 %v372_v13, %v371_v10 }
 0x120   :  { %v374_v15 = vrot.slane %v373_v14, 2 }
 0x122   :  { %v375_v16 = vadd.f32 %v374_v15, %v373_v14 }
 0x124   :  { %v376_v17 = vrot.slane %v375_v16, 1 }
 0x126   :  { %v377_v18 = vadd.f32 %v376_v17, %v375_v16 }
 0x128   :  { %v378_v19 = vmul.f32 0.02, %v377_v18 }
 0x12a   :  { %v380_v20 = vadd.f32 1e-05, %v378_v19 }
 0x12c   :  { %471 = vrsqrt.f32 %v380_v20  ;;  %vm387_vm3 = vweird.f32 %v380_v20 }
 0x132   :  { %v472_v21 = vpop.eup %471 }
 0x133   :  { %v382_v22 = vmul.f32 %v472_v21, %v380_v20  ;;  %vm388_vm2 = vweird.f32 %v472_v21 }
 0x134   :  { %vm389_vm4 = vmor %vm387_vm3, %vm388_vm2 }
 0x135   :  { %v383_v23 = vmul.f32 %v472_v21, %v382_v22 }
 0x137   :  { %v384_v24 = vmul.f32 0.5, %v383_v23 }
 0x139   :  { %v385_v25 = vsub.f32 1.5, %v384_v24 }
 0x13b   :  { %v386_v27 = vmul.f32 %v472_v21, %v385_v25 }
 0x13d   :  { %v390_v28 = vsel %vm389_vm4, %v472_v21, %v386_v27 }
 0x13e   :  { %v391_v29 = vmul.f32 %v390_v28, %v379_v26 }
 0x140   :  { %v393_v30 = vperm.slane %v391_v29, 0 }
 0x142   :  { %v395_v32 = vmul.f32 %v393_v30, %v351_v56  ;;  %v396_v33 = vmul.f32 %v393_v30, %v352_v57  ;;  %v397_v34 = vmul.f32 %v393_v30, %v353_v58  ;;  %v398_v35 = vmul.f32 %v393_v30, %v354_v59 }
 0x143   :  { %v399_v36 = vmul.f32 %v393_v30, %v355_v62  ;;  %v400_v37 = vmul.f32 %v393_v30, %v356_v2  ;;  %v401_v38 = vmul.f32 %v393_v30, %v357_v1 }
 0x144   :  { %v406_v39 = vadd.f32 %v470_v31, %v395_v32  ;;  %v407_v40 = vadd.f32 %v470_v31, %v396_v33  ;;  %v408_v41 = vadd.f32 %v470_v31, %v397_v34  ;;  %v409_v42 = vadd.f32 %v470_v31, %v398_v35 }
 0x145   :  { %v410_v43 = vadd.f32 %v470_v31, %v399_v36  ;;  %v411_v44 = vadd.f32 %v470_v31, %v400_v37  ;;  %v412_v45 = vadd.f32 %v470_v31, %v401_v38 }
 0x146   :  { %v413_v46 = vmax.f32 %v406_v39, 0.0  ;;  %v414_v47 = vmax.f32 %v407_v40, 0.0  ;;  %v415_v48 = vmax.f32 %v408_v41, 0.0  ;;  %v416_v49 = vmax.f32 %v409_v42, 0.0 }
 0x147   :  { %v417_v51 = vmax.f32 %v410_v43, 0.0  ;;  %v418_v52 = vmax.f32 %v411_v44, 0.0  ;;  %v419_v53 = vmax.f32 %v412_v45, 0.0 }
 0x148   :  { %420 = vst [vmem:[%s859_s4] sm:$0xff] %v413_v46 }
 0x149   :  { %421 = vst [vmem:[%s859_s4 + $0x8] sm:$0xff] %v414_v47 }
 0x14a   :  { %422 = vst [vmem:[%s859_s4 + $0x10] sm:$0xff] %v415_v48 }
 0x14b   :  { %423 = vst [vmem:[%s859_s4 + $0x18] sm:$0xff] %v416_v49 }
 0x14c   :  { %424 = vst [vmem:[%s859_s4 + $0x20] sm:$0xff] %v417_v51 }
 0x14d   :  { %425 = vst [vmem:[%s859_s4 + $0x28] sm:$0xff] %v418_v52 }
 0x14e   :  { %426 = vst [vmem:[%s859_s4 + $0x30] sm:$0x3] %v419_v53 }

</bundles_post_ra>
